<compile_context>
chip_gen: v6e
topology: v6e:2x2x1
jax: 0.10.0
libtpu: 0.0.40
codegen_flags: <defaults>
</compile_context>

<pallas_src>
import functools

import jax
import jax.numpy as jnp
from jax.experimental import pallas as pl
from jax.experimental.pallas import tpu as pltpu

D_IN = 768
D_HID = 1024
D_OUT = 768

# Default batch tile: multiple of 256 (fills the 256-wide MXU on v6e/v7x),
# sized so per-step VMEM (bf16 x tile x2 buffers, f32 hidden, f32 out tile x2
# buffers, resident bf16 weights) stays around ~10 MiB.
DEFAULT_BLOCK_B = 512


def mlp_kernel(x_ref, w1_ref, b1_ref, w2_ref, b2_ref, o_ref, *, apply_relu):
    # Layer 1: bf16 x bf16 -> f32 accumulation on the MXU, bias add in f32.
    h = jnp.dot(x_ref[...], w1_ref[...], preferred_element_type=jnp.float32)
    h = h + b1_ref[...]
    if apply_relu:
        h = jnp.maximum(h, 0.0)
    # TODO(synk): Dropout (need_Dropout=True, training mode) would need
    # pltpu.prng_seed / pltpu.prng_random_bits masking; omitted since the
    # module default is need_Dropout=False (and eval-mode dropout is identity).
    # Layer 2: downcast activations to bf16 (MXU-native), accumulate in f32,
    # bias add in f32, then cast to the output dtype.
    out = jnp.dot(h.astype(jnp.bfloat16), w2_ref[...],
                  preferred_element_type=jnp.float32)
    out = out + b2_ref[...]
    o_ref[...] = out.astype(o_ref.dtype)


def simple_mlp(x, w1, b1, w2, b2, *, need_relu=False, block_b=None):
    """x: [B, 768] float32 -> [B, 768] float32.

    w1: [768, 1024], b1: [1024], w2: [1024, 768], b2: [768] (float32; cast to
    bf16/f32 as appropriate inside).
    """
    B, d_in = x.shape
    assert d_in == D_IN

    if block_b is None:
        block_b = min(DEFAULT_BLOCK_B, B)
    assert B % block_b == 0, f"batch {B} must be divisible by block_b {block_b}"
    # bf16 x tile: sublane dim should be a multiple of 16 (or the full batch),
    # otherwise lowering falls back to masked partial stores / relayouts.
    assert block_b % 16 == 0 or block_b == B, (
        f"block_b={block_b} must be a multiple of 16 (bf16 sublane packing)")

    # Cast inputs/weights to bf16 at the boundary; keep biases (and all
    # accumulation inside the kernel) in f32.
    x_bf = x.astype(jnp.bfloat16)
    w1_bf = w1.astype(jnp.bfloat16)
    w2_bf = w2.astype(jnp.bfloat16)
    b1_2d = b1.reshape(1, D_HID).astype(jnp.float32)
    b2_2d = b2.reshape(1, D_OUT).astype(jnp.float32)

    kernel = functools.partial(mlp_kernel, apply_relu=need_relu)

    # Grid-invariant weights/biases: single-buffered (no double-buffer needed).
    resident = pl.Buffered(1)

    grid = (B // block_b,)
    return pl.pallas_call(
        kernel,
        out_shape=jax.ShapeDtypeStruct((B, D_OUT), x.dtype),
        grid_spec=pltpu.PrefetchScalarGridSpec(
            num_scalar_prefetch=0,
            grid=grid,
            in_specs=[
                pl.BlockSpec((block_b, D_IN), lambda i: (i, 0)),   # x tile (pipelined)
                pl.BlockSpec((D_IN, D_HID), lambda i: (0, 0),
                             pipeline_mode=resident),              # W1 (resident)
                pl.BlockSpec((1, D_HID), lambda i: (0, 0),
                             pipeline_mode=resident),              # b1
                pl.BlockSpec((D_HID, D_OUT), lambda i: (0, 0),
                             pipeline_mode=resident),              # W2 (resident)
                pl.BlockSpec((1, D_OUT), lambda i: (0, 0),
                             pipeline_mode=resident),              # b2
            ],
            out_specs=pl.BlockSpec((block_b, D_OUT), lambda i: (i, 0)),
        ),
        compiler_params=pltpu.CompilerParams(
            dimension_semantics=("parallel",),
            # Well above what one step needs (~10 MiB), comfortably under the
            # v7x 64 MiB physical VMEM and above the v5e/v6e default scoped
            # limits so the compiler never shrinks buffers.
            vmem_limit_bytes=48 * 1024 * 1024,
        ),
    )(x_bf, w1_bf, b1_2d, w2_bf, b2_2d)


def init_params(key):
    """Deterministic init matching PyTorch nn.Linear default:
    U(-1/sqrt(fan_in), 1/sqrt(fan_in)) for both weight and bias."""
    k1, k2, k3, k4 = jax.random.split(key, 4)
    bound1 = 1.0 / jnp.sqrt(jnp.float32(D_IN))
    bound2 = 1.0 / jnp.sqrt(jnp.float32(D_HID))
    # Stored as [in, out] (transposed vs. PyTorch's [out, in]).
    w1 = jax.random.uniform(k1, (D_IN, D_HID), jnp.float32, -bound1, bound1)
    b1 = jax.random.uniform(k2, (D_HID,), jnp.float32, -bound1, bound1)
    w2 = jax.random.uniform(k3, (D_HID, D_OUT), jnp.float32, -bound2, bound2)
    b2 = jax.random.uniform(k4, (D_OUT,), jnp.float32, -bound2, bound2)
    return w1, b1, w2, b2


if __name__ == "__main__":
    key = jax.random.PRNGKey(0)
    k_x, k_p = jax.random.split(key)

    # Small test: B=512 with block_b=256 -> grid of 2 steps, which still
    # exercises the pipelined batch tiling while keeping the run fast.
    B = 512
    BLOCK_B = 256
    x = jax.random.normal(k_x, (B, D_IN), jnp.float32)
    w1, b1, w2, b2 = init_params(k_p)

    out = simple_mlp(x, w1, b1, w2, b2, need_relu=False, block_b=BLOCK_B)
    out = jax.block_until_ready(out)
    assert out.shape == (B, D_OUT)
    assert out.dtype == x.dtype

    # Reference with matching numerics (bf16 inputs/weights, f32 accumulation).
    x_bf = x.astype(jnp.bfloat16)
    h_ref = jnp.dot(x_bf, w1.astype(jnp.bfloat16),
                    preferred_element_type=jnp.float32) + b1
    ref = jnp.dot(h_ref.astype(jnp.bfloat16), w2.astype(jnp.bfloat16),
                  preferred_element_type=jnp.float32) + b2
    assert jnp.allclose(out, ref, atol=1e-2, rtol=1e-2)

    # Loose sanity check against the pure-f32 PyTorch-equivalent reference
    # (bf16 casts change numerics, so the tolerance is relaxed).
    ref_f32 = (x @ w1 + b1) @ w2 + b2
    assert jnp.allclose(out, ref_f32, atol=2e-1, rtol=2e-1)

    print("KERNEL_OK")
</pallas_src>

<mosaic_0001>
module attributes {stable_mosaic.version = 11 : i64} {
  func.func @mlp_kernel(%arg0: i32, %arg1: memref<256x768xbf16, #tpu.memory_space<vmem>>, %arg2: memref<768x1024xbf16, #tpu.memory_space<vmem>>, %arg3: memref<1x1024xf32, #tpu.memory_space<vmem>>, %arg4: memref<1024x768xbf16, #tpu.memory_space<vmem>>, %arg5: memref<1x768xf32, #tpu.memory_space<vmem>>, %arg6: memref<256x768xf32, #tpu.memory_space<vmem>>) attributes {dimension_semantics = [#tpu.dimension_semantics<parallel>], iteration_bounds = array<i64: 2>, scalar_prefetch = 0 : i64, scratch_operands = 0 : i64, tpu.core_type = #tpu.core_type<tc>, window_params = [{transform_indices = @transform_0, window_bounds = array<i64: 256, 768>}, {pipeline_mode = #tpu.pipeline_mode<synchronous>, transform_indices = @transform_1, window_bounds = array<i64: 768, 1024>}, {pipeline_mode = #tpu.pipeline_mode<synchronous>, transform_indices = @transform_2, window_bounds = array<i64: 1, 1024>}, {pipeline_mode = #tpu.pipeline_mode<synchronous>, transform_indices = @transform_3, window_bounds = array<i64: 1024, 768>}, {pipeline_mode = #tpu.pipeline_mode<synchronous>, transform_indices = @transform_4, window_bounds = array<i64: 1, 768>}, {transform_indices = @transform_5, window_bounds = array<i64: 256, 768>}]} {
    %c0 = arith.constant 0 : index
    %c0_0 = arith.constant 0 : index
    %0 = vector.load %arg1[%c0, %c0_0] : memref<256x768xbf16, #tpu.memory_space<vmem>>, vector<256x768xbf16>
    %c0_1 = arith.constant 0 : index
    %c0_2 = arith.constant 0 : index
    %1 = vector.load %arg2[%c0_1, %c0_2] : memref<768x1024xbf16, #tpu.memory_space<vmem>>, vector<768x1024xbf16>
    %cst = arith.constant dense<0.000000e+00> : vector<256x1024xf32>
    %2 = tpu.matmul %0, %1, %cst {dimension_numbers = #tpu.dot_dimension_numbers<[1], [0], [0], [1], [0, 0, 1, 1], [], []>} : vector<256x768xbf16>, vector<768x1024xbf16>, vector<256x1024xf32> -> vector<256x1024xf32>
    %c0_3 = arith.constant 0 : index
    %c0_4 = arith.constant 0 : index
    %3 = vector.load %arg3[%c0_3, %c0_4] : memref<1x1024xf32, #tpu.memory_space<vmem>>, vector<1x1024xf32>
    %4 = vector.broadcast %3 : vector<1x1024xf32> to vector<256x1024xf32>
    %5 = arith.addf %2, %4 : vector<256x1024xf32>
    %6 = arith.truncf %5 : vector<256x1024xf32> to vector<256x1024xbf16>
    %c0_5 = arith.constant 0 : index
    %c0_6 = arith.constant 0 : index
    %7 = vector.load %arg4[%c0_5, %c0_6] : memref<1024x768xbf16, #tpu.memory_space<vmem>>, vector<1024x768xbf16>
    %cst_7 = arith.constant dense<0.000000e+00> : vector<256x768xf32>
    %8 = tpu.matmul %6, %7, %cst_7 {dimension_numbers = #tpu.dot_dimension_numbers<[1], [0], [0], [1], [0, 0, 1, 1], [], []>} : vector<256x1024xbf16>, vector<1024x768xbf16>, vector<256x768xf32> -> vector<256x768xf32>
    %c0_8 = arith.constant 0 : index
    %c0_9 = arith.constant 0 : index
    %9 = vector.load %arg5[%c0_8, %c0_9] : memref<1x768xf32, #tpu.memory_space<vmem>>, vector<1x768xf32>
    %10 = vector.broadcast %9 : vector<1x768xf32> to vector<256x768xf32>
    %11 = arith.addf %8, %10 : vector<256x768xf32>
    %c0_10 = arith.constant 0 : index
    %c0_11 = arith.constant 0 : index
    %12 = vector.load %arg6[%c0_10, %c0_11] : memref<256x768xf32, #tpu.memory_space<vmem>>, vector<256x768xf32>
    tpu.vector_store %arg6[%c0_10, %c0_11], %11 {strides = array<i32>} : memref<256x768xf32, #tpu.memory_space<vmem>>, vector<256x768xf32>,
    return
  }
  func.func @transform_0(%arg0: i32) -> (i32, i32) {
    %c0_i32 = arith.constant 0 : i32
    %c0_i32_0 = arith.constant 0 : i32
    return %arg0, %c0_i32 : i32, i32
  }
  func.func @transform_1(%arg0: i32) -> (i32, i32) {
    %c0_i32 = arith.constant 0 : i32
    %c0_i32_0 = arith.constant 0 : i32
    %c0_i32_1 = arith.constant 0 : i32
    return %c0_i32, %c0_i32_0 : i32, i32
  }
  func.func @transform_2(%arg0: i32) -> (i32, i32) {
    %c0_i32 = arith.constant 0 : i32
    %c0_i32_0 = arith.constant 0 : i32
    %c0_i32_1 = arith.constant 0 : i32
    return %c0_i32, %c0_i32_0 : i32, i32
  }
  func.func @transform_3(%arg0: i32) -> (i32, i32) {
    %c0_i32 = arith.constant 0 : i32
    %c0_i32_0 = arith.constant 0 : i32
    %c0_i32_1 = arith.constant 0 : i32
    return %c0_i32, %c0_i32_0 : i32, i32
  }
  func.func @transform_4(%arg0: i32) -> (i32, i32) {
    %c0_i32 = arith.constant 0 : i32
    %c0_i32_0 = arith.constant 0 : i32
    %c0_i32_1 = arith.constant 0 : i32
    return %c0_i32, %c0_i32_0 : i32, i32
  }
  func.func @transform_5(%arg0: i32) -> (i32, i32) {
    %c0_i32 = arith.constant 0 : i32
    %c0_i32_0 = arith.constant 0 : i32
    return %arg0, %c0_i32 : i32, i32
  }
}

</mosaic_0001>

<bundles_post_ra>
// kernel: tpu_custom_call.1
= control target key start
LH: loop header
LB: loop body
LE: loop exit
PB: predicated region body
PF: predicated region fallthrough
CT: control target
= control target key end

     0   :  { %10 = vsyncpa [#allocation3], 0  ;;  %s16589_s0 = inlined_call_operand.hbm [shape: bf16[512,768], index: 0, kind: input, shape index: {}]   ;;  %s16590_s1 = inlined_call_operand.hbm [shape: bf16[768,1024], index: 1, kind: input, shape index: {}]   ;;  %s16591_s2 = inlined_call_operand.hbm [shape: f32[1,1024], index: 2, kind: input, shape index: {}]   ;;  %s16592_s3 = inlined_call_operand.hbm [shape: bf16[1024,768], index: 3, kind: input, shape index: {}]   ;;  %s16593_s4 = inlined_call_operand.hbm [shape: f32[1,768], index: 4, kind: input, shape index: {}]   ;;  %s16594_s5 = inlined_call_operand.hbm [shape: f32[512,768], index: 5, kind: output, shape index: {}]  }
   0x1   :  { %12 = vsyncpa [#allocation3 + $0x1], 0 }
   0x2   :  { %13 = vsyncpa [#allocation6], 0 }
   0x3   :  { %14 = vsyncpa [#allocation9], 0 }
   0x4   :  { %15 = vsyncpa [#allocation4], 0 }
   0x5   :  { %17 = vsyncpa [#allocation4 + $0x1], 0  ;;  %s12831_s18 = smov 0   ;;  %s12833_s19 = smov 0  }
   0x6   :  { %s12835_s20 = smov 0   ;;  %s12837_s21 = smov 0  }
   0x7 LB: > { %s12852_s22 = sadd.s32 4294967295, %s12787_s21   ;;  %s10636_s23 = sadd.s32 4294967294, %s12787_s21   ;;  %s12787_s21 = sphi %s12837_s21, %s17700_s21   ;;  %s12783_s20 = sphi %s12835_s20, %s17699_s20   ;;  %s12779_s19 = sphi %s12833_s19, %s17698_s19   ;;  %s12775_s18 = sphi %s12831_s18, %s17697_s18  }
   0x8   : > { %p43_p0 = scmp.ne.s32.totalorder %s12779_s19, %s12775_s18  ;;  %p16595_p1 = scmp.eq.s32.totalorder %s12852_s22, 0 }
   0x9   : > { %p157_p3 = scmp.eq.s32.totalorder %s10636_s23, 1  ;;  %p10637_p5 = scmp.ge.s32.totalorder %s12787_s21, 1 }
   0xa   : > { %p12861_p4 = por %p16595_p1, %p43_p0  ;;  %p164_p7 = scmp.lt.s32.totalorder %s12787_s21, 3 }
   0xb   : > { %p12866_p6 = por %p157_p3, %p43_p0  ;;  %s12789_s27 = smov [#allocation5]  }
   0xc   : > { %s16791_s24 = scalar_select %p12861_p4, 1, 0 }
   0xd   : > { %s16792_s25 = scalar_select %p12866_p6, 1, 0 }
   0xe   : > { %p12871_p8 = pnand %p10637_p5, %p164_p7  ;;  %s176_s28 = sshll.u32 %s12789_s27, 4  ;;  %s177_s28 = int_to_ptr.vmem [resolvable:$true] %s176_s28 }
   0xf   : > { %s12790_s30 = smov [#allocation8]   ;;  %s12594_s7 = scalar_lea.vmem %s177_s28, 49152 }
  0x10   : > { %s16793_s26 = scalar_select %p12871_p8, 1, 0 }
  0x11   : > { %p11545_p9 = pneg %p12871_p8  ;;  %s200_s6 = sshll.u32 %s12790_s30, 4  ;;  %s201_s6 = int_to_ptr.vmem [resolvable:$true] %s200_s6 }
  0x12   : > { %p12595_p13 = scmp.ne.s32.totalorder %s177_s28, %s12594_s7  ;;  %p12602_p5 = scmp.lt.s32.totalorder %s177_s28, %s177_s28 }
  0x13   : > { %p12880_p11 = pnand %p11545_p9, %p16595_p1  ;;  %p12603_p7 = scmp.lt.s32.totalorder %s12594_s7, %s12594_s7 }
  0x15   : > { %p12585_p12 = pneg %p12880_p11  ;;  %p12604_p10 = por %p12603_p7, %p12602_p5 }
  0x17   : > { %p12597_p0 = pnand %p12595_p13, %p12585_p12 }
  0x19   : > { %p12598_p3 = pneg %p12597_p0 }
  0x1b   : > { %p12605_p9 = pnand %p12604_p10, %p12598_p3 }
  0x1d   : > { %12608 = shalt.err (!%p12605_p9)
}
  0x1e   : > { %s12791_s8 = smov 512   ;;  %s12792_s9 = smov 32  }
  0x1f   : > { %11548 = dma.hbm_to_vmem [thread:$0]  (!%p12880_p11), %s16590_s1, 49152, %s177_s28, [#allocation6], %s12791_s8, %s12791_s8, %s12792_s9  }
  0x20   : > { %s12620_s12 = scalar_lea.vmem %s201_s6, 49152  ;;  %p12628_p2 = scmp.lt.s32.totalorder %s201_s6, %s201_s6 }
  0x21   : > { %p12621_p1 = scmp.ne.s32.totalorder %s201_s6, %s12620_s12  ;;  %p12629_p6 = scmp.lt.s32.totalorder %s12620_s12, %s12620_s12 }
  0x23   : > { %p12623_p13 = pnand %p12621_p1, %p12585_p12  ;;  %p12630_p5 = por %p12629_p6, %p12628_p2 }
  0x25   : > { %p12624_p0 = pneg %p12623_p13 }
  0x27   : > { %p12631_p10 = pnand %p12630_p5, %p12624_p0 }
  0x29   : > { %12634 = shalt.err (!%p12631_p10)
}
  0x2a   : > { %s16598_s13 = smov 384   ;;  %s12794_s14 = smov 24  }
  0x2b   : > { %11554 = dma.hbm_to_vmem [thread:$0]  (!%p12880_p11), %s16592_s3, 49152, %s201_s6, [#allocation9], %s16598_s13, %s16598_s13, %s12794_s14  }
  0x2c   : > { %s12795_s17 = smov [#allocation7]   ;;  %s12796_s27 = smov [#allocation10]  }
  0x2d   : > { %s190_s23 = sshll.u32 %s12795_s17, 4  ;;  %s214_s28 = sshll.u32 %s12796_s27, 4  ;;  %s191_s23 = int_to_ptr.vmem [resolvable:$true] %s190_s23  ;;  %s215_s28 = int_to_ptr.vmem [resolvable:$true] %s214_s28 }
  0x2e   : > { %s12646_s30 = scalar_lea.vmem %s191_s23, 128  ;;  %p12654_p3 = scmp.lt.s32.totalorder %s191_s23, %s191_s23 }
  0x2f   : > { %p12647_p1 = scmp.ne.s32.totalorder %s191_s23, %s12646_s30  ;;  %p12655_p7 = scmp.lt.s32.totalorder %s12646_s30, %s12646_s30 }
  0x31   : > { %p12649_p2 = pnand %p12647_p1, %p12585_p12  ;;  %p12656_p9 = por %p12655_p7, %p12654_p3 }
  0x33   : > { %p12650_p6 = pneg %p12649_p2 }
  0x35   : > { %p12657_p13 = pnand %p12656_p9, %p12650_p6 }
  0x37   : > { %12660 = shalt.err (!%p12657_p13)
}
  0x38   : > { %11551 = dma.hbm_to_vmem [thread:$0]  (!%p12880_p11), %s16591_s2, 128, %s191_s23, [#allocation6]  }
  0x39   : > { %s12672_s8 = scalar_lea.vmem %s215_s28, 96  ;;  %p12680_p1 = scmp.lt.s32.totalorder %s215_s28, %s215_s28 }
  0x3a   : > { %p12673_p0 = scmp.ne.s32.totalorder %s215_s28, %s12672_s8  ;;  %p12681_p2 = scmp.lt.s32.totalorder %s12672_s8, %s12672_s8 }
  0x3c   : > { %p12675_p5 = pnand %p12673_p0, %p12585_p12  ;;  %p12682_p4 = por %p12681_p2, %p12680_p1 }
  0x3e   : > { %p12676_p10 = pneg %p12675_p5 }
  0x40   : > { %p12683_p8 = pnand %p12682_p4, %p12676_p10 }
  0x42   : > { %12686 = shalt.err (!%p12683_p8)
}
  0x43   : > { %11557 = dma.hbm_to_vmem [thread:$0]  (!%p12880_p11), %s16593_s4, 96, %s215_s28, [#allocation9]  }
  0x44   : > { %s12922_s11 = sadd.s32 1, %s12787_s21   ;;  %s30_s29 = sadd.s32 1, %s12783_s20 }
  0x45   : > { %s27_s12 = ssub.s32 %s12787_s21, %s12922_s11  ;;  %p37_p8 = scmp.ne.s32.totalorder %s12783_s20, %s12779_s19 }
  0x46   : > { %p28_p4 = scmp.eq.s32.totalorder %s27_s12, 0  ;;  %p38_p12 = scmp.eq.s32.totalorder %s12787_s21, 0 }
  0x47   : > { %p16795_p3 = scmp.eq.s32.totalorder %s12852_s22, 1  ;;  %p11570_p9 = scmp.lt.s32.totalorder %s12787_s21, 2 }
  0x48   : > { %s12931_s15 = scalar_select %p28_p4, %s12783_s20, %s30_s29  }
  0x49   : > { %p39_p6 = por %p38_p12, %p37_p8  ;;  %p12935_p7 = por %p16795_p3, %p37_p8 }
  0x4a   : > { %s225_s17 = sand.u32 1, %s12783_s20   ;;  %s11521_s27 = smul.u32 12288, %s12787_s21 }
  0x4b   : > { %s16796_s16 = scalar_select %p12935_p7, 1, 0 }
  0x4c   : > { %s11520_s23 = smul.u32 768, %s225_s17  ;;  %p12942_p11 = pnand %p11570_p9, %p39_p6 }
  0x4d   : > { %s12949_s7 = scalar_lea.hbm %s16589_s0, %s11521_s27  ;;  %s12953_s10 = scalar_lea.sflag [#allocation3], %s225_s17 }
  0x4e   : > { %s229_s8 = scalar_lea.vmem [#allocation2], %s11520_s23  ;;  %s12687_s12 = scalar_lea.hbm %s12949_s7, 12288 }
  0x4f   : > { %s237_s9 = sshll.u32 %s229_s8, 4  ;;  %p12688_p13 = scmp.ne.s32.totalorder %s12949_s7, %s12687_s12  ;;  %s12951_s9 = int_to_ptr.vmem [resolvable:$true] %s237_s9 }
  0x50   : > { %p12689_p0 = pneg %p12942_p11  ;;  %s12692_s27 = scalar_lea.hbm %s16589_s0, 24576 }
  0x51   : > { %p12693_p1 = scmp.lt.s32.totalorder %s12949_s7, %s16589_s0  ;;  %p12694_p2 = scmp.lt.s32.totalorder %s12692_s27, %s12687_s12 }
  0x52   : > { %p12690_p5 = pnand %p12689_p0, %p12688_p13 }
  0x53   : > { %p12695_p4 = por %p12694_p2, %p12693_p1 }
  0x54   : > { %p12691_p10 = pneg %p12690_p5 }
  0x56   : > { %p12696_p8 = pnand %p12695_p4, %p12691_p10 }
  0x58   : > { %12699 = shalt.err (!%p12696_p8)
}
  0x59   : > { %s12700_s17 = scalar_lea.vmem %s12951_s9, 12288  ;;  %s12797_s23 = smov [#allocation2]  }
  0x5a   : > { %p12701_p12 = scmp.ne.s32.totalorder %s12951_s9, %s12700_s17  ;;  %s12705_s8 = sshll.u32 %s12797_s23, 4  ;;  %s12706_s8 = int_to_ptr.vmem [resolvable:$false] %s12705_s8 }
  0x5b   : > { %s12707_s29 = scalar_lea.vmem %s12706_s8, 24576  ;;  %p12708_p9 = scmp.lt.s32.totalorder %s12951_s9, %s12706_s8 }
  0x5c   : > { %p12703_p6 = pnand %p12701_p12, %p12689_p0  ;;  %p12709_p13 = scmp.lt.s32.totalorder %s12707_s29, %s12700_s17 }
  0x5e   : > { %p12704_p3 = pneg %p12703_p6  ;;  %p12710_p5 = por %p12709_p13, %p12708_p9 }
  0x60   : > { %p12711_p7 = pnand %p12710_p5, %p12704_p3 }
  0x62   : > { %12714 = shalt.err (!%p12711_p7)
}
  0x63   : > { %s16798_s13 = smov 384   ;;  %p16799_p0 = scmp.ne.s32.totalorder %s16793_s26, 0 }
  0x64   : > { %11561 = dma.hbm_to_vmem [thread:$0]  (!%p12942_p11), %s12949_s7, 12288, %s12951_s9, %s12953_s10, %s16798_s13, %s16798_s13, %s12794_s14  }
  0x65   : > { %249 = sbr.rel (%p16799_p0) target bundleno = 1948 (0x79c), region = 40 }
  0x6a   : > { %s12980_s12 = sand.u32 1, %s12779_s19   ;;  %p16800_p7 = scmp.ne.s32.totalorder %s16791_s24, 0 }
  0x6b   : > { %s11522_s30 = smul.u32 768, %s12980_s12  ;;  %s252_s27 = scalar_lea.sflag [#allocation3], %s12980_s12 }
  0x6d   : > { %s12984_s6 = scalar_lea.vmem [#allocation2], %s11522_s30 }
  0x6e   : > { %12758 = dma.done.wait (%p16800_p7), %s252_s27, 12288  }
  0x6f   : > { %12760 = vsyncadd (%p16800_p7), %s252_s27, 4294955008  ;;  %p16801_p11 = scmp.eq.s32.totalorder %s12852_s22, 0 }
  0x71   : > { %12762 = dma.done.wait (%p16801_p11), [#allocation6], 49280   ;;  %p16802_p10 = pmov %p16801_p11 }
  0x73   : > { %12764 = vsyncadd (%p16802_p10), [#allocation6], 4294918016  ;;  %p16803_p1 = pmov %p16802_p10 }
  0x75   : > { %12766 = dma.done.wait (%p16803_p1), [#allocation9], 49248   ;;  %p16804_p2 = pmov %p16803_p1 }
  0x76   : > { %v452_v0 = vld [vmem:[#allocation5 + $0x1c0] sm:$0xff]  ;;  %s11523_s24 = smul.u32 1536, %s12980_s12  ;;  %p17694_p8 = scmp.ne.s32.totalorder %s16796_s16, 0 }
  0x77   : > { %12768 = vsyncadd (%p16804_p2), [#allocation9], 4294918048  ;;  %v456_v1 = vld [vmem:[#allocation5 + $0x1e0] sm:$0xff]  ;;  %s11524_s14 = smul.u32 24576, %s12852_s22  ;;  %s10511_s22 = scalar_lea.sflag [#allocation4], %s12980_s12 }
  0x78   : > { %v580_v2 = vld [vmem:[#allocation5 + $0x5c0] sm:$0xff]  ;;  %v10804_v3 = vcombine.high %v452_v0, %v456_v1  ;;  %v10803_v5 = vcombine.low %v452_v0, %v456_v1  ;;  %s15537_s26 = scalar_lea.vmem [#allocation11], %s11523_s24  ;;  %s12798_s23 = smov [#allocation11]  }
  0x79   : > { %v584_v4 = vld [vmem:[#allocation5 + $0x5e0] sm:$0xff]  ;;  %s10525_s28 = sshll.u32 %s15537_s26, 4  ;;  %s16542_s10 = scalar_lea.hbm %s16594_s5, %s11524_s14  ;;  %s16544_s28 = int_to_ptr.vmem [resolvable:$true] %s10525_s28 }
  0x7a   : > { %v444_v6 = vld [vmem:[#allocation5 + $0x180] sm:$0xff]  ;;  %v10932_v8 = vcombine.high %v580_v2, %v584_v4  ;;  %v10931_v9 = vcombine.low %v580_v2, %v584_v4  ;;  %3222 = vmatprep.subr.bf16.mxu0 %v10804_v3  ;;  %s12715_s17 = scalar_lea.vmem %s16544_s28, 24576  ;;  %s12719_s8 = sshll.u32 %s12798_s23, 4  ;;  %s12720_s8 = int_to_ptr.vmem [resolvable:$false] %s12719_s8 }
  0x7b   : > { %v448_v7 = vld [vmem:[#allocation5 + $0x1a0] sm:$0xff]  ;;  %3223 = vmatpush1.bf16.msra.mxu0 %v10803_v5  ;;  %p12716_p4 = scmp.ne.s32.totalorder %s16544_s28, %s12715_s17  ;;  %s12721_s29 = scalar_lea.vmem %s12720_s8, 49152 }
  0x7c   : > { %v10796_v10 = vcombine.high %v444_v6, %v448_v7  ;;  %v572_v11 = vld [vmem:[#allocation5 + $0x580] sm:$0xff]  ;;  %3415 = vmatprep.subr.bf16.mxu1 %v10932_v8  ;;  %v10795_v18 = vcombine.low %v444_v6, %v448_v7  ;;  %p12722_p3 = scmp.lt.s32.totalorder %s16544_s28, %s12720_s8  ;;  %p12723_p9 = scmp.lt.s32.totalorder %s12721_s29, %s12715_s17 }
  0x7d   : > { %v576_v12 = vld [vmem:[#allocation5 + $0x5a0] sm:$0xff]  ;;  %3416 = vmatpush1.bf16.msra.mxu1 %v10931_v9  ;;  %p12717_p12 = pnand %p12716_p4, %p17694_p8 }
  0x7e   : > { %v436_v13 = vld [vmem:[#allocation5 + $0x140] sm:$0xff]  ;;  %v10924_v14 = vcombine.high %v572_v11, %v576_v12  ;;  %3224 = vmatprep.subr.bf16.mxu0 %v10796_v10  ;;  %v10923_v19 = vcombine.low %v572_v11, %v576_v12  ;;  %p12724_p13 = por %p12723_p9, %p12722_p3 }
  0x7f   : > { %v440_v15 = vld [vmem:[#allocation5 + $0x160] sm:$0xff]  ;;  %3225 = vmatpush1.bf16.msra.mxu0 %v10795_v18  ;;  %p12718_p6 = pneg %p12717_p12 }
  0x80   : > { %v564_v16 = vld [vmem:[#allocation5 + $0x540] sm:$0xff]  ;;  %v10788_v20 = vcombine.high %v436_v13, %v440_v15  ;;  %3417 = vmatprep.subr.bf16.mxu1 %v10924_v14  ;;  %v10787_v26 = vcombine.low %v436_v13, %v440_v15 }
  0x81   : > { %v568_v17 = vld [vmem:[#allocation5 + $0x560] sm:$0xff]  ;;  %3418 = vmatpush1.bf16.msra.mxu1 %v10923_v19  ;;  %p12725_p5 = pnand %p12724_p13, %p12718_p6 }
  0x82   : > { %v10916_v21 = vcombine.high %v564_v16, %v568_v17  ;;  %v428_v22 = vld [vmem:[#allocation5 + $0x100] sm:$0xff]  ;;  %3226 = vmatprep.subr.bf16.mxu0 %v10788_v20  ;;  %v10915_v27 = vcombine.low %v564_v16, %v568_v17 }
  0x83   : > { %v432_v23 = vld [vmem:[#allocation5 + $0x120] sm:$0xff]  ;;  %3227 = vmatpush1.bf16.msra.mxu0 %v10787_v26 }
  0x84   : > { %v556_v24 = vld [vmem:[#allocation5 + $0x500] sm:$0xff]  ;;  %v10780_v28 = vcombine.high %v428_v22, %v432_v23  ;;  %3419 = vmatprep.subr.bf16.mxu1 %v10916_v21  ;;  %v10779_v34 = vcombine.low %v428_v22, %v432_v23 }
  0x85   : > { %v560_v25 = vld [vmem:[#allocation5 + $0x520] sm:$0xff]  ;;  %3420 = vmatpush1.bf16.msra.mxu1 %v10915_v27 }
  0x86   : > { %v10908_v29 = vcombine.high %v556_v24, %v560_v25  ;;  %v420_v30 = vld [vmem:[#allocation5 + $0xc0] sm:$0xff]  ;;  %3228 = vmatprep.subr.bf16.mxu0 %v10780_v28  ;;  %v10907_v35 = vcombine.low %v556_v24, %v560_v25 }
  0x87   : > { %v424_v31 = vld [vmem:[#allocation5 + $0xe0] sm:$0xff]  ;;  %3229 = vmatpush1.bf16.msra.mxu0 %v10779_v34 }
  0x88   : > { %v548_v32 = vld [vmem:[#allocation5 + $0x4c0] sm:$0xff]  ;;  %v10772_v36 = vcombine.high %v420_v30, %v424_v31  ;;  %3421 = vmatprep.subr.bf16.mxu1 %v10908_v29  ;;  %v10771_v42 = vcombine.low %v420_v30, %v424_v31 }
  0x89   : > { %v552_v33 = vld [vmem:[#allocation5 + $0x4e0] sm:$0xff]  ;;  %3422 = vmatpush1.bf16.msra.mxu1 %v10907_v35 }
  0x8a   : > { %v10900_v37 = vcombine.high %v548_v32, %v552_v33  ;;  %v412_v38 = vld [vmem:[#allocation5 + $0x80] sm:$0xff]  ;;  %3230 = vmatprep.subr.bf16.mxu0 %v10772_v36  ;;  %v10899_v43 = vcombine.low %v548_v32, %v552_v33 }
  0x8b   : > { %v416_v39 = vld [vmem:[#allocation5 + $0xa0] sm:$0xff]  ;;  %3231 = vmatpush1.bf16.msra.mxu0 %v10771_v42 }
  0x8c   : > { %v540_v40 = vld [vmem:[#allocation5 + $0x480] sm:$0xff]  ;;  %v10764_v44 = vcombine.high %v412_v38, %v416_v39  ;;  %3423 = vmatprep.subr.bf16.mxu1 %v10900_v37  ;;  %v10763_v50 = vcombine.low %v412_v38, %v416_v39 }
  0x8d   : > { %v544_v41 = vld [vmem:[#allocation5 + $0x4a0] sm:$0xff]  ;;  %3424 = vmatpush1.bf16.msra.mxu1 %v10899_v43 }
  0x8e   : > { %v10892_v45 = vcombine.high %v540_v40, %v544_v41  ;;  %v404_v46 = vld [vmem:[#allocation5 + $0x40] sm:$0xff]  ;;  %3232 = vmatprep.subr.bf16.mxu0 %v10764_v44  ;;  %v10891_v52 = vcombine.low %v540_v40, %v544_v41 }
  0x8f   : > { %v408_v47 = vld [vmem:[#allocation5 + $0x60] sm:$0xff]  ;;  %3233 = vmatpush1.bf16.msra.mxu0 %v10763_v50 }
  0x90   : > { %v532_v48 = vld [vmem:[#allocation5 + $0x440] sm:$0xff]  ;;  %v10756_v53 = vcombine.high %v404_v46, %v408_v47  ;;  %3425 = vmatprep.subr.bf16.mxu1 %v10892_v45  ;;  %v10755_v60 = vcombine.low %v404_v46, %v408_v47 }
  0x91   : > { %v536_v49 = vld [vmem:[#allocation5 + $0x460] sm:$0xff]  ;;  %3426 = vmatpush1.bf16.msra.mxu1 %v10891_v52 }
  0x92   : > { %v396_v51 = vld [vmem:[#allocation5] sm:$0xff]  ;;  %v10884_v55 = vcombine.high %v532_v48, %v536_v49  ;;  %3234 = vmatprep.subr.bf16.mxu0 %v10756_v53  ;;  %v10883_v61 = vcombine.low %v532_v48, %v536_v49 }
  0x93   : > { %v400_v54 = vld [vmem:[#allocation5 + $0x20] sm:$0xff]  ;;  %3235 = vmatpush1.bf16.msra.mxu0 %v10755_v60 }
  0x94   : > { %v11618_v56 = vld [vmem:[%s12984_s6 + $0x4] ss:$24 sps:$4 sm:$0xff]   ;;  %v10748_v62 = vcombine.high %v396_v51, %v400_v54  ;;  %3427 = vmatprep.subr.bf16.mxu1 %v10884_v55  ;;  %v10747_v4 = vcombine.low %v396_v51, %v400_v54 }
  0x95   : > { %v524_v57 = vld [vmem:[#allocation5 + $0x400] sm:$0xff]  ;;  %3254 = vmatprep.mubr.bf16.mxu0 %v11618_v56  ;;  %3428 = vmatpush1.bf16.msra.mxu1 %v10883_v61 }
  0x96   : > { %v528_v58 = vld [vmem:[#allocation5 + $0x420] sm:$0xff]  ;;  %3236 = vmatprep.subr.bf16.mxu0 %v10748_v62 }
  0x97   : > { %v11620_v59 = vld [vmem:[%s12984_s6 + $0xc] ss:$24 sps:$4 sm:$0xff]   ;;  %v10876_v0 = vcombine.high %v524_v57, %v528_v58  ;;  %v10875_v5 = vcombine.low %v524_v57, %v528_v58  ;;  %3237 = vmatpush1.bf16.msra.mxu0 %v10747_v4 }
  0x98   : > { %v516_v63 = vld [vmem:[#allocation5 + $0x3c0] sm:$0xff]  ;;  %3447 = vmatprep.mubr.bf16.mxu1 %v11620_v59 }
  0x99   : > { %v520_v1 = vld [vmem:[#allocation5 + $0x3e0] sm:$0xff]  ;;  %3429 = vmatprep.subr.bf16.mxu1 %v10876_v0 }
  0x9a   : > { %v644_v2 = vld [vmem:[#allocation5 + $0x7c0] sm:$0xff]  ;;  %v10868_v6 = vcombine.high %v516_v63, %v520_v1  ;;  %v10867_v12 = vcombine.low %v516_v63, %v520_v1  ;;  %3430 = vmatpush1.bf16.msra.mxu1 %v10875_v5 }
  0x9b   : > { %v648_v3 = vld [vmem:[#allocation5 + $0x7e0] sm:$0xff] }
  0x9c   : > { %v508_v7 = vld [vmem:[#allocation5 + $0x380] sm:$0xff]  ;;  %v10996_v8 = vcombine.high %v644_v2, %v648_v3  ;;  %3238 = vmatprep.subr.bf16.mxu0 %v10868_v6  ;;  %v10995_v13 = vcombine.low %v644_v2, %v648_v3  ;;  %v453_v2 = vld [vmem:[#allocation5 + $0x1c8] sm:$0xff] }
  0x9d   : > { %v512_v9 = vld [vmem:[#allocation5 + $0x3a0] sm:$0xff]  ;;  %3239 = vmatpush2.bf16.msra.mxu0 %v10867_v12  ;;  %v457_v3 = vld [vmem:[#allocation5 + $0x1e8] sm:$0xff] }
  0x9e   : > { %v636_v10 = vld [vmem:[#allocation5 + $0x780] sm:$0xff]  ;;  %v10860_v14 = vcombine.high %v508_v7, %v512_v9  ;;  %3431 = vmatprep.subr.bf16.mxu1 %v10996_v8  ;;  %v10859_v20 = vcombine.low %v508_v7, %v512_v9  ;;  %v10806_v9 = vcombine.high %v453_v2, %v457_v3 }
  0x9f   : > { %v640_v11 = vld [vmem:[#allocation5 + $0x7a0] sm:$0xff]  ;;  %3432 = vmatpush2.bf16.msra.mxu1 %v10995_v13 }
  0xa0   : > { %v500_v15 = vld [vmem:[#allocation5 + $0x340] sm:$0xff]  ;;  %v10988_v16 = vcombine.high %v636_v10, %v640_v11  ;;  %3240 = vmatprep.subr.bf16.mxu0 %v10860_v14  ;;  %v10987_v21 = vcombine.low %v636_v10, %v640_v11  ;;  %v11624_v10 = vld [vmem:[%s12984_s6 + $0x34] ss:$24 sps:$4 sm:$0xff]  }
  0xa1   : > { %v504_v17 = vld [vmem:[#allocation5 + $0x360] sm:$0xff]  ;;  %3241 = vmatpush2.bf16.msra.mxu0 %v10859_v20  ;;  %v11626_v14 = vld [vmem:[%s12984_s6 + $0x3c] ss:$24 sps:$4 sm:$0xff]  }
  0xa2   : > { %v628_v18 = vld [vmem:[#allocation5 + $0x740] sm:$0xff]  ;;  %v10852_v22 = vcombine.high %v500_v15, %v504_v17  ;;  %3433 = vmatprep.subr.bf16.mxu1 %v10988_v16  ;;  %v10851_v28 = vcombine.low %v500_v15, %v504_v17  ;;  %v445_v15 = vld [vmem:[#allocation5 + $0x188] sm:$0xff]  ;;  %v10805_v17 = vcombine.low %v453_v2, %v457_v3  ;;  %v11641_v3 = vld [vmem:[%s12984_s6 + $0x98] ss:$24 sps:$4 sm:$0xff]  }
  0xa3   : > { %v632_v19 = vld [vmem:[#allocation5 + $0x760] sm:$0xff]  ;;  %3434 = vmatpush2.bf16.msra.mxu1 %v10987_v21  ;;  %v449_v16 = vld [vmem:[#allocation5 + $0x1a8] sm:$0xff] }
  0xa4   : > { %v492_v23 = vld [vmem:[#allocation5 + $0x300] sm:$0xff]  ;;  %v10980_v24 = vcombine.high %v628_v18, %v632_v19  ;;  %3242 = vmatprep.subr.bf16.mxu0 %v10852_v22  ;;  %v10979_v29 = vcombine.low %v628_v18, %v632_v19  ;;  %v10798_v21 = vcombine.high %v445_v15, %v449_v16  ;;  %v437_v22 = vld [vmem:[#allocation5 + $0x148] sm:$0xff] }
  0xa5   : > { %v496_v25 = vld [vmem:[#allocation5 + $0x320] sm:$0xff]  ;;  %3243 = vmatpush2.bf16.msra.mxu0 %v10851_v28 }
  0xa6   : > { %v620_v26 = vld [vmem:[#allocation5 + $0x700] sm:$0xff]  ;;  %v10844_v30 = vcombine.high %v492_v23, %v496_v25  ;;  %3435 = vmatprep.subr.bf16.mxu1 %v10980_v24  ;;  %v10843_v36 = vcombine.low %v492_v23, %v496_v25  ;;  %v441_v23 = vld [vmem:[#allocation5 + $0x168] sm:$0xff]  ;;  %v10797_v25 = vcombine.low %v445_v15, %v449_v16 }
  0xa7   : > { %v624_v27 = vld [vmem:[#allocation5 + $0x720] sm:$0xff]  ;;  %3436 = vmatpush2.bf16.msra.mxu1 %v10979_v29  ;;  %v10790_v28 = vcombine.high %v437_v22, %v441_v23  ;;  %v11629_v29 = vld [vmem:[%s12984_s6 + $0x38] ss:$24 sps:$4 sm:$0xff]  }
  0xa8   : > { %v484_v31 = vld [vmem:[#allocation5 + $0x2c0] sm:$0xff]  ;;  %v10972_v32 = vcombine.high %v620_v26, %v624_v27  ;;  %3244 = vmatprep.subr.bf16.mxu0 %v10844_v30  ;;  %v10971_v37 = vcombine.low %v620_v26, %v624_v27  ;;  %v11628_v27 = vld [vmem:[%s12984_s6 + $0x30] ss:$24 sps:$4 sm:$0xff]  }
  0xa9   : > { %v488_v33 = vld [vmem:[#allocation5 + $0x2e0] sm:$0xff]  ;;  %3245 = vmatpush2.bf16.msra.mxu0 %v10843_v36 }
  0xaa   : > { %v612_v34 = vld [vmem:[#allocation5 + $0x6c0] sm:$0xff]  ;;  %v10836_v38 = vcombine.high %v484_v31, %v488_v33  ;;  %3437 = vmatprep.subr.bf16.mxu1 %v10972_v32  ;;  %v10835_v44 = vcombine.low %v484_v31, %v488_v33  ;;  %v429_v33 = vld [vmem:[#allocation5 + $0x108] sm:$0xff] }
  0xab   : > { %v616_v35 = vld [vmem:[#allocation5 + $0x6e0] sm:$0xff]  ;;  %3438 = vmatpush2.bf16.msra.mxu1 %v10971_v37  ;;  %v10789_v37 = vcombine.low %v437_v22, %v441_v23 }
  0xac   : > { %v476_v39 = vld [vmem:[#allocation5 + $0x280] sm:$0xff]  ;;  %v10964_v40 = vcombine.high %v612_v34, %v616_v35  ;;  %3246 = vmatprep.subr.bf16.mxu0 %v10836_v38  ;;  %v10963_v45 = vcombine.low %v612_v34, %v616_v35  ;;  %v433_v34 = vld [vmem:[#allocation5 + $0x128] sm:$0xff] }
  0xad   : > { %v480_v41 = vld [vmem:[#allocation5 + $0x2a0] sm:$0xff]  ;;  %3247 = vmatpush2.bf16.msra.mxu0 %v10835_v44 }
  0xae   : > { %v604_v42 = vld [vmem:[#allocation5 + $0x680] sm:$0xff]  ;;  %v10828_v46 = vcombine.high %v476_v39, %v480_v41  ;;  %3439 = vmatprep.subr.bf16.mxu1 %v10964_v40  ;;  %v10827_v52 = vcombine.low %v476_v39, %v480_v41  ;;  %v10782_v39 = vcombine.high %v429_v33, %v433_v34 }
  0xaf   : > { %v608_v43 = vld [vmem:[#allocation5 + $0x6a0] sm:$0xff]  ;;  %3440 = vmatpush2.bf16.msra.mxu1 %v10963_v45 }
  0xb0   : > { %v468_v47 = vld [vmem:[#allocation5 + $0x240] sm:$0xff]  ;;  %v10956_v48 = vcombine.high %v604_v42, %v608_v43  ;;  %3248 = vmatprep.subr.bf16.mxu0 %v10828_v46  ;;  %v10955_v53 = vcombine.low %v604_v42, %v608_v43  ;;  %v421_v42 = vld [vmem:[#allocation5 + $0xc8] sm:$0xff]  ;;  %v10781_v46 = vcombine.low %v429_v33, %v433_v34 }
  0xb1   : > { %v472_v49 = vld [vmem:[#allocation5 + $0x260] sm:$0xff]  ;;  %3249 = vmatpush2.bf16.msra.mxu0 %v10827_v52  ;;  %v425_v43 = vld [vmem:[#allocation5 + $0xe8] sm:$0xff] }
  0xb2   : > { %v596_v50 = vld [vmem:[#allocation5 + $0x640] sm:$0xff]  ;;  %v10820_v54 = vcombine.high %v468_v47, %v472_v49  ;;  %3441 = vmatprep.subr.bf16.mxu1 %v10956_v48  ;;  %v10819_v60 = vcombine.low %v468_v47, %v472_v49  ;;  %v10774_v49 = vcombine.high %v421_v42, %v425_v43  ;;  %v11636_v52 = vld [vmem:[%s12984_s6 + $0x94] ss:$24 sps:$4 sm:$0xff]  }
  0xb3   : > { %v600_v51 = vld [vmem:[#allocation5 + $0x660] sm:$0xff]  ;;  %3442 = vmatpush2.bf16.msra.mxu1 %v10955_v53  ;;  %v413_v53 = vld [vmem:[#allocation5 + $0x88] sm:$0xff] }
  0xb4   : > { %v460_v55 = vld [vmem:[#allocation5 + $0x200] sm:$0xff]  ;;  %v10948_v56 = vcombine.high %v596_v50, %v600_v51  ;;  %3250 = vmatprep.subr.bf16.mxu0 %v10820_v54  ;;  %v10947_v61 = vcombine.low %v596_v50, %v600_v51  ;;  %v417_v54 = vld [vmem:[#allocation5 + $0xa8] sm:$0xff] }
  0xb5   : > { %v464_v57 = vld [vmem:[#allocation5 + $0x220] sm:$0xff]  ;;  %3251 = vmatpush2.bf16.msra.mxu0 %v10819_v60 }
  0xb6   : > { %v588_v58 = vld [vmem:[#allocation5 + $0x600] sm:$0xff]  ;;  %v10812_v62 = vcombine.high %v460_v55, %v464_v57  ;;  %3443 = vmatprep.subr.bf16.mxu1 %v10948_v56  ;;  %v10811_v4 = vcombine.low %v460_v55, %v464_v57  ;;  %v11638_v55 = vld [vmem:[%s12984_s6 + $0x9c] ss:$24 sps:$4 sm:$0xff]   ;;  %v10773_v57 = vcombine.low %v421_v42, %v425_v43 }
  0xb7   : > { %v592_v59 = vld [vmem:[#allocation5 + $0x620] sm:$0xff]  ;;  %3444 = vmatpush2.bf16.msra.mxu1 %v10947_v61 }
  0xb8   : > { %v708_v63 = vld [vmem:[#allocation5 + $0x9c0] sm:$0xff]  ;;  %v10940_v0 = vcombine.high %v588_v58, %v592_v59  ;;  %3252 = vmatprep.subr.bf16.mxu0 %v10812_v62  ;;  %v10939_v5 = vcombine.low %v588_v58, %v592_v59  ;;  %v10766_v59 = vcombine.high %v413_v53, %v417_v54  ;;  %v405_v62 = vld [vmem:[#allocation5 + $0x48] sm:$0xff] }
  0xb9   : > { %v712_v1 = vld [vmem:[#allocation5 + $0x9e0] sm:$0xff]  ;;  %3253 = vmatpush2.bf16.msra.mxu0 %v10811_v4 }
  0xba   : > { %v11622_v6 = vld [vmem:[%s12984_s6] ss:$24 sps:$4 sm:$0xff]   ;;  %v11060_v7 = vcombine.high %v708_v63, %v712_v1  ;;  %3445 = vmatprep.subr.bf16.mxu1 %v10940_v0  ;;  %v11059_v13 = vcombine.low %v708_v63, %v712_v1  ;;  %v11630_v32 = vld [vmem:[%s12984_s6 + $0x64] ss:$24 sps:$4 sm:$0xff]   ;;  %v409_v63 = vld [vmem:[#allocation5 + $0x68] sm:$0xff] }
  0xbb   : > { %v11623_v8 = vld [vmem:[%s12984_s6 + $0x8] ss:$24 sps:$4 sm:$0xff]   ;;  %3446 = vmatpush2.bf16.msra.mxu1 %v10939_v5  ;;  %v11632_v35 = vld [vmem:[%s12984_s6 + $0x6c] ss:$24 sps:$4 sm:$0xff]   ;;  %v10765_v5 = vcombine.low %v413_v53, %v417_v54 }
  0xbc   : > { %v700_v11 = vld [vmem:[#allocation5 + $0x980] sm:$0xff]  ;;  %3608 = vmatprep.subr.bf16.mxu0 %v11060_v7  ;;  %3801 = vmatprep.subr.bf16.mxu1 %v10806_v9  ;;  %v11640_v0 = vld [vmem:[%s12984_s6 + $0x90] ss:$24 sps:$4 sm:$0xff]  }
  0xbd   : > { %v704_v12 = vld [vmem:[#allocation5 + $0x9a0] sm:$0xff]  ;;  %3255 = vmatmul.mubr.bf16.vlgmr.msra.gmra.mxu0 %v11622_v6  ;;  %v13015_v9 = vld [vmem:[#allocation5 + $0x5c8] sm:$0xff] }
  0xbe   : > { %v692_v18 = vld [vmem:[#allocation5 + $0x940] sm:$0xff]  ;;  %v11052_v19 = vcombine.high %v700_v11, %v704_v12  ;;  %3448 = vmatmul.mubr.bf16.vlgmr.msra.gmra.mxu1 %v11623_v8  ;;  %3609 = vmatpush1.bf16.msra.mxu0 %v11059_v13  ;;  %v11051_v24 = vcombine.low %v700_v11, %v704_v12  ;;  %v397_v8 = vld [vmem:[#allocation5 + $0x8] sm:$0xff] }
  0xbf   : > { %v696_v20 = vld [vmem:[#allocation5 + $0x960] sm:$0xff]  ;;  %3802 = vmatpush1.bf16.msra.mxu1 %v10805_v17  ;;  %3264 = vmatprep.mubr.bf16.mxu0 %v11624_v10  ;;  %v10758_v10 = vcombine.high %v405_v62, %v409_v63  ;;  %v13017_v11 = vld [vmem:[#allocation5 + $0x5e8] sm:$0xff] }
  0xc0   : > { %v11044_v26 = vcombine.high %v692_v18, %v696_v20  ;;  %3457 = vmatprep.mubr.bf16.mxu1 %v11626_v14  ;;  %3610 = vmatprep.subr.bf16.mxu0 %v11052_v19  ;;  %v684_v30 = vld [vmem:[#allocation5 + $0x900] sm:$0xff]  ;;  %v11043_v36 = vcombine.low %v692_v18, %v696_v20  ;;  %v13019_v12 = vld [vmem:[#allocation5 + $0x9c8] sm:$0xff]  ;;  %v10933_v15 = vcombine.low %v13015_v9, %v13017_v11 }
  0xc1   : > { %3803 = vmatprep.subr.bf16.mxu1 %v10798_v21  ;;  %v688_v31 = vld [vmem:[#allocation5 + $0x920] sm:$0xff]  ;;  %v13021_v13 = vld [vmem:[#allocation5 + $0x9e8] sm:$0xff]  ;;  %v10757_v19 = vcombine.low %v405_v62, %v409_v63 }
  0xc2   : > { %3611 = vmatpush1.bf16.msra.mxu0 %v11051_v24  ;;  %v11036_v38 = vcombine.high %v684_v30, %v688_v31  ;;  %v676_v40 = vld [vmem:[#allocation5 + $0x8c0] sm:$0xff]  ;;  %v11035_v44 = vcombine.low %v684_v30, %v688_v31  ;;  %v401_v14 = vld [vmem:[#allocation5 + $0x28] sm:$0xff]  ;;  %v11061_v16 = vcombine.low %v13019_v12, %v13021_v13 }
  0xc3   : > { %3804 = vmatpush1.bf16.msra.mxu1 %v10797_v25  ;;  %3612 = vmatprep.subr.bf16.mxu0 %v11044_v26  ;;  %v680_v41 = vld [vmem:[#allocation5 + $0x8e0] sm:$0xff]  ;;  %v10750_v21 = vcombine.high %v397_v8, %v401_v14  ;;  %v517_v24 = vld [vmem:[#allocation5 + $0x3c8] sm:$0xff]  ;;  %v10749_v30 = vcombine.low %v397_v8, %v401_v14 }
  0xc4   : > { %3805 = vmatprep.subr.bf16.mxu1 %v10790_v28  ;;  %v11634_v45 = vld [vmem:[%s12984_s6 + $0x60] ss:$24 sps:$4 sm:$0xff]   ;;  %v11028_v47 = vcombine.high %v676_v40, %v680_v41  ;;  %v11027_v56 = vcombine.low %v676_v40, %v680_v41  ;;  %v11642_v4 = vld [vmem:[%s12984_s6 + $0xc4] ss:$24 sps:$4 sm:$0xff]   ;;  %v521_v25 = vld [vmem:[#allocation5 + $0x3e8] sm:$0xff] }
  0xc5   : > { %3265 = vmatmul.mubr.bf16.gmra.mxu0 %v11628_v27  ;;  %v11635_v48 = vld [vmem:[%s12984_s6 + $0x68] ss:$24 sps:$4 sm:$0xff]   ;;  %v11644_v17 = vld [vmem:[%s12984_s6 + $0xcc] ss:$24 sps:$4 sm:$0xff]   ;;  %v10870_v33 = vcombine.high %v517_v24, %v521_v25  ;;  %v10869_v41 = vcombine.low %v517_v24, %v521_v25 }
  0xc6   : > { %3458 = vmatmul.mubr.bf16.gmra.mxu1 %v11629_v29  ;;  %3274 = vmatprep.mubr.bf16.mxu0 %v11630_v32  ;;  %v668_v50 = vld [vmem:[#allocation5 + $0x880] sm:$0xff]  ;;  %v11648_v29 = vld [vmem:[%s12984_s6 + $0xf4] ss:$24 sps:$4 sm:$0xff]  }
  0xc7   : > { %3467 = vmatprep.mubr.bf16.mxu1 %v11632_v35  ;;  %3613 = vmatpush1.bf16.msra.mxu0 %v11043_v36  ;;  %v672_v51 = vld [vmem:[#allocation5 + $0x8a0] sm:$0xff]  ;;  %v11650_v32 = vld [vmem:[%s12984_s6 + $0xfc] ss:$24 sps:$4 sm:$0xff]   ;;  %v509_v36 = vld [vmem:[#allocation5 + $0x388] sm:$0xff] }
  0xc8   : > { %3806 = vmatpush1.bf16.msra.mxu1 %v10789_v37  ;;  %3614 = vmatprep.subr.bf16.mxu0 %v11036_v38  ;;  %v11020_v58 = vcombine.high %v668_v50, %v672_v51  ;;  %v660_v60 = vld [vmem:[#allocation5 + $0x840] sm:$0xff]  ;;  %v11019_v1 = vcombine.low %v668_v50, %v672_v51  ;;  %v513_v37 = vld [vmem:[#allocation5 + $0x3a8] sm:$0xff]  ;;  %v11653_v50 = vld [vmem:[%s12984_s6 + $0xf8] ss:$24 sps:$4 sm:$0xff]  }
  0xc9   : > { %3807 = vmatprep.subr.bf16.mxu1 %v10782_v39  ;;  %v664_v61 = vld [vmem:[#allocation5 + $0x860] sm:$0xff]  ;;  %v10862_v43 = vcombine.high %v509_v36, %v513_v37  ;;  %v493_v54 = vld [vmem:[#allocation5 + $0x308] sm:$0xff] }
  0xca   : > { %v652_v2 = vld [vmem:[#allocation5 + $0x800] sm:$0xff]  ;;  %v11012_v6 = vcombine.high %v660_v60, %v664_v61  ;;  %v11011_v18 = vcombine.low %v660_v60, %v664_v61  ;;  %v477_v14 = vld [vmem:[#allocation5 + $0x288] sm:$0xff] }
  0xcb   : > { %3615 = vmatpush1.bf16.msra.mxu0 %v11035_v44  ;;  %v656_v7 = vld [vmem:[#allocation5 + $0x820] sm:$0xff]  ;;  %v501_v44 = vld [vmem:[#allocation5 + $0x348] sm:$0xff] }
  0xcc   : > { %3808 = vmatpush1.bf16.msra.mxu1 %v10781_v46  ;;  %3616 = vmatprep.subr.bf16.mxu0 %v11028_v47  ;;  %v11004_v20 = vcombine.high %v652_v2, %v656_v7  ;;  %v772_v22 = vld [vmem:[#allocation5 + $0xbc0] sm:$0xff]  ;;  %v11003_v26 = vcombine.low %v652_v2, %v656_v7  ;;  %v11652_v46 = vld [vmem:[%s12984_s6 + $0xf0] ss:$24 sps:$4 sm:$0xff]   ;;  %v11660_v7 = vld [vmem:[%s12984_s6 + $0x154] ss:$24 sps:$4 sm:$0xff]  }
  0xcd   : > { %3275 = vmatmul.mubr.bf16.gmra.mxu0 %v11634_v45  ;;  %3809 = vmatprep.subr.bf16.mxu1 %v10774_v49  ;;  %v776_v23 = vld [vmem:[#allocation5 + $0xbe0] sm:$0xff]  ;;  %v505_v45 = vld [vmem:[#allocation5 + $0x368] sm:$0xff] }
  0xce   : > { %3468 = vmatmul.mubr.bf16.gmra.mxu1 %v11635_v48  ;;  %3284 = vmatprep.mubr.bf16.mxu0 %v11636_v52  ;;  %v11646_v27 = vld [vmem:[%s12984_s6 + $0xc0] ss:$24 sps:$4 sm:$0xff]   ;;  %v11124_v31 = vcombine.high %v772_v22, %v776_v23  ;;  %v11123_v38 = vcombine.low %v772_v22, %v776_v23  ;;  %v11654_v51 = vld [vmem:[%s12984_s6 + $0x124] ss:$24 sps:$4 sm:$0xff]   ;;  %v10861_v52 = vcombine.low %v509_v36, %v513_v37  ;;  %v461_v36 = vld [vmem:[#allocation5 + $0x208] sm:$0xff] }
  0xcf   : > { %3477 = vmatprep.mubr.bf16.mxu1 %v11638_v55  ;;  %3617 = vmatpush1.bf16.msra.mxu0 %v11027_v56  ;;  %v11647_v28 = vld [vmem:[%s12984_s6 + $0xc8] ss:$24 sps:$4 sm:$0xff]   ;;  %v11656_v56 = vld [vmem:[%s12984_s6 + $0x12c] ss:$24 sps:$4 sm:$0xff]   ;;  %v10853_v61 = vcombine.low %v501_v44, %v505_v45 }
  0xd0   : > { %3810 = vmatpush1.bf16.msra.mxu1 %v10773_v57  ;;  %3618 = vmatprep.subr.bf16.mxu0 %v11020_v58  ;;  %v764_v34 = vld [vmem:[#allocation5 + $0xb80] sm:$0xff]  ;;  %v497_v55 = vld [vmem:[#allocation5 + $0x328] sm:$0xff]  ;;  %v10854_v57 = vcombine.high %v501_v44, %v505_v45 }
  0xd1   : > { %3811 = vmatprep.subr.bf16.mxu1 %v10766_v59  ;;  %v768_v35 = vld [vmem:[#allocation5 + $0xba0] sm:$0xff]  ;;  %v10846_v63 = vcombine.high %v493_v54, %v497_v55  ;;  %v10845_v8 = vcombine.low %v493_v54, %v497_v55  ;;  %v465_v37 = vld [vmem:[#allocation5 + $0x228] sm:$0xff] }
  0xd2   : > { %v756_v39 = vld [vmem:[#allocation5 + $0xb40] sm:$0xff]  ;;  %v11116_v42 = vcombine.high %v764_v34, %v768_v35  ;;  %v11115_v47 = vcombine.low %v764_v34, %v768_v35 }
  0xd3   : > { %3619 = vmatpush1.bf16.msra.mxu0 %v11019_v1  ;;  %v760_v40 = vld [vmem:[#allocation5 + $0xb60] sm:$0xff]  ;;  %v489_v1 = vld [vmem:[#allocation5 + $0x2e8] sm:$0xff] }
  0xd4   : > { %3812 = vmatpush1.bf16.msra.mxu1 %v10765_v5  ;;  %3620 = vmatprep.subr.bf16.mxu0 %v11012_v6  ;;  %v748_v48 = vld [vmem:[#allocation5 + $0xb00] sm:$0xff]  ;;  %v11108_v53 = vcombine.high %v756_v39, %v760_v40  ;;  %v11107_v58 = vcombine.low %v756_v39, %v760_v40 }
  0xd5   : > { %3285 = vmatmul.mubr.bf16.gmra.mxu0 %v11640_v0  ;;  %3813 = vmatprep.subr.bf16.mxu1 %v10758_v10  ;;  %v752_v49 = vld [vmem:[#allocation5 + $0xb20] sm:$0xff]  ;;  %v485_v0 = vld [vmem:[#allocation5 + $0x2c8] sm:$0xff] }
  0xd6   : > { %3478 = vmatmul.mubr.bf16.gmra.mxu1 %v11641_v3  ;;  %3294 = vmatprep.mubr.bf16.mxu0 %v11642_v4  ;;  %v740_v59 = vld [vmem:[#allocation5 + $0xac0] sm:$0xff]  ;;  %v11100_v62 = vcombine.high %v748_v48, %v752_v49  ;;  %v11099_v3 = vcombine.low %v748_v48, %v752_v49  ;;  %v10837_v23 = vcombine.low %v485_v0, %v489_v1 }
  0xd7   : > { %3487 = vmatprep.mubr.bf16.mxu1 %v11644_v17  ;;  %3621 = vmatpush1.bf16.msra.mxu0 %v11011_v18  ;;  %v744_v60 = vld [vmem:[#allocation5 + $0xae0] sm:$0xff]  ;;  %v481_v17 = vld [vmem:[#allocation5 + $0x2a8] sm:$0xff]  ;;  %v11662_v18 = vld [vmem:[%s12984_s6 + $0x15c] ss:$24 sps:$4 sm:$0xff]   ;;  %v10813_v48 = vcombine.low %v461_v36, %v465_v37  ;;  %v10934_v49 = vcombine.high %v13015_v9, %v13017_v11 }
  0xd8   : > { %3814 = vmatpush1.bf16.msra.mxu1 %v10757_v19  ;;  %3622 = vmatprep.subr.bf16.mxu0 %v11004_v20  ;;  %v11658_v2 = vld [vmem:[%s12984_s6 + $0x120] ss:$24 sps:$4 sm:$0xff]   ;;  %v11092_v10 = vcombine.high %v740_v59, %v744_v60  ;;  %v10838_v19 = vcombine.high %v485_v0, %v489_v1  ;;  %v11091_v20 = vcombine.low %v740_v59, %v744_v60  ;;  %v11678_v54 = vld [vmem:[%s12984_s6 + $0x1e4] ss:$24 sps:$4 sm:$0xff]   ;;  %v11688_v60 = vld [vmem:[%s12984_s6 + $0x210] ss:$24 sps:$4 sm:$0xff]  }
  0xd9   : > { %3815 = vmatprep.subr.bf16.mxu1 %v10750_v21  ;;  %v732_v4 = vld [vmem:[#allocation5 + $0xa80] sm:$0xff]  ;;  %v10830_v25 = vcombine.high %v477_v14, %v481_v17  ;;  %v10829_v34 = vcombine.low %v477_v14, %v481_v17  ;;  %v11686_v59 = vld [vmem:[%s12984_s6 + $0x21c] ss:$24 sps:$4 sm:$0xff]  }
  0xda   : > { %v736_v5 = vld [vmem:[#allocation5 + $0xaa0] sm:$0xff]  ;;  %v11708_v14 = vld [vmem:[%s12984_s6 + $0x2d4] ss:$24 sps:$4 sm:$0xff]  }
  0xdb   : > { %3623 = vmatpush1.bf16.msra.mxu0 %v11003_v26  ;;  %v11659_v6 = vld [vmem:[%s12984_s6 + $0x128] ss:$24 sps:$4 sm:$0xff]   ;;  %v11084_v24 = vcombine.high %v732_v4, %v736_v5  ;;  %v11680_v55 = vld [vmem:[%s12984_s6 + $0x1ec] ss:$24 sps:$4 sm:$0xff]   ;;  %v11710_v17 = vld [vmem:[%s12984_s6 + $0x2dc] ss:$24 sps:$4 sm:$0xff]  }
  0xdc   : > { %3816 = vmatpush1.bf16.msra.mxu1 %v10749_v30  ;;  %3624 = vmatprep.subr.bf16.mxu0 %v11124_v31  ;;  %v724_v21 = vld [vmem:[#allocation5 + $0xa40] sm:$0xff]  ;;  %v469_v26 = vld [vmem:[#allocation5 + $0x248] sm:$0xff]  ;;  %v13092_v9 = vld [vmem:[#allocation5 + $0x1d0] sm:$0xff] }
  0xdd   : > { %3295 = vmatmul.mubr.bf16.gmra.mxu0 %v11646_v27  ;;  %3817 = vmatprep.subr.bf16.mxu1 %v10870_v33  ;;  %v728_v22 = vld [vmem:[#allocation5 + $0xa60] sm:$0xff]  ;;  %v473_v27 = vld [vmem:[#allocation5 + $0x268] sm:$0xff]  ;;  %v13094_v11 = vld [vmem:[#allocation5 + $0x1f0] sm:$0xff] }
  0xde   : > { %3488 = vmatmul.mubr.bf16.gmra.mxu1 %v11647_v28  ;;  %3304 = vmatprep.mubr.bf16.mxu0 %v11648_v29  ;;  %v11664_v28 = vld [vmem:[%s12984_s6 + $0x150] ss:$24 sps:$4 sm:$0xff]   ;;  %v11083_v29 = vcombine.low %v732_v4, %v736_v5  ;;  %v716_v30 = vld [vmem:[#allocation5 + $0xa00] sm:$0xff]  ;;  %v11076_v35 = vcombine.high %v724_v21, %v728_v22  ;;  %v10822_v39 = vcombine.high %v469_v26, %v473_v27 }
  0xdf   : > { %3497 = vmatprep.mubr.bf16.mxu1 %v11650_v32  ;;  %3625 = vmatpush2.bf16.msra.mxu0 %v11123_v38  ;;  %v720_v31 = vld [vmem:[#allocation5 + $0xa20] sm:$0xff]  ;;  %v11665_v32 = vld [vmem:[%s12984_s6 + $0x158] ss:$24 sps:$4 sm:$0xff]   ;;  %v11075_v40 = vcombine.low %v724_v21, %v728_v22 }
  0xe0   : > { %3818 = vmatpush2.bf16.msra.mxu1 %v10869_v41  ;;  %3626 = vmatprep.subr.bf16.mxu0 %v11116_v42  ;;  %v11666_v33 = vld [vmem:[%s12984_s6 + $0x184] ss:$24 sps:$4 sm:$0xff]   ;;  %v10821_v41 = vcombine.low %v469_v26, %v473_v27  ;;  %v11068_v42 = vcombine.high %v716_v30, %v720_v31  ;;  %v11670_v44 = vld [vmem:[%s12984_s6 + $0x180] ss:$24 sps:$4 sm:$0xff]   ;;  %v11067_v45 = vcombine.low %v716_v30, %v720_v31  ;;  %v11700_v4 = vld [vmem:[%s12984_s6 + $0x270] ss:$24 sps:$4 sm:$0xff]  }
  0xe1   : > { %3819 = vmatprep.subr.bf16.mxu1 %v10862_v43  ;;  %v11668_v38 = vld [vmem:[%s12984_s6 + $0x18c] ss:$24 sps:$4 sm:$0xff]   ;;  %v10814_v43 = vcombine.high %v461_v36, %v465_v37  ;;  %v11694_v0 = vld [vmem:[%s12984_s6 + $0x240] ss:$24 sps:$4 sm:$0xff]   ;;  %v11714_v21 = vld [vmem:[%s12984_s6 + $0x10] ss:$24 sps:$4 sm:$0xff]  }
  0xe2   : > { %v11695_v1 = vld [vmem:[%s12984_s6 + $0x248] ss:$24 sps:$4 sm:$0xff]   ;;  %v11701_v5 = vld [vmem:[%s12984_s6 + $0x278] ss:$24 sps:$4 sm:$0xff]   ;;  %v12338_v22 = vld [vmem:[%s12984_s6 + $0x4] ss:$24 sps:$4 sm:$0xff]  }
  0xe3   : > { %3627 = vmatpush2.bf16.msra.mxu0 %v11115_v47  ;;  %v11672_v47 = vld [vmem:[%s12984_s6 + $0x1b4] ss:$24 sps:$4 sm:$0xff]   ;;  %v11717_v27 = vld [vmem:[%s12984_s6 + $0x44] ss:$24 sps:$4 sm:$0xff]   ;;  %v11719_v36 = vld [vmem:[%s12984_s6 + $0x40] ss:$24 sps:$4 sm:$0xff]  }
  0xe4   : > { %3820 = vmatpush2.bf16.msra.mxu1 %v10861_v52  ;;  %3628 = vmatprep.subr.bf16.mxu0 %v11108_v53  ;;  %v11676_v52 = vld [vmem:[%s12984_s6 + $0x1b0] ss:$24 sps:$4 sm:$0xff]  }
  0xe5   : > { %3305 = vmatmul.mubr.bf16.gmra.mxu0 %v11652_v46  ;;  %3821 = vmatprep.subr.bf16.mxu1 %v10854_v57  ;;  %v11671_v46 = vld [vmem:[%s12984_s6 + $0x188] ss:$24 sps:$4 sm:$0xff]   ;;  %v11677_v53 = vld [vmem:[%s12984_s6 + $0x1b8] ss:$24 sps:$4 sm:$0xff]  }
  0xe6   : > { %3498 = vmatmul.mubr.bf16.gmra.mxu1 %v11653_v50  ;;  %3314 = vmatprep.mubr.bf16.mxu0 %v11654_v51  ;;  %v11674_v50 = vld [vmem:[%s12984_s6 + $0x1bc] ss:$24 sps:$4 sm:$0xff]   ;;  %v11062_v51 = vcombine.high %v13019_v12, %v13021_v13  ;;  %v11683_v57 = vld [vmem:[%s12984_s6 + $0x1e8] ss:$24 sps:$4 sm:$0xff]   ;;  %v10807_v12 = vcombine.low %v13092_v9, %v13094_v11 }
  0xe7   : > { %3507 = vmatprep.mubr.bf16.mxu1 %v11656_v56  ;;  %3629 = vmatpush2.bf16.msra.mxu0 %v11107_v58  ;;  %v11682_v56 = vld [vmem:[%s12984_s6 + $0x1e0] ss:$24 sps:$4 sm:$0xff]   ;;  %v11684_v58 = vld [vmem:[%s12984_s6 + $0x214] ss:$24 sps:$4 sm:$0xff]  }
  0xe8   : > { %3822 = vmatpush2.bf16.msra.mxu1 %v10853_v61  ;;  %3630 = vmatprep.subr.bf16.mxu0 %v11100_v62  ;;  %v11689_v61 = vld [vmem:[%s12984_s6 + $0x218] ss:$24 sps:$4 sm:$0xff]   ;;  %v11690_v62 = vld [vmem:[%s12984_s6 + $0x244] ss:$24 sps:$4 sm:$0xff]   ;;  %v705_v26 = vld [vmem:[#allocation5 + $0x9a8] sm:$0xff] }
  0xe9   : > { %3823 = vmatprep.subr.bf16.mxu1 %v10846_v63  ;;  %v11692_v63 = vld [vmem:[%s12984_s6 + $0x24c] ss:$24 sps:$4 sm:$0xff]   ;;  %v13098_v13 = vld [vmem:[#allocation5 + $0x5d0] sm:$0xff] }
  0xea   : > { %v693_v30 = vld [vmem:[#allocation5 + $0x948] sm:$0xff] }
  0xeb   : > { %3631 = vmatpush2.bf16.msra.mxu0 %v11099_v3  ;;  %v11698_v3 = vld [vmem:[%s12984_s6 + $0x27c] ss:$24 sps:$4 sm:$0xff]   ;;  %v697_v31 = vld [vmem:[#allocation5 + $0x968] sm:$0xff] }
  0xec   : > { %3824 = vmatpush2.bf16.msra.mxu1 %v10845_v8  ;;  %3632 = vmatprep.subr.bf16.mxu0 %v11092_v10  ;;  %v11706_v8 = vld [vmem:[%s12984_s6 + $0x2a0] ss:$24 sps:$4 sm:$0xff]  }
  0xed   : > { %3315 = vmatmul.mubr.bf16.gmra.mxu0 %v11658_v2  ;;  %3825 = vmatprep.subr.bf16.mxu1 %v10838_v19  ;;  %v11696_v2 = vld [vmem:[%s12984_s6 + $0x274] ss:$24 sps:$4 sm:$0xff]   ;;  %v11707_v10 = vld [vmem:[%s12984_s6 + $0x2a8] ss:$24 sps:$4 sm:$0xff]   ;;  %v11713_v19 = vld [vmem:[%s12984_s6 + $0x2d8] ss:$24 sps:$4 sm:$0xff]  }
  0xee   : > { %3508 = vmatmul.mubr.bf16.gmra.mxu1 %v11659_v6  ;;  %3324 = vmatprep.mubr.bf16.mxu0 %v11660_v7  ;;  %v11702_v6 = vld [vmem:[%s12984_s6 + $0x2a4] ss:$24 sps:$4 sm:$0xff]  }
  0xef   : > { %3517 = vmatprep.mubr.bf16.mxu1 %v11662_v18  ;;  %3633 = vmatpush2.bf16.msra.mxu0 %v11091_v20  ;;  %v11704_v7 = vld [vmem:[%s12984_s6 + $0x2ac] ss:$24 sps:$4 sm:$0xff]   ;;  %v11712_v18 = vld [vmem:[%s12984_s6 + $0x2d0] ss:$24 sps:$4 sm:$0xff]  }
  0xf0   : > { %3826 = vmatpush2.bf16.msra.mxu1 %v10837_v23  ;;  %3634 = vmatprep.subr.bf16.mxu0 %v11084_v24  ;;  %v11716_v20 = vld [vmem:[%s12984_s6 + $0x14] ss:$24 sps:$4 sm:$0xff]  }
  0xf1   : > { %3827 = vmatprep.subr.bf16.mxu1 %v10830_v25  ;;  %v573_v23 = vld [vmem:[#allocation5 + $0x588] sm:$0xff] }
  0xf2   : > { %v577_v24 = vld [vmem:[#allocation5 + $0x5a8] sm:$0xff] }
  0xf3   : > { %3635 = vmatpush2.bf16.msra.mxu0 %v11083_v29  ;;  %v701_v25 = vld [vmem:[#allocation5 + $0x988] sm:$0xff] }
  0xf4   : > { %3828 = vmatpush2.bf16.msra.mxu1 %v10829_v34  ;;  %3636 = vmatprep.subr.bf16.mxu0 %v11076_v35  ;;  %v569_v29 = vld [vmem:[#allocation5 + $0x568] sm:$0xff]  ;;  %v12339_v34 = vld [vmem:[%s12984_s6] ss:$24 sps:$4 sm:$0xff]   ;;  %v10925_v35 = vcombine.low %v573_v23, %v577_v24  ;;  %v11053_v37 = vcombine.low %v701_v25, %v705_v26 }
  0xf5   : > { %3325 = vmatmul.mubr.bf16.gmra.mxu0 %v11664_v28  ;;  %3829 = vmatprep.subr.bf16.mxu1 %v10822_v39  ;;  %v565_v28 = vld [vmem:[#allocation5 + $0x548] sm:$0xff] }
  0xf6   : > { %3518 = vmatmul.mubr.bf16.gmra.mxu1 %v11665_v32  ;;  %3334 = vmatprep.mubr.bf16.mxu0 %v11666_v33  ;;  %v10926_v32 = vcombine.high %v573_v23, %v577_v24  ;;  %v11054_v33 = vcombine.high %v701_v25, %v705_v26  ;;  %v557_v39 = vld [vmem:[#allocation5 + $0x508] sm:$0xff] }
  0xf7   : > { %3527 = vmatprep.mubr.bf16.mxu1 %v11668_v38  ;;  %3637 = vmatpush2.bf16.msra.mxu0 %v11075_v40  ;;  %v10918_v38 = vcombine.high %v565_v28, %v569_v29  ;;  %v561_v40 = vld [vmem:[#allocation5 + $0x528] sm:$0xff] }
  0xf8   : > { %3830 = vmatpush2.bf16.msra.mxu1 %v10821_v41  ;;  %3638 = vmatprep.subr.bf16.mxu0 %v11068_v42  ;;  %v12340_v41 = vld [vmem:[%s12984_s6 + $0x34] ss:$24 sps:$4 sm:$0xff]  }
  0xf9   : > { %3831 = vmatprep.subr.bf16.mxu1 %v10814_v43  ;;  %v11720_v42 = vld [vmem:[%s12984_s6 + $0x74] ss:$24 sps:$4 sm:$0xff]   ;;  %v11046_v43 = vcombine.high %v693_v30, %v697_v31 }
  0xfa   : > { %v525_v23 = vld [vmem:[#allocation5 + $0x408] sm:$0xff] }
  0xfb   : > { %3639 = vmatpush2.bf16.msra.mxu0 %v11067_v45  ;;  %v689_v45 = vld [vmem:[#allocation5 + $0x928] sm:$0xff] }
  0xfc   : > { %3832 = vmatpush2.bf16.msra.mxu1 %v10813_v48  ;;  %3994 = vmatprep.subr.bf16.mxu0 %v10934_v49  ;;  %v11045_v49 = vcombine.low %v693_v30, %v697_v31  ;;  %v529_v24 = vld [vmem:[#allocation5 + $0x428] sm:$0xff] }
  0xfd   : > { %3335 = vmatmul.mubr.bf16.gmra.mxu0 %v11670_v44  ;;  %4187 = vmatprep.subr.bf16.mxu1 %v11062_v51  ;;  %v685_v44 = vld [vmem:[#allocation5 + $0x908] sm:$0xff] }
  0xfe   : > { %3528 = vmatmul.mubr.bf16.gmra.mxu1 %v11671_v46  ;;  %3344 = vmatprep.mubr.bf16.mxu0 %v11672_v47  ;;  %v549_v46 = vld [vmem:[#allocation5 + $0x4c8] sm:$0xff] }
  0xff   : > { %3537 = vmatprep.mubr.bf16.mxu1 %v11674_v50  ;;  %v553_v47 = vld [vmem:[#allocation5 + $0x4e8] sm:$0xff]  ;;  %v10910_v50 = vcombine.high %v557_v39, %v561_v40 }
 0x100   : > { %v677_v51 = vld [vmem:[#allocation5 + $0x8c8] sm:$0xff] }
 0x101   : > { %v653_v26 = vld [vmem:[#allocation5 + $0x808] sm:$0xff] }
 0x102   : > { %v649_v30 = vld [vmem:[#allocation5 + $0x7e8] sm:$0xff] }
 0x105   : > { %3345 = vmatmul.mubr.bf16.gmra.mxu0 %v11676_v52  ;;  %v681_v52 = vld [vmem:[#allocation5 + $0x8e8] sm:$0xff] }
 0x106   : > { %3538 = vmatmul.mubr.bf16.gmra.mxu1 %v11677_v53  ;;  %3354 = vmatprep.mubr.bf16.mxu0 %v11678_v54  ;;  %v11038_v53 = vcombine.high %v685_v44, %v689_v45  ;;  %v12341_v54 = vld [vmem:[%s12984_s6 + $0x30] ss:$24 sps:$4 sm:$0xff]  }
 0x107   : > { %3547 = vmatprep.mubr.bf16.mxu1 %v11680_v55  ;;  %v12342_v55 = vld [vmem:[%s12984_s6 + $0x64] ss:$24 sps:$4 sm:$0xff]  }
 0x10d   : > { %3355 = vmatmul.mubr.bf16.gmra.mxu0 %v11682_v56  ;;  %v11722_v56 = vld [vmem:[%s12984_s6 + $0x70] ss:$24 sps:$4 sm:$0xff]  }
 0x10e   : > { %3548 = vmatmul.mubr.bf16.gmra.mxu1 %v11683_v57  ;;  %3364 = vmatprep.mubr.bf16.mxu0 %v11684_v58  ;;  %v10909_v57 = vcombine.low %v557_v39, %v561_v40  ;;  %v11723_v58 = vld [vmem:[%s12984_s6 + $0xa4] ss:$24 sps:$4 sm:$0xff]   ;;  %v10877_v39 = vcombine.low %v525_v23, %v529_v24 }
 0x10f   : > { %3557 = vmatprep.mubr.bf16.mxu1 %v11686_v59  ;;  %v11037_v59 = vcombine.low %v685_v44, %v689_v45  ;;  %v11729_v40 = vld [vmem:[%s12984_s6 + $0x104] ss:$24 sps:$4 sm:$0xff]   ;;  %v641_v44 = vld [vmem:[#allocation5 + $0x7a8] sm:$0xff] }
 0x115   : > { %3365 = vmatmul.mubr.bf16.gmra.mxu0 %v11688_v60  ;;  %v10902_v60 = vcombine.high %v549_v46, %v553_v47 }
 0x116   : > { %3558 = vmatmul.mubr.bf16.gmra.mxu1 %v11689_v61  ;;  %3374 = vmatprep.mubr.bf16.mxu0 %v11690_v62  ;;  %v541_v61 = vld [vmem:[#allocation5 + $0x488] sm:$0xff] }
 0x117   : > { %3567 = vmatprep.mubr.bf16.mxu1 %v11692_v63  ;;  %v545_v62 = vld [vmem:[#allocation5 + $0x4a8] sm:$0xff]  ;;  %v11030_v63 = vcombine.high %v677_v51, %v681_v52 }
 0x11d   : > { %3375 = vmatmul.mubr.bf16.gmra.mxu0 %v11694_v0  ;;  %v669_v0 = vld [vmem:[#allocation5 + $0x888] sm:$0xff] }
 0x11e   : > { %3568 = vmatmul.mubr.bf16.gmra.mxu1 %v11695_v1  ;;  %3384 = vmatprep.mubr.bf16.mxu0 %v11696_v2  ;;  %v673_v1 = vld [vmem:[#allocation5 + $0x8a8] sm:$0xff]  ;;  %v10901_v2 = vcombine.low %v549_v46, %v553_v47 }
 0x11f   : > { %3577 = vmatprep.mubr.bf16.mxu1 %v11698_v3  ;;  %v533_v3 = vld [vmem:[#allocation5 + $0x448] sm:$0xff] }
 0x120   : > { %v769_v46 = vld [vmem:[#allocation5 + $0xba8] sm:$0xff] }
 0x125   : > { %3385 = vmatmul.mubr.bf16.gmra.mxu0 %v11700_v4  ;;  %v537_v4 = vld [vmem:[#allocation5 + $0x468] sm:$0xff] }
 0x126   : > { %3578 = vmatmul.mubr.bf16.gmra.mxu1 %v11701_v5  ;;  %3394 = vmatprep.mubr.bf16.mxu0 %v11702_v6  ;;  %v11029_v5 = vcombine.low %v677_v51, %v681_v52  ;;  %v10894_v6 = vcombine.high %v541_v61, %v545_v62 }
 0x127   : > { %3587 = vmatprep.mubr.bf16.mxu1 %v11704_v7  ;;  %v661_v7 = vld [vmem:[#allocation5 + $0x848] sm:$0xff] }
 0x12d   : > { %3395 = vmatmul.mubr.bf16.gmra.mxu0 %v11706_v8  ;;  %v665_v8 = vld [vmem:[#allocation5 + $0x868] sm:$0xff] }
 0x12e   : > { %3588 = vmatmul.mubr.bf16.gmra.mxu1 %v11707_v10  ;;  %3404 = vmatprep.mubr.bf16.mxu0 %v11708_v14  ;;  %v11022_v10 = vcombine.high %v669_v0, %v673_v1  ;;  %v12343_v14 = vld [vmem:[%s12984_s6 + $0x60] ss:$24 sps:$4 sm:$0xff]   ;;  %v11014_v25 = vcombine.high %v661_v7, %v665_v8  ;;  %v11013_v31 = vcombine.low %v661_v7, %v665_v8 }
 0x12f   : > { %3597 = vmatprep.mubr.bf16.mxu1 %v11710_v17  ;;  %v12344_v17 = vld [vmem:[%s12984_s6 + $0x94] ss:$24 sps:$4 sm:$0xff]  }
 0x135   : > { %3405 = vmatmul.mubr.bf16.gmra.mxu0 %v11712_v18  ;;  %v11725_v18 = vld [vmem:[%s12984_s6 + $0xa0] ss:$24 sps:$4 sm:$0xff]  }
 0x136   : > { %3598 = vmatmul.mubr.bf16.gmra.mxu1 %v11713_v19  ;;  %3640 = vmatprep.mubr.bf16.mxu0 %v11716_v20  ;;  %v10893_v19 = vcombine.low %v541_v61, %v545_v62  ;;  %v11726_v20 = vld [vmem:[%s12984_s6 + $0xd4] ss:$24 sps:$4 sm:$0xff]  }
 0x137   : > { %3833 = vmatprep.mubr.bf16.mxu1 %v12338_v22  ;;  %v10886_v22 = vcombine.high %v533_v3, %v537_v4 }
 0x13d   : > { %3641 = vmatmul.mubr.bf16.vlgmr.msra.gmra.mxu0 %v11714_v21  ;;  %v11021_v21 = vcombine.low %v669_v0, %v673_v1  ;;  %v625_v0 = vld [vmem:[#allocation5 + $0x728] sm:$0xff] }
 0x13e   : > { %3834 = vmatmul.mubr.bf16.vlgmr.msra.gmra.mxu1 %v12339_v34  ;;  %3995 = vmatpush1.bf16.msra.mxu0 %v10933_v15  ;;  %v13100_v15 = vld [vmem:[#allocation5 + $0x5f0] sm:$0xff]  ;;  %v777_v34 = vld [vmem:[#allocation5 + $0xbe8] sm:$0xff] }
 0x13f   : > { %4188 = vmatpush1.bf16.msra.mxu1 %v11061_v16  ;;  %3650 = vmatprep.mubr.bf16.mxu0 %v11717_v27  ;;  %v10917_v16 = vcombine.low %v565_v28, %v569_v29  ;;  %v10935_v48 = vcombine.low %v13098_v13, %v13100_v15  ;;  %v657_v27 = vld [vmem:[#allocation5 + $0x828] sm:$0xff]  ;;  %v10885_v28 = vcombine.low %v533_v3, %v537_v4 }
 0x140   : > { %3843 = vmatprep.mubr.bf16.mxu1 %v12340_v41  ;;  %3996 = vmatprep.subr.bf16.mxu0 %v10926_v32  ;;  %v645_v29 = vld [vmem:[#allocation5 + $0x7c8] sm:$0xff]  ;;  %v10878_v32 = vcombine.high %v525_v23, %v529_v24  ;;  %v11005_v41 = vcombine.low %v653_v26, %v657_v27 }
 0x141   : > { %4189 = vmatprep.subr.bf16.mxu1 %v11054_v33  ;;  %v773_v33 = vld [vmem:[#allocation5 + $0xbc8] sm:$0xff]  ;;  %v10997_v47 = vcombine.low %v645_v29, %v649_v30 }
 0x142   : > { %3997 = vmatpush1.bf16.msra.mxu0 %v10925_v35  ;;  %v11006_v35 = vcombine.high %v653_v26, %v657_v27  ;;  %v11126_v45 = vcombine.high %v773_v33, %v777_v34  ;;  %v11125_v51 = vcombine.low %v773_v33, %v777_v34  ;;  %v753_v3 = vld [vmem:[#allocation5 + $0xb28] sm:$0xff] }
 0x143   : > { %4190 = vmatpush1.bf16.msra.mxu1 %v11053_v37  ;;  %3998 = vmatprep.subr.bf16.mxu0 %v10918_v38  ;;  %v12346_v37 = vld [vmem:[%s12984_s6 + $0xc4] ss:$24 sps:$4 sm:$0xff]   ;;  %v11728_v38 = vld [vmem:[%s12984_s6 + $0xd0] ss:$24 sps:$4 sm:$0xff]  }
 0x144   : > { %4191 = vmatprep.subr.bf16.mxu1 %v11046_v43  ;;  %v637_v43 = vld [vmem:[#allocation5 + $0x788] sm:$0xff] }
 0x145   : > { %3651 = vmatmul.mubr.bf16.gmra.mxu0 %v11719_v36  ;;  %v12345_v36 = vld [vmem:[%s12984_s6 + $0x90] ss:$24 sps:$4 sm:$0xff]   ;;  %v10990_v52 = vcombine.high %v637_v43, %v641_v44 }
 0x146   : > { %3844 = vmatmul.mubr.bf16.gmra.mxu1 %v12341_v54  ;;  %3660 = vmatprep.mubr.bf16.mxu0 %v11720_v42  ;;  %v10998_v42 = vcombine.high %v645_v29, %v649_v30  ;;  %v761_v54 = vld [vmem:[#allocation5 + $0xb68] sm:$0xff] }
 0x147   : > { %3853 = vmatprep.mubr.bf16.mxu1 %v12342_v55  ;;  %3999 = vmatpush1.bf16.msra.mxu0 %v10917_v16  ;;  %v765_v16 = vld [vmem:[#allocation5 + $0xb88] sm:$0xff] }
 0x148   : > { %4192 = vmatpush1.bf16.msra.mxu1 %v11045_v49  ;;  %4000 = vmatprep.subr.bf16.mxu0 %v10910_v50  ;;  %v629_v49 = vld [vmem:[#allocation5 + $0x748] sm:$0xff]  ;;  %v11118_v55 = vcombine.high %v765_v16, %v769_v46  ;;  %v11117_v61 = vcombine.low %v765_v16, %v769_v46 }
 0x149   : > { %4193 = vmatprep.subr.bf16.mxu1 %v11038_v53  ;;  %v633_v50 = vld [vmem:[#allocation5 + $0x768] sm:$0xff] }
 0x14a   : > { %v757_v53 = vld [vmem:[#allocation5 + $0xb48] sm:$0xff]  ;;  %v10982_v62 = vcombine.high %v629_v49, %v633_v50  ;;  %v10981_v4 = vcombine.low %v629_v49, %v633_v50 }
 0x14b   : > { %4001 = vmatpush1.bf16.msra.mxu0 %v10909_v57  ;;  %v12348_v57 = vld [vmem:[%s12984_s6 + $0xf4] ss:$24 sps:$4 sm:$0xff]   ;;  %v11110_v1 = vcombine.high %v757_v53, %v761_v54  ;;  %v11109_v7 = vcombine.low %v757_v53, %v761_v54 }
 0x14c   : > { %4194 = vmatpush1.bf16.msra.mxu1 %v11037_v59  ;;  %4002 = vmatprep.subr.bf16.mxu0 %v10902_v60  ;;  %v10989_v59 = vcombine.low %v637_v43, %v641_v44  ;;  %v11732_v60 = vld [vmem:[%s12984_s6 + $0x134] ss:$24 sps:$4 sm:$0xff]  }
 0x14d   : > { %3661 = vmatmul.mubr.bf16.gmra.mxu0 %v11722_v56  ;;  %4195 = vmatprep.subr.bf16.mxu1 %v11030_v63  ;;  %v12347_v56 = vld [vmem:[%s12984_s6 + $0xc0] ss:$24 sps:$4 sm:$0xff]   ;;  %v621_v63 = vld [vmem:[#allocation5 + $0x708] sm:$0xff] }
 0x14e   : > { %3854 = vmatmul.mubr.bf16.gmra.mxu1 %v12343_v14  ;;  %3670 = vmatprep.mubr.bf16.mxu0 %v11723_v58  ;;  %v11731_v58 = vld [vmem:[%s12984_s6 + $0x100] ss:$24 sps:$4 sm:$0xff]   ;;  %v10974_v8 = vcombine.high %v621_v63, %v625_v0  ;;  %v745_v14 = vld [vmem:[#allocation5 + $0xae8] sm:$0xff] }
 0x14f   : > { %3863 = vmatprep.mubr.bf16.mxu1 %v12344_v17  ;;  %4003 = vmatpush1.bf16.msra.mxu0 %v10901_v2  ;;  %v749_v2 = vld [vmem:[#allocation5 + $0xb08] sm:$0xff] }
 0x150   : > { %4196 = vmatpush1.bf16.msra.mxu1 %v11029_v5  ;;  %4004 = vmatprep.subr.bf16.mxu0 %v10894_v6  ;;  %v613_v5 = vld [vmem:[#allocation5 + $0x6c8] sm:$0xff]  ;;  %v11102_v17 = vcombine.high %v749_v2, %v753_v3  ;;  %v11101_v23 = vcombine.low %v749_v2, %v753_v3  ;;  %v11741_v3 = vld [vmem:[%s12984_s6 + $0x1c4] ss:$24 sps:$4 sm:$0xff]  }
 0x151   : > { %4197 = vmatprep.subr.bf16.mxu1 %v11022_v10  ;;  %v617_v6 = vld [vmem:[#allocation5 + $0x6e8] sm:$0xff] }
 0x152   : > { %v741_v10 = vld [vmem:[#allocation5 + $0xac8] sm:$0xff]  ;;  %v10966_v24 = vcombine.high %v613_v5, %v617_v6  ;;  %v10965_v30 = vcombine.low %v613_v5, %v617_v6 }
 0x153   : > { %4005 = vmatpush1.bf16.msra.mxu0 %v10893_v19  ;;  %v12350_v19 = vld [vmem:[%s12984_s6 + $0x124] ss:$24 sps:$4 sm:$0xff]   ;;  %v609_v26 = vld [vmem:[#allocation5 + $0x6a8] sm:$0xff]  ;;  %v11094_v27 = vcombine.high %v741_v10, %v745_v14  ;;  %v11093_v33 = vcombine.low %v741_v10, %v745_v14 }
 0x154   : > { %4198 = vmatpush1.bf16.msra.mxu1 %v11021_v21  ;;  %4006 = vmatprep.subr.bf16.mxu0 %v10886_v22  ;;  %v10973_v21 = vcombine.low %v621_v63, %v625_v0  ;;  %v11735_v22 = vld [vmem:[%s12984_s6 + $0x164] ss:$24 sps:$4 sm:$0xff]   ;;  %v737_v29 = vld [vmem:[#allocation5 + $0xaa8] sm:$0xff]  ;;  %v10808_v0 = vcombine.high %v13092_v9, %v13094_v11  ;;  %v13310_v9 = vld [vmem:[#allocation5 + $0x9f0] sm:$0xff] }
 0x155   : > { %3671 = vmatmul.mubr.bf16.gmra.mxu0 %v11725_v18  ;;  %4199 = vmatprep.subr.bf16.mxu1 %v11014_v25  ;;  %v12349_v18 = vld [vmem:[%s12984_s6 + $0xf0] ss:$24 sps:$4 sm:$0xff]   ;;  %v11738_v43 = vld [vmem:[%s12984_s6 + $0x194] ss:$24 sps:$4 sm:$0xff]  }
 0x156   : > { %3864 = vmatmul.mubr.bf16.gmra.mxu1 %v12345_v36  ;;  %3680 = vmatprep.mubr.bf16.mxu0 %v11726_v20  ;;  %v11734_v20 = vld [vmem:[%s12984_s6 + $0x130] ss:$24 sps:$4 sm:$0xff]   ;;  %v12356_v14 = vld [vmem:[%s12984_s6 + $0x1b4] ss:$24 sps:$4 sm:$0xff]  }
 0x157   : > { %3873 = vmatprep.mubr.bf16.mxu1 %v12346_v37  ;;  %4007 = vmatpush1.bf16.msra.mxu0 %v10885_v28  ;;  %v605_v25 = vld [vmem:[#allocation5 + $0x688] sm:$0xff] }
 0x158   : > { %4200 = vmatpush1.bf16.msra.mxu1 %v11013_v31  ;;  %4008 = vmatprep.subr.bf16.mxu0 %v10878_v32  ;;  %v733_v28 = vld [vmem:[#allocation5 + $0xa88] sm:$0xff]  ;;  %v10958_v34 = vcombine.high %v605_v25, %v609_v26 }
 0x159   : > { %4201 = vmatprep.subr.bf16.mxu1 %v11006_v35  ;;  %v597_v31 = vld [vmem:[#allocation5 + $0x648] sm:$0xff]  ;;  %v11086_v37 = vcombine.high %v733_v28, %v737_v29  ;;  %v11085_v44 = vcombine.low %v733_v28, %v737_v29 }
 0x15a   : > { %v601_v32 = vld [vmem:[#allocation5 + $0x668] sm:$0xff] }
 0x15b   : > { %4009 = vmatpush1.bf16.msra.mxu0 %v10877_v39  ;;  %v725_v35 = vld [vmem:[#allocation5 + $0xa48] sm:$0xff]  ;;  %v782_v39 = vlaneseq }
 0x15c   : > { %4202 = vmatpush1.bf16.msra.mxu1 %v11005_v41  ;;  %4010 = vmatprep.subr.bf16.mxu0 %v10998_v42  ;;  %v729_v36 = vld [vmem:[#allocation5 + $0xa68] sm:$0xff]  ;;  %v11737_v41 = vld [vmem:[%s12984_s6 + $0x160] ss:$24 sps:$4 sm:$0xff]   ;;  %v10957_v42 = vcombine.low %v605_v25, %v609_v26 }
 0x15d   : > { %3681 = vmatmul.mubr.bf16.gmra.mxu0 %v11728_v38  ;;  %4203 = vmatprep.subr.bf16.mxu1 %v11126_v45  ;;  %v12351_v38 = vld [vmem:[%s12984_s6 + $0x120] ss:$24 sps:$4 sm:$0xff]   ;;  %v10950_v45 = vcombine.high %v597_v31, %v601_v32  ;;  %v589_v16 = vld [vmem:[#allocation5 + $0x608] sm:$0xff]  ;;  %v13128_v49 = vshrl.u32 %v782_v39, 7  ;;  %v11077_v53 = vcombine.low %v725_v35, %v729_v36 }
 0x15e   : > { %3874 = vmatmul.mubr.bf16.gmra.mxu1 %v12347_v56  ;;  %3690 = vmatprep.mubr.bf16.mxu0 %v11729_v40  ;;  %v12352_v40 = vld [vmem:[%s12984_s6 + $0x154] ss:$24 sps:$4 sm:$0xff]  }
 0x15f   : > { %3883 = vmatprep.mubr.bf16.mxu1 %v12348_v57  ;;  %4011 = vmatpush2.bf16.msra.mxu0 %v10997_v47  ;;  %v593_v46 = vld [vmem:[#allocation5 + $0x628] sm:$0xff]  ;;  %v11078_v47 = vcombine.high %v725_v35, %v729_v36  ;;  %16805 = vst [vmem:[#allocation16_spill] sm:$0xff] %v13128_v49  ;;  %v12358_v36 = vld [vmem:[%s12984_s6 + $0x1e4] ss:$24 sps:$4 sm:$0xff]  }
 0x160   : > { %4204 = vmatpush2.bf16.msra.mxu1 %v11125_v51  ;;  %4012 = vmatprep.subr.bf16.mxu0 %v10990_v52  ;;  %v717_v50 = vld [vmem:[#allocation5 + $0xa08] sm:$0xff]  ;;  %v10949_v52 = vcombine.low %v597_v31, %v601_v32  ;;  %v10942_v54 = vcombine.high %v589_v16, %v593_v46 }
 0x161   : > { %4205 = vmatprep.subr.bf16.mxu1 %v11118_v55  ;;  %v721_v51 = vld [vmem:[#allocation5 + $0xa28] sm:$0xff]  ;;  %v780_v55 = vld [vmem:[#allocation7] sm:$0xff] }
 0x162   : > { %v11070_v56 = vcombine.high %v717_v50, %v721_v51  ;;  %v12353_v57 = vld [vmem:[%s12984_s6 + $0x150] ss:$24 sps:$4 sm:$0xff]   ;;  %v11069_v63 = vcombine.low %v717_v50, %v721_v51 }
 0x163   : > { %4013 = vmatpush2.bf16.msra.mxu0 %v10989_v59  ;;  %v12354_v59 = vld [vmem:[%s12984_s6 + $0x184] ss:$24 sps:$4 sm:$0xff]  }
 0x164   : > { %4206 = vmatpush2.bf16.msra.mxu1 %v11117_v61  ;;  %4014 = vmatprep.subr.bf16.mxu0 %v10982_v62  ;;  %v11740_v61 = vld [vmem:[%s12984_s6 + $0x190] ss:$24 sps:$4 sm:$0xff]   ;;  %v16600_v62 = vsub.s32 1, %v13128_v49 }
 0x165   : > { %3691 = vmatmul.mubr.bf16.gmra.mxu0 %v11731_v58  ;;  %4207 = vmatprep.subr.bf16.mxu1 %v11110_v1  ;;  %v16601_v58 = vsub.s32 0, %v13128_v49  ;;  %v10936_v1 = vcombine.high %v13098_v13, %v13100_v15  ;;  %v12375_v15 = vld [vmem:[%s12984_s6 + $0x44] ss:$24 sps:$4 sm:$0xff]  }
 0x166   : > { %3884 = vmatmul.mubr.bf16.gmra.mxu1 %v12349_v18  ;;  %3700 = vmatprep.mubr.bf16.mxu0 %v11732_v60  ;;  %v10941_v60 = vcombine.low %v589_v16, %v593_v46 }
 0x167   : > { %3893 = vmatprep.mubr.bf16.mxu1 %v12350_v19  ;;  %4015 = vmatpush2.bf16.msra.mxu0 %v10981_v4  ;;  %v13141_v2 = vrot.slane %v780_v55, %v16601_v58  ;;  %v13146_v4 = vrot.slane %v780_v55, %v16600_v62  ;;  %v12359_v55 = vld [vmem:[%s12984_s6 + $0x1e0] ss:$24 sps:$4 sm:$0xff]   ;;  %v13301_v62 = vld [vmem:[%s12984_s6 + $0x3c] ss:$24 sps:$4 sm:$0xff]  }
 0x168   : > { %4208 = vmatpush2.bf16.msra.mxu1 %v11109_v7  ;;  %4016 = vmatprep.subr.bf16.mxu0 %v10974_v8  ;;  %v12355_v8 = vld [vmem:[%s12984_s6 + $0x180] ss:$24 sps:$4 sm:$0xff]   ;;  %16810 = vst [vmem:[#allocation21_spill] sm:$0xff] %v13301_v62 }
 0x169   : > { %4209 = vmatprep.subr.bf16.mxu1 %v11102_v17  ;;  %v13320_v58 = vld [vmem:[#allocation5 + $0x1f8] sm:$0xff] }
 0x16b   : > { %4017 = vmatpush2.bf16.msra.mxu0 %v10973_v21  ;;  %v11743_v21 = vld [vmem:[%s12984_s6 + $0x1c0] ss:$24 sps:$4 sm:$0xff]  }
 0x16c   : > { %4210 = vmatpush2.bf16.msra.mxu1 %v11101_v23  ;;  %4018 = vmatprep.subr.bf16.mxu0 %v10966_v24 }
 0x16d   : > { %3701 = vmatmul.mubr.bf16.gmra.mxu0 %v11734_v20  ;;  %4211 = vmatprep.subr.bf16.mxu1 %v11094_v27 }
 0x16e   : > { %3894 = vmatmul.mubr.bf16.gmra.mxu1 %v12351_v38  ;;  %3710 = vmatprep.mubr.bf16.mxu0 %v11735_v22  ;;  %v11744_v22 = vld [vmem:[%s12984_s6 + $0x1f4] ss:$24 sps:$4 sm:$0xff]  }
 0x16f   : > { %3903 = vmatprep.mubr.bf16.mxu1 %v12352_v40  ;;  %4019 = vmatpush2.bf16.msra.mxu0 %v10965_v30 }
 0x170   : > { %4212 = vmatpush2.bf16.msra.mxu1 %v11093_v33  ;;  %4020 = vmatprep.subr.bf16.mxu0 %v10958_v34  ;;  %v12357_v34 = vld [vmem:[%s12984_s6 + $0x1b0] ss:$24 sps:$4 sm:$0xff]  }
 0x171   : > { %4213 = vmatprep.subr.bf16.mxu1 %v11086_v37 }
 0x173   : > { %4021 = vmatpush2.bf16.msra.mxu0 %v10957_v42 }
 0x174   : > { %4214 = vmatpush2.bf16.msra.mxu1 %v11085_v44  ;;  %4022 = vmatprep.subr.bf16.mxu0 %v10950_v45  ;;  %v11747_v45 = vld [vmem:[%s12984_s6 + $0x224] ss:$24 sps:$4 sm:$0xff]  }
 0x175   : > { %3711 = vmatmul.mubr.bf16.gmra.mxu0 %v11737_v41  ;;  %4215 = vmatprep.subr.bf16.mxu1 %v11078_v47  ;;  %v11746_v41 = vld [vmem:[%s12984_s6 + $0x1f0] ss:$24 sps:$4 sm:$0xff]  }
 0x176   : > { %3904 = vmatmul.mubr.bf16.gmra.mxu1 %v12353_v57  ;;  %3720 = vmatprep.mubr.bf16.mxu0 %v11738_v43  ;;  %v12360_v57 = vld [vmem:[%s12984_s6 + $0x214] ss:$24 sps:$4 sm:$0xff]  }
 0x177   : > { %3913 = vmatprep.mubr.bf16.mxu1 %v12354_v59  ;;  %4023 = vmatpush2.bf16.msra.mxu0 %v10949_v52 }
 0x178   : > { %4216 = vmatpush2.bf16.msra.mxu1 %v11077_v53  ;;  %4024 = vmatprep.subr.bf16.mxu0 %v10942_v54 }
 0x179   : > { %4217 = vmatprep.subr.bf16.mxu1 %v11070_v56 }
 0x17b   : > { %4025 = vmatpush2.bf16.msra.mxu0 %v10941_v60 }
 0x17c   : > { %4218 = vmatpush2.bf16.msra.mxu1 %v11069_v63  ;;  %4380 = vmatprep.subr.bf16.mxu0 %v10808_v0  ;;  %v11749_v0 = vld [vmem:[%s12984_s6 + $0x220] ss:$24 sps:$4 sm:$0xff]  }
 0x17d   : > { %v3256_v5 = vpop.f32.mrf.mxu0  ;;  %3721 = vmatmul.mubr.bf16.gmra.mxu0 %v11740_v61  ;;  %4573 = vmatprep.subr.bf16.mxu1 %v10936_v1 }
 0x17e   : > { %v3257_v6 = vadd.f32 %v3256_v5, %v13141_v2  ;;  %v3449_v7 = vpop.f32.mrf.mxu1  ;;  %3914 = vmatmul.mubr.bf16.gmra.mxu1 %v12355_v8  ;;  %3730 = vmatprep.mubr.bf16.mxu0 %v11741_v3 }
 0x17f   : > { %v3258_v10 = vpop.f32.mrf.mxu0  ;;  %3923 = vmatprep.mubr.bf16.mxu1 %v12356_v14 }
 0x180   : > { %v13151_v17 = vadd.f32 %v3449_v7, %v3257_v6  ;;  %v3259_v18 = vadd.f32 %v3258_v10, %v13146_v4  ;;  %v3451_v19 = vpop.f32.mrf.mxu1  ;;  %v11750_v6 = vld [vmem:[%s12984_s6 + $0x254] ss:$24 sps:$4 sm:$0xff]  }
 0x181   : > { %v3260_v20 = vpop.f32.mrf.mxu0 }
 0x182   : > { %v13156_v23 = vadd.f32 %v3451_v19, %v3259_v18  ;;  %v3261_v24 = vadd.f32 %v3260_v20, %v13141_v2  ;;  %v3453_v25 = vpop.f32.mrf.mxu1 }
 0x183   : > { %v3262_v26 = vpop.f32.mrf.mxu0 }
 0x184   : > { %v13159_v27 = vadd.f32 %v3453_v25, %v3261_v24  ;;  %v3263_v28 = vadd.f32 %v3262_v26, %v13146_v4  ;;  %v3455_v29 = vpop.f32.mrf.mxu1  ;;  %v12362_v25 = vld [vmem:[%s12984_s6 + $0x244] ss:$24 sps:$4 sm:$0xff]  }
 0x185   : > { %v3266_v30 = vpop.f32.mrf.mxu0  ;;  %3731 = vmatmul.mubr.bf16.gmra.mxu0 %v11743_v21 }
 0x186   : > { %v13162_v31 = vadd.f32 %v3455_v29, %v3263_v28  ;;  %v3267_v32 = vadd.f32 %v3266_v30, %v13141_v2  ;;  %v3459_v33 = vpop.f32.mrf.mxu1  ;;  %3924 = vmatmul.mubr.bf16.gmra.mxu1 %v12357_v34  ;;  %3740 = vmatprep.mubr.bf16.mxu0 %v11744_v22  ;;  %v12361_v22 = vld [vmem:[%s12984_s6 + $0x210] ss:$24 sps:$4 sm:$0xff]  }
 0x187   : > { %v3268_v35 = vpop.f32.mrf.mxu0  ;;  %3933 = vmatprep.mubr.bf16.mxu1 %v12358_v36  ;;  %v11753_v36 = vld [vmem:[%s12984_s6 + $0x284] ss:$24 sps:$4 sm:$0xff]  }
 0x188   : > { %v13167_v37 = vadd.f32 %v3459_v33, %v3267_v32  ;;  %v3269_v38 = vadd.f32 %v3268_v35, %v13146_v4  ;;  %v3461_v39 = vpop.f32.mrf.mxu1  ;;  %v11752_v32 = vld [vmem:[%s12984_s6 + $0x250] ss:$24 sps:$4 sm:$0xff]  }
 0x189   : > { %v3270_v40 = vpop.f32.mrf.mxu0 }
 0x18a   : > { %v13171_v42 = vadd.f32 %v3461_v39, %v3269_v38  ;;  %v3271_v43 = vadd.f32 %v3270_v40, %v13141_v2  ;;  %v3463_v44 = vpop.f32.mrf.mxu1 }
 0x18b   : > { %v3272_v16 = vpop.f32.mrf.mxu0 }
 0x18c   : > { %v13175_v46 = vadd.f32 %v3463_v44, %v3271_v43  ;;  %v3273_v47 = vadd.f32 %v3272_v16, %v13146_v4  ;;  %v3465_v50 = vpop.f32.mrf.mxu1 }
 0x18d   : > { %v3276_v51 = vpop.f32.mrf.mxu0  ;;  %3741 = vmatmul.mubr.bf16.gmra.mxu0 %v11746_v41 }
 0x18e   : > { %v13178_v52 = vadd.f32 %v3465_v50, %v3273_v47  ;;  %v3277_v53 = vadd.f32 %v3276_v51, %v13141_v2  ;;  %v3469_v54 = vpop.f32.mrf.mxu1  ;;  %3934 = vmatmul.mubr.bf16.gmra.mxu1 %v12359_v55  ;;  %3750 = vmatprep.mubr.bf16.mxu0 %v11747_v45  ;;  %v12363_v47 = vld [vmem:[%s12984_s6 + $0x240] ss:$24 sps:$4 sm:$0xff]   ;;  %v12364_v51 = vld [vmem:[%s12984_s6 + $0x274] ss:$24 sps:$4 sm:$0xff]  }
 0x18f   : > { %v3278_v56 = vpop.f32.mrf.mxu0  ;;  %3943 = vmatprep.mubr.bf16.mxu1 %v12360_v57  ;;  %v11755_v57 = vld [vmem:[%s12984_s6 + $0x280] ss:$24 sps:$4 sm:$0xff]  }
 0x190   : > { %v13183_v59 = vadd.f32 %v3469_v54, %v3277_v53  ;;  %v3279_v60 = vadd.f32 %v3278_v56, %v13146_v4  ;;  %v3471_v61 = vpop.f32.mrf.mxu1 }
 0x191   : > { %v3280_v63 = vpop.f32.mrf.mxu0 }
 0x192   : > { %v13187_v1 = vadd.f32 %v3471_v61, %v3279_v60  ;;  %v3281_v3 = vadd.f32 %v3280_v63, %v13141_v2  ;;  %v3473_v5 = vpop.f32.mrf.mxu1 }
 0x193   : > { %v3282_v7 = vpop.f32.mrf.mxu0 }
 0x194   : > { %v13191_v8 = vadd.f32 %v3473_v5, %v3281_v3  ;;  %v3283_v10 = vadd.f32 %v3282_v7, %v13146_v4  ;;  %v3475_v14 = vpop.f32.mrf.mxu1 }
 0x195   : > { %v3286_v18 = vpop.f32.mrf.mxu0  ;;  %3751 = vmatmul.mubr.bf16.gmra.mxu0 %v11749_v0  ;;  %v11756_v0 = vld [vmem:[%s12984_s6 + $0x2b4] ss:$24 sps:$4 sm:$0xff]  }
 0x196   : > { %v13194_v19 = vadd.f32 %v3475_v14, %v3283_v10  ;;  %v3287_v20 = vadd.f32 %v3286_v18, %v13141_v2  ;;  %v3479_v21 = vpop.f32.mrf.mxu1  ;;  %3944 = vmatmul.mubr.bf16.gmra.mxu1 %v12361_v22  ;;  %3760 = vmatprep.mubr.bf16.mxu0 %v11750_v6 }
 0x197   : > { %v3288_v24 = vpop.f32.mrf.mxu0  ;;  %3953 = vmatprep.mubr.bf16.mxu1 %v12362_v25 }
 0x198   : > { %v13199_v26 = vadd.f32 %v3479_v21, %v3287_v20  ;;  %v3289_v28 = vadd.f32 %v3288_v24, %v13146_v4  ;;  %v3481_v29 = vpop.f32.mrf.mxu1  ;;  %v12365_v21 = vld [vmem:[%s12984_s6 + $0x270] ss:$24 sps:$4 sm:$0xff]   ;;  %v12366_v24 = vld [vmem:[%s12984_s6 + $0x2a4] ss:$24 sps:$4 sm:$0xff]  }
 0x199   : > { %v3290_v30 = vpop.f32.mrf.mxu0 }
 0x19a   : > { %v13203_v33 = vadd.f32 %v3481_v29, %v3289_v28  ;;  %v3291_v34 = vadd.f32 %v3290_v30, %v13141_v2  ;;  %v3483_v35 = vpop.f32.mrf.mxu1 }
 0x19b   : > { %v3292_v38 = vpop.f32.mrf.mxu0 }
 0x19c   : > { %v13207_v39 = vadd.f32 %v3483_v35, %v3291_v34  ;;  %v3293_v40 = vadd.f32 %v3292_v38, %v13146_v4  ;;  %v3485_v41 = vpop.f32.mrf.mxu1  ;;  %v11759_v38 = vld [vmem:[%s12984_s6 + $0x2e4] ss:$24 sps:$4 sm:$0xff]  }
 0x19d   : > { %v3296_v43 = vpop.f32.mrf.mxu0  ;;  %3761 = vmatmul.mubr.bf16.gmra.mxu0 %v11752_v32  ;;  %v11758_v32 = vld [vmem:[%s12984_s6 + $0x2b0] ss:$24 sps:$4 sm:$0xff]  }
 0x19e   : > { %v13210_v44 = vadd.f32 %v3485_v41, %v3293_v40  ;;  %v3297_v45 = vadd.f32 %v3296_v43, %v13141_v2  ;;  %v3489_v16 = vpop.f32.mrf.mxu1  ;;  %3954 = vmatmul.mubr.bf16.gmra.mxu1 %v12363_v47  ;;  %3770 = vmatprep.mubr.bf16.mxu0 %v11753_v36 }
 0x19f   : > { %v3298_v50 = vpop.f32.mrf.mxu0  ;;  %3963 = vmatprep.mubr.bf16.mxu1 %v12364_v51 }
 0x1a0   : > { %v13215_v53 = vadd.f32 %v3489_v16, %v3297_v45  ;;  %v3299_v54 = vadd.f32 %v3298_v50, %v13146_v4  ;;  %v3491_v55 = vpop.f32.mrf.mxu1 }
 0x1a1   : > { %v3300_v56 = vpop.f32.mrf.mxu0 }
 0x1a2   : > { %v13219_v60 = vadd.f32 %v3491_v55, %v3299_v54  ;;  %v3301_v61 = vadd.f32 %v3300_v56, %v13141_v2  ;;  %v3493_v63 = vpop.f32.mrf.mxu1  ;;  %v12367_v54 = vld [vmem:[%s12984_s6 + $0x2a0] ss:$24 sps:$4 sm:$0xff]   ;;  %v12368_v56 = vld [vmem:[%s12984_s6 + $0x2d4] ss:$24 sps:$4 sm:$0xff]  }
 0x1a3   : > { %v3302_v3 = vpop.f32.mrf.mxu0 }
 0x1a4   : > { %v13223_v5 = vadd.f32 %v3493_v63, %v3301_v61  ;;  %v3303_v6 = vadd.f32 %v3302_v3, %v13146_v4  ;;  %v3495_v7 = vpop.f32.mrf.mxu1  ;;  %v13251_v3 = vld [vmem:[%s12984_s6 + $0x2e0] ss:$24 sps:$4 sm:$0xff]  }
 0x1a5   : > { %v3306_v10 = vpop.f32.mrf.mxu0  ;;  %3771 = vmatmul.mubr.bf16.gmra.mxu0 %v11755_v57 }
 0x1a6   : > { %v13226_v14 = vadd.f32 %v3495_v7, %v3303_v6  ;;  %v3307_v18 = vadd.f32 %v3306_v10, %v13141_v2  ;;  %v3499_v20 = vpop.f32.mrf.mxu1  ;;  %3964 = vmatmul.mubr.bf16.gmra.mxu1 %v12365_v21  ;;  %3780 = vmatprep.mubr.bf16.mxu0 %v11756_v0 }
 0x1a7   : > { %v3308_v22 = vpop.f32.mrf.mxu0  ;;  %3973 = vmatprep.mubr.bf16.mxu1 %v12366_v24 }
 0x1a8   : > { %v13231_v25 = vadd.f32 %v3499_v20, %v3307_v18  ;;  %v3309_v28 = vadd.f32 %v3308_v22, %v13146_v4  ;;  %v3501_v29 = vpop.f32.mrf.mxu1 }
 0x1a9   : > { %v3310_v30 = vpop.f32.mrf.mxu0 }
 0x1aa   : > { %v13235_v34 = vadd.f32 %v3501_v29, %v3309_v28  ;;  %v3311_v35 = vadd.f32 %v3310_v30, %v13141_v2  ;;  %v3503_v36 = vpop.f32.mrf.mxu1 }
 0x1ab   : > { %v3312_v40 = vpop.f32.mrf.mxu0 }
 0x1ac   : > { %v13239_v41 = vadd.f32 %v3503_v36, %v3311_v35  ;;  %v3313_v43 = vadd.f32 %v3312_v40, %v13146_v4  ;;  %v3505_v45 = vpop.f32.mrf.mxu1  ;;  %v13265_v35 = vld [vmem:[%s12984_s6 + $0xc] ss:$24 sps:$4 sm:$0xff]  }
 0x1ad   : > { %v3316_v16 = vpop.f32.mrf.mxu0  ;;  %3781 = vmatmul.mubr.bf16.gmra.mxu0 %v11758_v32  ;;  %v12369_v32 = vld [vmem:[%s12984_s6 + $0x2d0] ss:$24 sps:$4 sm:$0xff]  }
 0x1ae   : > { %v13242_v47 = vadd.f32 %v3505_v45, %v3313_v43  ;;  %v3317_v50 = vadd.f32 %v3316_v16, %v13141_v2  ;;  %v3509_v51 = vpop.f32.mrf.mxu1  ;;  %3974 = vmatmul.mubr.bf16.gmra.mxu1 %v12367_v54  ;;  %3790 = vmatprep.mubr.bf16.mxu0 %v11759_v38  ;;  %v12371_v38 = vld [vmem:[%s12984_s6 + $0x14] ss:$24 sps:$4 sm:$0xff]  }
 0x1af   : > { %v3318_v55 = vpop.f32.mrf.mxu0  ;;  %3983 = vmatprep.mubr.bf16.mxu1 %v12368_v56 }
 0x1b0   : > { %v13247_v57 = vadd.f32 %v3509_v51, %v3317_v50  ;;  %v3319_v61 = vadd.f32 %v3318_v55, %v13146_v4  ;;  %v3511_v63 = vpop.f32.mrf.mxu1  ;;  %v446_v50 = vld [vmem:[#allocation5 + $0x190] sm:$0xff] }
 0x1b1   : > { %v3320_v0 = vpop.f32.mrf.mxu0  ;;  %v450_v51 = vld [vmem:[#allocation5 + $0x1b0] sm:$0xff] }
 0x1b2   : > { %v13253_v6 = vadd.f32 %v3511_v63, %v3319_v61  ;;  %v3321_v7 = vadd.f32 %v3320_v0, %v13141_v2  ;;  %v3513_v10 = vpop.f32.mrf.mxu1  ;;  %v574_v61 = vld [vmem:[#allocation5 + $0x590] sm:$0xff] }
 0x1b3   : > { %v3322_v18 = vpop.f32.mrf.mxu0  ;;  %v578_v63 = vld [vmem:[#allocation5 + $0x5b0] sm:$0xff] }
 0x1b4   : > { %v13256_v20 = vadd.f32 %v3513_v10, %v3321_v7  ;;  %v3323_v21 = vadd.f32 %v3322_v18, %v13146_v4  ;;  %v3515_v22 = vpop.f32.mrf.mxu1  ;;  %v13275_v7 = vld [vmem:[#allocation5 + $0x150] sm:$0xff] }
 0x1b5   : > { %v3326_v24 = vpop.f32.mrf.mxu0  ;;  %3791 = vmatmul.mubr.bf16.gmra.mxu0 %v13251_v3 }
 0x1b6   : > { %v13260_v28 = vadd.f32 %v3515_v22, %v3323_v21  ;;  %v3327_v29 = vadd.f32 %v3326_v24, %v13141_v2  ;;  %v3519_v30 = vpop.f32.mrf.mxu1  ;;  %3984 = vmatmul.mubr.bf16.gmra.mxu1 %v12369_v32  ;;  %4026 = vmatprep.mubr.bf16.mxu0 %v13265_v35  ;;  %v10800_v22 = vcombine.high %v446_v50, %v450_v51  ;;  %v13280_v24 = vld [vmem:[#allocation5 + $0x170] sm:$0xff] }
 0x1b7   : > { %v3328_v36 = vpop.f32.mrf.mxu0  ;;  %4219 = vmatprep.mubr.bf16.mxu1 %v12371_v38  ;;  %v10928_v38 = vcombine.high %v574_v61, %v578_v63 }
 0x1b8   : > { %v13269_v40 = vadd.f32 %v3519_v30, %v3327_v29  ;;  %v3329_v43 = vadd.f32 %v3328_v36, %v13146_v4  ;;  %v3521_v45 = vpop.f32.mrf.mxu1  ;;  %v13282_v29 = vld [vmem:[#allocation5 + $0x550] sm:$0xff]  ;;  %v13287_v36 = vld [vmem:[%s12984_s6 + $0x8] ss:$24 sps:$4 sm:$0xff]  }
 0x1b9   : > { %v3330_v16 = vpop.f32.mrf.mxu0  ;;  %v13284_v30 = vld [vmem:[#allocation5 + $0x570] sm:$0xff]  ;;  %16808 = vst [vmem:[#allocation19_spill] sm:$0xff] %v13287_v36 }
 0x1ba   : > { %v13272_v54 = vadd.f32 %v3521_v45, %v3329_v43  ;;  %v3331_v55 = vadd.f32 %v3330_v16, %v13141_v2  ;;  %v3523_v56 = vpop.f32.mrf.mxu1 }
 0x1bb   : > { %v3332_v0 = vpop.f32.mrf.mxu0 }
 0x1bc   : > { %16806 = vst [vmem:[#allocation17_spill] sm:$0xff] %v13272_v54  ;;  %v13277_v10 = vadd.f32 %v3523_v56, %v3331_v55  ;;  %v3333_v18 = vadd.f32 %v3332_v0, %v13146_v4  ;;  %v3525_v21 = vpop.f32.mrf.mxu1  ;;  %v12373_v55 = vld [vmem:[%s12984_s6 + $0x10] ss:$24 sps:$4 sm:$0xff]   ;;  %v10799_v56 = vcombine.low %v446_v50, %v450_v51 }
 0x1bd   : > { %v3336_v32 = vpop.f32.mrf.mxu0  ;;  %4027 = vmatmul.mubr.bf16.vlgmr.msra.gmra.mxu0 %v13287_v36  ;;  %v12379_v36 = vld [vmem:[%s12984_s6 + $0x74] ss:$24 sps:$4 sm:$0xff]  }
 0x1be   : > { %16807 = vst [vmem:[#allocation18_spill] sm:$0xff] %v13277_v10  ;;  %v13290_v43 = vadd.f32 %v3525_v21, %v3333_v18  ;;  %v3337_v45 = vadd.f32 %v3336_v32, %v13141_v2  ;;  %v3529_v16 = vpop.f32.mrf.mxu1  ;;  %4220 = vmatmul.mubr.bf16.vlgmr.msra.gmra.mxu1 %v12373_v55  ;;  %4381 = vmatpush1.bf16.msra.mxu0 %v10807_v12  ;;  %v13308_v55 = vld [vmem:[#allocation5 + $0x9d0] sm:$0xff] }
 0x1bf   : > { %v3338_v0 = vpop.f32.mrf.mxu0  ;;  %4574 = vmatpush1.bf16.msra.mxu1 %v10935_v48  ;;  %4036 = vmatprep.mubr.bf16.mxu0 %v13301_v62  ;;  %v10927_v18 = vcombine.low %v574_v61, %v578_v63  ;;  %v10792_v21 = vcombine.high %v13275_v7, %v13280_v24  ;;  %v10920_v32 = vcombine.high %v13282_v29, %v13284_v30  ;;  %v430_v48 = vld [vmem:[#allocation5 + $0x110] sm:$0xff]  ;;  %v13318_v63 = vld [vmem:[#allocation5 + $0x1d8] sm:$0xff] }
 0x1c0   : > { %16809 = vst [vmem:[#allocation20_spill] sm:$0xff] %v13290_v43  ;;  %v13312_v11 = vadd.f32 %v3529_v16, %v3337_v45  ;;  %v3339_v12 = vadd.f32 %v3338_v0, %v13146_v4  ;;  %v3531_v13 = vpop.f32.mrf.mxu1  ;;  %4229 = vmatprep.mubr.bf16.mxu1 %v12375_v15  ;;  %4382 = vmatprep.subr.bf16.mxu0 %v10800_v22  ;;  %v434_v61 = vld [vmem:[#allocation5 + $0x130] sm:$0xff] }
 0x1c1   : > { %v3340_v51 = vpop.f32.mrf.mxu0  ;;  %4575 = vmatprep.subr.bf16.mxu1 %v10928_v38  ;;  %v558_v0 = vld [vmem:[#allocation5 + $0x510] sm:$0xff]  ;;  %v10791_v38 = vcombine.low %v13275_v7, %v13280_v24 }
 0x1c2   : > { %16811 = vst [vmem:[#allocation22_spill] sm:$0xff] %v13312_v11  ;;  %v13322_v49 = vadd.f32 %v3531_v13, %v3339_v12  ;;  %v3341_v45 = vadd.f32 %v3340_v51, %v13141_v2  ;;  %v3533_v16 = vpop.f32.mrf.mxu1  ;;  %4383 = vmatpush1.bf16.msra.mxu0 %v10799_v56  ;;  %v562_v22 = vld [vmem:[#allocation5 + $0x530] sm:$0xff]  ;;  %v10919_v56 = vcombine.low %v13282_v29, %v13284_v30 }
 0x1c3   : > { %v3342_v50 = vpop.f32.mrf.mxu0  ;;  %4576 = vmatpush1.bf16.msra.mxu1 %v10927_v18  ;;  %4384 = vmatprep.subr.bf16.mxu0 %v10792_v21  ;;  %v10784_v51 = vcombine.high %v430_v48, %v434_v61  ;;  %v13335_v15 = vld [vmem:[%s12984_s6 + $0x38] ss:$24 sps:$4 sm:$0xff]   ;;  %v10912_v7 = vcombine.high %v558_v0, %v562_v22  ;;  %v10911_v11 = vcombine.low %v558_v0, %v562_v22 }
 0x1c4   : > { %16812 = vst [vmem:[#allocation23_spill] sm:$0xff] %v13322_v49  ;;  %v13329_v62 = vadd.f32 %v3533_v16, %v3341_v45  ;;  %v3343_v12 = vadd.f32 %v3342_v50, %v13146_v4  ;;  %v3535_v13 = vpop.f32.mrf.mxu1  ;;  %4577 = vmatprep.subr.bf16.mxu1 %v10920_v32  ;;  %16814 = vst [vmem:[#allocation25_spill] sm:$0xff] %v13335_v15  ;;  %v422_v24 = vld [vmem:[#allocation5 + $0xd0] sm:$0xff]  ;;  %v12377_v16 = vld [vmem:[%s12984_s6 + $0x40] ss:$24 sps:$4 sm:$0xff]  }
 0x1c5   : > { %v3346_v49 = vpop.f32.mrf.mxu0  ;;  %4037 = vmatmul.mubr.bf16.gmra.mxu0 %v13335_v15  ;;  %v426_v18 = vld [vmem:[#allocation5 + $0xf0] sm:$0xff]  ;;  %v10783_v15 = vcombine.low %v430_v48, %v434_v61 }
 0x1c6   : > { %16813 = vst [vmem:[#allocation24_spill] sm:$0xff] %v13329_v62  ;;  %v13338_v21 = vadd.f32 %v3535_v13, %v3343_v12  ;;  %v3347_v50 = vadd.f32 %v3346_v49, %v13141_v2  ;;  %v3539_v45 = vpop.f32.mrf.mxu1  ;;  %4230 = vmatmul.mubr.bf16.gmra.mxu1 %v12377_v16  ;;  %v13343_v62 = vld [vmem:[%s12984_s6 + $0x6c] ss:$24 sps:$4 sm:$0xff]   ;;  %v550_v29 = vld [vmem:[#allocation5 + $0x4d0] sm:$0xff]  ;;  %4385 = vmatpush1.bf16.msra.mxu0 %v10791_v38 }
 0x1c7   : > { %16816 = vst [vmem:[#allocation27_spill] sm:$0xff] %v13343_v62  ;;  %4046 = vmatprep.mubr.bf16.mxu0 %v13343_v62  ;;  %v554_v30 = vld [vmem:[#allocation5 + $0x4f0] sm:$0xff]  ;;  %v3348_v32 = vpop.f32.mrf.mxu0  ;;  %4239 = vmatprep.mubr.bf16.mxu1 %v12379_v36  ;;  %v10776_v13 = vcombine.high %v422_v24, %v426_v18  ;;  %v10775_v38 = vcombine.low %v422_v24, %v426_v18 }
 0x1c8   : > { %16815 = vst [vmem:[#allocation26_spill] sm:$0xff] %v13338_v21  ;;  %v13347_v43 = vadd.f32 %v3539_v45, %v3347_v50  ;;  %v3349_v12 = vadd.f32 %v3348_v32, %v13146_v4  ;;  %v3541_v49 = vpop.f32.mrf.mxu1  ;;  %4578 = vmatpush1.bf16.msra.mxu1 %v10919_v56  ;;  %4386 = vmatprep.subr.bf16.mxu0 %v10784_v51  ;;  %v414_v62 = vld [vmem:[#allocation5 + $0x90] sm:$0xff] }
 0x1c9   : > { %v3350_v16 = vpop.f32.mrf.mxu0  ;;  %4579 = vmatprep.subr.bf16.mxu1 %v10912_v7  ;;  %v10904_v21 = vcombine.high %v550_v29, %v554_v30  ;;  %v418_v10 = vld [vmem:[#allocation5 + $0xb0] sm:$0xff]  ;;  %v10903_v50 = vcombine.low %v550_v29, %v554_v30 }
 0x1ca   : > { %16817 = vst [vmem:[#allocation28_spill] sm:$0xff] %v13347_v43  ;;  %v13350_v54 = vadd.f32 %v3541_v49, %v3349_v12  ;;  %v3351_v36 = vadd.f32 %v3350_v16, %v13141_v2  ;;  %v3543_v48 = vpop.f32.mrf.mxu1  ;;  %v542_v61 = vld [vmem:[#allocation5 + $0x490] sm:$0xff]  ;;  %4387 = vmatpush1.bf16.msra.mxu0 %v10783_v15  ;;  %v10768_v45 = vcombine.high %v414_v62, %v418_v10  ;;  %v13357_v12 = vld [vmem:[%s12984_s6 + $0x68] ss:$24 sps:$4 sm:$0xff]  }
 0x1cb   : > { %v546_v0 = vld [vmem:[#allocation5 + $0x4b0] sm:$0xff]  ;;  %v3352_v22 = vpop.f32.mrf.mxu0  ;;  %4388 = vmatprep.subr.bf16.mxu0 %v10776_v13  ;;  %16820 = vst [vmem:[#allocation31_spill] sm:$0xff] %v13357_v12 }
 0x1cc   : > { %16818 = vst [vmem:[#allocation29_spill] sm:$0xff] %v13350_v54  ;;  %v13353_v56 = vadd.f32 %v3543_v48, %v3351_v36  ;;  %v3353_v51 = vadd.f32 %v3352_v22, %v13146_v4  ;;  %v3545_v7 = vpop.f32.mrf.mxu1  ;;  %4580 = vmatpush1.bf16.msra.mxu1 %v10911_v11  ;;  %v10896_v15 = vcombine.high %v542_v61, %v546_v0  ;;  %v406_v24 = vld [vmem:[#allocation5 + $0x50] sm:$0xff]  ;;  %v12383_v22 = vld [vmem:[%s12984_s6 + $0xa4] ss:$24 sps:$4 sm:$0xff]  }
 0x1cd   : > { %v3356_v32 = vpop.f32.mrf.mxu0  ;;  %4047 = vmatmul.mubr.bf16.gmra.mxu0 %v13357_v12  ;;  %4581 = vmatprep.subr.bf16.mxu1 %v10904_v21  ;;  %v410_v18 = vld [vmem:[#allocation5 + $0x70] sm:$0xff]  ;;  %v10767_v21 = vcombine.low %v414_v62, %v418_v10  ;;  %v10895_v12 = vcombine.low %v542_v61, %v546_v0 }
 0x1ce   : > { %16819 = vst [vmem:[#allocation30_spill] sm:$0xff] %v13353_v56  ;;  %v13360_v29 = vadd.f32 %v3545_v7, %v3353_v51  ;;  %v3357_v30 = vadd.f32 %v3356_v32, %v13141_v2  ;;  %v3549_v49 = vpop.f32.mrf.mxu1  ;;  %v12381_v16 = vld [vmem:[%s12984_s6 + $0x70] ss:$24 sps:$4 sm:$0xff]   ;;  %v13365_v11 = vld [vmem:[%s12984_s6 + $0x9c] ss:$24 sps:$4 sm:$0xff]   ;;  %4389 = vmatpush1.bf16.msra.mxu0 %v10775_v38  ;;  %v10760_v32 = vcombine.high %v406_v24, %v410_v18 }
 0x1cf   : > { %4240 = vmatmul.mubr.bf16.gmra.mxu1 %v12381_v16  ;;  %16822 = vst [vmem:[#allocation33_spill] sm:$0xff] %v13365_v11  ;;  %4056 = vmatprep.mubr.bf16.mxu0 %v13365_v11  ;;  %v534_v13 = vld [vmem:[#allocation5 + $0x450] sm:$0xff]  ;;  %v3358_v48 = vpop.f32.mrf.mxu0 }
 0x1d0   : > { %16821 = vst [vmem:[#allocation32_spill] sm:$0xff] %v13360_v29  ;;  %v538_v36 = vld [vmem:[#allocation5 + $0x470] sm:$0xff]  ;;  %4249 = vmatprep.mubr.bf16.mxu1 %v12383_v22  ;;  %v13369_v56 = vadd.f32 %v3549_v49, %v3357_v30  ;;  %v3359_v51 = vadd.f32 %v3358_v48, %v13146_v4  ;;  %v3551_v7 = vpop.f32.mrf.mxu1  ;;  %4582 = vmatpush1.bf16.msra.mxu1 %v10903_v50 }
 0x1d1   : > { %4390 = vmatprep.subr.bf16.mxu0 %v10768_v45  ;;  %v3360_v16 = vpop.f32.mrf.mxu0  ;;  %4583 = vmatprep.subr.bf16.mxu1 %v10896_v15  ;;  %v10888_v29 = vcombine.high %v534_v13, %v538_v36  ;;  %v398_v11 = vld [vmem:[#allocation5 + $0x10] sm:$0xff]  ;;  %v10759_v30 = vcombine.low %v406_v24, %v410_v18  ;;  %v10887_v49 = vcombine.low %v534_v13, %v538_v36 }
 0x1d2   : > { %16823 = vst [vmem:[#allocation34_spill] sm:$0xff] %v13369_v56  ;;  %v402_v54 = vld [vmem:[#allocation5 + $0x30] sm:$0xff]  ;;  %v13372_v43 = vadd.f32 %v3551_v7, %v3359_v51  ;;  %v3361_v38 = vadd.f32 %v3360_v16, %v13141_v2  ;;  %v3553_v62 = vpop.f32.mrf.mxu1  ;;  %4391 = vmatpush1.bf16.msra.mxu0 %v10767_v21  ;;  %v12385_v16 = vld [vmem:[%s12984_s6 + $0xa0] ss:$24 sps:$4 sm:$0xff]  }
 0x1d3   : > { %v526_v10 = vld [vmem:[#allocation5 + $0x410] sm:$0xff]  ;;  %v3362_v0 = vpop.f32.mrf.mxu0  ;;  %4392 = vmatprep.subr.bf16.mxu0 %v10760_v32  ;;  %v10752_v48 = vcombine.high %v398_v11, %v402_v54 }
 0x1d4   : > { %16824 = vst [vmem:[#allocation35_spill] sm:$0xff] %v13372_v43  ;;  %v530_v61 = vld [vmem:[#allocation5 + $0x430] sm:$0xff]  ;;  %v13375_v50 = vadd.f32 %v3553_v62, %v3361_v38  ;;  %v3363_v45 = vadd.f32 %v3362_v0, %v13146_v4  ;;  %v3555_v15 = vpop.f32.mrf.mxu1  ;;  %4584 = vmatpush1.bf16.msra.mxu1 %v10895_v12  ;;  %v13387_v12 = vld [vmem:[%s12984_s6 + $0xcc] ss:$24 sps:$4 sm:$0xff]  }
 0x1d5   : > { %v3366_v22 = vpop.f32.mrf.mxu0  ;;  %v13379_v51 = vld [vmem:[%s12984_s6 + $0x98] ss:$24 sps:$4 sm:$0xff]   ;;  %4585 = vmatprep.subr.bf16.mxu1 %v10888_v29  ;;  %v10880_v21 = vcombine.high %v526_v10, %v530_v61  ;;  %16828 = vst [vmem:[#allocation39_spill] sm:$0xff] %v13387_v12  ;;  %v12387_v0 = vld [vmem:[%s12984_s6 + $0xd4] ss:$24 sps:$4 sm:$0xff]   ;;  %v10751_v29 = vcombine.low %v398_v11, %v402_v54 }
 0x1d6   : > { %16825 = vst [vmem:[#allocation36_spill] sm:$0xff] %v13375_v50  ;;  %16826 = vst [vmem:[#allocation37_spill] sm:$0xff] %v13379_v51  ;;  %4057 = vmatmul.mubr.bf16.gmra.mxu0 %v13379_v51  ;;  %v518_v24 = vld [vmem:[#allocation5 + $0x3d0] sm:$0xff]  ;;  %v13382_v13 = vadd.f32 %v3555_v15, %v3363_v45  ;;  %v3367_v36 = vadd.f32 %v3366_v22, %v13141_v2  ;;  %v3559_v7 = vpop.f32.mrf.mxu1  ;;  %v10879_v51 = vcombine.low %v526_v10, %v530_v61 }
 0x1d7   : > { %v522_v18 = vld [vmem:[#allocation5 + $0x3f0] sm:$0xff]  ;;  %4250 = vmatmul.mubr.bf16.gmra.mxu1 %v12385_v16  ;;  %4066 = vmatprep.mubr.bf16.mxu0 %v13387_v12  ;;  %v3368_v62 = vpop.f32.mrf.mxu0 }
 0x1d8   : > { %16827 = vst [vmem:[#allocation38_spill] sm:$0xff] %v13382_v13  ;;  %v646_v32 = vld [vmem:[#allocation5 + $0x7d0] sm:$0xff]  ;;  %4259 = vmatprep.mubr.bf16.mxu1 %v12387_v0  ;;  %4393 = vmatpush1.bf16.msra.mxu0 %v10759_v30  ;;  %v13391_v50 = vadd.f32 %v3559_v7, %v3367_v36  ;;  %v3369_v45 = vadd.f32 %v3368_v62, %v13146_v4  ;;  %v3561_v15 = vpop.f32.mrf.mxu1 }
 0x1d9   : > { %v650_v38 = vld [vmem:[#allocation5 + $0x7f0] sm:$0xff]  ;;  %4586 = vmatpush1.bf16.msra.mxu1 %v10887_v49  ;;  %4394 = vmatprep.subr.bf16.mxu0 %v10752_v48  ;;  %v10872_v22 = vcombine.high %v518_v24, %v522_v18  ;;  %v3370_v16 = vpop.f32.mrf.mxu0  ;;  %v10871_v36 = vcombine.low %v518_v24, %v522_v18 }
 0x1da   : > { %16829 = vst [vmem:[#allocation40_spill] sm:$0xff] %v13391_v50  ;;  %4587 = vmatprep.subr.bf16.mxu1 %v10880_v21  ;;  %v11000_v13 = vcombine.high %v646_v32, %v650_v38  ;;  %v510_v12 = vld [vmem:[#allocation5 + $0x390] sm:$0xff]  ;;  %v13394_v56 = vadd.f32 %v3561_v15, %v3369_v45  ;;  %v3371_v30 = vadd.f32 %v3370_v16, %v13141_v2  ;;  %v3563_v54 = vpop.f32.mrf.mxu1  ;;  %v13401_v45 = vld [vmem:[%s12984_s6 + $0xc8] ss:$24 sps:$4 sm:$0xff]  }
 0x1db   : > { %v514_v43 = vld [vmem:[#allocation5 + $0x3b0] sm:$0xff]  ;;  %v3372_v61 = vpop.f32.mrf.mxu0  ;;  %v10999_v7 = vcombine.low %v646_v32, %v650_v38  ;;  %16832 = vst [vmem:[#allocation43_spill] sm:$0xff] %v13401_v45 }
 0x1dc   : > { %16830 = vst [vmem:[#allocation41_spill] sm:$0xff] %v13394_v56  ;;  %v638_v11 = vld [vmem:[#allocation5 + $0x790] sm:$0xff]  ;;  %4395 = vmatpush1.bf16.msra.mxu0 %v10751_v29  ;;  %v13397_v49 = vadd.f32 %v3563_v54, %v3371_v30  ;;  %v3373_v48 = vadd.f32 %v3372_v61, %v13146_v4  ;;  %v3565_v21 = vpop.f32.mrf.mxu1  ;;  %v10864_v62 = vcombine.high %v510_v12, %v514_v43  ;;  %v12391_v61 = vld [vmem:[%s12984_s6 + $0x104] ss:$24 sps:$4 sm:$0xff]  }
 0x1dd   : > { %v642_v10 = vld [vmem:[#allocation5 + $0x7b0] sm:$0xff]  ;;  %4588 = vmatpush1.bf16.msra.mxu1 %v10879_v51  ;;  %4396 = vmatprep.subr.bf16.mxu0 %v10872_v22  ;;  %v3376_v0 = vpop.f32.mrf.mxu0 }
 0x1de   : > { %16831 = vst [vmem:[#allocation42_spill] sm:$0xff] %v13397_v49  ;;  %4067 = vmatmul.mubr.bf16.gmra.mxu0 %v13401_v45  ;;  %4589 = vmatprep.subr.bf16.mxu1 %v11000_v13  ;;  %v10992_v29 = vcombine.high %v638_v11, %v642_v10  ;;  %v502_v24 = vld [vmem:[#allocation5 + $0x350] sm:$0xff]  ;;  %v13404_v32 = vadd.f32 %v3565_v21, %v3373_v48  ;;  %v3569_v15 = vpop.f32.mrf.mxu1 }
 0x1df   : > { %v506_v18 = vld [vmem:[#allocation5 + $0x370] sm:$0xff]  ;;  %v3377_v38 = vadd.f32 %v3376_v0, %v13141_v2  ;;  %v3378_v54 = vpop.f32.mrf.mxu0  ;;  %v10863_v13 = vcombine.low %v510_v12, %v514_v43  ;;  %v10991_v45 = vcombine.low %v638_v11, %v642_v10 }
 0x1e0   : > { %16833 = vst [vmem:[#allocation44_spill] sm:$0xff] %v13404_v32  ;;  %v12389_v16 = vld [vmem:[%s12984_s6 + $0xd0] ss:$24 sps:$4 sm:$0xff]   ;;  %v13409_v51 = vld [vmem:[%s12984_s6 + $0xfc] ss:$24 sps:$4 sm:$0xff]   ;;  %4397 = vmatpush2.bf16.msra.mxu0 %v10871_v36  ;;  %v3379_v48 = vadd.f32 %v3378_v54, %v13146_v4  ;;  %v3571_v21 = vpop.f32.mrf.mxu1  ;;  %v10856_v0 = vcombine.high %v502_v24, %v506_v18 }
 0x1e1   : > { %4260 = vmatmul.mubr.bf16.gmra.mxu1 %v12389_v16  ;;  %16834 = vst [vmem:[#allocation45_spill] sm:$0xff] %v13409_v51  ;;  %4076 = vmatprep.mubr.bf16.mxu0 %v13409_v51  ;;  %v630_v22 = vld [vmem:[#allocation5 + $0x750] sm:$0xff]  ;;  %v13413_v49 = vadd.f32 %v3569_v15, %v3377_v38  ;;  %v3380_v16 = vpop.f32.mrf.mxu0  ;;  %v10855_v38 = vcombine.low %v502_v24, %v506_v18 }
 0x1e2   : > { %v634_v30 = vld [vmem:[#allocation5 + $0x770] sm:$0xff]  ;;  %4269 = vmatprep.mubr.bf16.mxu1 %v12391_v61  ;;  %4590 = vmatpush2.bf16.msra.mxu1 %v10999_v7  ;;  %v13416_v50 = vadd.f32 %v3571_v21, %v3379_v48  ;;  %v3381_v36 = vadd.f32 %v3380_v16, %v13141_v2  ;;  %v3573_v43 = vpop.f32.mrf.mxu1  ;;  %v12393_v16 = vld [vmem:[%s12984_s6 + $0x100] ss:$24 sps:$4 sm:$0xff]  }
 0x1e3   : > { %16835 = vst [vmem:[#allocation46_spill] sm:$0xff] %v13413_v49  ;;  %4398 = vmatprep.subr.bf16.mxu0 %v10864_v62  ;;  %4591 = vmatprep.subr.bf16.mxu1 %v10992_v29  ;;  %v10984_v32 = vcombine.high %v630_v22, %v634_v30  ;;  %v494_v51 = vld [vmem:[#allocation5 + $0x310] sm:$0xff]  ;;  %v3382_v10 = vpop.f32.mrf.mxu0  ;;  %v10983_v15 = vcombine.low %v630_v22, %v634_v30 }
 0x1e4   : > { %v498_v56 = vld [vmem:[#allocation5 + $0x330] sm:$0xff]  ;;  %16836 = vst [vmem:[#allocation47_spill] sm:$0xff] %v13416_v50  ;;  %4399 = vmatpush2.bf16.msra.mxu0 %v10863_v13  ;;  %v13419_v7 = vadd.f32 %v3573_v43, %v3381_v36  ;;  %v3383_v62 = vadd.f32 %v3382_v10, %v13146_v4  ;;  %v3575_v29 = vpop.f32.mrf.mxu1 }
 0x1e5   : > { %v622_v12 = vld [vmem:[#allocation5 + $0x710] sm:$0xff]  ;;  %4400 = vmatprep.subr.bf16.mxu0 %v10856_v0  ;;  %v10848_v54 = vcombine.high %v494_v51, %v498_v56  ;;  %v3386_v61 = vpop.f32.mrf.mxu0 }
 0x1e6   : > { %v626_v11 = vld [vmem:[#allocation5 + $0x730] sm:$0xff]  ;;  %16837 = vst [vmem:[#allocation48_spill] sm:$0xff] %v13419_v7  ;;  %4592 = vmatpush2.bf16.msra.mxu1 %v10991_v45  ;;  %v13426_v22 = vadd.f32 %v3575_v29, %v3383_v62  ;;  %v3387_v30 = vadd.f32 %v3386_v61, %v13141_v2  ;;  %v3579_v21 = vpop.f32.mrf.mxu1  ;;  %v13431_v45 = vld [vmem:[%s12984_s6 + $0x12c] ss:$24 sps:$4 sm:$0xff]  }
 0x1e7   : > { %v13423_v48 = vld [vmem:[%s12984_s6 + $0xf8] ss:$24 sps:$4 sm:$0xff]   ;;  %4593 = vmatprep.subr.bf16.mxu1 %v10984_v32  ;;  %v10976_v13 = vcombine.high %v622_v12, %v626_v11  ;;  %16840 = vst [vmem:[#allocation51_spill] sm:$0xff] %v13431_v45  ;;  %v3388_v43 = vpop.f32.mrf.mxu0  ;;  %v12395_v10 = vld [vmem:[%s12984_s6 + $0x134] ss:$24 sps:$4 sm:$0xff]   ;;  %v10847_v32 = vcombine.low %v494_v51, %v498_v56 }
 0x1e8   : > { %16838 = vst [vmem:[#allocation49_spill] sm:$0xff] %v13423_v48  ;;  %4077 = vmatmul.mubr.bf16.gmra.mxu0 %v13423_v48  ;;  %v486_v24 = vld [vmem:[#allocation5 + $0x2d0] sm:$0xff]  ;;  %16839 = vst [vmem:[#allocation50_spill] sm:$0xff] %v13426_v22  ;;  %v10975_v48 = vcombine.low %v622_v12, %v626_v11  ;;  %v13435_v7 = vadd.f32 %v3579_v21, %v3387_v30  ;;  %v3389_v62 = vadd.f32 %v3388_v43, %v13146_v4  ;;  %v3581_v29 = vpop.f32.mrf.mxu1 }
 0x1e9   : > { %v490_v18 = vld [vmem:[#allocation5 + $0x2f0] sm:$0xff]  ;;  %4270 = vmatmul.mubr.bf16.gmra.mxu1 %v12393_v16  ;;  %4086 = vmatprep.mubr.bf16.mxu0 %v13431_v45  ;;  %v3390_v16 = vpop.f32.mrf.mxu0 }
 0x1ea   : > { %v614_v0 = vld [vmem:[#allocation5 + $0x6d0] sm:$0xff]  ;;  %4279 = vmatprep.mubr.bf16.mxu1 %v12395_v10  ;;  %4401 = vmatpush2.bf16.msra.mxu0 %v10855_v38  ;;  %16841 = vst [vmem:[#allocation52_spill] sm:$0xff] %v13435_v7  ;;  %v10840_v61 = vcombine.high %v486_v24, %v490_v18  ;;  %v13438_v49 = vadd.f32 %v3581_v29, %v3389_v62  ;;  %v3583_v56 = vpop.f32.mrf.mxu1  ;;  %v13445_v62 = vld [vmem:[%s12984_s6 + $0x128] ss:$24 sps:$4 sm:$0xff]  }
 0x1eb   : > { %v618_v36 = vld [vmem:[#allocation5 + $0x6f0] sm:$0xff]  ;;  %4594 = vmatpush2.bf16.msra.mxu1 %v10983_v15  ;;  %4402 = vmatprep.subr.bf16.mxu0 %v10848_v54  ;;  %v3391_v38 = vadd.f32 %v3390_v16, %v13141_v2  ;;  %v3392_v11 = vpop.f32.mrf.mxu0  ;;  %v10839_v30 = vcombine.low %v486_v24, %v490_v18  ;;  %16844 = vst [vmem:[#allocation55_spill] sm:$0xff] %v13445_v62 }
 0x1ec   : > { %4595 = vmatprep.subr.bf16.mxu1 %v10976_v13  ;;  %v10968_v22 = vcombine.high %v614_v0, %v618_v36  ;;  %v478_v45 = vld [vmem:[#allocation5 + $0x290] sm:$0xff]  ;;  %16842 = vst [vmem:[#allocation53_spill] sm:$0xff] %v13438_v49  ;;  %v10967_v21 = vcombine.low %v614_v0, %v618_v36  ;;  %v3393_v54 = vadd.f32 %v3392_v11, %v13146_v4  ;;  %v3585_v13 = vpop.f32.mrf.mxu1  ;;  %v12399_v11 = vld [vmem:[%s12984_s6 + $0x164] ss:$24 sps:$4 sm:$0xff]  }
 0x1ed   : > { %v482_v50 = vld [vmem:[#allocation5 + $0x2b0] sm:$0xff]  ;;  %v13441_v15 = vadd.f32 %v3583_v56, %v3391_v38  ;;  %v3396_v10 = vpop.f32.mrf.mxu0 }
 0x1ee   : > { %v606_v51 = vld [vmem:[#allocation5 + $0x690] sm:$0xff]  ;;  %4403 = vmatpush2.bf16.msra.mxu0 %v10847_v32  ;;  %v10832_v43 = vcombine.high %v478_v45, %v482_v50  ;;  %v13448_v0 = vadd.f32 %v3585_v13, %v3393_v54  ;;  %v3397_v36 = vadd.f32 %v3396_v10, %v13141_v2  ;;  %v3589_v29 = vpop.f32.mrf.mxu1 }
 0x1ef   : > { %v610_v12 = vld [vmem:[#allocation5 + $0x6b0] sm:$0xff]  ;;  %16843 = vst [vmem:[#allocation54_spill] sm:$0xff] %v13441_v15  ;;  %4596 = vmatpush2.bf16.msra.mxu1 %v10975_v48  ;;  %4404 = vmatprep.subr.bf16.mxu0 %v10840_v61  ;;  %v3398_v56 = vpop.f32.mrf.mxu0 }
 0x1f0   : > { %4087 = vmatmul.mubr.bf16.gmra.mxu0 %v13445_v62  ;;  %4597 = vmatprep.subr.bf16.mxu1 %v10968_v22  ;;  %v10960_v32 = vcombine.high %v606_v51, %v610_v12  ;;  %v470_v24 = vld [vmem:[#allocation5 + $0x250] sm:$0xff]  ;;  %16845 = vst [vmem:[#allocation56_spill] sm:$0xff] %v13448_v0  ;;  %v10831_v22 = vcombine.low %v478_v45, %v482_v50  ;;  %v3591_v13 = vpop.f32.mrf.mxu1 }
 0x1f1   : > { %v474_v18 = vld [vmem:[#allocation5 + $0x270] sm:$0xff]  ;;  %v10959_v62 = vcombine.low %v606_v51, %v610_v12  ;;  %v13457_v15 = vadd.f32 %v3589_v29, %v3397_v36  ;;  %v3399_v54 = vadd.f32 %v3398_v56, %v13146_v4 }
 0x1f2   : > { %v12397_v16 = vld [vmem:[%s12984_s6 + $0x130] ss:$24 sps:$4 sm:$0xff]   ;;  %v13453_v48 = vld [vmem:[%s12984_s6 + $0x15c] ss:$24 sps:$4 sm:$0xff]   ;;  %4405 = vmatpush2.bf16.msra.mxu0 %v10839_v30  ;;  %v10824_v10 = vcombine.high %v470_v24, %v474_v18  ;;  %v3593_v50 = vpop.f32.mrf.mxu1  ;;  %v10823_v36 = vcombine.low %v470_v24, %v474_v18 }
 0x1f3   : > { %4280 = vmatmul.mubr.bf16.gmra.mxu1 %v12397_v16  ;;  %16846 = vst [vmem:[#allocation57_spill] sm:$0xff] %v13453_v48  ;;  %4096 = vmatprep.mubr.bf16.mxu0 %v13453_v48  ;;  %v598_v61 = vld [vmem:[#allocation5 + $0x650] sm:$0xff]  ;;  %v3400_v16 = vpop.f32.mrf.mxu0  ;;  %v13460_v7 = vadd.f32 %v3591_v13, %v3399_v54  ;;  %v13475_v13 = vld [vmem:[%s12984_s6 + $0x18c] ss:$24 sps:$4 sm:$0xff]  }
 0x1f4   : > { %v602_v38 = vld [vmem:[#allocation5 + $0x670] sm:$0xff]  ;;  %4289 = vmatprep.mubr.bf16.mxu1 %v12399_v11  ;;  %4598 = vmatpush2.bf16.msra.mxu1 %v10967_v21  ;;  %v3401_v30 = vadd.f32 %v3400_v16, %v13141_v2  ;;  %v3595_v29 = vpop.f32.mrf.mxu1 }
 0x1f5   : > { %4406 = vmatprep.subr.bf16.mxu0 %v10832_v43  ;;  %4599 = vmatprep.subr.bf16.mxu1 %v10960_v32  ;;  %v10952_v0 = vcombine.high %v598_v61, %v602_v38  ;;  %v462_v48 = vld [vmem:[#allocation5 + $0x210] sm:$0xff]  ;;  %v3402_v12 = vpop.f32.mrf.mxu0  ;;  %v10951_v21 = vcombine.low %v598_v61, %v602_v38  ;;  %v12401_v38 = vld [vmem:[%s12984_s6 + $0x160] ss:$24 sps:$4 sm:$0xff]  }
 0x1f6   : > { %v466_v49 = vld [vmem:[#allocation5 + $0x230] sm:$0xff]  ;;  %4407 = vmatpush2.bf16.msra.mxu0 %v10831_v22  ;;  %v13463_v43 = vadd.f32 %v3593_v50, %v3401_v30  ;;  %v3403_v32 = vadd.f32 %v3402_v12, %v13146_v4  ;;  %v3599_v61 = vpop.f32.mrf.mxu1 }
 0x1f7   : > { %v590_v45 = vld [vmem:[#allocation5 + $0x610] sm:$0xff]  ;;  %4408 = vmatprep.subr.bf16.mxu0 %v10824_v10  ;;  %v10816_v56 = vcombine.high %v462_v48, %v466_v49  ;;  %v3406_v11 = vpop.f32.mrf.mxu0  ;;  %v10815_v16 = vcombine.low %v462_v48, %v466_v49 }
 0x1f8   : > { %v594_v51 = vld [vmem:[#allocation5 + $0x630] sm:$0xff]  ;;  %4600 = vmatpush2.bf16.msra.mxu1 %v10959_v62  ;;  %v13470_v24 = vadd.f32 %v3595_v29, %v3403_v32  ;;  %v3407_v18 = vadd.f32 %v3406_v11, %v13141_v2  ;;  %v3601_v12 = vpop.f32.mrf.mxu1  ;;  %v11064_v32 = vcombine.high %v13308_v55, %v13310_v9  ;;  %v10810_v11 = vcombine.high %v13318_v63, %v13320_v58 }
 0x1f9   : > { %v13467_v54 = vld [vmem:[%s12984_s6 + $0x158] ss:$24 sps:$4 sm:$0xff]   ;;  %4601 = vmatprep.subr.bf16.mxu1 %v10952_v0  ;;  %v10944_v22 = vcombine.high %v590_v45, %v594_v51  ;;  %v3408_v62 = vpop.f32.mrf.mxu0  ;;  %v12403_v10 = vld [vmem:[%s12984_s6 + $0x194] ss:$24 sps:$4 sm:$0xff]   ;;  %v10943_v30 = vcombine.low %v590_v45, %v594_v51 }
 0x1fa   : > { %4097 = vmatmul.mubr.bf16.gmra.mxu0 %v13467_v54  ;;  %v13479_v50 = vadd.f32 %v3599_v61, %v3407_v18  ;;  %v3409_v0 = vadd.f32 %v3408_v62, %v13146_v4  ;;  %v3603_v48 = vpop.f32.mrf.mxu1  ;;  %v12405_v62 = vld [vmem:[%s12984_s6 + $0x190] ss:$24 sps:$4 sm:$0xff]  }
 0x1fb   : > { %4290 = vmatmul.mubr.bf16.gmra.mxu1 %v12401_v38  ;;  %4106 = vmatprep.mubr.bf16.mxu0 %v13475_v13  ;;  %v3410_v29 = vpop.f32.mrf.mxu0 }
 0x1fc   : > { %4299 = vmatprep.mubr.bf16.mxu1 %v12403_v10  ;;  %4409 = vmatpush2.bf16.msra.mxu0 %v10823_v36  ;;  %v13486_v38 = vadd.f32 %v3601_v12, %v3409_v0  ;;  %v3411_v49 = vadd.f32 %v3410_v29, %v13141_v2 }
 0x1fd   : > { %4602 = vmatpush2.bf16.msra.mxu1 %v10951_v21  ;;  %4410 = vmatprep.subr.bf16.mxu0 %v10816_v56  ;;  %v3412_v45 = vpop.f32.mrf.mxu0  ;;  %v3605_v21 = vpop.f32.mrf.mxu1 }
 0x1fe   : > { %4603 = vmatprep.subr.bf16.mxu1 %v10944_v22  ;;  %v13489_v51 = vadd.f32 %v3603_v48, %v3411_v49  ;;  %v3413_v36 = vadd.f32 %v3412_v45, %v13146_v4  ;;  %v13493_v22 = vld [vmem:[%s12984_s6 + $0x188] ss:$24 sps:$4 sm:$0xff]   ;;  %v13503_v4 = vld [vmem:[%s12984_s6 + $0x1bc] ss:$24 sps:$4 sm:$0xff]  }
 0x1ff   : > { %v3642_v56 = vpop.f32.mrf.mxu0  ;;  %v13499_v61 = vpop.f32.mrf.mxu1 }
 0x200   : > { %4411 = vmatpush2.bf16.msra.mxu0 %v10815_v16  ;;  %v13496_v2 = vadd.f32 %v3605_v21, %v3413_v36  ;;  %v3643_v18 = vadd.f32 %v3642_v56, %v13151_v17  ;;  %v12407_v16 = vld [vmem:[%s12984_s6 + $0x1c4] ss:$24 sps:$4 sm:$0xff]   ;;  %v13519_v36 = vld [vmem:[%s12984_s6 + $0x1b8] ss:$24 sps:$4 sm:$0xff]  }
 0x201   : > { %4604 = vmatpush2.bf16.msra.mxu1 %v10943_v30  ;;  %4766 = vmatprep.subr.bf16.mxu0 %v11064_v32  ;;  %v3644_v10 = vpop.f32.mrf.mxu0  ;;  %v13508_v0 = vpop.f32.mrf.mxu1  ;;  %v12409_v56 = vld [vmem:[%s12984_s6 + $0x1c0] ss:$24 sps:$4 sm:$0xff]  }
 0x202   : > { %4107 = vmatmul.mubr.bf16.gmra.mxu0 %v13493_v22  ;;  %4959 = vmatprep.subr.bf16.mxu1 %v10810_v11  ;;  %v3645_v30 = vadd.f32 %v3644_v10, %v13156_v23 }
 0x203   : > { %4300 = vmatmul.mubr.bf16.gmra.mxu1 %v12405_v62  ;;  %4116 = vmatprep.mubr.bf16.mxu0 %v13503_v4  ;;  %v3646_v12 = vpop.f32.mrf.mxu0  ;;  %v13511_v32 = vpop.f32.mrf.mxu1  ;;  %v12411_v62 = vld [vmem:[%s12984_s6 + $0x1f4] ss:$24 sps:$4 sm:$0xff]  }
 0x204   : > { %4309 = vmatprep.mubr.bf16.mxu1 %v12407_v16  ;;  %v3647_v17 = vadd.f32 %v3646_v12, %v13159_v27 }
 0x205   : > { %v3648_v29 = vpop.f32.mrf.mxu0  ;;  %v13516_v48 = vpop.f32.mrf.mxu1 }
 0x206   : > { %v13513_v11 = vpack.c.bf16 %v3647_v17, %v3643_v18  ;;  %v3649_v49 = vadd.f32 %v3648_v29, %v13162_v31  ;;  %v13529_v18 = vld [vmem:[%s12984_s6 + $0x1ec] ss:$24 sps:$4 sm:$0xff]  }
 0x207   : > { %v3652_v45 = vpop.f32.mrf.mxu0  ;;  %v13525_v27 = vpop.f32.mrf.mxu1 }
 0x208   : > { %16847 = vst [vmem:[#allocation58_spill] sm:$0xff] %v13513_v11  ;;  %v13522_v23 = vpack.c.bf16 %v3649_v49, %v3645_v30  ;;  %v3653_v21 = vadd.f32 %v3652_v45, %v13167_v37 }
 0x209   : > { %v3654_v31 = vpop.f32.mrf.mxu0  ;;  %v13534_v16 = vpop.f32.mrf.mxu1 }
 0x20a   : > { %4117 = vmatmul.mubr.bf16.gmra.mxu0 %v13519_v36  ;;  %16848 = vst [vmem:[#allocation59_spill] sm:$0xff] %v13522_v23  ;;  %v3655_v10 = vadd.f32 %v3654_v31, %v13171_v42  ;;  %v12416_v23 = vld [vmem:[%s12984_s6 + $0x218] ss:$24 sps:$4 sm:$0xff]  }
 0x20b   : > { %4310 = vmatmul.mubr.bf16.gmra.mxu1 %v12409_v56  ;;  %4126 = vmatprep.mubr.bf16.mxu0 %v13529_v18  ;;  %v3656_v30 = vpop.f32.mrf.mxu0  ;;  %v13537_v12 = vpop.f32.mrf.mxu1 }
 0x20c   : > { %4319 = vmatprep.mubr.bf16.mxu1 %v12411_v62  ;;  %v3657_v37 = vadd.f32 %v3656_v30, %v13175_v46  ;;  %v13545_v62 = vld [vmem:[%s12984_s6 + $0x1e8] ss:$24 sps:$4 sm:$0xff]  }
 0x20d   : > { %v3658_v17 = vpop.f32.mrf.mxu0  ;;  %v13542_v45 = vpop.f32.mrf.mxu1  ;;  %v12413_v30 = vld [vmem:[%s12984_s6 + $0x1f0] ss:$24 sps:$4 sm:$0xff]  }
 0x20e   : > { %v13539_v29 = vpack.c.bf16 %v3657_v37, %v3653_v21  ;;  %v3659_v49 = vadd.f32 %v3658_v17, %v13178_v52  ;;  %v13555_v21 = vld [vmem:[%s12984_s6 + $0x21c] ss:$24 sps:$4 sm:$0xff]  }
 0x20f   : > { %v3662_v56 = vpop.f32.mrf.mxu0  ;;  %v13551_v46 = vpop.f32.mrf.mxu1  ;;  %16851 = vst [vmem:[#allocation62_spill] sm:$0xff] %v13555_v21  ;;  %v12415_v37 = vld [vmem:[%s12984_s6 + $0x224] ss:$24 sps:$4 sm:$0xff]  }
 0x210   : > { %16849 = vst [vmem:[#allocation60_spill] sm:$0xff] %v13539_v29  ;;  %v13548_v42 = vpack.c.bf16 %v3659_v49, %v3655_v10  ;;  %v3663_v31 = vadd.f32 %v3662_v56, %v13183_v59 }
 0x211   : > { %v3664_v52 = vpop.f32.mrf.mxu0  ;;  %v13560_v29 = vpop.f32.mrf.mxu1 }
 0x212   : > { %4127 = vmatmul.mubr.bf16.gmra.mxu0 %v13545_v62  ;;  %16850 = vst [vmem:[#allocation61_spill] sm:$0xff] %v13548_v42  ;;  %v3665_v17 = vadd.f32 %v3664_v52, %v13187_v1 }
 0x213   : > { %4320 = vmatmul.mubr.bf16.gmra.mxu1 %v12413_v30  ;;  %4136 = vmatprep.mubr.bf16.mxu0 %v13555_v21  ;;  %v3666_v10 = vpop.f32.mrf.mxu0  ;;  %v13563_v49 = vpop.f32.mrf.mxu1 }
 0x214   : > { %4329 = vmatprep.mubr.bf16.mxu1 %v12415_v37  ;;  %v3667_v59 = vadd.f32 %v3666_v10, %v13191_v8  ;;  %v12417_v8 = vld [vmem:[%s12984_s6 + $0x220] ss:$24 sps:$4 sm:$0xff]   ;;  %v13578_v10 = vld [vmem:[%s12984_s6 + $0x24c] ss:$24 sps:$4 sm:$0xff]  }
 0x215   : > { %v3668_v56 = vpop.f32.mrf.mxu0  ;;  %v13568_v11 = vpop.f32.mrf.mxu1  ;;  %16854 = vst [vmem:[#allocation65_spill] sm:$0xff] %v13578_v10 }
 0x216   : > { %v13565_v30 = vpack.c.bf16 %v3667_v59, %v3663_v31  ;;  %v3669_v42 = vadd.f32 %v3668_v56, %v13194_v19  ;;  %v12419_v19 = vld [vmem:[%s12984_s6 + $0x254] ss:$24 sps:$4 sm:$0xff]  }
 0x217   : > { %v3672_v37 = vpop.f32.mrf.mxu0  ;;  %v13574_v21 = vpop.f32.mrf.mxu1 }
 0x218   : > { %16852 = vst [vmem:[#allocation63_spill] sm:$0xff] %v13565_v30  ;;  %v13571_v1 = vpack.c.bf16 %v3669_v42, %v3665_v17  ;;  %v3673_v52 = vadd.f32 %v3672_v37, %v13199_v26 }
 0x219   : > { %v3674_v31 = vpop.f32.mrf.mxu0 }
 0x21a   : > { %4137 = vmatmul.mubr.bf16.gmra.mxu0 %v12416_v23  ;;  %16853 = vst [vmem:[#allocation64_spill] sm:$0xff] %v13571_v1  ;;  %v3675_v59 = vadd.f32 %v3674_v31, %v13203_v33  ;;  %v13583_v23 = vpop.f32.mrf.mxu1  ;;  %v12420_v1 = vld [vmem:[%s12984_s6 + $0x248] ss:$24 sps:$4 sm:$0xff]  }
 0x21b   : > { %4330 = vmatmul.mubr.bf16.gmra.mxu1 %v12417_v8  ;;  %4146 = vmatprep.mubr.bf16.mxu0 %v13578_v10  ;;  %v3676_v42 = vpop.f32.mrf.mxu0 }
 0x21c   : > { %4339 = vmatprep.mubr.bf16.mxu1 %v12419_v19  ;;  %v3677_v26 = vadd.f32 %v3676_v42, %v13207_v39  ;;  %v13586_v17 = vpop.f32.mrf.mxu1  ;;  %v12421_v39 = vld [vmem:[%s12984_s6 + $0x250] ss:$24 sps:$4 sm:$0xff]   ;;  %v12422_v42 = vld [vmem:[%s12984_s6 + $0x27c] ss:$24 sps:$4 sm:$0xff]  }
 0x21d   : > { %v3678_v56 = vpop.f32.mrf.mxu0 }
 0x21e   : > { %v13588_v37 = vpack.c.bf16 %v3677_v26, %v3673_v52  ;;  %v3679_v8 = vadd.f32 %v3678_v56, %v13210_v44  ;;  %v13591_v30 = vpop.f32.mrf.mxu1  ;;  %v12423_v26 = vld [vmem:[%s12984_s6 + $0x284] ss:$24 sps:$4 sm:$0xff]  }
 0x21f   : > { %v3682_v19 = vpop.f32.mrf.mxu0 }
 0x220   : > { %16855 = vst [vmem:[#allocation66_spill] sm:$0xff] %v13588_v37  ;;  %v13594_v33 = vpack.c.bf16 %v3679_v8, %v3675_v59  ;;  %v3683_v31 = vadd.f32 %v3682_v19, %v13215_v53  ;;  %v13597_v10 = vpop.f32.mrf.mxu1  ;;  %v12424_v37 = vld [vmem:[%s12984_s6 + $0x278] ss:$24 sps:$4 sm:$0xff]  }
 0x221   : > { %v3684_v52 = vpop.f32.mrf.mxu0 }
 0x222   : > { %4147 = vmatmul.mubr.bf16.gmra.mxu0 %v12420_v1  ;;  %16856 = vst [vmem:[#allocation67_spill] sm:$0xff] %v13594_v33  ;;  %v3685_v44 = vadd.f32 %v3684_v52, %v13219_v60  ;;  %v13603_v56 = vpop.f32.mrf.mxu1 }
 0x223   : > { %4340 = vmatmul.mubr.bf16.gmra.mxu1 %v12421_v39  ;;  %4156 = vmatprep.mubr.bf16.mxu0 %v12422_v42  ;;  %16857 = vst [vmem:[#allocation68_spill] sm:$0xff] %v13603_v56  ;;  %v3686_v1 = vpop.f32.mrf.mxu0 }
 0x224   : > { %4349 = vmatprep.mubr.bf16.mxu1 %v12423_v26  ;;  %v3687_v59 = vadd.f32 %v3686_v1, %v13223_v5  ;;  %v13606_v53 = vpop.f32.mrf.mxu1  ;;  %v12425_v5 = vld [vmem:[%s12984_s6 + $0x280] ss:$24 sps:$4 sm:$0xff]   ;;  %v12426_v1 = vld [vmem:[%s12984_s6 + $0x2ac] ss:$24 sps:$4 sm:$0xff]  }
 0x225   : > { %16858 = vst [vmem:[#allocation69_spill] sm:$0xff] %v13606_v53  ;;  %v3688_v8 = vpop.f32.mrf.mxu0 }
 0x226   : > { %v13608_v19 = vpack.c.bf16 %v3687_v59, %v3683_v31  ;;  %v3689_v39 = vadd.f32 %v3688_v8, %v13226_v14  ;;  %v13611_v42 = vpop.f32.mrf.mxu1  ;;  %v12427_v59 = vld [vmem:[%s12984_s6 + $0x2b4] ss:$24 sps:$4 sm:$0xff]  }
 0x227   : > { %16860 = vst [vmem:[#allocation71_spill] sm:$0xff] %v13611_v42  ;;  %v3692_v26 = vpop.f32.mrf.mxu0 }
 0x228   : > { %16859 = vst [vmem:[#allocation70_spill] sm:$0xff] %v13608_v19  ;;  %v13614_v60 = vpack.c.bf16 %v3689_v39, %v3685_v44  ;;  %v3693_v52 = vadd.f32 %v3692_v26, %v13231_v25  ;;  %v13617_v33 = vpop.f32.mrf.mxu1  ;;  %v12428_v19 = vld [vmem:[%s12984_s6 + $0x2a8] ss:$24 sps:$4 sm:$0xff]  }
 0x229   : > { %16862 = vst [vmem:[#allocation73_spill] sm:$0xff] %v13617_v33  ;;  %v3694_v31 = vpop.f32.mrf.mxu0 }
 0x22a   : > { %4157 = vmatmul.mubr.bf16.gmra.mxu0 %v12424_v37  ;;  %16861 = vst [vmem:[#allocation72_spill] sm:$0xff] %v13614_v60  ;;  %v3695_v14 = vadd.f32 %v3694_v31, %v13235_v34  ;;  %v13623_v8 = vpop.f32.mrf.mxu1 }
 0x22b   : > { %4350 = vmatmul.mubr.bf16.gmra.mxu1 %v12425_v5  ;;  %4166 = vmatprep.mubr.bf16.mxu0 %v12426_v1  ;;  %16863 = vst [vmem:[#allocation74_spill] sm:$0xff] %v13623_v8  ;;  %v3696_v37 = vpop.f32.mrf.mxu0  ;;  %v12436_v8 = vld [vmem:[%s12984_s6 + $0x30] ss:$24 sps:$4 sm:$0xff]  }
 0x22c   : > { %4359 = vmatprep.mubr.bf16.mxu1 %v12427_v59  ;;  %v3697_v44 = vadd.f32 %v3696_v37, %v13239_v41  ;;  %v13626_v25 = vpop.f32.mrf.mxu1  ;;  %v12429_v41 = vld [vmem:[%s12984_s6 + $0x2b0] ss:$24 sps:$4 sm:$0xff]   ;;  %v12430_v37 = vld [vmem:[%s12984_s6 + $0x2dc] ss:$24 sps:$4 sm:$0xff]  }
 0x22d   : > { %16864 = vst [vmem:[#allocation75_spill] sm:$0xff] %v13626_v25  ;;  %v3698_v39 = vpop.f32.mrf.mxu0  ;;  %v12435_v25 = vld [vmem:[%s12984_s6 + $0x34] ss:$24 sps:$4 sm:$0xff]  }
 0x22e   : > { %v13628_v26 = vpack.c.bf16 %v3697_v44, %v3693_v52  ;;  %v3699_v5 = vadd.f32 %v3698_v39, %v13242_v47  ;;  %v13631_v1 = vpop.f32.mrf.mxu1  ;;  %v12431_v44 = vld [vmem:[%s12984_s6 + $0x2e4] ss:$24 sps:$4 sm:$0xff]  }
 0x22f   : > { %16866 = vst [vmem:[#allocation77_spill] sm:$0xff] %v13631_v1  ;;  %v3702_v59 = vpop.f32.mrf.mxu0 }
 0x230   : > { %16865 = vst [vmem:[#allocation76_spill] sm:$0xff] %v13628_v26  ;;  %v13634_v34 = vpack.c.bf16 %v3699_v5, %v3695_v14  ;;  %v3703_v31 = vadd.f32 %v3702_v59, %v13247_v57  ;;  %v13637_v60 = vpop.f32.mrf.mxu1 }
 0x231   : > { %16868 = vst [vmem:[#allocation79_spill] sm:$0xff] %v13637_v60  ;;  %v3704_v52 = vpop.f32.mrf.mxu0 }
 0x232   : > { %4167 = vmatmul.mubr.bf16.gmra.mxu0 %v12428_v19  ;;  %16867 = vst [vmem:[#allocation78_spill] sm:$0xff] %v13634_v34  ;;  %v3705_v47 = vadd.f32 %v3704_v52, %v13253_v6  ;;  %v13643_v39 = vpop.f32.mrf.mxu1  ;;  %v12432_v34 = vld [vmem:[%s12984_s6 + $0x2d8] ss:$24 sps:$4 sm:$0xff]  }
 0x233   : > { %4360 = vmatmul.mubr.bf16.gmra.mxu1 %v12429_v41  ;;  %4176 = vmatprep.mubr.bf16.mxu0 %v12430_v37  ;;  %16869 = vst [vmem:[#allocation80_spill] sm:$0xff] %v13643_v39  ;;  %v3706_v19 = vpop.f32.mrf.mxu0  ;;  %v12434_v39 = vld [vmem:[%s12984_s6] ss:$24 sps:$4 sm:$0xff]  }
 0x234   : > { %4369 = vmatprep.mubr.bf16.mxu1 %v12431_v44  ;;  %v3707_v14 = vadd.f32 %v3706_v19, %v13256_v20  ;;  %v13646_v5 = vpop.f32.mrf.mxu1  ;;  %v12433_v20 = vld [vmem:[%s12984_s6 + $0x4] ss:$24 sps:$4 sm:$0xff]  }
 0x235   : > { %16870 = vst [vmem:[#allocation81_spill] sm:$0xff] %v13646_v5  ;;  %v3708_v57 = vpop.f32.mrf.mxu0 }
 0x236   : > { %v13648_v59 = vpack.c.bf16 %v3707_v14, %v3703_v31  ;;  %v3709_v41 = vadd.f32 %v3708_v57, %v13260_v28  ;;  %v13651_v26 = vpop.f32.mrf.mxu1  ;;  %v16875_v31 = vld [vmem:[#allocation17_spill] sm:$0xff] }
 0x237   : > { %16872 = vst [vmem:[#allocation83_spill] sm:$0xff] %v13651_v26  ;;  %v3712_v37 = vpop.f32.mrf.mxu0 }
 0x238   : > { %16871 = vst [vmem:[#allocation82_spill] sm:$0xff] %v13648_v59  ;;  %v13654_v44 = vpack.c.bf16 %v3709_v41, %v3705_v47  ;;  %v3713_v6 = vadd.f32 %v3712_v37, %v13269_v40  ;;  %v13657_v52 = vpop.f32.mrf.mxu1  ;;  %v706_v47 = vld [vmem:[#allocation5 + $0x9b0] sm:$0xff]  ;;  %v16877_v41 = vld [vmem:[#allocation18_spill] sm:$0xff] }
 0x239   : > { %16874 = vst [vmem:[#allocation85_spill] sm:$0xff] %v13657_v52  ;;  %v3714_v19 = vpop.f32.mrf.mxu0  ;;  %v447_v37 = vld [vmem:[#allocation5 + $0x198] sm:$0xff] }
 0x23a   : > { %4177 = vmatmul.mubr.bf16.gmra.mxu0 %v12432_v34  ;;  %16873 = vst [vmem:[#allocation84_spill] sm:$0xff] %v13654_v44  ;;  %v3715_v28 = vadd.f32 %v3714_v19, %v16875_v31  ;;  %v13663_v14 = vpop.f32.mrf.mxu1  ;;  %v702_v34 = vld [vmem:[#allocation5 + $0x990] sm:$0xff]  ;;  %v451_v44 = vld [vmem:[#allocation5 + $0x1b8] sm:$0xff] }
 0x23b   : > { %4370 = vmatmul.mubr.bf16.gmra.mxu1 %v13251_v3  ;;  %4412 = vmatprep.mubr.bf16.mxu0 %v12433_v20  ;;  %16876 = vst [vmem:[#allocation17_spill] sm:$0xff] %v13663_v14  ;;  %v3716_v57 = vpop.f32.mrf.mxu0  ;;  %v16880_v20 = vld [vmem:[#allocation20_spill] sm:$0xff]  ;;  %v11056_v19 = vcombine.high %v702_v34, %v706_v47  ;;  %v11055_v60 = vcombine.low %v702_v34, %v706_v47  ;;  %v431_v34 = vld [vmem:[#allocation5 + $0x118] sm:$0xff] }
 0x23c   : > { %4605 = vmatprep.mubr.bf16.mxu1 %v13265_v35  ;;  %v3717_v59 = vadd.f32 %v3716_v57, %v16877_v41  ;;  %v13666_v40 = vpop.f32.mrf.mxu1  ;;  %v13673_v31 = vld [vmem:[#allocation5 + $0x950] sm:$0xff]  ;;  %v10802_v57 = vcombine.high %v447_v37, %v451_v44  ;;  %v13678_v41 = vld [vmem:[#allocation5 + $0x158] sm:$0xff] }
 0x23d   : > { %16878 = vst [vmem:[#allocation18_spill] sm:$0xff] %v13666_v40  ;;  %v3718_v3 = vpop.f32.mrf.mxu0  ;;  %v13675_v14 = vld [vmem:[#allocation5 + $0x970] sm:$0xff]  ;;  %v13680_v40 = vld [vmem:[#allocation5 + $0x178] sm:$0xff] }
 0x23e   : > { %v13668_v52 = vpack.c.bf16 %v3717_v59, %v3713_v6  ;;  %v3719_v26 = vadd.f32 %v3718_v3, %v16880_v20  ;;  %v13671_v35 = vpop.f32.mrf.mxu1  ;;  %v16883_v6 = vld [vmem:[#allocation22_spill] sm:$0xff]  ;;  %v16891_v47 = vld [vmem:[#allocation24_spill] sm:$0xff] }
 0x23f   : > { %16881 = vst [vmem:[#allocation20_spill] sm:$0xff] %v13671_v35  ;;  %v3722_v5 = vpop.f32.mrf.mxu0  ;;  %v16886_v35 = vcombine.low %v13308_v55, %v13310_v9  ;;  %v10794_v55 = vcombine.high %v13678_v41, %v13680_v40  ;;  %v13703_v9 = vld [vmem:[#allocation5 + $0x5d8] sm:$0xff] }
 0x240   : > { %16879 = vst [vmem:[#allocation86_spill] sm:$0xff] %v13668_v52  ;;  %v13682_v59 = vpack.c.bf16 %v3719_v26, %v3715_v28  ;;  %v3723_v3 = vadd.f32 %v3722_v5, %v16883_v6  ;;  %v13685_v20 = vpop.f32.mrf.mxu1  ;;  %v16885_v52 = vld [vmem:[#allocation19_spill] sm:$0xff]  ;;  %v10801_v26 = vcombine.low %v447_v37, %v451_v44  ;;  %v11048_v5 = vcombine.high %v13673_v31, %v13675_v14  ;;  %v690_v44 = vld [vmem:[#allocation5 + $0x930] sm:$0xff] }
 0x241   : > { %16884 = vst [vmem:[#allocation22_spill] sm:$0xff] %v13685_v20  ;;  %v3724_v1 = vpop.f32.mrf.mxu0  ;;  %v16888_v28 = vld [vmem:[#allocation23_spill] sm:$0xff] }
 0x242   : > { %4413 = vmatmul.mubr.bf16.vlgmr.msra.gmra.mxu0 %v12434_v39  ;;  %16882 = vst [vmem:[#allocation87_spill] sm:$0xff] %v13682_v59  ;;  %v16887_v39 = vcombine.low %v13318_v63, %v13320_v58  ;;  %v3725_v6 = vadd.f32 %v3724_v1, %v16888_v28  ;;  %v13698_v59 = vpop.f32.mrf.mxu1  ;;  %v13705_v58 = vld [vmem:[#allocation5 + $0x5f8] sm:$0xff] }
 0x243   : > { %4606 = vmatmul.mubr.bf16.vlgmr.msra.gmra.mxu1 %v16885_v52  ;;  %4767 = vmatpush1.bf16.msra.mxu0 %v16886_v35  ;;  %16889 = vst [vmem:[#allocation19_spill] sm:$0xff] %v13698_v59  ;;  %v16890_v52 = vld [vmem:[#allocation21_spill] sm:$0xff]  ;;  %v3726_v63 = vpop.f32.mrf.mxu0 }
 0x244   : > { %4960 = vmatpush1.bf16.msra.mxu1 %v16887_v39  ;;  %4422 = vmatprep.mubr.bf16.mxu0 %v12435_v25  ;;  %v686_v25 = vld [vmem:[#allocation5 + $0x910] sm:$0xff]  ;;  %v3727_v37 = vadd.f32 %v3726_v63, %v16891_v47  ;;  %v13710_v35 = vpop.f32.mrf.mxu1  ;;  %v13712_v39 = vld [vmem:[#allocation5 + $0x9d8] sm:$0xff] }
 0x245   : > { %4615 = vmatprep.mubr.bf16.mxu1 %v16890_v52  ;;  %4768 = vmatprep.subr.bf16.mxu0 %v11056_v19  ;;  %16892 = vst [vmem:[#allocation23_spill] sm:$0xff] %v13710_v35  ;;  %v435_v19 = vld [vmem:[#allocation5 + $0x138] sm:$0xff]  ;;  %v3728_v52 = vpop.f32.mrf.mxu0  ;;  %v10793_v35 = vcombine.low %v13678_v41, %v13680_v40  ;;  %v11040_v20 = vcombine.high %v686_v25, %v690_v44 }
 0x246   : > { %4961 = vmatprep.subr.bf16.mxu1 %v10802_v57  ;;  %v13714_v28 = vld [vmem:[#allocation5 + $0x9f8] sm:$0xff]  ;;  %v11047_v57 = vcombine.low %v13673_v31, %v13675_v14  ;;  %v13720_v59 = vpack.c.bf16 %v3727_v37, %v3723_v3  ;;  %v13723_v47 = vpop.f32.mrf.mxu1  ;;  %v10786_v14 = vcombine.high %v431_v34, %v435_v19  ;;  %v678_v31 = vld [vmem:[#allocation5 + $0x8d0] sm:$0xff] }
 0x247   : > { %4769 = vmatpush1.bf16.msra.mxu0 %v11055_v60  ;;  %v16894_v63 = vld [vmem:[#allocation26_spill] sm:$0xff]  ;;  %16895 = vst [vmem:[#allocation24_spill] sm:$0xff] %v13723_v47  ;;  %v16897_v3 = vld [vmem:[#allocation28_spill] sm:$0xff]  ;;  %v16901_v47 = vld [vmem:[#allocation29_spill] sm:$0xff] }
 0x248   : > { %4962 = vmatpush1.bf16.msra.mxu1 %v10801_v26  ;;  %4770 = vmatprep.subr.bf16.mxu0 %v11048_v5  ;;  %16893 = vst [vmem:[#allocation21_spill] sm:$0xff] %v13720_v59  ;;  %v3729_v60 = vadd.f32 %v3728_v52, %v16894_v63  ;;  %v3732_v26 = vpop.f32.mrf.mxu0  ;;  %v682_v5 = vld [vmem:[#allocation5 + $0x8f0] sm:$0xff]  ;;  %v13731_v1 = vpop.f32.mrf.mxu1  ;;  %v12437_v63 = vld [vmem:[%s12984_s6 + $0x64] ss:$24 sps:$4 sm:$0xff]  }
 0x249   : > { %4963 = vmatprep.subr.bf16.mxu1 %v10794_v55  ;;  %v3733_v37 = vadd.f32 %v3732_v26, %v16897_v3  ;;  %16898 = vst [vmem:[#allocation28_spill] sm:$0xff] %v13731_v1  ;;  %v16899_v52 = vld [vmem:[#allocation25_spill] sm:$0xff]  ;;  %v16900_v55 = vld [vmem:[#allocation27_spill] sm:$0xff] }
 0x24a   : > { %4423 = vmatmul.mubr.bf16.gmra.mxu0 %v12436_v8  ;;  %v13728_v33 = vpack.c.bf16 %v3729_v60, %v3725_v6  ;;  %v423_v59 = vld [vmem:[#allocation5 + $0xd8] sm:$0xff]  ;;  %v3734_v41 = vpop.f32.mrf.mxu0  ;;  %v11039_v8 = vcombine.low %v686_v25, %v690_v44  ;;  %v13737_v53 = vpop.f32.mrf.mxu1  ;;  %v10785_v6 = vcombine.low %v431_v34, %v435_v19  ;;  %v11032_v60 = vcombine.high %v678_v31, %v682_v5 }
 0x24b   : > { %4616 = vmatmul.mubr.bf16.gmra.mxu1 %v16899_v52  ;;  %4432 = vmatprep.mubr.bf16.mxu0 %v12437_v63  ;;  %v427_v40 = vld [vmem:[#allocation5 + $0xf8] sm:$0xff]  ;;  %v3735_v42 = vadd.f32 %v3734_v41, %v16901_v47  ;;  %16902 = vst [vmem:[#allocation25_spill] sm:$0xff] %v13737_v53  ;;  %v670_v52 = vld [vmem:[#allocation5 + $0x890] sm:$0xff]  ;;  %v11031_v47 = vcombine.low %v678_v31, %v682_v5  ;;  %v16911_v5 = vld [vmem:[#allocation31_spill] sm:$0xff] }
 0x24c   : > { %16896 = vst [vmem:[#allocation26_spill] sm:$0xff] %v13728_v33  ;;  %4625 = vmatprep.mubr.bf16.mxu1 %v16900_v55  ;;  %4771 = vmatpush1.bf16.msra.mxu0 %v11047_v57  ;;  %v3736_v26 = vpop.f32.mrf.mxu0  ;;  %v10778_v3 = vcombine.high %v423_v59, %v427_v40  ;;  %v674_v63 = vld [vmem:[#allocation5 + $0x8b0] sm:$0xff]  ;;  %v16903_v33 = vld [vmem:[#allocation30_spill] sm:$0xff]  ;;  %v13740_v56 = vpop.f32.mrf.mxu1  ;;  %v10777_v41 = vcombine.low %v423_v59, %v427_v40 }
 0x24d   : > { %4964 = vmatpush1.bf16.msra.mxu1 %v10793_v35  ;;  %4772 = vmatprep.subr.bf16.mxu0 %v11040_v20  ;;  %v3737_v1 = vadd.f32 %v3736_v26, %v16903_v33  ;;  %16904 = vst [vmem:[#allocation27_spill] sm:$0xff] %v13740_v56  ;;  %v415_v57 = vld [vmem:[#allocation5 + $0x98] sm:$0xff]  ;;  %v16906_v20 = vld [vmem:[#allocation32_spill] sm:$0xff] }
 0x24e   : > { %4965 = vmatprep.subr.bf16.mxu1 %v10786_v14  ;;  %v419_v25 = vld [vmem:[#allocation5 + $0xb8] sm:$0xff]  ;;  %v3738_v44 = vpop.f32.mrf.mxu0  ;;  %v13745_v19 = vpop.f32.mrf.mxu1  ;;  %v11024_v14 = vcombine.high %v670_v52, %v674_v63  ;;  %v662_v56 = vld [vmem:[#allocation5 + $0x850] sm:$0xff] }
 0x24f   : > { %v13742_v35 = vpack.c.bf16 %v3737_v1, %v3733_v37  ;;  %v3739_v34 = vadd.f32 %v3738_v44, %v16906_v20  ;;  %16907 = vst [vmem:[#allocation30_spill] sm:$0xff] %v13745_v19  ;;  %v12438_v33 = vld [vmem:[%s12984_s6 + $0x60] ss:$24 sps:$4 sm:$0xff]   ;;  %v10770_v26 = vcombine.high %v415_v57, %v419_v25  ;;  %v666_v53 = vld [vmem:[#allocation5 + $0x870] sm:$0xff]  ;;  %v16913_v20 = vld [vmem:[#allocation35_spill] sm:$0xff] }
 0x250   : > { %4773 = vmatpush1.bf16.msra.mxu0 %v11039_v8  ;;  %v3742_v55 = vpop.f32.mrf.mxu0  ;;  %v16909_v59 = vld [vmem:[#allocation34_spill] sm:$0xff]  ;;  %v13751_v31 = vpop.f32.mrf.mxu1  ;;  %v12439_v37 = vld [vmem:[%s12984_s6 + $0x94] ss:$24 sps:$4 sm:$0xff]  }
 0x251   : > { %16905 = vst [vmem:[#allocation29_spill] sm:$0xff] %v13742_v35  ;;  %4966 = vmatpush1.bf16.msra.mxu1 %v10785_v6  ;;  %4774 = vmatprep.subr.bf16.mxu0 %v11032_v60  ;;  %v13748_v8 = vpack.c.bf16 %v3739_v34, %v3735_v42  ;;  %v3743_v1 = vadd.f32 %v3742_v55, %v16909_v59  ;;  %16910 = vst [vmem:[#allocation34_spill] sm:$0xff] %v13751_v31  ;;  %v407_v40 = vld [vmem:[#allocation5 + $0x58] sm:$0xff] }
 0x252   : > { %4433 = vmatmul.mubr.bf16.gmra.mxu0 %v12438_v33  ;;  %4967 = vmatprep.subr.bf16.mxu1 %v10778_v3  ;;  %v411_v6 = vld [vmem:[#allocation5 + $0x78] sm:$0xff]  ;;  %v3744_v60 = vpop.f32.mrf.mxu0  ;;  %v11023_v3 = vcombine.low %v670_v52, %v674_v63  ;;  %v13757_v35 = vpop.f32.mrf.mxu1  ;;  %v10769_v42 = vcombine.low %v415_v57, %v419_v25  ;;  %v11016_v34 = vcombine.high %v662_v56, %v666_v53 }
 0x253   : > { %16908 = vst [vmem:[#allocation32_spill] sm:$0xff] %v13748_v8  ;;  %4626 = vmatmul.mubr.bf16.gmra.mxu1 %v16911_v5  ;;  %4442 = vmatprep.mubr.bf16.mxu0 %v12439_v37  ;;  %v16912_v44 = vld [vmem:[#allocation33_spill] sm:$0xff]  ;;  %v3745_v33 = vadd.f32 %v3744_v60, %v16913_v20  ;;  %16914 = vst [vmem:[#allocation31_spill] sm:$0xff] %v13757_v35  ;;  %v10762_v59 = vcombine.high %v407_v40, %v411_v6  ;;  %v16915_v8 = vld [vmem:[#allocation36_spill] sm:$0xff] }
 0x254   : > { %4635 = vmatprep.mubr.bf16.mxu1 %v16912_v44  ;;  %4775 = vmatpush1.bf16.msra.mxu0 %v11031_v47  ;;  %v3746_v55 = vpop.f32.mrf.mxu0  ;;  %v654_v5 = vld [vmem:[#allocation5 + $0x810] sm:$0xff]  ;;  %v13760_v19 = vpop.f32.mrf.mxu1  ;;  %v399_v47 = vld [vmem:[#allocation5 + $0x18] sm:$0xff]  ;;  %v11015_v60 = vcombine.low %v662_v56, %v666_v53  ;;  %v10761_v44 = vcombine.low %v407_v40, %v411_v6 }
 0x255   : > { %4968 = vmatpush1.bf16.msra.mxu1 %v10777_v41  ;;  %4776 = vmatprep.subr.bf16.mxu0 %v11024_v14  ;;  %v658_v37 = vld [vmem:[#allocation5 + $0x830] sm:$0xff]  ;;  %v3747_v31 = vadd.f32 %v3746_v55, %v16915_v8  ;;  %16916 = vst [vmem:[#allocation33_spill] sm:$0xff] %v13760_v19  ;;  %v403_v52 = vld [vmem:[#allocation5 + $0x38] sm:$0xff] }
 0x256   : > { %4969 = vmatprep.subr.bf16.mxu1 %v10770_v26  ;;  %v3748_v63 = vpop.f32.mrf.mxu0  ;;  %v16918_v57 = vld [vmem:[#allocation38_spill] sm:$0xff]  ;;  %v13765_v14 = vpop.f32.mrf.mxu1  ;;  %v11008_v26 = vcombine.high %v654_v5, %v658_v37  ;;  %v12440_v8 = vld [vmem:[%s12984_s6 + $0x90] ss:$24 sps:$4 sm:$0xff]   ;;  %v10754_v55 = vcombine.high %v399_v47, %v403_v52 }
 0x257   : > { %v13762_v41 = vpack.c.bf16 %v3747_v31, %v3743_v1  ;;  %v3749_v25 = vadd.f32 %v3748_v63, %v16918_v57  ;;  %16919 = vst [vmem:[#allocation36_spill] sm:$0xff] %v13765_v14  ;;  %v774_v19 = vld [vmem:[#allocation5 + $0xbd0] sm:$0xff]  ;;  %v12441_v40 = vld [vmem:[%s12984_s6 + $0xc4] ss:$24 sps:$4 sm:$0xff]  }
 0x258   : > { %4777 = vmatpush1.bf16.msra.mxu0 %v11023_v3  ;;  %v3752_v20 = vpop.f32.mrf.mxu0  ;;  %v778_v35 = vld [vmem:[#allocation5 + $0xbf0] sm:$0xff]  ;;  %v13771_v1 = vpop.f32.mrf.mxu1  ;;  %v519_v6 = vld [vmem:[#allocation5 + $0x3d8] sm:$0xff]  ;;  %v16924_v63 = vld [vmem:[#allocation39_spill] sm:$0xff] }
 0x259   : > { %16917 = vst [vmem:[#allocation35_spill] sm:$0xff] %v13762_v41  ;;  %4970 = vmatpush1.bf16.msra.mxu1 %v10769_v42  ;;  %4778 = vmatprep.subr.bf16.mxu0 %v11016_v34  ;;  %v13768_v3 = vpack.c.bf16 %v3749_v25, %v3745_v33  ;;  %v16921_v56 = vld [vmem:[#allocation40_spill] sm:$0xff]  ;;  %v16923_v31 = vld [vmem:[#allocation37_spill] sm:$0xff]  ;;  %v10753_v33 = vcombine.low %v399_v47, %v403_v52 }
 0x25a   : > { %4443 = vmatmul.mubr.bf16.gmra.mxu0 %v12440_v8  ;;  %4971 = vmatprep.subr.bf16.mxu1 %v10762_v59  ;;  %v3753_v53 = vadd.f32 %v3752_v20, %v16921_v56  ;;  %16922 = vst [vmem:[#allocation40_spill] sm:$0xff] %v13771_v1  ;;  %v523_v42 = vld [vmem:[#allocation5 + $0x3f8] sm:$0xff]  ;;  %v3754_v34 = vpop.f32.mrf.mxu0  ;;  %v11007_v59 = vcombine.low %v654_v5, %v658_v37  ;;  %v13777_v41 = vpop.f32.mrf.mxu1  ;;  %v16930_v47 = vld [vmem:[#allocation44_spill] sm:$0xff] }
 0x25b   : > { %16920 = vst [vmem:[#allocation38_spill] sm:$0xff] %v13768_v3  ;;  %4636 = vmatmul.mubr.bf16.gmra.mxu1 %v16923_v31  ;;  %4452 = vmatprep.mubr.bf16.mxu0 %v12441_v40  ;;  %v16925_v57 = vld [vmem:[#allocation41_spill] sm:$0xff]  ;;  %16926 = vst [vmem:[#allocation37_spill] sm:$0xff] %v13777_v41  ;;  %v11128_v25 = vcombine.high %v774_v19, %v778_v35  ;;  %v10874_v56 = vcombine.high %v519_v6, %v523_v42  ;;  %v16927_v3 = vld [vmem:[#allocation42_spill] sm:$0xff] }
 0x25c   : > { %4645 = vmatprep.mubr.bf16.mxu1 %v16924_v63  ;;  %4779 = vmatpush1.bf16.msra.mxu0 %v11015_v60  ;;  %v3755_v8 = vadd.f32 %v3754_v34, %v16925_v57  ;;  %v3756_v20 = vpop.f32.mrf.mxu0  ;;  %v766_v31 = vld [vmem:[#allocation5 + $0xb90] sm:$0xff]  ;;  %v13780_v14 = vpop.f32.mrf.mxu1  ;;  %v511_v60 = vld [vmem:[#allocation5 + $0x398] sm:$0xff]  ;;  %v11127_v34 = vcombine.low %v774_v19, %v778_v35  ;;  %v10873_v63 = vcombine.low %v519_v6, %v523_v42 }
 0x25d   : > { %4972 = vmatpush1.bf16.msra.mxu1 %v10761_v44  ;;  %4780 = vmatprep.subr.bf16.mxu0 %v11008_v26  ;;  %v770_v40 = vld [vmem:[#allocation5 + $0xbb0] sm:$0xff]  ;;  %v3757_v1 = vadd.f32 %v3756_v20, %v16927_v3  ;;  %16928 = vst [vmem:[#allocation39_spill] sm:$0xff] %v13780_v14  ;;  %v515_v5 = vld [vmem:[#allocation5 + $0x3b8] sm:$0xff] }
 0x25e   : > { %4973 = vmatprep.subr.bf16.mxu1 %v10754_v55  ;;  %v3758_v37 = vpop.f32.mrf.mxu0  ;;  %v13785_v26 = vpop.f32.mrf.mxu1  ;;  %v11120_v55 = vcombine.high %v766_v31, %v770_v40  ;;  %v12442_v3 = vld [vmem:[%s12984_s6 + $0xc0] ss:$24 sps:$4 sm:$0xff]   ;;  %v10866_v20 = vcombine.high %v511_v60, %v515_v5  ;;  %v758_v14 = vld [vmem:[#allocation5 + $0xb50] sm:$0xff] }
 0x25f   : > { %v13782_v44 = vpack.c.bf16 %v3757_v1, %v3753_v53  ;;  %v3759_v52 = vadd.f32 %v3758_v37, %v16930_v47  ;;  %16931 = vst [vmem:[#allocation42_spill] sm:$0xff] %v13785_v26  ;;  %v762_v41 = vld [vmem:[#allocation5 + $0xb70] sm:$0xff]  ;;  %v16933_v35 = vld [vmem:[#allocation46_spill] sm:$0xff]  ;;  %v16935_v1 = vld [vmem:[#allocation43_spill] sm:$0xff] }
 0x260   : > { %4781 = vmatpush1.bf16.msra.mxu0 %v11007_v59  ;;  %v3762_v57 = vpop.f32.mrf.mxu0  ;;  %v13791_v53 = vpop.f32.mrf.mxu1  ;;  %v12443_v6 = vld [vmem:[%s12984_s6 + $0xf4] ss:$24 sps:$4 sm:$0xff]   ;;  %v503_v42 = vld [vmem:[#allocation5 + $0x358] sm:$0xff] }
 0x261   : > { %16929 = vst [vmem:[#allocation41_spill] sm:$0xff] %v13782_v44  ;;  %4974 = vmatpush1.bf16.msra.mxu1 %v10753_v33  ;;  %4782 = vmatprep.subr.bf16.mxu0 %v11128_v25  ;;  %v13788_v59 = vpack.c.bf16 %v3759_v52, %v3755_v8  ;;  %v3763_v19 = vadd.f32 %v3762_v57, %v16933_v35  ;;  %16934 = vst [vmem:[#allocation46_spill] sm:$0xff] %v13791_v53  ;;  %v507_v33 = vld [vmem:[#allocation5 + $0x378] sm:$0xff]  ;;  %v16937_v47 = vld [vmem:[#allocation47_spill] sm:$0xff] }
 0x262   : > { %4453 = vmatmul.mubr.bf16.gmra.mxu0 %v12442_v3  ;;  %4975 = vmatprep.subr.bf16.mxu1 %v10874_v56  ;;  %v3764_v25 = vpop.f32.mrf.mxu0  ;;  %v16936_v37 = vld [vmem:[#allocation45_spill] sm:$0xff]  ;;  %v11119_v56 = vcombine.low %v766_v31, %v770_v40  ;;  %v13797_v44 = vpop.f32.mrf.mxu1  ;;  %v10865_v8 = vcombine.low %v511_v60, %v515_v5  ;;  %v11112_v52 = vcombine.high %v758_v14, %v762_v41  ;;  %v16942_v60 = vld [vmem:[#allocation50_spill] sm:$0xff] }
 0x263   : > { %16932 = vst [vmem:[#allocation44_spill] sm:$0xff] %v13788_v59  ;;  %4646 = vmatmul.mubr.bf16.gmra.mxu1 %v16935_v1  ;;  %4462 = vmatprep.mubr.bf16.mxu0 %v12443_v6  ;;  %v3765_v3 = vadd.f32 %v3764_v25, %v16937_v47  ;;  %16938 = vst [vmem:[#allocation43_spill] sm:$0xff] %v13797_v44  ;;  %v10858_v35 = vcombine.high %v503_v42, %v507_v33  ;;  %v750_v1 = vld [vmem:[#allocation5 + $0xb10] sm:$0xff]  ;;  %v499_v31 = vld [vmem:[#allocation5 + $0x338] sm:$0xff] }
 0x264   : > { %4655 = vmatprep.mubr.bf16.mxu1 %v16936_v37  ;;  %4783 = vmatpush2.bf16.msra.mxu0 %v11127_v34  ;;  %v3766_v57 = vpop.f32.mrf.mxu0  ;;  %v754_v6 = vld [vmem:[#allocation5 + $0xb30] sm:$0xff]  ;;  %v13800_v26 = vpop.f32.mrf.mxu1  ;;  %v495_v34 = vld [vmem:[#allocation5 + $0x318] sm:$0xff]  ;;  %v11111_v25 = vcombine.low %v758_v14, %v762_v41  ;;  %v10857_v37 = vcombine.low %v503_v42, %v507_v33 }
 0x265   : > { %4976 = vmatpush2.bf16.msra.mxu1 %v10873_v63  ;;  %4784 = vmatprep.subr.bf16.mxu0 %v11120_v55  ;;  %v16939_v59 = vld [vmem:[#allocation48_spill] sm:$0xff]  ;;  %16940 = vst [vmem:[#allocation45_spill] sm:$0xff] %v13800_v26  ;;  %v12445_v42 = vld [vmem:[%s12984_s6 + $0x124] ss:$24 sps:$4 sm:$0xff]  }
 0x266   : > { %4977 = vmatprep.subr.bf16.mxu1 %v10866_v20  ;;  %v3767_v53 = vadd.f32 %v3766_v57, %v16939_v59  ;;  %v3768_v40 = vpop.f32.mrf.mxu0  ;;  %v13805_v55 = vpop.f32.mrf.mxu1  ;;  %v11104_v20 = vcombine.high %v750_v1, %v754_v6  ;;  %v12444_v59 = vld [vmem:[%s12984_s6 + $0xf0] ss:$24 sps:$4 sm:$0xff]   ;;  %v10850_v57 = vcombine.high %v495_v34, %v499_v31  ;;  %v487_v33 = vld [vmem:[#allocation5 + $0x2d8] sm:$0xff] }
 0x267   : > { %v3769_v5 = vadd.f32 %v3768_v40, %v16942_v60  ;;  %16943 = vst [vmem:[#allocation48_spill] sm:$0xff] %v13805_v55  ;;  %v742_v26 = vld [vmem:[#allocation5 + $0xad0] sm:$0xff]  ;;  %v16948_v40 = vld [vmem:[#allocation51_spill] sm:$0xff] }
 0x268   : > { %4785 = vmatpush2.bf16.msra.mxu0 %v11119_v56  ;;  %v13802_v63 = vpack.c.bf16 %v3767_v53, %v3763_v19  ;;  %v3772_v47 = vpop.f32.mrf.mxu0  ;;  %v746_v44 = vld [vmem:[#allocation5 + $0xaf0] sm:$0xff]  ;;  %v13811_v19 = vpop.f32.mrf.mxu1 }
 0x269   : > { %4978 = vmatpush2.bf16.msra.mxu1 %v10865_v8  ;;  %4786 = vmatprep.subr.bf16.mxu0 %v11112_v52  ;;  %v13808_v56 = vpack.c.bf16 %v3769_v5, %v3765_v3  ;;  %v16945_v41 = vld [vmem:[#allocation52_spill] sm:$0xff]  ;;  %v16947_v53 = vld [vmem:[#allocation49_spill] sm:$0xff]  ;;  %v10849_v3 = vcombine.low %v495_v34, %v499_v31  ;;  %v11096_v5 = vcombine.high %v742_v26, %v746_v44 }
 0x26a   : > { %16941 = vst [vmem:[#allocation47_spill] sm:$0xff] %v13802_v63  ;;  %4463 = vmatmul.mubr.bf16.gmra.mxu0 %v12444_v59  ;;  %4979 = vmatprep.subr.bf16.mxu1 %v10858_v35  ;;  %v3773_v14 = vadd.f32 %v3772_v47, %v16945_v41  ;;  %16946 = vst [vmem:[#allocation52_spill] sm:$0xff] %v13811_v19  ;;  %v491_v8 = vld [vmem:[#allocation5 + $0x2f8] sm:$0xff]  ;;  %v3774_v52 = vpop.f32.mrf.mxu0  ;;  %v11103_v35 = vcombine.low %v750_v1, %v754_v6  ;;  %v13817_v63 = vpop.f32.mrf.mxu1  ;;  %v16954_v34 = vld [vmem:[#allocation56_spill] sm:$0xff] }
 0x26b   : > { %16944 = vst [vmem:[#allocation50_spill] sm:$0xff] %v13808_v56  ;;  %4656 = vmatmul.mubr.bf16.gmra.mxu1 %v16947_v53  ;;  %4472 = vmatprep.mubr.bf16.mxu0 %v12445_v42  ;;  %v16949_v60 = vld [vmem:[#allocation53_spill] sm:$0xff]  ;;  %16950 = vst [vmem:[#allocation49_spill] sm:$0xff] %v13817_v63  ;;  %v10842_v41 = vcombine.high %v487_v33, %v491_v8  ;;  %v16951_v56 = vld [vmem:[#allocation54_spill] sm:$0xff] }
 0x26c   : > { %4665 = vmatprep.mubr.bf16.mxu1 %v16948_v40  ;;  %4787 = vmatpush2.bf16.msra.mxu0 %v11111_v25  ;;  %v3775_v59 = vadd.f32 %v3774_v52, %v16949_v60  ;;  %v3776_v47 = vpop.f32.mrf.mxu0  ;;  %v734_v53 = vld [vmem:[#allocation5 + $0xa90] sm:$0xff]  ;;  %v13820_v55 = vpop.f32.mrf.mxu1  ;;  %v479_v25 = vld [vmem:[#allocation5 + $0x298] sm:$0xff]  ;;  %v11095_v52 = vcombine.low %v742_v26, %v746_v44  ;;  %v10841_v40 = vcombine.low %v487_v33, %v491_v8 }
 0x26d   : > { %4980 = vmatpush2.bf16.msra.mxu1 %v10857_v37  ;;  %4788 = vmatprep.subr.bf16.mxu0 %v11104_v20  ;;  %v738_v42 = vld [vmem:[#allocation5 + $0xab0] sm:$0xff]  ;;  %v3777_v19 = vadd.f32 %v3776_v47, %v16951_v56  ;;  %16952 = vst [vmem:[#allocation51_spill] sm:$0xff] %v13820_v55  ;;  %v483_v1 = vld [vmem:[#allocation5 + $0x2b8] sm:$0xff] }
 0x26e   : > { %4981 = vmatprep.subr.bf16.mxu1 %v10850_v57  ;;  %v3778_v6 = vpop.f32.mrf.mxu0  ;;  %v13825_v20 = vpop.f32.mrf.mxu1  ;;  %v11088_v57 = vcombine.high %v734_v53, %v738_v42  ;;  %v12446_v56 = vld [vmem:[%s12984_s6 + $0x120] ss:$24 sps:$4 sm:$0xff]   ;;  %v10834_v47 = vcombine.high %v479_v25, %v483_v1  ;;  %v726_v55 = vld [vmem:[#allocation5 + $0xa50] sm:$0xff] }
 0x26f   : > { %v13822_v37 = vpack.c.bf16 %v3777_v19, %v3773_v14  ;;  %v3779_v31 = vadd.f32 %v3778_v6, %v16954_v34  ;;  %v730_v63 = vld [vmem:[#allocation5 + $0xa70] sm:$0xff]  ;;  %v16956_v14 = vld [vmem:[#allocation55_spill] sm:$0xff]  ;;  %v471_v33 = vld [vmem:[#allocation5 + $0x258] sm:$0xff] }
 0x270   : > { %4789 = vmatpush2.bf16.msra.mxu0 %v11103_v35  ;;  %v3782_v60 = vpop.f32.mrf.mxu0  ;;  %v13831_v26 = vpop.f32.mrf.mxu1  ;;  %v12447_v19 = vld [vmem:[%s12984_s6 + $0x154] ss:$24 sps:$4 sm:$0xff]   ;;  %v475_v8 = vld [vmem:[#allocation5 + $0x278] sm:$0xff] }
 0x271   : > { %16953 = vst [vmem:[#allocation53_spill] sm:$0xff] %v13822_v37  ;;  %4982 = vmatpush2.bf16.msra.mxu1 %v10849_v3  ;;  %4790 = vmatprep.subr.bf16.mxu0 %v11096_v5  ;;  %v13828_v35 = vpack.c.bf16 %v3779_v31, %v3775_v59  ;;  %v3783_v44 = vadd.f32 %v3782_v60, %v13457_v15  ;;  %v16957_v5 = vld [vmem:[#allocation57_spill] sm:$0xff] }
 0x272   : > { %4473 = vmatmul.mubr.bf16.gmra.mxu0 %v12446_v56  ;;  %4983 = vmatprep.subr.bf16.mxu1 %v10842_v41  ;;  %v3784_v3 = vpop.f32.mrf.mxu0  ;;  %v11087_v41 = vcombine.low %v734_v53, %v738_v42  ;;  %v13837_v34 = vpop.f32.mrf.mxu1  ;;  %v10833_v15 = vcombine.low %v479_v25, %v483_v1  ;;  %v11080_v59 = vcombine.high %v726_v55, %v730_v63  ;;  %v718_v56 = vld [vmem:[#allocation5 + $0xa10] sm:$0xff]  ;;  %v467_v53 = vld [vmem:[#allocation5 + $0x238] sm:$0xff] }
 0x273   : > { %16955 = vst [vmem:[#allocation54_spill] sm:$0xff] %v13828_v35  ;;  %4666 = vmatmul.mubr.bf16.gmra.mxu1 %v16956_v14  ;;  %4482 = vmatprep.mubr.bf16.mxu0 %v12447_v19  ;;  %v3785_v6 = vadd.f32 %v3784_v3, %v13460_v7  ;;  %v10826_v60 = vcombine.high %v471_v33, %v475_v8  ;;  %v722_v14 = vld [vmem:[#allocation5 + $0xa30] sm:$0xff] }
 0x274   : > { %4675 = vmatprep.mubr.bf16.mxu1 %v16957_v5  ;;  %4791 = vmatpush2.bf16.msra.mxu0 %v11095_v52  ;;  %v3786_v31 = vpop.f32.mrf.mxu0  ;;  %v13840_v37 = vpop.f32.mrf.mxu1  ;;  %v463_v52 = vld [vmem:[#allocation5 + $0x218] sm:$0xff]  ;;  %v16958_v42 = vld [vmem:[#allocation16_spill] sm:$0xff] }
 0x275   : > { %4984 = vmatpush2.bf16.msra.mxu1 %v10841_v40  ;;  %4792 = vmatprep.subr.bf16.mxu0 %v11088_v57  ;;  %v3787_v19 = vadd.f32 %v3786_v31, %v13463_v43  ;;  %v11079_v40 = vcombine.low %v726_v55, %v730_v63  ;;  %v10825_v57 = vcombine.low %v471_v33, %v475_v8  ;;  %v12448_v31 = vld [vmem:[%s12984_s6 + $0x150] ss:$24 sps:$4 sm:$0xff]   ;;  %v16648_v7 = vsub.s32 3, %v16958_v42 }
 0x276   : > { %4985 = vmatprep.subr.bf16.mxu1 %v10834_v47  ;;  %v3788_v3 = vpop.f32.mrf.mxu0  ;;  %v13846_v47 = vpop.f32.mrf.mxu1  ;;  %v11072_v43 = vcombine.high %v718_v56, %v722_v14  ;;  %v10818_v35 = vcombine.high %v463_v52, %v467_v53  ;;  %v16961_v33 = vsub.s32 2, %v16958_v42 }
 0x277   : > { %v13843_v25 = vpack.c.bf16 %v3787_v19, %v3783_v44  ;;  %v3789_v1 = vadd.f32 %v3788_v3, %v13470_v24  ;;  %v12449_v24 = vld [vmem:[%s12984_s6 + $0x184] ss:$24 sps:$4 sm:$0xff]   ;;  %v11066_v3 = vcombine.high %v13712_v39, %v13714_v28 }
 0x278   : > { %4793 = vmatpush2.bf16.msra.mxu0 %v11087_v41  ;;  %v3792_v5 = vpop.f32.mrf.mxu0  ;;  %v13853_v55 = vpop.f32.mrf.mxu1  ;;  %v12450_v44 = vld [vmem:[#allocation7] sm:$0xff] }
 0x279   : > { %16959 = vst [vmem:[#allocation56_spill] sm:$0xff] %v13843_v25  ;;  %4986 = vmatpush2.bf16.msra.mxu1 %v10833_v15  ;;  %4794 = vmatprep.subr.bf16.mxu0 %v11080_v59  ;;  %v13850_v41 = vpack.c.bf16 %v3789_v1, %v3785_v6  ;;  %v3793_v63 = vadd.f32 %v3792_v5, %v13479_v50  ;;  %v12451_v1 = vld [vmem:[%s12984_s6 + $0x180] ss:$24 sps:$4 sm:$0xff]   ;;  %v12491_v25 = vld [vmem:[%s12984_s6 + $0xc4] ss:$24 sps:$4 sm:$0xff]  }
 0x27a   : > { %4483 = vmatmul.mubr.bf16.gmra.mxu0 %v12448_v31  ;;  %4987 = vmatprep.subr.bf16.mxu1 %v10826_v60  ;;  %v13859_v8 = vrot.slane %v12450_v44, %v16961_v33  ;;  %v3794_v15 = vpop.f32.mrf.mxu0  ;;  %v11071_v59 = vcombine.low %v718_v56, %v722_v14  ;;  %v13863_v60 = vpop.f32.mrf.mxu1  ;;  %v10817_v50 = vcombine.low %v463_v52, %v467_v53 }
 0x27b   : > { %16960 = vst [vmem:[#allocation55_spill] sm:$0xff] %v13850_v41  ;;  %4676 = vmatmul.mubr.bf16.gmra.mxu1 %v13467_v54  ;;  %4492 = vmatprep.mubr.bf16.mxu0 %v12449_v24  ;;  %v3795_v6 = vadd.f32 %v3794_v15, %v13486_v38  ;;  %v10938_v54 = vcombine.high %v13703_v9, %v13705_v58 }
 0x27c   : > { %4685 = vmatprep.mubr.bf16.mxu1 %v13475_v13  ;;  %4795 = vmatpush2.bf16.msra.mxu0 %v11079_v40  ;;  %v3796_v19 = vpop.f32.mrf.mxu0  ;;  %v13871_v13 = vrot.slane %v12450_v44, %v16648_v7  ;;  %v13874_v56 = vpop.f32.mrf.mxu1  ;;  %v3836_v52 = vadd.f32 %v13499_v61, %v13859_v8  ;;  %v12452_v61 = vld [vmem:[%s12984_s6 + $0x1b4] ss:$24 sps:$4 sm:$0xff]  }
 0x27d   : > { %4988 = vmatpush2.bf16.msra.mxu1 %v10825_v57  ;;  %4796 = vmatprep.subr.bf16.mxu0 %v11072_v43  ;;  %v3797_v38 = vadd.f32 %v3796_v19, %v13489_v51 }
 0x27e   : > { %4989 = vmatprep.subr.bf16.mxu1 %v10818_v35  ;;  %v3798_v14 = vpop.f32.mrf.mxu0  ;;  %v13881_v40 = vpop.f32.mrf.mxu1  ;;  %v3838_v51 = vadd.f32 %v13508_v0, %v13871_v13  ;;  %v3842_v0 = vadd.f32 %v13516_v48, %v13871_v13 }
 0x27f   : > { %v13878_v53 = vpack.c.bf16 %v3797_v38, %v3793_v63  ;;  %v3799_v35 = vadd.f32 %v3798_v14, %v13496_v2  ;;  %v3840_v63 = vadd.f32 %v13511_v32, %v13859_v8  ;;  %v3848_v32 = vadd.f32 %v13534_v16, %v13871_v13  ;;  %v12453_v14 = vld [vmem:[%s12984_s6 + $0x1b0] ss:$24 sps:$4 sm:$0xff]  }
 0x280   : > { %4797 = vmatpush2.bf16.msra.mxu0 %v11071_v59  ;;  %v4028_v57 = vpop.f32.mrf.mxu0  ;;  %v4221_v31 = vpop.f32.mrf.mxu1 }
 0x281   : > { %16962 = vst [vmem:[#allocation57_spill] sm:$0xff] %v13878_v53  ;;  %4990 = vmatpush2.bf16.msra.mxu1 %v10817_v50  ;;  %5152 = vmatprep.subr.bf16.mxu0 %v10938_v54  ;;  %v13886_v43 = vpack.c.bf16 %v3799_v35, %v3795_v6  ;;  %v4029_v5 = vadd.f32 %v4028_v57, %v3836_v52  ;;  %v12487_v53 = vld [vmem:[%s12984_s6 + $0x94] ss:$24 sps:$4 sm:$0xff]  }
 0x282   : > { %4493 = vmatmul.mubr.bf16.gmra.mxu0 %v12451_v1  ;;  %5345 = vmatprep.subr.bf16.mxu1 %v11066_v3  ;;  %v4030_v2 = vpop.f32.mrf.mxu0  ;;  %v4223_v33 = vpop.f32.mrf.mxu1  ;;  %v3846_v54 = vadd.f32 %v13525_v27, %v13859_v8  ;;  %v12454_v1 = vld [vmem:[%s12984_s6 + $0x1e4] ss:$24 sps:$4 sm:$0xff]   ;;  %v3850_v27 = vadd.f32 %v13537_v12, %v13859_v8 }
 0x283   : > { %16963 = vst [vmem:[#allocation88_spill] sm:$0xff] %v13886_v43  ;;  %4686 = vmatmul.mubr.bf16.gmra.mxu1 %v13493_v22  ;;  %4502 = vmatprep.mubr.bf16.mxu0 %v12452_v61  ;;  %v4222_v24 = vadd.f32 %v4221_v31, %v4029_v5  ;;  %v4031_v44 = vadd.f32 %v4030_v2, %v3838_v51 }
 0x284   : > { %4695 = vmatprep.mubr.bf16.mxu1 %v13503_v4  ;;  %v4032_v15 = vpop.f32.mrf.mxu0  ;;  %v4225_v22 = vpop.f32.mrf.mxu1 }
 0x285   : > { %v4224_v59 = vadd.f32 %v4223_v33, %v4031_v44  ;;  %v4033_v6 = vadd.f32 %v4032_v15, %v3840_v63  ;;  %v3852_v63 = vadd.f32 %v13542_v45, %v13871_v13 }
 0x286   : > { %v4034_v50 = vpop.f32.mrf.mxu0  ;;  %v4227_v3 = vpop.f32.mrf.mxu1 }
 0x287   : > { %v4226_v4 = vadd.f32 %v4225_v22, %v4033_v6  ;;  %v4035_v19 = vadd.f32 %v4034_v50, %v3842_v0  ;;  %v12455_v22 = vld [vmem:[%s12984_s6 + $0x1e0] ss:$24 sps:$4 sm:$0xff]  }
 0x288   : > { %v4038_v38 = vpop.f32.mrf.mxu0  ;;  %v4231_v57 = vpop.f32.mrf.mxu1 }
 0x289   : > { %v13900_v52 = vpack.c.bf16 %v4226_v4, %v4222_v24  ;;  %v4228_v48 = vadd.f32 %v4227_v3, %v4035_v19  ;;  %v4039_v35 = vadd.f32 %v4038_v38, %v3846_v54  ;;  %v12456_v19 = vld [vmem:[%s12984_s6 + $0x214] ss:$24 sps:$4 sm:$0xff]  }
 0x28a   : > { %4503 = vmatmul.mubr.bf16.gmra.mxu0 %v12453_v14  ;;  %v4040_v51 = vpop.f32.mrf.mxu0  ;;  %v4233_v61 = vpop.f32.mrf.mxu1 }
 0x28b   : > { %16964 = vst [vmem:[#allocation89_spill] sm:$0xff] %v13900_v52  ;;  %4696 = vmatmul.mubr.bf16.gmra.mxu1 %v13519_v36  ;;  %4512 = vmatprep.mubr.bf16.mxu0 %v12454_v1  ;;  %v13907_v5 = vpack.c.bf16 %v4228_v48, %v4224_v59  ;;  %v4232_v16 = vadd.f32 %v4231_v57, %v4039_v35  ;;  %v12538_v52 = vld [vmem:[%s12984_s6 + $0x2d0] ss:$24 sps:$4 sm:$0xff]  }
 0x28c   : > { %4705 = vmatprep.mubr.bf16.mxu1 %v13529_v18  ;;  %v4041_v31 = vadd.f32 %v4040_v51, %v3848_v32  ;;  %v4042_v2 = vpop.f32.mrf.mxu0  ;;  %v4235_v44 = vpop.f32.mrf.mxu1  ;;  %v3856_v18 = vadd.f32 %v13551_v46, %v13859_v8  ;;  %v3858_v59 = vadd.f32 %v13560_v29, %v13871_v13  ;;  %v16967_v46 = vld [vmem:[#allocation62_spill] sm:$0xff]  ;;  %v3860_v32 = vadd.f32 %v13563_v49, %v13859_v8 }
 0x28d   : > { %16965 = vst [vmem:[#allocation90_spill] sm:$0xff] %v13907_v5  ;;  %v4043_v36 = vadd.f32 %v4042_v2, %v3850_v27  ;;  %v3862_v57 = vadd.f32 %v13568_v11, %v13871_v13  ;;  %v3868_v2 = vadd.f32 %v13583_v23, %v13871_v13 }
 0x28e   : > { %v4234_v24 = vadd.f32 %v4233_v61, %v4041_v31  ;;  %v4044_v33 = vpop.f32.mrf.mxu0  ;;  %v4237_v0 = vpop.f32.mrf.mxu1 }
 0x28f   : > { %v4236_v15 = vadd.f32 %v4235_v44, %v4043_v36  ;;  %v4045_v12 = vadd.f32 %v4044_v33, %v3852_v63 }
 0x290   : > { %v4048_v6 = vpop.f32.mrf.mxu0  ;;  %v4241_v4 = vpop.f32.mrf.mxu1 }
 0x291   : > { %v13916_v50 = vpack.c.bf16 %v4236_v15, %v4232_v16  ;;  %v4238_v45 = vadd.f32 %v4237_v0, %v4045_v12  ;;  %v4049_v54 = vadd.f32 %v4048_v6, %v3856_v18  ;;  %v3866_v16 = vadd.f32 %v13574_v21, %v13859_v8  ;;  %v12458_v18 = vld [vmem:[%s12984_s6 + $0x218] ss:$24 sps:$4 sm:$0xff]   ;;  %v12459_v15 = vld [vmem:[%s12984_s6 + $0x244] ss:$24 sps:$4 sm:$0xff]  }
 0x292   : > { %4513 = vmatmul.mubr.bf16.gmra.mxu0 %v12455_v22  ;;  %v4050_v3 = vpop.f32.mrf.mxu0  ;;  %v4243_v48 = vpop.f32.mrf.mxu1  ;;  %v16970_v21 = vld [vmem:[#allocation65_spill] sm:$0xff]  ;;  %v3870_v0 = vadd.f32 %v13586_v17, %v13859_v8 }
 0x293   : > { %16966 = vst [vmem:[#allocation91_spill] sm:$0xff] %v13916_v50  ;;  %4706 = vmatmul.mubr.bf16.gmra.mxu1 %v13545_v62  ;;  %4522 = vmatprep.mubr.bf16.mxu0 %v12456_v19  ;;  %v13923_v38 = vpack.c.bf16 %v4238_v45, %v4234_v24  ;;  %v4242_v29 = vadd.f32 %v4241_v4, %v4049_v54  ;;  %v12457_v24 = vld [vmem:[%s12984_s6 + $0x210] ss:$24 sps:$4 sm:$0xff]  }
 0x294   : > { %4715 = vmatprep.mubr.bf16.mxu1 %v16967_v46  ;;  %v4051_v14 = vadd.f32 %v4050_v3, %v3858_v59  ;;  %v4052_v35 = vpop.f32.mrf.mxu0  ;;  %v4245_v51 = vpop.f32.mrf.mxu1  ;;  %v3872_v54 = vadd.f32 %v13591_v30, %v13871_v13 }
 0x295   : > { %16968 = vst [vmem:[#allocation62_spill] sm:$0xff] %v13923_v38  ;;  %v4053_v62 = vadd.f32 %v4052_v35, %v3860_v32  ;;  %v3876_v32 = vadd.f32 %v13597_v10, %v13859_v8 }
 0x296   : > { %v4244_v1 = vadd.f32 %v4243_v48, %v4051_v14  ;;  %v4054_v27 = vpop.f32.mrf.mxu0  ;;  %v4247_v61 = vpop.f32.mrf.mxu1  ;;  %v16972_v48 = vld [vmem:[#allocation68_spill] sm:$0xff] }
 0x297   : > { %v4246_v49 = vadd.f32 %v4245_v51, %v4053_v62  ;;  %v4055_v31 = vadd.f32 %v4054_v27, %v3862_v57  ;;  %v3878_v35 = vadd.f32 %v16972_v48, %v13871_v13 }
 0x298   : > { %v4058_v63 = vpop.f32.mrf.mxu0  ;;  %v4251_v33 = vpop.f32.mrf.mxu1 }
 0x299   : > { %v13932_v36 = vpack.c.bf16 %v4246_v49, %v4242_v29  ;;  %v4248_v11 = vadd.f32 %v4247_v61, %v4055_v31  ;;  %v4059_v44 = vadd.f32 %v4058_v63, %v3866_v16  ;;  %v12461_v16 = vld [vmem:[%s12984_s6 + $0x248] ss:$24 sps:$4 sm:$0xff]   ;;  %v12462_v49 = vld [vmem:[%s12984_s6 + $0x274] ss:$24 sps:$4 sm:$0xff]  }
 0x29a   : > { %4523 = vmatmul.mubr.bf16.gmra.mxu0 %v12457_v24  ;;  %v4060_v12 = vpop.f32.mrf.mxu0  ;;  %v4253_v22 = vpop.f32.mrf.mxu1  ;;  %v12463_v31 = vld [vmem:[%s12984_s6 + $0x27c] ss:$24 sps:$4 sm:$0xff]  }
 0x29b   : > { %16969 = vst [vmem:[#allocation92_spill] sm:$0xff] %v13932_v36  ;;  %4716 = vmatmul.mubr.bf16.gmra.mxu1 %v12458_v18  ;;  %4532 = vmatprep.mubr.bf16.mxu0 %v12459_v15  ;;  %v13939_v59 = vpack.c.bf16 %v4248_v11, %v4244_v1  ;;  %v4252_v23 = vadd.f32 %v4251_v33, %v4059_v44  ;;  %v12460_v1 = vld [vmem:[%s12984_s6 + $0x240] ss:$24 sps:$4 sm:$0xff]   ;;  %v16976_v18 = vld [vmem:[#allocation71_spill] sm:$0xff] }
 0x29c   : > { %4725 = vmatprep.mubr.bf16.mxu1 %v16970_v21  ;;  %v4061_v6 = vadd.f32 %v4060_v12, %v3868_v2  ;;  %v4062_v45 = vpop.f32.mrf.mxu0  ;;  %v4255_v3 = vpop.f32.mrf.mxu1  ;;  %v16974_v61 = vld [vmem:[#allocation69_spill] sm:$0xff]  ;;  %v3882_v15 = vadd.f32 %v16976_v18, %v13871_v13 }
 0x29d   : > { %16971 = vst [vmem:[#allocation65_spill] sm:$0xff] %v13939_v59  ;;  %v4063_v19 = vadd.f32 %v4062_v45, %v3870_v0  ;;  %v3880_v2 = vadd.f32 %v16974_v61, %v13859_v8 }
 0x29e   : > { %v4254_v4 = vadd.f32 %v4253_v22, %v4061_v6  ;;  %v4064_v46 = vpop.f32.mrf.mxu0  ;;  %v4257_v14 = vpop.f32.mrf.mxu1  ;;  %v16977_v6 = vld [vmem:[#allocation73_spill] sm:$0xff] }
 0x29f   : > { %v4256_v17 = vadd.f32 %v4255_v3, %v4063_v19  ;;  %v4065_v29 = vadd.f32 %v4064_v46, %v3872_v54  ;;  %v3886_v22 = vadd.f32 %v16977_v6, %v13859_v8  ;;  %v16978_v19 = vld [vmem:[#allocation74_spill] sm:$0xff]  ;;  %v16984_v6 = vld [vmem:[#allocation80_spill] sm:$0xff] }
 0x2a0   : > { %v4068_v57 = vpop.f32.mrf.mxu0  ;;  %v3888_v3 = vadd.f32 %v16978_v19, %v13871_v13 }
 0x2a1   : > { %v13948_v30 = vpack.c.bf16 %v4256_v17, %v4252_v23  ;;  %v4258_v62 = vadd.f32 %v4257_v14, %v4065_v29  ;;  %v4069_v51 = vadd.f32 %v4068_v57, %v3876_v32  ;;  %v4261_v27 = vpop.f32.mrf.mxu1  ;;  %v12464_v32 = vld [vmem:[%s12984_s6 + $0x270] ss:$24 sps:$4 sm:$0xff]   ;;  %v12466_v57 = vld [vmem:[%s12984_s6 + $0x2a4] ss:$24 sps:$4 sm:$0xff]  }
 0x2a2   : > { %4533 = vmatmul.mubr.bf16.gmra.mxu0 %v12460_v1  ;;  %v4070_v10 = vpop.f32.mrf.mxu0 }
 0x2a3   : > { %16973 = vst [vmem:[#allocation68_spill] sm:$0xff] %v13948_v30  ;;  %4726 = vmatmul.mubr.bf16.gmra.mxu1 %v12461_v16  ;;  %4542 = vmatprep.mubr.bf16.mxu0 %v12462_v49  ;;  %v13955_v63 = vpack.c.bf16 %v4258_v62, %v4254_v4  ;;  %v4262_v24 = vadd.f32 %v4261_v27, %v4069_v51  ;;  %v4263_v44 = vpop.f32.mrf.mxu1  ;;  %v12467_v62 = vld [vmem:[%s12984_s6 + $0x2ac] ss:$24 sps:$4 sm:$0xff]   ;;  %v12534_v30 = vld [vmem:[%s12984_s6 + $0x2a0] ss:$24 sps:$4 sm:$0xff]  }
 0x2a4   : > { %4735 = vmatprep.mubr.bf16.mxu1 %v12463_v31  ;;  %v4071_v11 = vadd.f32 %v4070_v10, %v3878_v35  ;;  %v4072_v33 = vpop.f32.mrf.mxu0  ;;  %v12465_v35 = vld [vmem:[%s12984_s6 + $0x278] ss:$24 sps:$4 sm:$0xff]   ;;  %v16980_v51 = vld [vmem:[#allocation75_spill] sm:$0xff] }
 0x2a5   : > { %16975 = vst [vmem:[#allocation69_spill] sm:$0xff] %v13955_v63  ;;  %v4073_v21 = vadd.f32 %v4072_v33, %v3880_v2  ;;  %v4265_v0 = vpop.f32.mrf.mxu1  ;;  %v3890_v27 = vadd.f32 %v16980_v51, %v13859_v8  ;;  %v16982_v2 = vld [vmem:[#allocation77_spill] sm:$0xff] }
 0x2a6   : > { %v4264_v12 = vadd.f32 %v4263_v44, %v4071_v11  ;;  %v4074_v23 = vpop.f32.mrf.mxu0 }
 0x2a7   : > { %v4266_v45 = vadd.f32 %v4265_v0, %v4073_v21  ;;  %v4075_v54 = vadd.f32 %v4074_v23, %v3882_v15  ;;  %v4267_v4 = vpop.f32.mrf.mxu1  ;;  %v16983_v15 = vld [vmem:[#allocation79_spill] sm:$0xff] }
 0x2a8   : > { %v4078_v46 = vpop.f32.mrf.mxu0  ;;  %v3896_v21 = vadd.f32 %v16983_v15, %v13859_v8 }
 0x2a9   : > { %v13964_v17 = vpack.c.bf16 %v4266_v45, %v4262_v24  ;;  %v4268_v29 = vadd.f32 %v4267_v4, %v4075_v54  ;;  %v4079_v14 = vadd.f32 %v4078_v46, %v3886_v22  ;;  %v4271_v48 = vpop.f32.mrf.mxu1  ;;  %v3892_v24 = vadd.f32 %v16982_v2, %v13871_v13  ;;  %v12468_v54 = vld [vmem:[%s12984_s6 + $0x2a0] ss:$24 sps:$4 sm:$0xff]  }
 0x2aa   : > { %4543 = vmatmul.mubr.bf16.gmra.mxu0 %v12464_v32  ;;  %v4080_v1 = vpop.f32.mrf.mxu0  ;;  %v3898_v22 = vadd.f32 %v16984_v6, %v13871_v13  ;;  %v12469_v32 = vld [vmem:[%s12984_s6 + $0x2a8] ss:$24 sps:$4 sm:$0xff]  }
 0x2ab   : > { %16979 = vst [vmem:[#allocation71_spill] sm:$0xff] %v13964_v17  ;;  %4736 = vmatmul.mubr.bf16.gmra.mxu1 %v12465_v35  ;;  %4552 = vmatprep.mubr.bf16.mxu0 %v12466_v57  ;;  %v13971_v16 = vpack.c.bf16 %v4268_v29, %v4264_v12  ;;  %v4272_v49 = vadd.f32 %v4271_v48, %v4079_v14  ;;  %v4273_v31 = vpop.f32.mrf.mxu1  ;;  %v12470_v29 = vld [vmem:[%s12984_s6 + $0x2d4] ss:$24 sps:$4 sm:$0xff]   ;;  %v12472_v6 = vld [vmem:[%s12984_s6 + $0x2d0] ss:$24 sps:$4 sm:$0xff]  }
 0x2ac   : > { %4745 = vmatprep.mubr.bf16.mxu1 %v12467_v62  ;;  %v4081_v10 = vadd.f32 %v4080_v1, %v3888_v3  ;;  %v4082_v61 = vpop.f32.mrf.mxu0  ;;  %v12471_v48 = vld [vmem:[%s12984_s6 + $0x2dc] ss:$24 sps:$4 sm:$0xff]  }
 0x2ad   : > { %16981 = vst [vmem:[#allocation73_spill] sm:$0xff] %v13971_v16  ;;  %v4083_v44 = vadd.f32 %v4082_v61, %v3890_v27  ;;  %v4275_v33 = vpop.f32.mrf.mxu1  ;;  %v16986_v35 = vld [vmem:[#allocation81_spill] sm:$0xff] }
 0x2ae   : > { %v4274_v11 = vadd.f32 %v4273_v31, %v4081_v10  ;;  %v4084_v18 = vpop.f32.mrf.mxu0  ;;  %v3900_v57 = vadd.f32 %v16986_v35, %v13859_v8  ;;  %v16988_v10 = vld [vmem:[#allocation83_spill] sm:$0xff] }
 0x2af   : > { %v4276_v0 = vadd.f32 %v4275_v33, %v4083_v44  ;;  %v4085_v12 = vadd.f32 %v4084_v18, %v3892_v24  ;;  %v4277_v23 = vpop.f32.mrf.mxu1  ;;  %v3902_v31 = vadd.f32 %v16988_v10, %v13871_v13  ;;  %v16989_v33 = vld [vmem:[#allocation85_spill] sm:$0xff] }
 0x2b0   : > { %v4088_v45 = vpop.f32.mrf.mxu0  ;;  %v3906_v18 = vadd.f32 %v16989_v33, %v13859_v8  ;;  %v579_v10 = vld [vmem:[#allocation5 + $0x5b8] sm:$0xff] }
 0x2b1   : > { %v13980_v4 = vpack.c.bf16 %v4276_v0, %v4272_v49  ;;  %v4278_v19 = vadd.f32 %v4277_v23, %v4085_v12  ;;  %v4089_v3 = vadd.f32 %v4088_v45, %v3896_v21  ;;  %v16990_v0 = vld [vmem:[#allocation17_spill] sm:$0xff] }
 0x2b2   : > { %4553 = vmatmul.mubr.bf16.gmra.mxu0 %v12468_v54  ;;  %v4090_v14 = vpop.f32.mrf.mxu0  ;;  %v3908_v12 = vadd.f32 %v16990_v0, %v13871_v13 }
 0x2b3   : > { %16985 = vst [vmem:[#allocation74_spill] sm:$0xff] %v13980_v4  ;;  %v4281_v46 = vpop.f32.mrf.mxu1  ;;  %4746 = vmatmul.mubr.bf16.gmra.mxu1 %v12469_v32  ;;  %4562 = vmatprep.mubr.bf16.mxu0 %v12470_v29  ;;  %v13987_v1 = vpack.c.bf16 %v4278_v19, %v4274_v11  ;;  %v4091_v51 = vadd.f32 %v4090_v14, %v3898_v22  ;;  %v12475_v29 = vld [vmem:[%s12984_s6 + $0x4] ss:$24 sps:$4 sm:$0xff]  }
 0x2b4   : > { %4755 = vmatprep.mubr.bf16.mxu1 %v12471_v48  ;;  %v4282_v62 = vadd.f32 %v4281_v46, %v4089_v3  ;;  %v4092_v49 = vpop.f32.mrf.mxu0  ;;  %v12473_v3 = vld [vmem:[%s12984_s6 + $0x2d8] ss:$24 sps:$4 sm:$0xff]   ;;  %v12474_v46 = vld [vmem:[%s12984_s6 + $0x14] ss:$24 sps:$4 sm:$0xff]   ;;  %v16992_v14 = vld [vmem:[#allocation18_spill] sm:$0xff] }
 0x2b5   : > { %16987 = vst [vmem:[#allocation75_spill] sm:$0xff] %v13987_v1  ;;  %v4283_v27 = vpop.f32.mrf.mxu1  ;;  %v4093_v2 = vadd.f32 %v4092_v49, %v3900_v57  ;;  %v3910_v48 = vadd.f32 %v16992_v14, %v13859_v8  ;;  %v575_v49 = vld [vmem:[#allocation5 + $0x598] sm:$0xff] }
 0x2b6   : > { %v4284_v61 = vadd.f32 %v4283_v27, %v4091_v51  ;;  %v4094_v44 = vpop.f32.mrf.mxu0 }
 0x2b7   : > { %v4285_v24 = vpop.f32.mrf.mxu1  ;;  %v4095_v11 = vadd.f32 %v4094_v44, %v3902_v31  ;;  %v16994_v31 = vld [vmem:[#allocation20_spill] sm:$0xff] }
 0x2b8   : > { %v4286_v15 = vadd.f32 %v4285_v24, %v4093_v2  ;;  %v3912_v2 = vadd.f32 %v16994_v31, %v13871_v13 }
 0x2b9   : > { %v4287_v21 = vpop.f32.mrf.mxu1 }
 0x2ba   : > { %v4098_v23 = vpop.f32.mrf.mxu0  ;;  %4563 = vmatmul.mubr.bf16.gmra.mxu0 %v12472_v6  ;;  %v13996_v22 = vpack.c.bf16 %v4286_v15, %v4282_v62  ;;  %v4288_v45 = vadd.f32 %v4287_v21, %v4095_v11  ;;  %v707_v15 = vld [vmem:[#allocation5 + $0x9b8] sm:$0xff] }
 0x2bb   : > { %v4099_v54 = vadd.f32 %v4098_v23, %v3906_v18  ;;  %v4291_v19 = vpop.f32.mrf.mxu1  ;;  %4756 = vmatmul.mubr.bf16.gmra.mxu1 %v12473_v3  ;;  %4798 = vmatprep.mubr.bf16.mxu0 %v12474_v46  ;;  %v703_v18 = vld [vmem:[#allocation5 + $0x998] sm:$0xff]  ;;  %v16996_v46 = vld [vmem:[#allocation19_spill] sm:$0xff] }
 0x2bc   : > { %16991 = vst [vmem:[#allocation77_spill] sm:$0xff] %v13996_v22  ;;  %v4100_v32 = vpop.f32.mrf.mxu0  ;;  %4991 = vmatprep.mubr.bf16.mxu1 %v12475_v29  ;;  %v14003_v35 = vpack.c.bf16 %v4288_v45, %v4284_v61  ;;  %v14007_v21 = vld [vmem:[#allocation5 + $0x558] sm:$0xff]  ;;  %v10930_v45 = vcombine.high %v575_v49, %v579_v10  ;;  %v16997_v29 = vld [vmem:[#allocation23_spill] sm:$0xff] }
 0x2bd   : > { %v4292_v57 = vadd.f32 %v4291_v19, %v4099_v54  ;;  %v4101_v51 = vadd.f32 %v4100_v32, %v3908_v12  ;;  %v4293_v27 = vpop.f32.mrf.mxu1  ;;  %v16995_v61 = vld [vmem:[#allocation22_spill] sm:$0xff]  ;;  %v3918_v32 = vadd.f32 %v16996_v46, %v13871_v13  ;;  %v3920_v14 = vadd.f32 %v16997_v29, %v13859_v8  ;;  %v12530_v22 = vld [vmem:[%s12984_s6 + $0x270] ss:$24 sps:$4 sm:$0xff]  }
 0x2be   : > { %16993 = vst [vmem:[#allocation79_spill] sm:$0xff] %v14003_v35  ;;  %v4102_v62 = vpop.f32.mrf.mxu0  ;;  %v3916_v0 = vadd.f32 %v16995_v61, %v13859_v8  ;;  %v14011_v54 = vld [vmem:[#allocation5 + $0x578] sm:$0xff]  ;;  %v16999_v61 = vcombine.low %v13703_v9, %v13705_v58  ;;  %v17000_v29 = vcombine.low %v13712_v39, %v13714_v28  ;;  %v12479_v58 = vld [vmem:[%s12984_s6 + $0x34] ss:$24 sps:$4 sm:$0xff]  }
 0x2bf   : > { %v4294_v24 = vadd.f32 %v4293_v27, %v4101_v51  ;;  %v4103_v44 = vadd.f32 %v4102_v62, %v3910_v48  ;;  %v4295_v33 = vpop.f32.mrf.mxu1  ;;  %v14013_v19 = vld [vmem:[#allocation5 + $0x958] sm:$0xff]  ;;  %v12476_v51 = vld [vmem:[%s12984_s6 + $0x10] ss:$24 sps:$4 sm:$0xff]   ;;  %v10929_v27 = vcombine.low %v575_v49, %v579_v10  ;;  %v11058_v62 = vcombine.high %v703_v18, %v707_v15 }
 0x2c0   : > { %v4104_v11 = vpop.f32.mrf.mxu0  ;;  %v14015_v3 = vld [vmem:[#allocation5 + $0x978] sm:$0xff]  ;;  %v11057_v49 = vcombine.low %v703_v18, %v707_v15  ;;  %v17002_v18 = vld [vmem:[#allocation24_spill] sm:$0xff] }
 0x2c1   : > { %v4296_v12 = vadd.f32 %v4295_v33, %v4103_v44  ;;  %v4105_v23 = vadd.f32 %v4104_v11, %v3912_v2  ;;  %v4297_v6 = vpop.f32.mrf.mxu1  ;;  %v12477_v11 = vld [vmem:[%s12984_s6] ss:$24 sps:$4 sm:$0xff]   ;;  %v11050_v10 = vcombine.high %v14013_v19, %v14015_v3  ;;  %v3922_v15 = vadd.f32 %v17002_v18, %v13871_v13 }
 0x2c2   : > { %v4108_v48 = vpop.f32.mrf.mxu0  ;;  %4799 = vmatmul.mubr.bf16.vlgmr.msra.gmra.mxu0 %v12476_v51  ;;  %v12478_v51 = vld [vmem:[%s12984_s6 + $0x44] ss:$24 sps:$4 sm:$0xff]  }
 0x2c3   : > { %v14022_v31 = vpack.c.bf16 %v4296_v12, %v4292_v57  ;;  %v4298_v2 = vadd.f32 %v4297_v6, %v4105_v23  ;;  %v4109_v44 = vadd.f32 %v4108_v48, %v3916_v0  ;;  %v4301_v33 = vpop.f32.mrf.mxu1  ;;  %4992 = vmatmul.mubr.bf16.vlgmr.msra.gmra.mxu1 %v12477_v11  ;;  %5153 = vmatpush1.bf16.msra.mxu0 %v16999_v61  ;;  %v14039_v39 = vld [vmem:[#allocation5 + $0x518] sm:$0xff] }
 0x2c4   : > { %v4110_v46 = vpop.f32.mrf.mxu0  ;;  %5346 = vmatpush1.bf16.msra.mxu1 %v17000_v29  ;;  %4808 = vmatprep.mubr.bf16.mxu0 %v12478_v51  ;;  %v10922_v57 = vcombine.high %v14007_v21, %v14011_v54  ;;  %v14041_v28 = vld [vmem:[#allocation5 + $0x538] sm:$0xff] }
 0x2c5   : > { %16998 = vst [vmem:[#allocation80_spill] sm:$0xff] %v14022_v31  ;;  %v14036_v0 = vpack.c.bf16 %v4298_v2, %v4294_v24  ;;  %v4302_v12 = vadd.f32 %v4301_v33, %v4109_v44  ;;  %v4111_v23 = vadd.f32 %v4110_v46, %v3918_v32  ;;  %v4303_v9 = vpop.f32.mrf.mxu1  ;;  %5001 = vmatprep.mubr.bf16.mxu1 %v12479_v58  ;;  %v14045_v24 = vld [vmem:[#allocation5 + $0x918] sm:$0xff]  ;;  %v17003_v2 = vld [vmem:[#allocation28_spill] sm:$0xff] }
 0x2c6   : > { %5154 = vmatprep.subr.bf16.mxu0 %v10930_v45  ;;  %v4112_v6 = vpop.f32.mrf.mxu0  ;;  %5347 = vmatprep.subr.bf16.mxu1 %v11058_v62  ;;  %v691_v32 = vld [vmem:[#allocation5 + $0x938] sm:$0xff]  ;;  %v3926_v44 = vadd.f32 %v17003_v2, %v13859_v8  ;;  %v10921_v62 = vcombine.low %v14007_v21, %v14011_v54  ;;  %v17005_v54 = vld [vmem:[#allocation27_spill] sm:$0xff] }
 0x2c7   : > { %17001 = vst [vmem:[#allocation81_spill] sm:$0xff] %v14036_v0  ;;  %v4304_v48 = vadd.f32 %v4303_v9, %v4111_v23  ;;  %v4113_v11 = vadd.f32 %v4112_v6, %v3920_v14  ;;  %v4305_v61 = vpop.f32.mrf.mxu1  ;;  %5155 = vmatpush1.bf16.msra.mxu0 %v10929_v27  ;;  %v11049_v14 = vcombine.low %v14013_v19, %v14015_v3  ;;  %v14055_v51 = vld [vmem:[#allocation5 + $0x4d8] sm:$0xff] }
 0x2c8   : > { %v4114_v45 = vpop.f32.mrf.mxu0  ;;  %5348 = vmatpush1.bf16.msra.mxu1 %v11057_v49  ;;  %5156 = vmatprep.subr.bf16.mxu0 %v10922_v57  ;;  %v10914_v27 = vcombine.high %v14039_v39, %v14041_v28  ;;  %v14057_v23 = vld [vmem:[#allocation5 + $0x4f8] sm:$0xff]  ;;  %v3930_v57 = vadd.f32 %v17005_v54, %v13859_v8  ;;  %v11042_v19 = vcombine.high %v14045_v24, %v691_v32 }
 0x2c9   : > { %v4306_v33 = vadd.f32 %v4305_v61, %v4113_v11  ;;  %v4115_v46 = vadd.f32 %v4114_v45, %v3922_v15  ;;  %v4307_v29 = vpop.f32.mrf.mxu1  ;;  %5349 = vmatprep.subr.bf16.mxu1 %v11050_v10  ;;  %v17004_v49 = vld [vmem:[#allocation25_spill] sm:$0xff]  ;;  %v12481_v15 = vld [vmem:[%s12984_s6 + $0x30] ss:$24 sps:$4 sm:$0xff]   ;;  %v10913_v54 = vcombine.low %v14039_v39, %v14041_v28  ;;  %v17008_v28 = vld [vmem:[#allocation30_spill] sm:$0xff] }
 0x2ca   : > { %v3928_v21 = vadd.f32 %v17004_v49, %v13871_v13  ;;  %v4118_v9 = vpop.f32.mrf.mxu0  ;;  %v12480_v58 = vld [vmem:[%s12984_s6 + $0x40] ss:$24 sps:$4 sm:$0xff]   ;;  %v12482_v11 = vld [vmem:[%s12984_s6 + $0x74] ss:$24 sps:$4 sm:$0xff]   ;;  %v12483_v49 = vld [vmem:[%s12984_s6 + $0x64] ss:$24 sps:$4 sm:$0xff]  }
 0x2cb   : > { %4809 = vmatmul.mubr.bf16.gmra.mxu0 %v12480_v58  ;;  %v14065_v3 = vpack.c.bf16 %v4306_v33, %v4302_v12  ;;  %v4308_v10 = vadd.f32 %v4307_v29, %v4115_v46  ;;  %v4119_v6 = vadd.f32 %v4118_v9, %v3926_v44  ;;  %v4311_v18 = vpop.f32.mrf.mxu1  ;;  %5002 = vmatmul.mubr.bf16.gmra.mxu1 %v12481_v15  ;;  %v14069_v61 = vld [vmem:[#allocation5 + $0x8d8] sm:$0xff] }
 0x2cc   : > { %4818 = vmatprep.mubr.bf16.mxu0 %v12482_v11  ;;  %v14071_v2 = vld [vmem:[#allocation5 + $0x8f8] sm:$0xff]  ;;  %v4120_v45 = vpop.f32.mrf.mxu0  ;;  %5011 = vmatprep.mubr.bf16.mxu1 %v12483_v49  ;;  %v11041_v12 = vcombine.low %v14045_v24, %v691_v32  ;;  %v10906_v44 = vcombine.high %v14055_v51, %v14057_v23  ;;  %v3932_v24 = vadd.f32 %v17008_v28, %v13871_v13  ;;  %v12484_v28 = vld [vmem:[%s12984_s6 + $0x70] ss:$24 sps:$4 sm:$0xff]  }
 0x2cd   : > { %17006 = vst [vmem:[#allocation83_spill] sm:$0xff] %v14065_v3  ;;  %5157 = vmatpush1.bf16.msra.mxu0 %v10921_v62  ;;  %v14079_v33 = vpack.c.bf16 %v4308_v10, %v4304_v48  ;;  %v4312_v46 = vadd.f32 %v4311_v18, %v4119_v6  ;;  %v4121_v29 = vadd.f32 %v4120_v45, %v3928_v21  ;;  %v4313_v9 = vpop.f32.mrf.mxu1  ;;  %v14083_v15 = vld [vmem:[#allocation5 + $0x498] sm:$0xff] }
 0x2ce   : > { %5350 = vmatpush1.bf16.msra.mxu1 %v11049_v14  ;;  %5158 = vmatprep.subr.bf16.mxu0 %v10914_v27  ;;  %v4122_v58 = vpop.f32.mrf.mxu0  ;;  %v11034_v62 = vcombine.high %v14069_v61, %v14071_v2  ;;  %v14085_v39 = vld [vmem:[#allocation5 + $0x4b8] sm:$0xff]  ;;  %v10905_v18 = vcombine.low %v14055_v51, %v14057_v23  ;;  %v11033_v11 = vcombine.low %v14069_v61, %v14071_v2 }
 0x2cf   : > { %17007 = vst [vmem:[#allocation85_spill] sm:$0xff] %v14079_v33  ;;  %5351 = vmatprep.subr.bf16.mxu1 %v11042_v19  ;;  %v4314_v32 = vadd.f32 %v4313_v9, %v4121_v29  ;;  %v4123_v48 = vadd.f32 %v4122_v58, %v3930_v57  ;;  %v4315_v10 = vpop.f32.mrf.mxu1  ;;  %v14089_v6 = vld [vmem:[#allocation5 + $0x898] sm:$0xff]  ;;  %v10898_v29 = vcombine.high %v14083_v15, %v14085_v39 }
 0x2d0   : > { %v14091_v21 = vld [vmem:[#allocation5 + $0x8b8] sm:$0xff]  ;;  %v4124_v19 = vpop.f32.mrf.mxu0 }
 0x2d1   : > { %v17009_v14 = vld [vmem:[#allocation34_spill] sm:$0xff]  ;;  %5159 = vmatpush1.bf16.msra.mxu0 %v10913_v54  ;;  %v4316_v45 = vadd.f32 %v4315_v10, %v4123_v48  ;;  %v4125_v49 = vadd.f32 %v4124_v19, %v3932_v24  ;;  %v4317_v57 = vpop.f32.mrf.mxu1  ;;  %v17010_v54 = vld [vmem:[#allocation31_spill] sm:$0xff]  ;;  %v17011_v23 = vld [vmem:[#allocation33_spill] sm:$0xff] }
 0x2d2   : > { %v3936_v27 = vadd.f32 %v17009_v14, %v13859_v8  ;;  %5352 = vmatpush1.bf16.msra.mxu1 %v11041_v12  ;;  %5160 = vmatprep.subr.bf16.mxu0 %v10906_v44  ;;  %v14101_v9 = vld [vmem:[#allocation5 + $0x458] sm:$0xff]  ;;  %v3938_v51 = vadd.f32 %v17010_v54, %v13871_v13  ;;  %v3940_v61 = vadd.f32 %v17011_v23, %v13859_v8  ;;  %v4128_v2 = vpop.f32.mrf.mxu0 }
 0x2d3   : > { %v14103_v58 = vld [vmem:[#allocation5 + $0x478] sm:$0xff]  ;;  %4819 = vmatmul.mubr.bf16.gmra.mxu0 %v12484_v28  ;;  %5353 = vmatprep.subr.bf16.mxu1 %v11034_v62  ;;  %v11026_v12 = vcombine.high %v14089_v6, %v14091_v21  ;;  %v14112_v44 = vpack.c.bf16 %v4316_v45, %v4312_v46  ;;  %v4318_v24 = vadd.f32 %v4317_v57, %v4125_v49  ;;  %v4321_v10 = vpop.f32.mrf.mxu1 }
 0x2d4   : > { %v4129_v48 = vadd.f32 %v4128_v2, %v3936_v27  ;;  %v12485_v14 = vld [vmem:[%s12984_s6 + $0x60] ss:$24 sps:$4 sm:$0xff]   ;;  %v12486_v19 = vld [vmem:[%s12984_s6 + $0xa4] ss:$24 sps:$4 sm:$0xff]   ;;  %v4130_v7 = vpop.f32.mrf.mxu0  ;;  %v10897_v62 = vcombine.low %v14083_v15, %v14085_v39  ;;  %v11025_v46 = vcombine.low %v14089_v6, %v14091_v21  ;;  %v10890_v27 = vcombine.high %v14101_v9, %v14103_v58  ;;  %v17014_v39 = vld [vmem:[#allocation36_spill] sm:$0xff] }
 0x2d5   : > { %17012 = vst [vmem:[#allocation17_spill] sm:$0xff] %v14112_v44  ;;  %5012 = vmatmul.mubr.bf16.gmra.mxu1 %v12485_v14  ;;  %4828 = vmatprep.mubr.bf16.mxu0 %v12486_v19  ;;  %v14116_v54 = vld [vmem:[#allocation5 + $0x858] sm:$0xff]  ;;  %v14127_v45 = vpack.c.bf16 %v4318_v24, %v4314_v32  ;;  %v4131_v57 = vadd.f32 %v4130_v7, %v3938_v51  ;;  %v4323_v2 = vpop.f32.mrf.mxu1 }
 0x2d6   : > { %v14118_v23 = vld [vmem:[#allocation5 + $0x878] sm:$0xff]  ;;  %5021 = vmatprep.mubr.bf16.mxu1 %v12487_v53  ;;  %5161 = vmatpush1.bf16.msra.mxu0 %v10905_v18  ;;  %v4322_v49 = vadd.f32 %v4321_v10, %v4129_v48  ;;  %v4132_v28 = vpop.f32.mrf.mxu0  ;;  %v3942_v6 = vadd.f32 %v17014_v39, %v13871_v13 }
 0x2d7   : > { %17013 = vst [vmem:[#allocation18_spill] sm:$0xff] %v14127_v45  ;;  %5354 = vmatpush1.bf16.msra.mxu1 %v11033_v11  ;;  %5162 = vmatprep.subr.bf16.mxu0 %v10898_v29  ;;  %v11018_v53 = vcombine.high %v14116_v54, %v14118_v23  ;;  %v14131_v18 = vld [vmem:[#allocation5 + $0x418] sm:$0xff]  ;;  %v4324_v21 = vadd.f32 %v4323_v2, %v4131_v57  ;;  %v4325_v24 = vpop.f32.mrf.mxu1  ;;  %v17015_v11 = vld [vmem:[#allocation40_spill] sm:$0xff] }
 0x2d8   : > { %5355 = vmatprep.subr.bf16.mxu1 %v11026_v12  ;;  %v14133_v15 = vld [vmem:[#allocation5 + $0x438] sm:$0xff]  ;;  %v4133_v32 = vadd.f32 %v4132_v28, %v3940_v61  ;;  %v3946_v29 = vadd.f32 %v17015_v11, %v13859_v8  ;;  %v4134_v51 = vpop.f32.mrf.mxu0  ;;  %v10889_v12 = vcombine.low %v14101_v9, %v14103_v58  ;;  %v11017_v10 = vcombine.low %v14116_v54, %v14118_v23  ;;  %v17017_v58 = vld [vmem:[#allocation39_spill] sm:$0xff] }
 0x2d9   : > { %v14137_v48 = vld [vmem:[#allocation5 + $0x818] sm:$0xff]  ;;  %v4135_v19 = vadd.f32 %v4134_v51, %v3942_v6  ;;  %v4327_v61 = vpop.f32.mrf.mxu1  ;;  %v10882_v57 = vcombine.high %v14131_v18, %v14133_v15  ;;  %v3950_v54 = vadd.f32 %v17017_v58, %v13859_v8  ;;  %v12489_v11 = vld [vmem:[%s12984_s6 + $0x90] ss:$24 sps:$4 sm:$0xff]   ;;  %v12490_v51 = vld [vmem:[%s12984_s6 + $0xd4] ss:$24 sps:$4 sm:$0xff]  }
 0x2da   : > { %v14139_v7 = vld [vmem:[#allocation5 + $0x838] sm:$0xff]  ;;  %5163 = vmatpush1.bf16.msra.mxu0 %v10897_v62  ;;  %v4326_v14 = vadd.f32 %v4325_v24, %v4133_v32  ;;  %v4138_v23 = vpop.f32.mrf.mxu0 }
 0x2db   : > { %5356 = vmatpush1.bf16.msra.mxu1 %v11025_v46  ;;  %5164 = vmatprep.subr.bf16.mxu0 %v10890_v27  ;;  %v14149_v2 = vld [vmem:[#allocation5 + $0x7d8] sm:$0xff]  ;;  %v11010_v46 = vcombine.high %v14137_v48, %v14139_v7  ;;  %v4328_v6 = vadd.f32 %v4327_v61, %v4135_v19  ;;  %v4139_v32 = vadd.f32 %v4138_v23, %v3946_v29  ;;  %v4331_v24 = vpop.f32.mrf.mxu1 }
 0x2dc   : > { %v14151_v28 = vld [vmem:[#allocation5 + $0x7f8] sm:$0xff]  ;;  %5357 = vmatprep.subr.bf16.mxu1 %v11018_v53  ;;  %v14160_v27 = vpack.c.bf16 %v4326_v14, %v4322_v49  ;;  %v4140_v43 = vpop.f32.mrf.mxu0  ;;  %v10881_v53 = vcombine.low %v14131_v18, %v14133_v15  ;;  %v11009_v49 = vcombine.low %v14137_v48, %v14139_v7 }
 0x2dd   : > { %v17016_v62 = vld [vmem:[#allocation37_spill] sm:$0xff]  ;;  %5022 = vmatmul.mubr.bf16.gmra.mxu1 %v12489_v11  ;;  %v11002_v29 = vcombine.high %v14149_v2, %v14151_v28  ;;  %v14175_v14 = vpack.c.bf16 %v4328_v6, %v4324_v21  ;;  %v4332_v19 = vadd.f32 %v4331_v24, %v4139_v32  ;;  %v4333_v23 = vpop.f32.mrf.mxu1  ;;  %v17020_v15 = vld [vmem:[#allocation42_spill] sm:$0xff] }
 0x2de   : > { %v3948_v9 = vadd.f32 %v17016_v62, %v13871_v13  ;;  %v12488_v39 = vld [vmem:[%s12984_s6 + $0xa0] ss:$24 sps:$4 sm:$0xff]   ;;  %17018 = vst [vmem:[#allocation20_spill] sm:$0xff] %v14160_v27  ;;  %5031 = vmatprep.mubr.bf16.mxu1 %v12491_v25  ;;  %5165 = vmatpush1.bf16.msra.mxu0 %v10889_v12  ;;  %v3952_v48 = vadd.f32 %v17020_v15, %v13871_v13  ;;  %v14206_v15 = vld [vmem:[%s12984_s6 + $0xd0] ss:$24 sps:$4 sm:$0xff]  }
 0x2df   : > { %4829 = vmatmul.mubr.bf16.gmra.mxu0 %v12488_v39  ;;  %v14164_v62 = vld [vmem:[#allocation5 + $0xbd8] sm:$0xff]  ;;  %17019 = vst [vmem:[#allocation22_spill] sm:$0xff] %v14175_v14  ;;  %5358 = vmatpush1.bf16.msra.mxu1 %v11017_v10  ;;  %v4142_v39 = vpop.f32.mrf.mxu0  ;;  %v4335_v6 = vpop.f32.mrf.mxu1 }
 0x2e0   : > { %4838 = vmatprep.mubr.bf16.mxu0 %v12490_v51  ;;  %v14166_v58 = vld [vmem:[#allocation5 + $0xbf8] sm:$0xff]  ;;  %v4141_v61 = vadd.f32 %v4140_v43, %v3948_v9  ;;  %5166 = vmatprep.subr.bf16.mxu0 %v10882_v57  ;;  %v4143_v21 = vadd.f32 %v4142_v39, %v3950_v54 }
 0x2e1   : > { %5359 = vmatprep.subr.bf16.mxu1 %v11010_v46  ;;  %v11130_v25 = vcombine.high %v14164_v62, %v14166_v58  ;;  %v14179_v12 = vld [vmem:[#allocation5 + $0x798] sm:$0xff]  ;;  %v4144_v9 = vpop.f32.mrf.mxu0  ;;  %v11001_v46 = vcombine.low %v14149_v2, %v14151_v28  ;;  %v11129_v24 = vcombine.low %v14164_v62, %v14166_v58  ;;  %v4337_v54 = vpop.f32.mrf.mxu1 }
 0x2e2   : > { %v14181_v18 = vld [vmem:[#allocation5 + $0x7b8] sm:$0xff]  ;;  %v4334_v7 = vadd.f32 %v4333_v23, %v4141_v61  ;;  %5167 = vmatpush1.bf16.msra.mxu0 %v10881_v53  ;;  %v4336_v11 = vadd.f32 %v4335_v6, %v4143_v21  ;;  %v4145_v51 = vadd.f32 %v4144_v9, %v3952_v48  ;;  %v17022_v53 = vld [vmem:[#allocation43_spill] sm:$0xff] }
 0x2e3   : > { %v14185_v32 = vld [vmem:[#allocation5 + $0xb98] sm:$0xff]  ;;  %5360 = vmatpush1.bf16.msra.mxu1 %v11009_v49  ;;  %5168 = vmatprep.subr.bf16.mxu0 %v11002_v29  ;;  %v10994_v61 = vcombine.high %v14179_v12, %v14181_v18  ;;  %v3958_v2 = vadd.f32 %v17022_v53, %v13871_v13  ;;  %v4148_v58 = vpop.f32.mrf.mxu0  ;;  %v4341_v6 = vpop.f32.mrf.mxu1 }
 0x2e4   : > { %v14187_v43 = vld [vmem:[#allocation5 + $0xbb8] sm:$0xff]  ;;  %5361 = vmatprep.subr.bf16.mxu1 %v11130_v25  ;;  %v14211_v29 = vpack.c.bf16 %v4336_v11, %v4332_v19  ;;  %v4338_v48 = vadd.f32 %v4337_v54, %v4145_v51  ;;  %v12495_v25 = vld [vmem:[%s12984_s6 + $0xf4] ss:$24 sps:$4 sm:$0xff]   ;;  %v10993_v19 = vcombine.low %v14179_v12, %v14181_v18 }
 0x2e5   : > { %v17021_v10 = vld [vmem:[#allocation46_spill] sm:$0xff]  ;;  %v17023_v28 = vld [vmem:[#allocation45_spill] sm:$0xff]  ;;  %v11122_v49 = vcombine.high %v14185_v32, %v14187_v43  ;;  %v4150_v41 = vpop.f32.mrf.mxu0  ;;  %v17026_v18 = vld [vmem:[#allocation48_spill] sm:$0xff] }
 0x2e6   : > { %v3956_v57 = vadd.f32 %v17021_v10, %v13859_v8  ;;  %v14197_v23 = vld [vmem:[#allocation5 + $0x758] sm:$0xff]  ;;  %v3960_v62 = vadd.f32 %v17023_v28, %v13859_v8  ;;  %17024 = vst [vmem:[#allocation19_spill] sm:$0xff] %v14211_v29  ;;  %5169 = vmatpush2.bf16.msra.mxu0 %v11001_v46  ;;  %v14229_v51 = vpack.c.bf16 %v4338_v48, %v4334_v7 }
 0x2e7   : > { %v14199_v39 = vld [vmem:[#allocation5 + $0x778] sm:$0xff]  ;;  %4839 = vmatmul.mubr.bf16.gmra.mxu0 %v14206_v15  ;;  %5362 = vmatpush2.bf16.msra.mxu1 %v11129_v24  ;;  %v4152_v29 = vpop.f32.mrf.mxu0  ;;  %v17027_v24 = vld [vmem:[#allocation52_spill] sm:$0xff] }
 0x2e8   : > { %v4149_v21 = vadd.f32 %v4148_v58, %v3956_v57  ;;  %v12493_v10 = vld [vmem:[%s12984_s6 + $0xc0] ss:$24 sps:$4 sm:$0xff]   ;;  %v14215_v9 = vld [vmem:[%s12984_s6 + $0x104] ss:$24 sps:$4 sm:$0xff]   ;;  %v11121_v57 = vcombine.low %v14185_v32, %v14187_v43  ;;  %v10986_v11 = vcombine.high %v14197_v23, %v14199_v39  ;;  %17025 = vst [vmem:[#allocation23_spill] sm:$0xff] %v14229_v51  ;;  %v4151_v58 = vadd.f32 %v4150_v41, %v3958_v2 }
 0x2e9   : > { %5032 = vmatmul.mubr.bf16.gmra.mxu1 %v12493_v10  ;;  %4848 = vmatprep.mubr.bf16.mxu0 %v14215_v9  ;;  %v14218_v53 = vld [vmem:[#allocation5 + $0xb58] sm:$0xff]  ;;  %v4343_v10 = vpop.f32.mrf.mxu1  ;;  %v3962_v32 = vadd.f32 %v17026_v18, %v13871_v13  ;;  %v4153_v7 = vadd.f32 %v4152_v29, %v3960_v62  ;;  %v4154_v2 = vpop.f32.mrf.mxu0  ;;  %v12497_v51 = vld [vmem:[%s12984_s6 + $0xf0] ss:$24 sps:$4 sm:$0xff]  }
 0x2ea   : > { %v14220_v28 = vld [vmem:[#allocation5 + $0xb78] sm:$0xff]  ;;  %5041 = vmatprep.mubr.bf16.mxu1 %v12495_v25  ;;  %v4342_v54 = vadd.f32 %v4341_v6, %v4149_v21  ;;  %5170 = vmatprep.subr.bf16.mxu0 %v10994_v61  ;;  %v4344_v43 = vadd.f32 %v4343_v10, %v4151_v58  ;;  %v3966_v61 = vadd.f32 %v17027_v24, %v13859_v8 }
 0x2eb   : > { %5363 = vmatprep.subr.bf16.mxu1 %v11122_v49  ;;  %v11114_v46 = vcombine.high %v14218_v53, %v14220_v28  ;;  %v14233_v25 = vld [vmem:[#allocation5 + $0x718] sm:$0xff]  ;;  %v4345_v48 = vpop.f32.mrf.mxu1  ;;  %5171 = vmatpush2.bf16.msra.mxu0 %v10993_v19  ;;  %v10985_v49 = vcombine.low %v14197_v23, %v14199_v39  ;;  %v11113_v6 = vcombine.low %v14218_v53, %v14220_v28  ;;  %v17029_v39 = vld [vmem:[#allocation51_spill] sm:$0xff]  ;;  %v4158_v28 = vpop.f32.mrf.mxu0 }
 0x2ec   : > { %v14235_v12 = vld [vmem:[#allocation5 + $0x738] sm:$0xff]  ;;  %v4346_v18 = vadd.f32 %v4345_v48, %v4153_v7  ;;  %v4155_v58 = vadd.f32 %v4154_v2, %v3962_v32  ;;  %5364 = vmatpush2.bf16.msra.mxu1 %v11121_v57  ;;  %5172 = vmatprep.subr.bf16.mxu0 %v10986_v11  ;;  %v3970_v53 = vadd.f32 %v17029_v39, %v13859_v8 }
 0x2ed   : > { %v14239_v21 = vld [vmem:[#allocation5 + $0xb18] sm:$0xff]  ;;  %v4347_v62 = vpop.f32.mrf.mxu1  ;;  %v10978_v29 = vcombine.high %v14233_v25, %v14235_v12  ;;  %5365 = vmatprep.subr.bf16.mxu1 %v11114_v46  ;;  %v4159_v48 = vadd.f32 %v4158_v28, %v3966_v61  ;;  %v4160_v14 = vpop.f32.mrf.mxu0 }
 0x2ee   : > { %v14241_v41 = vld [vmem:[#allocation5 + $0xb38] sm:$0xff]  ;;  %v14265_v11 = vpack.c.bf16 %v4346_v18, %v4342_v54  ;;  %v4348_v7 = vadd.f32 %v4347_v62, %v4155_v58  ;;  %v10977_v54 = vcombine.low %v14233_v25, %v14235_v12  ;;  %v3972_v12 = vadd.f32 %v13825_v20, %v13871_v13 }
 0x2ef   : > { %v14251_v10 = vld [vmem:[#allocation5 + $0x6d8] sm:$0xff]  ;;  %v11106_v57 = vcombine.high %v14239_v21, %v14241_v41  ;;  %v4351_v2 = vpop.f32.mrf.mxu1  ;;  %5173 = vmatpush2.bf16.msra.mxu0 %v10985_v49  ;;  %v11105_v61 = vcombine.low %v14239_v21, %v14241_v41 }
 0x2f0   : > { %v14253_v24 = vld [vmem:[#allocation5 + $0x6f8] sm:$0xff]  ;;  %17030 = vst [vmem:[#allocation24_spill] sm:$0xff] %v14265_v11  ;;  %v14283_v18 = vpack.c.bf16 %v4348_v7, %v4344_v43  ;;  %v4352_v58 = vadd.f32 %v4351_v2, %v4159_v48  ;;  %5366 = vmatpush2.bf16.msra.mxu1 %v11113_v6  ;;  %5174 = vmatprep.subr.bf16.mxu0 %v10978_v29  ;;  %v4162_v11 = vpop.f32.mrf.mxu0 }
 0x2f1   : > { %v17028_v19 = vld [vmem:[#allocation49_spill] sm:$0xff]  ;;  %5042 = vmatmul.mubr.bf16.gmra.mxu1 %v12497_v51  ;;  %v10970_v51 = vcombine.high %v14251_v10, %v14253_v24  ;;  %v4353_v28 = vpop.f32.mrf.mxu1  ;;  %5367 = vmatprep.subr.bf16.mxu1 %v11106_v57  ;;  %v4163_v43 = vadd.f32 %v4162_v11, %v3970_v53  ;;  %v3976_v6 = vadd.f32 %v13831_v26, %v13859_v8 }
 0x2f2   : > { %v3968_v23 = vadd.f32 %v17028_v19, %v13871_v13  ;;  %v14260_v32 = vld [vmem:[%s12984_s6 + $0x100] ss:$24 sps:$4 sm:$0xff]   ;;  %v14269_v19 = vld [vmem:[%s12984_s6 + $0x134] ss:$24 sps:$4 sm:$0xff]   ;;  %v12499_v46 = vld [vmem:[%s12984_s6 + $0x124] ss:$24 sps:$4 sm:$0xff]   ;;  %v4164_v29 = vpop.f32.mrf.mxu0 }
 0x2f3   : > { %4849 = vmatmul.mubr.bf16.gmra.mxu0 %v14260_v32  ;;  %v14272_v39 = vld [vmem:[#allocation5 + $0xad8] sm:$0xff]  ;;  %5051 = vmatprep.mubr.bf16.mxu1 %v12499_v46  ;;  %17031 = vst [vmem:[#allocation28_spill] sm:$0xff] %v14283_v18  ;;  %v4355_v41 = vpop.f32.mrf.mxu1  ;;  %v4165_v48 = vadd.f32 %v4164_v29, %v3972_v12 }
 0x2f4   : > { %4858 = vmatprep.mubr.bf16.mxu0 %v14269_v19  ;;  %v14274_v27 = vld [vmem:[#allocation5 + $0xaf8] sm:$0xff]  ;;  %v4161_v62 = vadd.f32 %v4160_v14, %v3968_v23  ;;  %5175 = vmatpush2.bf16.msra.mxu0 %v10977_v54  ;;  %v10969_v23 = vcombine.low %v14251_v10, %v14253_v24  ;;  %v4356_v20 = vadd.f32 %v4355_v41, %v4163_v43  ;;  %v4168_v24 = vpop.f32.mrf.mxu0 }
 0x2f5   : > { %v11098_v49 = vcombine.high %v14272_v39, %v14274_v27  ;;  %v14287_v46 = vld [vmem:[#allocation5 + $0x698] sm:$0xff]  ;;  %v11097_v57 = vcombine.low %v14272_v39, %v14274_v27  ;;  %v4357_v53 = vpop.f32.mrf.mxu1  ;;  %5368 = vmatpush2.bf16.msra.mxu1 %v11105_v61  ;;  %5176 = vmatprep.subr.bf16.mxu0 %v10970_v51  ;;  %v3978_v10 = vadd.f32 %v13837_v34, %v13871_v13  ;;  %v14314_v39 = vld [vmem:[%s12984_s6 + $0x130] ss:$24 sps:$4 sm:$0xff]  }
 0x2f6   : > { %v14289_v25 = vld [vmem:[#allocation5 + $0x6b8] sm:$0xff]  ;;  %v4354_v21 = vadd.f32 %v4353_v28, %v4161_v62  ;;  %v3980_v27 = vadd.f32 %v13840_v37, %v13859_v8  ;;  %v14319_v61 = vpack.c.bf16 %v4356_v20, %v4352_v58  ;;  %v4358_v51 = vadd.f32 %v4357_v53, %v4165_v48  ;;  %v4170_v41 = vpop.f32.mrf.mxu0 }
 0x2f7   : > { %v14293_v7 = vld [vmem:[#allocation5 + $0xa98] sm:$0xff]  ;;  %v10962_v11 = vcombine.high %v14287_v46, %v14289_v25  ;;  %5369 = vmatprep.subr.bf16.mxu1 %v11098_v49  ;;  %v4169_v62 = vadd.f32 %v4168_v24, %v3976_v6  ;;  %v4361_v28 = vpop.f32.mrf.mxu1  ;;  %v12503_v49 = vld [vmem:[%s12984_s6 + $0x154] ss:$24 sps:$4 sm:$0xff]   ;;  %v10961_v58 = vcombine.low %v14287_v46, %v14289_v25  ;;  %v4171_v53 = vadd.f32 %v4170_v41, %v3978_v10 }
 0x2f8   : > { %v14295_v14 = vld [vmem:[#allocation5 + $0xab8] sm:$0xff]  ;;  %17032 = vst [vmem:[#allocation25_spill] sm:$0xff] %v14319_v61  ;;  %5177 = vmatpush2.bf16.msra.mxu0 %v10969_v23  ;;  %v14337_v20 = vpack.c.bf16 %v4358_v51, %v4354_v21  ;;  %v3982_v25 = vadd.f32 %v13846_v47, %v13871_v13  ;;  %v3988_v41 = vadd.f32 %v13863_v60, %v13871_v13  ;;  %v16660_v60 = vsub.s32 4, %v16958_v42 }
 0x2f9   : > { %v14305_v26 = vld [vmem:[#allocation5 + $0x658] sm:$0xff]  ;;  %v11090_v54 = vcombine.high %v14293_v7, %v14295_v14  ;;  %v11089_v6 = vcombine.low %v14293_v7, %v14295_v14  ;;  %v4362_v48 = vadd.f32 %v4361_v28, %v4169_v62  ;;  %v4363_v24 = vpop.f32.mrf.mxu1  ;;  %5370 = vmatpush2.bf16.msra.mxu1 %v11097_v57  ;;  %5178 = vmatprep.subr.bf16.mxu0 %v10962_v11 }
 0x2fa   : > { %v14307_v2 = vld [vmem:[#allocation5 + $0x678] sm:$0xff]  ;;  %17033 = vst [vmem:[#allocation27_spill] sm:$0xff] %v14337_v20  ;;  %v4364_v7 = vadd.f32 %v4363_v24, %v4171_v53  ;;  %v3986_v57 = vadd.f32 %v13853_v55, %v13859_v8  ;;  %v12505_v53 = vld [vmem:[%s12984_s6 + $0x150] ss:$24 sps:$4 sm:$0xff]  }
 0x2fb   : > { %4859 = vmatmul.mubr.bf16.gmra.mxu0 %v14314_v39  ;;  %v12501_v12 = vld [vmem:[%s12984_s6 + $0x120] ss:$24 sps:$4 sm:$0xff]   ;;  %v14323_v34 = vld [vmem:[%s12984_s6 + $0x164] ss:$24 sps:$4 sm:$0xff]   ;;  %v10954_v29 = vcombine.high %v14305_v26, %v14307_v2  ;;  %5371 = vmatprep.subr.bf16.mxu1 %v11090_v54  ;;  %v4365_v61 = vpop.f32.mrf.mxu1  ;;  %v10953_v10 = vcombine.low %v14305_v26, %v14307_v2 }
 0x2fc   : > { %5052 = vmatmul.mubr.bf16.gmra.mxu1 %v12501_v12  ;;  %4868 = vmatprep.mubr.bf16.mxu0 %v14323_v34  ;;  %v14326_v37 = vld [vmem:[#allocation5 + $0xa58] sm:$0xff]  ;;  %v4172_v12 = vpop.f32.mrf.mxu0 }
 0x2fd   : > { %v14328_v43 = vld [vmem:[#allocation5 + $0xa78] sm:$0xff]  ;;  %5061 = vmatprep.mubr.bf16.mxu1 %v12503_v49  ;;  %v4173_v14 = vadd.f32 %v4172_v12, %v3980_v27  ;;  %5179 = vmatpush2.bf16.msra.mxu0 %v10961_v58  ;;  %v4367_v28 = vpop.f32.mrf.mxu1 }
 0x2fe   : > { %v11082_v23 = vcombine.high %v14326_v37, %v14328_v43  ;;  %v591_v49 = vld [vmem:[#allocation5 + $0x618] sm:$0xff]  ;;  %v4174_v11 = vpop.f32.mrf.mxu0  ;;  %v11081_v54 = vcombine.low %v14326_v37, %v14328_v43  ;;  %5372 = vmatpush2.bf16.msra.mxu1 %v11089_v6  ;;  %5180 = vmatprep.subr.bf16.mxu0 %v10954_v29  ;;  %v14359_v6 = vld [vmem:[%s12984_s6 + $0x194] ss:$24 sps:$4 sm:$0xff]   ;;  %v3990_v29 = vadd.f32 %v13874_v56, %v13859_v8 }
 0x2ff   : > { %v595_v46 = vld [vmem:[#allocation5 + $0x638] sm:$0xff]  ;;  %v4366_v62 = vadd.f32 %v4365_v61, %v4173_v14  ;;  %v4175_v47 = vadd.f32 %v4174_v11, %v3982_v25  ;;  %v4371_v43 = vpop.f32.mrf.mxu1  ;;  %v3992_v8 = vadd.f32 %v13881_v40, %v13871_v13  ;;  %v14380_v40 = vld [vmem:[%s12984_s6 + $0x190] ss:$24 sps:$4 sm:$0xff]  }
 0x300   : > { %v719_v21 = vld [vmem:[#allocation5 + $0xa18] sm:$0xff]  ;;  %v10946_v27 = vcombine.high %v591_v49, %v595_v46  ;;  %v4178_v55 = vpop.f32.mrf.mxu0  ;;  %5373 = vmatprep.subr.bf16.mxu1 %v11082_v23 }
 0x301   : > { %v723_v51 = vld [vmem:[#allocation5 + $0xa38] sm:$0xff]  ;;  %v14355_v2 = vpack.c.bf16 %v4366_v62, %v4362_v48  ;;  %v4368_v61 = vadd.f32 %v4367_v28, %v4175_v47  ;;  %v4179_v37 = vadd.f32 %v4178_v55, %v3986_v57  ;;  %5181 = vmatpush2.bf16.msra.mxu0 %v10953_v10  ;;  %v10945_v48 = vcombine.low %v591_v49, %v595_v46  ;;  %v4373_v11 = vpop.f32.mrf.mxu1 }
 0x302   : > { %v14352_v58 = vld [vmem:[%s12984_s6 + $0x160] ss:$24 sps:$4 sm:$0xff]   ;;  %v11074_v26 = vcombine.high %v719_v21, %v723_v51  ;;  %v4180_v24 = vpop.f32.mrf.mxu0  ;;  %v12507_v12 = vld [vmem:[%s12984_s6 + $0x184] ss:$24 sps:$4 sm:$0xff]   ;;  %v11073_v23 = vcombine.low %v719_v21, %v723_v51  ;;  %v16659_v62 = vsub.s32 5, %v16958_v42  ;;  %5374 = vmatpush2.bf16.msra.mxu1 %v11081_v54  ;;  %5182 = vmatprep.subr.bf16.mxu0 %v10946_v27 }
 0x303   : > { %4869 = vmatmul.mubr.bf16.gmra.mxu0 %v14352_v58  ;;  %17034 = vst [vmem:[#allocation30_spill] sm:$0xff] %v14355_v2  ;;  %v14366_v25 = vpack.c.bf16 %v4368_v61, %v4364_v7  ;;  %v4372_v14 = vadd.f32 %v4371_v43, %v4179_v37  ;;  %v4181_v57 = vadd.f32 %v4180_v24, %v3988_v41  ;;  %v11764_v47 = vld [vmem:[#allocation8 + $0x154] ss:$24 sps:$4 sm:$0xff]   ;;  %v4375_v46 = vpop.f32.mrf.mxu1  ;;  %v12508_v7 = vld [vmem:[#allocation7] sm:$0xff] }
 0x304   : > { %5062 = vmatmul.mubr.bf16.gmra.mxu1 %v12505_v53  ;;  %4878 = vmatprep.mubr.bf16.mxu0 %v14359_v6  ;;  %v4182_v28 = vpop.f32.mrf.mxu0  ;;  %v11767_v55 = vld [vmem:[#allocation8 + $0x454] ss:$24 sps:$4 sm:$0xff]   ;;  %v14373_v21 = vrot.slane %v12508_v7, %v16660_v60  ;;  %v14377_v41 = vrot.slane %v12508_v7, %v16659_v62  ;;  %v12510_v53 = vld [vmem:[%s12984_s6 + $0x180] ss:$24 sps:$4 sm:$0xff]  }
 0x305   : > { %5071 = vmatprep.mubr.bf16.mxu1 %v12507_v12  ;;  %17035 = vst [vmem:[#allocation34_spill] sm:$0xff] %v14366_v25  ;;  %5375 = vmatprep.subr.bf16.mxu1 %v11074_v26  ;;  %v4374_v56 = vadd.f32 %v4373_v11, %v4181_v57  ;;  %v4183_v49 = vadd.f32 %v4182_v28, %v3990_v29  ;;  %v4377_v27 = vpop.f32.mrf.mxu1  ;;  %v14388_v29 = vld [vmem:[%s12984_s6 + $0x1c4] ss:$24 sps:$4 sm:$0xff]   ;;  %v12512_v12 = vld [vmem:[%s12984_s6 + $0x1b4] ss:$24 sps:$4 sm:$0xff]  }
 0x306   : > { %v4184_v51 = vpop.f32.mrf.mxu0  ;;  %5183 = vmatpush2.bf16.msra.mxu0 %v10945_v48  ;;  %5376 = vmatpush2.bf16.msra.mxu1 %v11073_v23  ;;  %v12526_v45 = vld [vmem:[%s12984_s6 + $0x240] ss:$24 sps:$4 sm:$0xff]  }
 0x307   : > { %v4376_v10 = vadd.f32 %v4375_v46, %v4183_v49  ;;  %v4185_v54 = vadd.f32 %v4184_v51, %v3992_v8  ;;  %8002 = vmatprep.subr.bf16.mxu0 %v11764_v47  ;;  %8195 = vmatprep.subr.bf16.mxu1 %v11767_v55  ;;  %v4607_v43 = vpop.f32.mrf.mxu1  ;;  %v14404_v51 = vld [vmem:[%s12984_s6 + $0x1c0] ss:$24 sps:$4 sm:$0xff]  }
 0x308   : > { %v4414_v13 = vpop.f32.mrf.mxu0 }
 0x309   : > { %v14383_v26 = vpack.c.bf16 %v4376_v10, %v4372_v14  ;;  %v4378_v61 = vadd.f32 %v4377_v27, %v4185_v54  ;;  %v4415_v37 = vadd.f32 %v4414_v13, %v14373_v21  ;;  %v4609_v57 = vpop.f32.mrf.mxu1  ;;  %v12514_v13 = vld [vmem:[%s12984_s6 + $0x1b0] ss:$24 sps:$4 sm:$0xff]  }
 0x30a   : > { %v4416_v24 = vpop.f32.mrf.mxu0 }
 0x30b   : > { %4879 = vmatmul.mubr.bf16.gmra.mxu0 %v14380_v40  ;;  %17036 = vst [vmem:[#allocation31_spill] sm:$0xff] %v14383_v26  ;;  %v14392_v48 = vpack.c.bf16 %v4378_v61, %v4374_v56  ;;  %v14394_v23 = vadd.f32 %v4607_v43, %v4415_v37  ;;  %v4417_v14 = vadd.f32 %v4416_v24, %v14377_v41  ;;  %v4611_v55 = vpop.f32.mrf.mxu1  ;;  %v14412_v61 = vld [vmem:[%s12984_s6 + $0x1f4] ss:$24 sps:$4 sm:$0xff]   ;;  %v12516_v43 = vld [vmem:[%s12984_s6 + $0x1e4] ss:$24 sps:$4 sm:$0xff]  }
 0x30c   : > { %5072 = vmatmul.mubr.bf16.gmra.mxu1 %v12510_v53  ;;  %4888 = vmatprep.mubr.bf16.mxu0 %v14388_v29  ;;  %v4418_v11 = vpop.f32.mrf.mxu0 }
 0x30d   : > { %5081 = vmatprep.mubr.bf16.mxu1 %v12512_v12  ;;  %17037 = vst [vmem:[#allocation33_spill] sm:$0xff] %v14392_v48  ;;  %v14397_v47 = vadd.f32 %v4609_v57, %v4417_v14  ;;  %v4419_v28 = vadd.f32 %v4418_v11, %v14373_v21  ;;  %v4613_v46 = vpop.f32.mrf.mxu1  ;;  %v12522_v48 = vld [vmem:[%s12984_s6 + $0x210] ss:$24 sps:$4 sm:$0xff]  }
 0x30e   : > { %v4420_v8 = vpop.f32.mrf.mxu0 }
 0x30f   : > { %v14400_v49 = vadd.f32 %v4611_v55, %v4419_v28  ;;  %v4421_v56 = vadd.f32 %v4420_v8, %v14377_v41  ;;  %v4617_v27 = vpop.f32.mrf.mxu1 }
 0x310   : > { %v4424_v7 = vpop.f32.mrf.mxu0 }
 0x311   : > { %v14407_v10 = vadd.f32 %v4613_v46, %v4421_v56  ;;  %v4425_v54 = vadd.f32 %v4424_v7, %v14373_v21  ;;  %v4619_v12 = vpop.f32.mrf.mxu1 }
 0x312   : > { %v4426_v37 = vpop.f32.mrf.mxu0 }
 0x313   : > { %4889 = vmatmul.mubr.bf16.gmra.mxu0 %v14404_v51  ;;  %v14416_v53 = vadd.f32 %v4617_v27, %v4425_v54  ;;  %v4427_v24 = vadd.f32 %v4426_v37, %v14377_v41  ;;  %v4621_v28 = vpop.f32.mrf.mxu1  ;;  %v14426_v54 = vld [vmem:[%s12984_s6 + $0x1f0] ss:$24 sps:$4 sm:$0xff]  }
 0x314   : > { %5082 = vmatmul.mubr.bf16.gmra.mxu1 %v12514_v13  ;;  %4898 = vmatprep.mubr.bf16.mxu0 %v14412_v61  ;;  %v4428_v14 = vpop.f32.mrf.mxu0 }
 0x315   : > { %5091 = vmatprep.mubr.bf16.mxu1 %v12516_v43  ;;  %v14419_v57 = vadd.f32 %v4619_v12, %v4427_v24  ;;  %v4429_v11 = vadd.f32 %v4428_v14, %v14373_v21  ;;  %v4623_v46 = vpop.f32.mrf.mxu1  ;;  %v12518_v43 = vld [vmem:[%s12984_s6 + $0x1e0] ss:$24 sps:$4 sm:$0xff]   ;;  %v14434_v24 = vld [vmem:[%s12984_s6 + $0x224] ss:$24 sps:$4 sm:$0xff]   ;;  %v12520_v14 = vld [vmem:[%s12984_s6 + $0x214] ss:$24 sps:$4 sm:$0xff]  }
 0x316   : > { %v4430_v55 = vpop.f32.mrf.mxu0 }
 0x317   : > { %v14422_v8 = vadd.f32 %v4621_v28, %v4429_v11  ;;  %v4431_v56 = vadd.f32 %v4430_v55, %v14377_v41  ;;  %v4627_v37 = vpop.f32.mrf.mxu1 }
 0x318   : > { %v4434_v7 = vpop.f32.mrf.mxu0 }
 0x319   : > { %v14429_v27 = vadd.f32 %v4623_v46, %v4431_v56  ;;  %v4435_v13 = vadd.f32 %v4434_v7, %v14373_v21  ;;  %v4629_v55 = vpop.f32.mrf.mxu1 }
 0x31a   : > { %v4436_v12 = vpop.f32.mrf.mxu0 }
 0x31b   : > { %4899 = vmatmul.mubr.bf16.gmra.mxu0 %v14426_v54  ;;  %v14438_v11 = vadd.f32 %v4627_v37, %v4435_v13  ;;  %v4437_v28 = vadd.f32 %v4436_v12, %v14377_v41  ;;  %v14448_v37 = vld [vmem:[%s12984_s6 + $0x220] ss:$24 sps:$4 sm:$0xff]  }
 0x31c   : > { %5092 = vmatmul.mubr.bf16.gmra.mxu1 %v12518_v43  ;;  %4908 = vmatprep.mubr.bf16.mxu0 %v14434_v24  ;;  %v4438_v56 = vpop.f32.mrf.mxu0  ;;  %v4631_v43 = vpop.f32.mrf.mxu1 }
 0x31d   : > { %5101 = vmatprep.mubr.bf16.mxu1 %v12520_v14  ;;  %v14441_v46 = vadd.f32 %v4629_v55, %v4437_v28  ;;  %v4439_v7 = vadd.f32 %v4438_v56, %v14373_v21  ;;  %v14456_v56 = vld [vmem:[%s12984_s6 + $0x254] ss:$24 sps:$4 sm:$0xff]  }
 0x31e   : > { %v4440_v62 = vpop.f32.mrf.mxu0  ;;  %v4633_v14 = vpop.f32.mrf.mxu1 }
 0x31f   : > { %v14444_v60 = vadd.f32 %v4631_v43, %v4439_v7  ;;  %v4441_v26 = vadd.f32 %v4440_v62, %v14377_v41  ;;  %v12524_v62 = vld [vmem:[%s12984_s6 + $0x244] ss:$24 sps:$4 sm:$0xff]  }
 0x320   : > { %v4444_v13 = vpop.f32.mrf.mxu0  ;;  %v4637_v55 = vpop.f32.mrf.mxu1 }
 0x321   : > { %v14451_v12 = vadd.f32 %v4633_v14, %v4441_v26  ;;  %v4445_v28 = vadd.f32 %v4444_v13, %v14373_v21 }
 0x322   : > { %v4446_v7 = vpop.f32.mrf.mxu0  ;;  %v4639_v26 = vpop.f32.mrf.mxu1 }
 0x323   : > { %4909 = vmatmul.mubr.bf16.gmra.mxu0 %v14448_v37  ;;  %v14460_v43 = vadd.f32 %v4637_v55, %v4445_v28  ;;  %v4447_v2 = vadd.f32 %v4446_v7, %v14377_v41  ;;  %v14470_v55 = vld [vmem:[%s12984_s6 + $0x250] ss:$24 sps:$4 sm:$0xff]  }
 0x324   : > { %5102 = vmatmul.mubr.bf16.gmra.mxu1 %v12522_v48  ;;  %4918 = vmatprep.mubr.bf16.mxu0 %v14456_v56  ;;  %v4448_v14 = vpop.f32.mrf.mxu0  ;;  %v4641_v25 = vpop.f32.mrf.mxu1 }
 0x325   : > { %5111 = vmatprep.mubr.bf16.mxu1 %v12524_v62  ;;  %v14463_v13 = vadd.f32 %v4639_v26, %v4447_v2  ;;  %v4449_v48 = vadd.f32 %v4448_v14, %v14373_v21  ;;  %v14478_v14 = vld [vmem:[%s12984_s6 + $0x284] ss:$24 sps:$4 sm:$0xff]  }
 0x326   : > { %v4450_v20 = vpop.f32.mrf.mxu0  ;;  %v4643_v62 = vpop.f32.mrf.mxu1 }
 0x327   : > { %v14466_v18 = vadd.f32 %v4641_v25, %v4449_v48  ;;  %v4451_v44 = vadd.f32 %v4450_v20, %v14377_v41  ;;  %v12528_v20 = vld [vmem:[%s12984_s6 + $0x274] ss:$24 sps:$4 sm:$0xff]  }
 0x328   : > { %v4454_v28 = vpop.f32.mrf.mxu0  ;;  %v4647_v26 = vpop.f32.mrf.mxu1 }
 0x329   : > { %v14473_v7 = vadd.f32 %v4643_v62, %v4451_v44  ;;  %v4455_v2 = vadd.f32 %v4454_v28, %v14373_v21 }
 0x32a   : > { %v4456_v25 = vpop.f32.mrf.mxu0  ;;  %v4649_v44 = vpop.f32.mrf.mxu1 }
 0x32b   : > { %4919 = vmatmul.mubr.bf16.gmra.mxu0 %v14470_v55  ;;  %v14482_v48 = vadd.f32 %v4647_v26, %v4455_v2  ;;  %v4457_v3 = vadd.f32 %v4456_v25, %v14377_v41  ;;  %v14492_v26 = vld [vmem:[%s12984_s6 + $0x280] ss:$24 sps:$4 sm:$0xff]  }
 0x32c   : > { %5112 = vmatmul.mubr.bf16.gmra.mxu1 %v12526_v45  ;;  %4928 = vmatprep.mubr.bf16.mxu0 %v14478_v14  ;;  %v4458_v62 = vpop.f32.mrf.mxu0  ;;  %v4651_v33 = vpop.f32.mrf.mxu1 }
 0x32d   : > { %5121 = vmatprep.mubr.bf16.mxu1 %v12528_v20  ;;  %v14485_v28 = vadd.f32 %v4649_v44, %v4457_v3  ;;  %v4459_v45 = vadd.f32 %v4458_v62, %v14373_v21  ;;  %v14500_v62 = vld [vmem:[%s12984_s6 + $0x2b4] ss:$24 sps:$4 sm:$0xff]  }
 0x32e   : > { %v4460_v31 = vpop.f32.mrf.mxu0  ;;  %v4653_v20 = vpop.f32.mrf.mxu1 }
 0x32f   : > { %v14488_v42 = vadd.f32 %v4651_v33, %v4459_v45  ;;  %v4461_v0 = vadd.f32 %v4460_v31, %v14377_v41  ;;  %v12532_v31 = vld [vmem:[%s12984_s6 + $0x2a4] ss:$24 sps:$4 sm:$0xff]  }
 0x330   : > { %v4464_v2 = vpop.f32.mrf.mxu0  ;;  %v4657_v44 = vpop.f32.mrf.mxu1 }
 0x331   : > { %v14495_v25 = vadd.f32 %v4653_v20, %v4461_v0  ;;  %v4465_v3 = vadd.f32 %v4464_v2, %v14373_v21 }
 0x332   : > { %v4466_v33 = vpop.f32.mrf.mxu0  ;;  %v4659_v0 = vpop.f32.mrf.mxu1 }
 0x333   : > { %4929 = vmatmul.mubr.bf16.gmra.mxu0 %v14492_v26  ;;  %v14504_v45 = vadd.f32 %v4657_v44, %v4465_v3  ;;  %v4467_v35 = vadd.f32 %v4466_v33, %v14377_v41  ;;  %v14514_v44 = vld [vmem:[%s12984_s6 + $0x2b0] ss:$24 sps:$4 sm:$0xff]  }
 0x334   : > { %5122 = vmatmul.mubr.bf16.gmra.mxu1 %v12530_v22  ;;  %4938 = vmatprep.mubr.bf16.mxu0 %v14500_v62  ;;  %v4468_v20 = vpop.f32.mrf.mxu0  ;;  %v4661_v4 = vpop.f32.mrf.mxu1  ;;  %17038 = vst [vmem:[#allocation36_spill] sm:$0xff] %v14514_v44 }
 0x335   : > { %5131 = vmatprep.mubr.bf16.mxu1 %v12532_v31  ;;  %v14507_v2 = vadd.f32 %v4659_v0, %v4467_v35  ;;  %v4469_v22 = vadd.f32 %v4468_v20, %v14373_v21  ;;  %v14522_v20 = vld [vmem:[%s12984_s6 + $0x2e4] ss:$24 sps:$4 sm:$0xff]  }
 0x336   : > { %v4470_v1 = vpop.f32.mrf.mxu0  ;;  %v4663_v31 = vpop.f32.mrf.mxu1  ;;  %17040 = vst [vmem:[#allocation37_spill] sm:$0xff] %v14522_v20 }
 0x337   : > { %v14510_v17 = vadd.f32 %v4661_v4, %v4469_v22  ;;  %v4471_v16 = vadd.f32 %v4470_v1, %v14377_v41  ;;  %v12536_v1 = vld [vmem:[%s12984_s6 + $0x2d4] ss:$24 sps:$4 sm:$0xff]  }
 0x338   : > { %v4474_v3 = vpop.f32.mrf.mxu0  ;;  %v4667_v0 = vpop.f32.mrf.mxu1 }
 0x339   : > { %v14517_v33 = vadd.f32 %v4663_v31, %v4471_v16  ;;  %v4475_v35 = vadd.f32 %v4474_v3, %v14373_v21 }
 0x33a   : > { %v4476_v4 = vpop.f32.mrf.mxu0  ;;  %v4669_v16 = vpop.f32.mrf.mxu1 }
 0x33b   : > { %4939 = vmatmul.mubr.bf16.gmra.mxu0 %v14514_v44  ;;  %17039 = vst [vmem:[#allocation40_spill] sm:$0xff] %v14517_v33  ;;  %v14526_v22 = vadd.f32 %v4667_v0, %v4475_v35  ;;  %v4477_v63 = vadd.f32 %v4476_v4, %v14377_v41  ;;  %v14536_v0 = vld [vmem:[%s12984_s6 + $0x2e0] ss:$24 sps:$4 sm:$0xff]   ;;  %v11776_v44 = vld [vmem:[#allocation8 + $0xf4] ss:$24 sps:$4 sm:$0xff]  }
 0x33c   : > { %5132 = vmatmul.mubr.bf16.gmra.mxu1 %v12534_v30  ;;  %4948 = vmatprep.mubr.bf16.mxu0 %v14522_v20  ;;  %v4478_v31 = vpop.f32.mrf.mxu0  ;;  %v4671_v36 = vpop.f32.mrf.mxu1  ;;  %17044 = vst [vmem:[#allocation43_spill] sm:$0xff] %v14536_v0  ;;  %v11773_v20 = vld [vmem:[#allocation8 + $0x424] ss:$24 sps:$4 sm:$0xff]   ;;  %v12557_v33 = vld [vmem:[%s12984_s6 + $0xc8] ss:$24 sps:$4 sm:$0xff]  }
 0x33d   : > { %5141 = vmatprep.mubr.bf16.mxu1 %v12536_v1  ;;  %17041 = vst [vmem:[#allocation39_spill] sm:$0xff] %v14526_v22  ;;  %v14529_v3 = vadd.f32 %v4669_v16, %v4477_v63  ;;  %v4479_v30 = vadd.f32 %v4478_v31, %v14373_v21  ;;  %v12539_v31 = vld [vmem:[%s12984_s6 + $0xc] ss:$24 sps:$4 sm:$0xff]  }
 0x33e   : > { %v4480_v59 = vpop.f32.mrf.mxu0  ;;  %v4673_v1 = vpop.f32.mrf.mxu1 }
 0x33f   : > { %17042 = vst [vmem:[#allocation42_spill] sm:$0xff] %v14529_v3  ;;  %v14532_v50 = vadd.f32 %v4671_v36, %v4479_v30  ;;  %v4481_v38 = vadd.f32 %v4480_v59, %v14377_v41  ;;  %v12540_v36 = vld [vmem:[%s12984_s6 + $0x14] ss:$24 sps:$4 sm:$0xff]  }
 0x340   : > { %v4484_v35 = vpop.f32.mrf.mxu0  ;;  %v4677_v16 = vpop.f32.mrf.mxu1 }
 0x341   : > { %17043 = vst [vmem:[#allocation46_spill] sm:$0xff] %v14532_v50  ;;  %v14539_v4 = vadd.f32 %v4673_v1, %v4481_v38  ;;  %v4485_v63 = vadd.f32 %v4484_v35, %v14373_v21  ;;  %v11762_v35 = vld [vmem:[#allocation8 + $0x150] ss:$24 sps:$4 sm:$0xff]  }
 0x342   : > { %v4486_v5 = vpop.f32.mrf.mxu0  ;;  %v4679_v50 = vpop.f32.mrf.mxu1 }
 0x343   : > { %4949 = vmatmul.mubr.bf16.gmra.mxu0 %v14536_v0  ;;  %17045 = vst [vmem:[#allocation45_spill] sm:$0xff] %v14539_v4  ;;  %v14545_v59 = vadd.f32 %v4677_v16, %v4485_v63  ;;  %v4487_v30 = vadd.f32 %v4486_v5, %v14377_v41  ;;  %v11765_v4 = vld [vmem:[#allocation8 + $0x450] ss:$24 sps:$4 sm:$0xff]   ;;  %v11770_v16 = vld [vmem:[#allocation8 + $0x124] ss:$24 sps:$4 sm:$0xff]  }
 0x344   : > { %5142 = vmatmul.mubr.bf16.gmra.mxu1 %v12538_v52  ;;  %5184 = vmatprep.mubr.bf16.mxu0 %v12539_v31  ;;  %v4488_v3 = vpop.f32.mrf.mxu0  ;;  %v4681_v1 = vpop.f32.mrf.mxu1  ;;  %v12541_v5 = vld [vmem:[%s12984_s6 + $0x8] ss:$24 sps:$4 sm:$0xff]  }
 0x345   : > { %5377 = vmatprep.mubr.bf16.mxu1 %v12540_v36  ;;  %17046 = vst [vmem:[#allocation48_spill] sm:$0xff] %v14545_v59  ;;  %v14548_v0 = vadd.f32 %v4679_v50, %v4487_v30  ;;  %v4489_v38 = vadd.f32 %v4488_v3, %v14373_v21 }
 0x346   : > { %v4490_v52 = vpop.f32.mrf.mxu0  ;;  %v4683_v63 = vpop.f32.mrf.mxu1 }
 0x347   : > { %17047 = vst [vmem:[#allocation52_spill] sm:$0xff] %v14548_v0  ;;  %v14551_v31 = vadd.f32 %v4681_v1, %v4489_v38  ;;  %v4491_v36 = vadd.f32 %v4490_v52, %v14377_v41  ;;  %v12542_v0 = vld [vmem:[%s12984_s6 + $0x10] ss:$24 sps:$4 sm:$0xff]   ;;  %v12543_v52 = vld [vmem:[%s12984_s6 + $0x3c] ss:$24 sps:$4 sm:$0xff]  }
 0x348   : > { %v4494_v59 = vpop.f32.mrf.mxu0  ;;  %v4687_v30 = vpop.f32.mrf.mxu1  ;;  %v11768_v38 = vld [vmem:[#allocation8 + $0x120] ss:$24 sps:$4 sm:$0xff]  }
 0x349   : > { %17048 = vst [vmem:[#allocation49_spill] sm:$0xff] %v14551_v31  ;;  %v14555_v50 = vadd.f32 %v4683_v63, %v4491_v36  ;;  %v4495_v3 = vadd.f32 %v4494_v59, %v14373_v21  ;;  %v11771_v31 = vld [vmem:[#allocation8 + $0x420] ss:$24 sps:$4 sm:$0xff]   ;;  %v12544_v63 = vld [vmem:[%s12984_s6 + $0x44] ss:$24 sps:$4 sm:$0xff]  }
 0x34a   : > { %v4496_v1 = vpop.f32.mrf.mxu0  ;;  %v4689_v36 = vpop.f32.mrf.mxu1  ;;  %v11779_v59 = vld [vmem:[#allocation8 + $0x3f4] ss:$24 sps:$4 sm:$0xff]  }
 0x34b   : > { %5185 = vmatmul.mubr.bf16.vlgmr.msra.gmra.mxu0 %v12541_v5  ;;  %17049 = vst [vmem:[#allocation51_spill] sm:$0xff] %v14555_v50  ;;  %v14560_v22 = vadd.f32 %v4687_v30, %v4495_v3  ;;  %v4497_v5 = vadd.f32 %v4496_v1, %v14377_v41  ;;  %v11774_v3 = vld [vmem:[#allocation8 + $0xf0] ss:$24 sps:$4 sm:$0xff]  }
 0x34c   : > { %5378 = vmatmul.mubr.bf16.vlgmr.msra.gmra.mxu1 %v12542_v0  ;;  %8003 = vmatpush1.bf16.msra.mxu0 %v11762_v35  ;;  %v4498_v50 = vpop.f32.mrf.mxu0  ;;  %v4691_v35 = vpop.f32.mrf.mxu1 }
 0x34d   : > { %8196 = vmatpush1.bf16.msra.mxu1 %v11765_v4  ;;  %5194 = vmatprep.mubr.bf16.mxu0 %v12543_v52  ;;  %17050 = vst [vmem:[#allocation93_spill] sm:$0xff] %v14560_v22  ;;  %v14564_v0 = vadd.f32 %v4689_v36, %v4497_v5  ;;  %v4499_v4 = vadd.f32 %v4498_v50, %v14373_v21  ;;  %v11782_v5 = vld [vmem:[#allocation8 + $0xc4] ss:$24 sps:$4 sm:$0xff]  }
 0x34e   : > { %5387 = vmatprep.mubr.bf16.mxu1 %v12544_v63  ;;  %8004 = vmatprep.subr.bf16.mxu0 %v11770_v16  ;;  %v4500_v52 = vpop.f32.mrf.mxu0  ;;  %v4693_v1 = vpop.f32.mrf.mxu1  ;;  %v12545_v63 = vld [vmem:[%s12984_s6 + $0x38] ss:$24 sps:$4 sm:$0xff]   ;;  %v11785_v50 = vld [vmem:[#allocation8 + $0x3c4] ss:$24 sps:$4 sm:$0xff]  }
 0x34f   : > { %8197 = vmatprep.subr.bf16.mxu1 %v11773_v20  ;;  %17051 = vst [vmem:[#allocation94_spill] sm:$0xff] %v14564_v0  ;;  %v14567_v30 = vadd.f32 %v4691_v35, %v4499_v4  ;;  %v4501_v16 = vadd.f32 %v4500_v52, %v14377_v41  ;;  %v11777_v20 = vld [vmem:[#allocation8 + $0x3f0] ss:$24 sps:$4 sm:$0xff]   ;;  %v12547_v4 = vld [vmem:[%s12984_s6 + $0x6c] ss:$24 sps:$4 sm:$0xff]  }
 0x350   : > { %8005 = vmatpush1.bf16.msra.mxu0 %v11768_v38  ;;  %v4504_v36 = vpop.f32.mrf.mxu0  ;;  %v4697_v0 = vpop.f32.mrf.mxu1  ;;  %v12548_v52 = vld [vmem:[%s12984_s6 + $0x74] ss:$24 sps:$4 sm:$0xff]  }
 0x351   : > { %8198 = vmatpush1.bf16.msra.mxu1 %v11771_v31  ;;  %8006 = vmatprep.subr.bf16.mxu0 %v11776_v44  ;;  %17052 = vst [vmem:[#allocation95_spill] sm:$0xff] %v14567_v30  ;;  %v14571_v38 = vadd.f32 %v4693_v1, %v4501_v16  ;;  %v4505_v31 = vadd.f32 %v4504_v36, %v14373_v21  ;;  %v12546_v44 = vld [vmem:[%s12984_s6 + $0x40] ss:$24 sps:$4 sm:$0xff]   ;;  %v11788_v1 = vld [vmem:[#allocation8 + $0x94] ss:$24 sps:$4 sm:$0xff]  }
 0x352   : > { %8199 = vmatprep.subr.bf16.mxu1 %v11779_v59  ;;  %v4506_v35 = vpop.f32.mrf.mxu0  ;;  %v11780_v30 = vld [vmem:[#allocation8 + $0xc0] ss:$24 sps:$4 sm:$0xff]  }
 0x353   : > { %5195 = vmatmul.mubr.bf16.gmra.mxu0 %v12545_v63  ;;  %17053 = vst [vmem:[#allocation96_spill] sm:$0xff] %v14571_v38  ;;  %v14577_v59 = vadd.f32 %v4697_v0, %v4505_v31  ;;  %v4507_v22 = vadd.f32 %v4506_v35, %v14377_v41  ;;  %v4699_v63 = vpop.f32.mrf.mxu1  ;;  %v11783_v16 = vld [vmem:[#allocation8 + $0x3c0] ss:$24 sps:$4 sm:$0xff]   ;;  %v11786_v0 = vld [vmem:[#allocation8 + $0x90] ss:$24 sps:$4 sm:$0xff]  }
 0x354   : > { %5388 = vmatmul.mubr.bf16.gmra.mxu1 %v12546_v44  ;;  %5204 = vmatprep.mubr.bf16.mxu0 %v12547_v4  ;;  %v4508_v36 = vpop.f32.mrf.mxu0  ;;  %v11791_v44 = vld [vmem:[#allocation8 + $0x394] ss:$24 sps:$4 sm:$0xff]   ;;  %v11794_v35 = vld [vmem:[#allocation8 + $0x64] ss:$24 sps:$4 sm:$0xff]  }
 0x355   : > { %5397 = vmatprep.mubr.bf16.mxu1 %v12548_v52  ;;  %8007 = vmatpush1.bf16.msra.mxu0 %v11774_v3  ;;  %17054 = vst [vmem:[#allocation97_spill] sm:$0xff] %v14577_v59  ;;  %v14580_v38 = vadd.f32 %v4699_v63, %v4507_v22  ;;  %v4509_v4 = vadd.f32 %v4508_v36, %v14373_v21  ;;  %v4701_v52 = vpop.f32.mrf.mxu1  ;;  %v12549_v63 = vld [vmem:[%s12984_s6 + $0x68] ss:$24 sps:$4 sm:$0xff]   ;;  %v11797_v36 = vld [vmem:[#allocation8 + $0x364] ss:$24 sps:$4 sm:$0xff]  }
 0x356   : > { %8200 = vmatpush1.bf16.msra.mxu1 %v11777_v20  ;;  %8008 = vmatprep.subr.bf16.mxu0 %v11782_v5  ;;  %v4510_v3 = vpop.f32.mrf.mxu0 }
 0x357   : > { %8201 = vmatprep.subr.bf16.mxu1 %v11785_v50  ;;  %17055 = vst [vmem:[#allocation98_spill] sm:$0xff] %v14580_v38  ;;  %v14583_v31 = vadd.f32 %v4701_v52, %v4509_v4  ;;  %v4511_v20 = vadd.f32 %v4510_v3, %v14377_v41  ;;  %v4703_v5 = vpop.f32.mrf.mxu1  ;;  %v11789_v50 = vld [vmem:[#allocation8 + $0x390] ss:$24 sps:$4 sm:$0xff]   ;;  %v12551_v3 = vld [vmem:[%s12984_s6 + $0x9c] ss:$24 sps:$4 sm:$0xff]  }
 0x358   : > { %v4514_v22 = vpop.f32.mrf.mxu0  ;;  %v12550_v52 = vld [vmem:[%s12984_s6 + $0x70] ss:$24 sps:$4 sm:$0xff]  }
 0x359   : > { %8009 = vmatpush1.bf16.msra.mxu0 %v11780_v30  ;;  %17056 = vst [vmem:[#allocation99_spill] sm:$0xff] %v14583_v31  ;;  %v14587_v38 = vadd.f32 %v4703_v5, %v4511_v20  ;;  %v4515_v30 = vadd.f32 %v4514_v22, %v14373_v21  ;;  %v4707_v4 = vpop.f32.mrf.mxu1  ;;  %v11795_v20 = vld [vmem:[#allocation8 + $0x360] ss:$24 sps:$4 sm:$0xff]   ;;  %v11800_v5 = vld [vmem:[#allocation8 + $0x34] ss:$24 sps:$4 sm:$0xff]  }
 0x35a   : > { %8202 = vmatpush1.bf16.msra.mxu1 %v11783_v16  ;;  %8010 = vmatprep.subr.bf16.mxu0 %v11788_v1  ;;  %v4516_v31 = vpop.f32.mrf.mxu0  ;;  %v12552_v16 = vld [vmem:[%s12984_s6 + $0xa4] ss:$24 sps:$4 sm:$0xff]   ;;  %v11792_v1 = vld [vmem:[#allocation8 + $0x60] ss:$24 sps:$4 sm:$0xff]  }
 0x35b   : > { %5205 = vmatmul.mubr.bf16.gmra.mxu0 %v12549_v63  ;;  %8203 = vmatprep.subr.bf16.mxu1 %v11791_v44  ;;  %17057 = vst [vmem:[#allocation100_spill] sm:$0xff] %v14587_v38  ;;  %v14593_v59 = vadd.f32 %v4707_v4, %v4515_v30  ;;  %v4517_v63 = vadd.f32 %v4516_v31, %v14377_v41  ;;  %v4709_v44 = vpop.f32.mrf.mxu1  ;;  %v11798_v30 = vld [vmem:[#allocation8 + $0x30] ss:$24 sps:$4 sm:$0xff]  }
 0x35c   : > { %5398 = vmatmul.mubr.bf16.gmra.mxu1 %v12550_v52  ;;  %5214 = vmatprep.mubr.bf16.mxu0 %v12551_v3  ;;  %v4518_v22 = vpop.f32.mrf.mxu0  ;;  %v11803_v52 = vld [vmem:[#allocation8 + $0x334] ss:$24 sps:$4 sm:$0xff]  }
 0x35d   : > { %5407 = vmatprep.mubr.bf16.mxu1 %v12552_v16  ;;  %8011 = vmatpush1.bf16.msra.mxu0 %v11786_v0  ;;  %17058 = vst [vmem:[#allocation101_spill] sm:$0xff] %v14593_v59  ;;  %v14596_v38 = vadd.f32 %v4709_v44, %v4517_v63  ;;  %v4519_v3 = vadd.f32 %v4518_v22, %v14373_v21  ;;  %v4711_v16 = vpop.f32.mrf.mxu1  ;;  %v12553_v44 = vld [vmem:[%s12984_s6 + $0x98] ss:$24 sps:$4 sm:$0xff]   ;;  %v11809_v22 = vld [vmem:[#allocation8 + $0x304] ss:$24 sps:$4 sm:$0xff]  }
 0x35e   : > { %8204 = vmatpush1.bf16.msra.mxu1 %v11789_v50  ;;  %8012 = vmatprep.subr.bf16.mxu0 %v11794_v35  ;;  %v4520_v0 = vpop.f32.mrf.mxu0  ;;  %v11801_v35 = vld [vmem:[#allocation8 + $0x330] ss:$24 sps:$4 sm:$0xff]  }
 0x35f   : > { %8205 = vmatprep.subr.bf16.mxu1 %v11797_v36  ;;  %17059 = vst [vmem:[#allocation102_spill] sm:$0xff] %v14596_v38  ;;  %v14599_v4 = vadd.f32 %v4711_v16, %v4519_v3  ;;  %v4521_v31 = vadd.f32 %v4520_v0, %v14377_v41  ;;  %v4713_v50 = vpop.f32.mrf.mxu1  ;;  %v11806_v36 = vld [vmem:[#allocation8 + $0x4] ss:$24 sps:$4 sm:$0xff]   ;;  %v12554_v16 = vld [vmem:[%s12984_s6 + $0xa0] ss:$24 sps:$4 sm:$0xff]  }
 0x360   : > { %v4524_v63 = vpop.f32.mrf.mxu0  ;;  %v12555_v0 = vld [vmem:[%s12984_s6 + $0xcc] ss:$24 sps:$4 sm:$0xff]  }
 0x361   : > { %8013 = vmatpush1.bf16.msra.mxu0 %v11792_v1  ;;  %17060 = vst [vmem:[#allocation103_spill] sm:$0xff] %v14599_v4  ;;  %v14603_v38 = vadd.f32 %v4713_v50, %v4521_v31  ;;  %v4525_v1 = vadd.f32 %v4524_v63, %v14373_v21  ;;  %v4717_v3 = vpop.f32.mrf.mxu1  ;;  %v11807_v31 = vld [vmem:[#allocation8 + $0x300] ss:$24 sps:$4 sm:$0xff]   ;;  %v11812_v50 = vld [vmem:[#allocation8 + $0x2d4] ss:$24 sps:$4 sm:$0xff]  }
 0x362   : > { %8206 = vmatpush1.bf16.msra.mxu1 %v11795_v20  ;;  %8014 = vmatprep.subr.bf16.mxu0 %v11800_v5  ;;  %v4526_v4 = vpop.f32.mrf.mxu0  ;;  %v12556_v20 = vld [vmem:[%s12984_s6 + $0xd4] ss:$24 sps:$4 sm:$0xff]   ;;  %v11804_v5 = vld [vmem:[#allocation8] ss:$24 sps:$4 sm:$0xff]  }
 0x363   : > { %5215 = vmatmul.mubr.bf16.gmra.mxu0 %v12553_v44  ;;  %8207 = vmatprep.subr.bf16.mxu1 %v11803_v52  ;;  %17061 = vst [vmem:[#allocation104_spill] sm:$0xff] %v14603_v38  ;;  %v14609_v59 = vadd.f32 %v4717_v3, %v4525_v1  ;;  %v4527_v44 = vadd.f32 %v4526_v4, %v14377_v41  ;;  %v4719_v52 = vpop.f32.mrf.mxu1  ;;  %v11810_v1 = vld [vmem:[#allocation8 + $0x2d0] ss:$24 sps:$4 sm:$0xff]  }
 0x364   : > { %5408 = vmatmul.mubr.bf16.gmra.mxu1 %v12554_v16  ;;  %5224 = vmatprep.mubr.bf16.mxu0 %v12555_v0  ;;  %v4528_v63 = vpop.f32.mrf.mxu0  ;;  %v11815_v16 = vld [vmem:[#allocation8 + $0x5d4] ss:$24 sps:$4 sm:$0xff]  }
 0x365   : > { %5417 = vmatprep.mubr.bf16.mxu1 %v12556_v20  ;;  %8015 = vmatpush1.bf16.msra.mxu0 %v11798_v30  ;;  %17062 = vst [vmem:[#allocation105_spill] sm:$0xff] %v14609_v59  ;;  %v14612_v38 = vadd.f32 %v4719_v52, %v4527_v44  ;;  %v4529_v0 = vadd.f32 %v4528_v63, %v14373_v21  ;;  %v4721_v20 = vpop.f32.mrf.mxu1  ;;  %v11821_v44 = vld [vmem:[#allocation8 + $0x5a4] ss:$24 sps:$4 sm:$0xff]  }
 0x366   : > { %8208 = vmatpush1.bf16.msra.mxu1 %v11801_v35  ;;  %8016 = vmatprep.subr.bf16.mxu0 %v11806_v36  ;;  %v4530_v30 = vpop.f32.mrf.mxu0  ;;  %v11813_v36 = vld [vmem:[#allocation8 + $0x5d0] ss:$24 sps:$4 sm:$0xff]  }
 0x367   : > { %8209 = vmatprep.subr.bf16.mxu1 %v11809_v22  ;;  %v14615_v3 = vadd.f32 %v4721_v20, %v4529_v0  ;;  %v4531_v4 = vadd.f32 %v4530_v30, %v14377_v41  ;;  %v4723_v35 = vpop.f32.mrf.mxu1  ;;  %v11818_v22 = vld [vmem:[#allocation8 + $0x2a4] ss:$24 sps:$4 sm:$0xff]   ;;  %v12558_v0 = vld [vmem:[%s12984_s6 + $0xfc] ss:$24 sps:$4 sm:$0xff]   ;;  %v11819_v30 = vld [vmem:[#allocation8 + $0x5a0] ss:$24 sps:$4 sm:$0xff]  }
 0x368   : > { %v4534_v59 = vpop.f32.mrf.mxu0 }
 0x369   : > { %8017 = vmatpush1.bf16.msra.mxu0 %v11804_v5  ;;  %v14619_v52 = vadd.f32 %v4723_v35, %v4531_v4  ;;  %v4535_v5 = vadd.f32 %v4534_v59, %v14373_v21  ;;  %v4727_v63 = vpop.f32.mrf.mxu1  ;;  %v11824_v4 = vld [vmem:[#allocation8 + $0x274] ss:$24 sps:$4 sm:$0xff]  }
 0x36a   : > { %8210 = vmatpush1.bf16.msra.mxu1 %v11807_v31  ;;  %8018 = vmatprep.subr.bf16.mxu0 %v11812_v50  ;;  %v4536_v20 = vpop.f32.mrf.mxu0  ;;  %v11816_v31 = vld [vmem:[#allocation8 + $0x2a0] ss:$24 sps:$4 sm:$0xff]  }
 0x36b   : > { %5225 = vmatmul.mubr.bf16.gmra.mxu0 %v12557_v33  ;;  %8211 = vmatprep.subr.bf16.mxu1 %v11815_v16  ;;  %17063 = vst [vmem:[#allocation106_spill] sm:$0xff] %v14619_v52  ;;  %v14625_v50 = vadd.f32 %v4727_v63, %v4535_v5  ;;  %v4537_v33 = vadd.f32 %v4536_v20, %v14377_v41  ;;  %v4729_v16 = vpop.f32.mrf.mxu1  ;;  %v11822_v5 = vld [vmem:[#allocation8 + $0x270] ss:$24 sps:$4 sm:$0xff]  }
 0x36c   : > { %5418 = vmatmul.mubr.bf16.gmra.mxu1 %v14206_v15  ;;  %5234 = vmatprep.mubr.bf16.mxu0 %v12558_v0  ;;  %v4538_v59 = vpop.f32.mrf.mxu0  ;;  %v11827_v15 = vld [vmem:[#allocation8 + $0x574] ss:$24 sps:$4 sm:$0xff]   ;;  %v11825_v20 = vld [vmem:[#allocation8 + $0x570] ss:$24 sps:$4 sm:$0xff]  }
 0x36d   : > { %5427 = vmatprep.mubr.bf16.mxu1 %v14215_v9  ;;  %8019 = vmatpush2.bf16.msra.mxu0 %v11810_v1  ;;  %17064 = vst [vmem:[#allocation107_spill] sm:$0xff] %v14625_v50  ;;  %v14628_v35 = vadd.f32 %v4729_v16, %v4537_v33  ;;  %v4539_v0 = vadd.f32 %v4538_v59, %v14373_v21  ;;  %v4731_v9 = vpop.f32.mrf.mxu1  ;;  %v12559_v52 = vld [vmem:[%s12984_s6 + $0xf8] ss:$24 sps:$4 sm:$0xff]   ;;  %v11833_v33 = vld [vmem:[#allocation8 + $0x544] ss:$24 sps:$4 sm:$0xff]  }
 0x36e   : > { %8212 = vmatpush2.bf16.msra.mxu1 %v11813_v36  ;;  %8020 = vmatprep.subr.bf16.mxu0 %v11818_v22  ;;  %v4540_v1 = vpop.f32.mrf.mxu0 }
 0x36f   : > { %8213 = vmatprep.subr.bf16.mxu1 %v11821_v44  ;;  %v14631_v63 = vadd.f32 %v4731_v9, %v4539_v0  ;;  %v4541_v36 = vadd.f32 %v4540_v1, %v14377_v41  ;;  %v4733_v22 = vpop.f32.mrf.mxu1  ;;  %v11830_v44 = vld [vmem:[#allocation8 + $0x244] ss:$24 sps:$4 sm:$0xff]   ;;  %v11831_v1 = vld [vmem:[#allocation8 + $0x540] ss:$24 sps:$4 sm:$0xff]  }
 0x370   : > { %v4544_v50 = vpop.f32.mrf.mxu0  ;;  %v12560_v0 = vld [vmem:[%s12984_s6 + $0x12c] ss:$24 sps:$4 sm:$0xff]  }
 0x371   : > { %8021 = vmatpush2.bf16.msra.mxu0 %v11816_v31  ;;  %v14635_v16 = vadd.f32 %v4733_v22, %v4541_v36  ;;  %v4545_v31 = vadd.f32 %v4544_v50, %v14373_v21  ;;  %v4737_v59 = vpop.f32.mrf.mxu1  ;;  %v11836_v36 = vld [vmem:[#allocation8 + $0x214] ss:$24 sps:$4 sm:$0xff]  }
 0x372   : > { %8214 = vmatpush2.bf16.msra.mxu1 %v11819_v30  ;;  %8022 = vmatprep.subr.bf16.mxu0 %v11824_v4  ;;  %v4546_v9 = vpop.f32.mrf.mxu0  ;;  %v11828_v30 = vld [vmem:[#allocation8 + $0x240] ss:$24 sps:$4 sm:$0xff]  }
 0x373   : > { %5235 = vmatmul.mubr.bf16.gmra.mxu0 %v12559_v52  ;;  %8215 = vmatprep.subr.bf16.mxu1 %v11827_v15  ;;  %17065 = vst [vmem:[#allocation108_spill] sm:$0xff] %v14635_v16  ;;  %v14641_v4 = vadd.f32 %v4737_v59, %v4545_v31  ;;  %v4547_v52 = vadd.f32 %v4546_v9, %v14377_v41  ;;  %v4739_v15 = vpop.f32.mrf.mxu1  ;;  %v11834_v31 = vld [vmem:[#allocation8 + $0x210] ss:$24 sps:$4 sm:$0xff]   ;;  %v12561_v16 = vld [vmem:[%s12984_s6 + $0x128] ss:$24 sps:$4 sm:$0xff]  }
 0x374   : > { %5428 = vmatmul.mubr.bf16.gmra.mxu1 %v14260_v32  ;;  %5244 = vmatprep.mubr.bf16.mxu0 %v12560_v0  ;;  %v4548_v50 = vpop.f32.mrf.mxu0  ;;  %v11839_v32 = vld [vmem:[#allocation8 + $0x514] ss:$24 sps:$4 sm:$0xff]   ;;  %v11837_v9 = vld [vmem:[#allocation8 + $0x510] ss:$24 sps:$4 sm:$0xff]  }
 0x375   : > { %5437 = vmatprep.mubr.bf16.mxu1 %v14269_v19  ;;  %8023 = vmatpush2.bf16.msra.mxu0 %v11822_v5  ;;  %17066 = vst [vmem:[#allocation109_spill] sm:$0xff] %v14641_v4  ;;  %v14644_v22 = vadd.f32 %v4739_v15, %v4547_v52  ;;  %v4549_v0 = vadd.f32 %v4548_v50, %v14373_v21  ;;  %v4741_v19 = vpop.f32.mrf.mxu1  ;;  %v11845_v52 = vld [vmem:[#allocation8 + $0x4e4] ss:$24 sps:$4 sm:$0xff]  }
 0x376   : > { %8216 = vmatpush2.bf16.msra.mxu1 %v11825_v20  ;;  %8024 = vmatprep.subr.bf16.mxu0 %v11830_v44  ;;  %v4550_v5 = vpop.f32.mrf.mxu0 }
 0x377   : > { %8217 = vmatprep.subr.bf16.mxu1 %v11833_v33  ;;  %v14647_v59 = vadd.f32 %v4741_v19, %v4549_v0  ;;  %v4551_v20 = vadd.f32 %v4550_v5, %v14377_v41  ;;  %v4743_v44 = vpop.f32.mrf.mxu1  ;;  %v11842_v33 = vld [vmem:[#allocation8 + $0x1e4] ss:$24 sps:$4 sm:$0xff]   ;;  %v12562_v0 = vld [vmem:[%s12984_s6 + $0x15c] ss:$24 sps:$4 sm:$0xff]   ;;  %v11843_v5 = vld [vmem:[#allocation8 + $0x4e0] ss:$24 sps:$4 sm:$0xff]  }
 0x378   : > { %v4554_v4 = vpop.f32.mrf.mxu0 }
 0x379   : > { %8025 = vmatpush2.bf16.msra.mxu0 %v11828_v30  ;;  %v14651_v15 = vadd.f32 %v4743_v44, %v4551_v20  ;;  %v4555_v30 = vadd.f32 %v4554_v4, %v14373_v21  ;;  %v4747_v50 = vpop.f32.mrf.mxu1  ;;  %v11848_v20 = vld [vmem:[#allocation8 + $0x1b4] ss:$24 sps:$4 sm:$0xff]  }
 0x37a   : > { %8218 = vmatpush2.bf16.msra.mxu1 %v11831_v1  ;;  %8026 = vmatprep.subr.bf16.mxu0 %v11836_v36  ;;  %v4556_v19 = vpop.f32.mrf.mxu0  ;;  %v11840_v1 = vld [vmem:[#allocation8 + $0x1e0] ss:$24 sps:$4 sm:$0xff]  }
 0x37b   : > { %5245 = vmatmul.mubr.bf16.gmra.mxu0 %v12561_v16  ;;  %8219 = vmatprep.subr.bf16.mxu1 %v11839_v32  ;;  %17067 = vst [vmem:[#allocation110_spill] sm:$0xff] %v14651_v15  ;;  %v14657_v36 = vadd.f32 %v4747_v50, %v4555_v30  ;;  %v4557_v16 = vadd.f32 %v4556_v19, %v14377_v41  ;;  %v4749_v32 = vpop.f32.mrf.mxu1  ;;  %v11846_v30 = vld [vmem:[#allocation8 + $0x1b0] ss:$24 sps:$4 sm:$0xff]  }
 0x37c   : > { %5438 = vmatmul.mubr.bf16.gmra.mxu1 %v14314_v39  ;;  %5254 = vmatprep.mubr.bf16.mxu0 %v12562_v0  ;;  %v4558_v4 = vpop.f32.mrf.mxu0  ;;  %v11851_v39 = vld [vmem:[#allocation8 + $0x4b4] ss:$24 sps:$4 sm:$0xff]   ;;  %v11849_v19 = vld [vmem:[#allocation8 + $0x4b0] ss:$24 sps:$4 sm:$0xff]  }
 0x37d   : > { %5447 = vmatprep.mubr.bf16.mxu1 %v14323_v34  ;;  %8027 = vmatpush2.bf16.msra.mxu0 %v11834_v31  ;;  %17068 = vst [vmem:[#allocation111_spill] sm:$0xff] %v14657_v36  ;;  %v14660_v44 = vadd.f32 %v4749_v32, %v4557_v16  ;;  %v4559_v0 = vadd.f32 %v4558_v4, %v14373_v21  ;;  %v4751_v34 = vpop.f32.mrf.mxu1  ;;  %v12563_v15 = vld [vmem:[%s12984_s6 + $0x158] ss:$24 sps:$4 sm:$0xff]   ;;  %v11857_v16 = vld [vmem:[#allocation8 + $0x484] ss:$24 sps:$4 sm:$0xff]  }
 0x37e   : > { %8220 = vmatpush2.bf16.msra.mxu1 %v11837_v9  ;;  %8028 = vmatprep.subr.bf16.mxu0 %v11842_v33  ;;  %v4560_v31 = vpop.f32.mrf.mxu0 }
 0x37f   : > { %8221 = vmatprep.subr.bf16.mxu1 %v11845_v52  ;;  %v14663_v50 = vadd.f32 %v4751_v34, %v4559_v0  ;;  %v4561_v9 = vadd.f32 %v4560_v31, %v14377_v41  ;;  %v4753_v33 = vpop.f32.mrf.mxu1  ;;  %v11854_v52 = vld [vmem:[#allocation8 + $0x184] ss:$24 sps:$4 sm:$0xff]   ;;  %v11855_v31 = vld [vmem:[#allocation8 + $0x480] ss:$24 sps:$4 sm:$0xff]  }
 0x380   : > { %v4564_v36 = vpop.f32.mrf.mxu0  ;;  %v12564_v0 = vld [vmem:[%s12984_s6 + $0x18c] ss:$24 sps:$4 sm:$0xff]  }
 0x381   : > { %8029 = vmatpush2.bf16.msra.mxu0 %v11840_v1  ;;  %v14667_v32 = vadd.f32 %v4753_v33, %v4561_v9  ;;  %v4565_v1 = vadd.f32 %v4564_v36, %v14373_v21  ;;  %v4757_v4 = vpop.f32.mrf.mxu1  ;;  %v11860_v36 = vld [vmem:[#allocation8 + $0x754] ss:$24 sps:$4 sm:$0xff]  }
 0x382   : > { %8222 = vmatpush2.bf16.msra.mxu1 %v11843_v5  ;;  %8030 = vmatprep.subr.bf16.mxu0 %v11848_v20  ;;  %v4566_v34 = vpop.f32.mrf.mxu0  ;;  %v11852_v5 = vld [vmem:[#allocation8 + $0x180] ss:$24 sps:$4 sm:$0xff]  }
 0x383   : > { %5255 = vmatmul.mubr.bf16.gmra.mxu0 %v12563_v15  ;;  %8223 = vmatprep.subr.bf16.mxu1 %v11851_v39  ;;  %v14673_v20 = vadd.f32 %v4757_v4, %v4565_v1  ;;  %v4567_v15 = vadd.f32 %v4566_v34, %v14377_v41  ;;  %v4759_v39 = vpop.f32.mrf.mxu1  ;;  %v12565_v34 = vld [vmem:[%s12984_s6 + $0x188] ss:$24 sps:$4 sm:$0xff]  }
 0x384   : > { %5448 = vmatmul.mubr.bf16.gmra.mxu1 %v14352_v58  ;;  %5264 = vmatprep.mubr.bf16.mxu0 %v12564_v0  ;;  %v4568_v9 = vpop.f32.mrf.mxu0  ;;  %v11863_v58 = vld [vmem:[#allocation8 + $0xa54] ss:$24 sps:$4 sm:$0xff]  }
 0x385   : > { %5457 = vmatprep.mubr.bf16.mxu1 %v14359_v6  ;;  %8031 = vmatpush2.bf16.msra.mxu0 %v11846_v30  ;;  %v14676_v33 = vadd.f32 %v4759_v39, %v4567_v15  ;;  %v4569_v0 = vadd.f32 %v4568_v9, %v14373_v21  ;;  %v4761_v6 = vpop.f32.mrf.mxu1 }
 0x386   : > { %8224 = vmatpush2.bf16.msra.mxu1 %v11849_v19  ;;  %8032 = vmatprep.subr.bf16.mxu0 %v11854_v52  ;;  %v4570_v30 = vpop.f32.mrf.mxu0 }
 0x387   : > { %8225 = vmatprep.subr.bf16.mxu1 %v11857_v16  ;;  %v14679_v1 = vadd.f32 %v4761_v6, %v4569_v0  ;;  %v4571_v4 = vadd.f32 %v4570_v30, %v14377_v41  ;;  %v4763_v19 = vpop.f32.mrf.mxu1 }
 0x388   : > { %v4800_v52 = vpop.f32.mrf.mxu0 }
 0x389   : > { %8033 = vmatpush2.bf16.msra.mxu0 %v11852_v5  ;;  %v14683_v16 = vadd.f32 %v4763_v19, %v4571_v4  ;;  %v4801_v15 = vadd.f32 %v4800_v52, %v14394_v23  ;;  %v14686_v21 = vpop.f32.mrf.mxu1  ;;  %v12566_v5 = vld [vmem:[%s12984_s6 + $0x1bc] ss:$24 sps:$4 sm:$0xff]   ;;  %v12567_v4 = vld [vmem:[%s12984_s6 + $0x1b8] ss:$24 sps:$4 sm:$0xff]  }
 0x38a   : > { %8226 = vmatpush2.bf16.msra.mxu1 %v11855_v31  ;;  %8388 = vmatprep.subr.bf16.mxu0 %v11860_v36  ;;  %v4802_v39 = vpop.f32.mrf.mxu0 }
 0x38b   : > { %5265 = vmatmul.mubr.bf16.gmra.mxu0 %v12565_v34  ;;  %8581 = vmatprep.subr.bf16.mxu1 %v11863_v58  ;;  %v4803_v41 = vadd.f32 %v4802_v39, %v14397_v47  ;;  %v14692_v31 = vpop.f32.mrf.mxu1 }
 0x38c   : > { %5458 = vmatmul.mubr.bf16.gmra.mxu1 %v14380_v40  ;;  %5274 = vmatprep.mubr.bf16.mxu0 %v12566_v5  ;;  %v4804_v36 = vpop.f32.mrf.mxu0 }
 0x38d   : > { %5467 = vmatprep.mubr.bf16.mxu1 %v14388_v29  ;;  %v4805_v9 = vadd.f32 %v4804_v36, %v14400_v49  ;;  %v14695_v58 = vpop.f32.mrf.mxu1  ;;  %v12568_v49 = vld [vmem:[%s12984_s6 + $0x1ec] ss:$24 sps:$4 sm:$0xff]  }
 0x38e   : > { %v4806_v23 = vpop.f32.mrf.mxu0 }
 0x38f   : > { %v14697_v0 = vpack.c.bf16 %v4805_v9, %v4801_v15  ;;  %v4807_v40 = vadd.f32 %v4806_v23, %v14407_v10  ;;  %v14700_v6 = vpop.f32.mrf.mxu1  ;;  %v12569_v23 = vld [vmem:[%s12984_s6 + $0x1e8] ss:$24 sps:$4 sm:$0xff]  }
 0x390   : > { %v4810_v30 = vpop.f32.mrf.mxu0 }
 0x391   : > { %17069 = vst [vmem:[#allocation112_spill] sm:$0xff] %v14697_v0  ;;  %v14703_v29 = vpack.c.bf16 %v4807_v40, %v4803_v41  ;;  %v4811_v47 = vadd.f32 %v4810_v30, %v14416_v53  ;;  %v14706_v19 = vpop.f32.mrf.mxu1  ;;  %v17105_v0 = vld [vmem:[#allocation89_spill] sm:$0xff] }
 0x392   : > { %v4812_v52 = vpop.f32.mrf.mxu0 }
 0x393   : > { %5275 = vmatmul.mubr.bf16.gmra.mxu0 %v12567_v4  ;;  %17070 = vst [vmem:[#allocation113_spill] sm:$0xff] %v14703_v29  ;;  %v4813_v10 = vadd.f32 %v4812_v52, %v14419_v57  ;;  %v14712_v34 = vpop.f32.mrf.mxu1 }
 0x394   : > { %5468 = vmatmul.mubr.bf16.gmra.mxu1 %v14404_v51  ;;  %5284 = vmatprep.mubr.bf16.mxu0 %v12568_v49  ;;  %v4814_v15 = vpop.f32.mrf.mxu0 }
 0x395   : > { %5477 = vmatprep.mubr.bf16.mxu1 %v14412_v61  ;;  %v4815_v5 = vadd.f32 %v4814_v15, %v14422_v8  ;;  %v14715_v39 = vpop.f32.mrf.mxu1  ;;  %v12570_v8 = vld [vmem:[%s12984_s6 + $0x21c] ss:$24 sps:$4 sm:$0xff]  }
 0x396   : > { %v4816_v53 = vpop.f32.mrf.mxu0 }
 0x397   : > { %v14717_v41 = vpack.c.bf16 %v4815_v5, %v4811_v47  ;;  %v4817_v51 = vadd.f32 %v4816_v53, %v14429_v27  ;;  %v14720_v36 = vpop.f32.mrf.mxu1  ;;  %v12571_v53 = vld [vmem:[%s12984_s6 + $0x218] ss:$24 sps:$4 sm:$0xff]  }
 0x398   : > { %v4820_v9 = vpop.f32.mrf.mxu0 }
 0x399   : > { %17071 = vst [vmem:[#allocation114_spill] sm:$0xff] %v14717_v41  ;;  %v14723_v61 = vpack.c.bf16 %v4817_v51, %v4813_v10  ;;  %v4821_v57 = vadd.f32 %v4820_v9, %v14438_v11  ;;  %v14726_v40 = vpop.f32.mrf.mxu1  ;;  %v17101_v41 = vld [vmem:[#allocation58_spill] sm:$0xff] }
 0x39a   : > { %v4822_v30 = vpop.f32.mrf.mxu0 }
 0x39b   : > { %5285 = vmatmul.mubr.bf16.gmra.mxu0 %v12569_v23  ;;  %17072 = vst [vmem:[#allocation115_spill] sm:$0xff] %v14723_v61  ;;  %v4823_v27 = vadd.f32 %v4822_v30, %v14441_v46  ;;  %v14732_v4 = vpop.f32.mrf.mxu1  ;;  %v17103_v61 = vld [vmem:[#allocation93_spill] sm:$0xff] }
 0x39c   : > { %5478 = vmatmul.mubr.bf16.gmra.mxu1 %v14426_v54  ;;  %5294 = vmatprep.mubr.bf16.mxu0 %v12570_v8  ;;  %v4824_v47 = vpop.f32.mrf.mxu0 }
 0x39d   : > { %5487 = vmatprep.mubr.bf16.mxu1 %v14434_v24  ;;  %v4825_v49 = vadd.f32 %v4824_v47, %v14444_v60  ;;  %v14735_v52 = vpop.f32.mrf.mxu1  ;;  %v12572_v60 = vld [vmem:[%s12984_s6 + $0x24c] ss:$24 sps:$4 sm:$0xff]  }
 0x39e   : > { %v4826_v11 = vpop.f32.mrf.mxu0 }
 0x39f   : > { %v14737_v10 = vpack.c.bf16 %v4825_v49, %v4821_v57  ;;  %v4827_v54 = vadd.f32 %v4826_v11, %v14451_v12  ;;  %v14740_v15 = vpop.f32.mrf.mxu1  ;;  %v12573_v11 = vld [vmem:[%s12984_s6 + $0x248] ss:$24 sps:$4 sm:$0xff]  }
 0x3a0   : > { %v4830_v5 = vpop.f32.mrf.mxu0 }
 0x3a1   : > { %17073 = vst [vmem:[#allocation116_spill] sm:$0xff] %v14737_v10  ;;  %v14743_v24 = vpack.c.bf16 %v4827_v54, %v4823_v27  ;;  %v4831_v46 = vadd.f32 %v4830_v5, %v14460_v43  ;;  %v14746_v51 = vpop.f32.mrf.mxu1 }
 0x3a2   : > { %v4832_v9 = vpop.f32.mrf.mxu0 }
 0x3a3   : > { %5295 = vmatmul.mubr.bf16.gmra.mxu0 %v12571_v53  ;;  %17074 = vst [vmem:[#allocation117_spill] sm:$0xff] %v14743_v24  ;;  %v4833_v12 = vadd.f32 %v4832_v9, %v14463_v13  ;;  %v14752_v23 = vpop.f32.mrf.mxu1 }
 0x3a4   : > { %5488 = vmatmul.mubr.bf16.gmra.mxu1 %v14448_v37  ;;  %5304 = vmatprep.mubr.bf16.mxu0 %v12572_v60  ;;  %v4834_v57 = vpop.f32.mrf.mxu0 }
 0x3a5   : > { %5497 = vmatprep.mubr.bf16.mxu1 %v14456_v56  ;;  %v4835_v8 = vadd.f32 %v4834_v57, %v14466_v18  ;;  %v14755_v30 = vpop.f32.mrf.mxu1  ;;  %v12574_v18 = vld [vmem:[%s12984_s6 + $0x27c] ss:$24 sps:$4 sm:$0xff]  }
 0x3a6   : > { %v4836_v43 = vpop.f32.mrf.mxu0 }
 0x3a7   : > { %v14757_v27 = vpack.c.bf16 %v4835_v8, %v4831_v46  ;;  %v4837_v37 = vadd.f32 %v4836_v43, %v14473_v7  ;;  %v14760_v47 = vpop.f32.mrf.mxu1  ;;  %v12575_v43 = vld [vmem:[%s12984_s6 + $0x278] ss:$24 sps:$4 sm:$0xff]  }
 0x3a8   : > { %v4840_v49 = vpop.f32.mrf.mxu0 }
 0x3a9   : > { %17075 = vst [vmem:[#allocation118_spill] sm:$0xff] %v14757_v27  ;;  %v14763_v56 = vpack.c.bf16 %v4837_v37, %v4833_v12  ;;  %v4841_v13 = vadd.f32 %v4840_v49, %v14482_v48  ;;  %v14766_v54 = vpop.f32.mrf.mxu1  ;;  %v17091_v27 = vld [vmem:[#allocation43_spill] sm:$0xff] }
 0x3aa   : > { %v4842_v5 = vpop.f32.mrf.mxu0 }
 0x3ab   : > { %5305 = vmatmul.mubr.bf16.gmra.mxu0 %v12573_v11  ;;  %17076 = vst [vmem:[#allocation119_spill] sm:$0xff] %v14763_v56  ;;  %v4843_v7 = vadd.f32 %v4842_v5, %v14485_v28  ;;  %v14772_v53 = vpop.f32.mrf.mxu1  ;;  %v17096_v56 = vld [vmem:[#allocation49_spill] sm:$0xff] }
 0x3ac   : > { %5498 = vmatmul.mubr.bf16.gmra.mxu1 %v14470_v55  ;;  %5314 = vmatprep.mubr.bf16.mxu0 %v12574_v18  ;;  %v4844_v46 = vpop.f32.mrf.mxu0 }
 0x3ad   : > { %5507 = vmatprep.mubr.bf16.mxu1 %v14478_v14  ;;  %v4845_v60 = vadd.f32 %v4844_v46, %v14488_v42  ;;  %v14775_v9 = vpop.f32.mrf.mxu1  ;;  %v12576_v42 = vld [vmem:[%s12984_s6 + $0x2ac] ss:$24 sps:$4 sm:$0xff]  }
 0x3ae   : > { %v4846_v48 = vpop.f32.mrf.mxu0  ;;  %v17080_v46 = vld [vmem:[#allocation40_spill] sm:$0xff] }
 0x3af   : > { %v14777_v12 = vpack.c.bf16 %v4845_v60, %v4841_v13  ;;  %v4847_v55 = vadd.f32 %v4846_v48, %v14495_v25  ;;  %v14780_v57 = vpop.f32.mrf.mxu1 }
 0x3b1   : > { %17077 = vst [vmem:[#allocation120_spill] sm:$0xff] %v14777_v12  ;;  %v14783_v14 = vpack.c.bf16 %v4847_v55, %v4843_v7  ;;  %v14786_v37 = vpop.f32.mrf.mxu1  ;;  %v12577_v55 = vld [vmem:[%s12984_s6 + $0x2a8] ss:$24 sps:$4 sm:$0xff]   ;;  %v12579_v12 = vld [vmem:[%s12984_s6 + $0x2d8] ss:$24 sps:$4 sm:$0xff]  }
 0x3b3   : > { %v4850_v8 = vpop.f32.mrf.mxu0  ;;  %5315 = vmatmul.mubr.bf16.gmra.mxu0 %v12575_v43  ;;  %17078 = vst [vmem:[#allocation121_spill] sm:$0xff] %v14783_v14  ;;  %v14792_v11 = vpop.f32.mrf.mxu1 }
 0x3b4   : > { %v4851_v28 = vadd.f32 %v4850_v8, %v14504_v45  ;;  %5508 = vmatmul.mubr.bf16.gmra.mxu1 %v14492_v26  ;;  %5324 = vmatprep.mubr.bf16.mxu0 %v12576_v42  ;;  %v17083_v42 = vld [vmem:[#allocation36_spill] sm:$0xff] }
 0x3b5   : > { %v4852_v49 = vpop.f32.mrf.mxu0  ;;  %5517 = vmatprep.mubr.bf16.mxu1 %v14500_v62  ;;  %v14795_v5 = vpop.f32.mrf.mxu1 }
 0x3b6   : > { %v4853_v25 = vadd.f32 %v4852_v49, %v14507_v2  ;;  %v17082_v2 = vld [vmem:[#allocation39_spill] sm:$0xff]  ;;  %v17084_v49 = vld [vmem:[#allocation37_spill] sm:$0xff] }
 0x3b7   : > { %v4854_v13 = vpop.f32.mrf.mxu0  ;;  %v14800_v60 = vpop.f32.mrf.mxu1 }
 0x3b8   : > { %v4855_v18 = vadd.f32 %v4854_v13, %v14510_v17  ;;  %v12578_v17 = vld [vmem:[%s12984_s6 + $0x2dc] ss:$24 sps:$4 sm:$0xff]  }
 0x3b9   : > { %v4856_v45 = vpop.f32.mrf.mxu0  ;;  %v17085_v13 = vld [vmem:[#allocation42_spill] sm:$0xff] }
 0x3ba   : > { %v14797_v7 = vpack.c.bf16 %v4855_v18, %v4851_v28  ;;  %v4857_v26 = vadd.f32 %v4856_v45, %v17080_v46 }
 0x3bb   : > { %v4860_v48 = vpop.f32.mrf.mxu0  ;;  %5325 = vmatmul.mubr.bf16.gmra.mxu0 %v12577_v55  ;;  %v17086_v55 = vld [vmem:[#allocation46_spill] sm:$0xff] }
 0x3bc   : > { %17079 = vst [vmem:[#allocation122_spill] sm:$0xff] %v14797_v7  ;;  %v14803_v62 = vpack.c.bf16 %v4857_v26, %v4853_v25  ;;  %v4861_v8 = vadd.f32 %v4860_v48, %v17082_v2  ;;  %v14806_v43 = vpop.f32.mrf.mxu1  ;;  %5518 = vmatmul.mubr.bf16.gmra.mxu1 %v17083_v42  ;;  %5334 = vmatprep.mubr.bf16.mxu0 %v12578_v17  ;;  %v17088_v7 = vld [vmem:[#allocation45_spill] sm:$0xff] }
 0x3bd   : > { %v4862_v28 = vpop.f32.mrf.mxu0  ;;  %5527 = vmatprep.mubr.bf16.mxu1 %v17084_v49 }
 0x3be   : > { %17081 = vst [vmem:[#allocation40_spill] sm:$0xff] %v14803_v62  ;;  %v4863_v18 = vadd.f32 %v4862_v28, %v17085_v13  ;;  %v14812_v45 = vpop.f32.mrf.mxu1  ;;  %v17090_v28 = vld [vmem:[#allocation48_spill] sm:$0xff] }
 0x3bf   : > { %v4864_v46 = vpop.f32.mrf.mxu0 }
 0x3c0   : > { %v4865_v25 = vadd.f32 %v4864_v46, %v17086_v55  ;;  %v14815_v26 = vpop.f32.mrf.mxu1  ;;  %v17092_v46 = vld [vmem:[#allocation59_spill] sm:$0xff]  ;;  %v17093_v55 = vld [vmem:[#allocation90_spill] sm:$0xff] }
 0x3c1   : > { %v4866_v48 = vpop.f32.mrf.mxu0 }
 0x3c2   : > { %v14817_v2 = vpack.c.bf16 %v4865_v25, %v4861_v8  ;;  %v4867_v62 = vadd.f32 %v4866_v48, %v17088_v7  ;;  %v14820_v42 = vpop.f32.mrf.mxu1  ;;  %v17094_v25 = vld [vmem:[#allocation52_spill] sm:$0xff] }
 0x3c3   : > { %v4870_v17 = vpop.f32.mrf.mxu0  ;;  %5335 = vmatmul.mubr.bf16.gmra.mxu0 %v12579_v12 }
 0x3c4   : > { %17087 = vst [vmem:[#allocation39_spill] sm:$0xff] %v14817_v2  ;;  %v14823_v49 = vpack.c.bf16 %v4867_v62, %v4863_v18  ;;  %v4871_v13 = vadd.f32 %v4870_v17, %v17090_v28  ;;  %v14826_v14 = vpop.f32.mrf.mxu1  ;;  %5528 = vmatmul.mubr.bf16.gmra.mxu1 %v17091_v27  ;;  %8034 = vmatprep.mubr.bf16.mxu0 %v17092_v46  ;;  %v11858_v17 = vld [vmem:[#allocation8 + $0x750] ss:$24 sps:$4 sm:$0xff]  }
 0x3c5   : > { %8227 = vmatprep.mubr.bf16.mxu1 %v17093_v55  ;;  %v4872_v8 = vpop.f32.mrf.mxu0  ;;  %v11861_v46 = vld [vmem:[#allocation8 + $0xa50] ss:$24 sps:$4 sm:$0xff]   ;;  %v11866_v55 = vld [vmem:[#allocation8 + $0x724] ss:$24 sps:$4 sm:$0xff]  }
 0x3c6   : > { %17089 = vst [vmem:[#allocation36_spill] sm:$0xff] %v14823_v49  ;;  %v4873_v7 = vadd.f32 %v4872_v8, %v17094_v25  ;;  %v14832_v48 = vpop.f32.mrf.mxu1  ;;  %v17099_v49 = vld [vmem:[#allocation51_spill] sm:$0xff] }
 0x3c7   : > { %17095 = vst [vmem:[#allocation37_spill] sm:$0xff] %v14832_v48  ;;  %v4874_v2 = vpop.f32.mrf.mxu0  ;;  %v11869_v8 = vld [vmem:[#allocation8 + $0xa24] ss:$24 sps:$4 sm:$0xff]  }
 0x3c8   : > { %v4875_v12 = vadd.f32 %v4874_v2, %v17096_v56  ;;  %v14835_v62 = vpop.f32.mrf.mxu1 }
 0x3c9   : > { %17097 = vst [vmem:[#allocation42_spill] sm:$0xff] %v14835_v62  ;;  %v4876_v18 = vpop.f32.mrf.mxu0 }
 0x3ca   : > { %v14837_v28 = vpack.c.bf16 %v4875_v12, %v4871_v13  ;;  %v4877_v27 = vadd.f32 %v4876_v18, %v17099_v49  ;;  %v14840_v10 = vpop.f32.mrf.mxu1  ;;  %v17106_v13 = vld [vmem:[#allocation61_spill] sm:$0xff]  ;;  %v17107_v12 = vld [vmem:[#allocation62_spill] sm:$0xff] }
 0x3cb   : > { %17100 = vst [vmem:[#allocation45_spill] sm:$0xff] %v14840_v10  ;;  %v4880_v24 = vpop.f32.mrf.mxu0  ;;  %8035 = vmatmul.mubr.bf16.vlgmr.msra.gmra.mxu0 %v17101_v41  ;;  %v11864_v18 = vld [vmem:[#allocation8 + $0x720] ss:$24 sps:$4 sm:$0xff]  }
 0x3cc   : > { %17098 = vst [vmem:[#allocation46_spill] sm:$0xff] %v14837_v28  ;;  %v14843_v25 = vpack.c.bf16 %v4877_v27, %v4873_v7  ;;  %v4881_v56 = vadd.f32 %v4880_v24, %v17103_v61  ;;  %v14846_v2 = vpop.f32.mrf.mxu1  ;;  %8228 = vmatmul.mubr.bf16.vlgmr.msra.gmra.mxu1 %v17105_v0  ;;  %8044 = vmatprep.mubr.bf16.mxu0 %v17106_v13  ;;  %v17108_v28 = vld [vmem:[#allocation94_spill] sm:$0xff]  ;;  %v17110_v41 = vld [vmem:[#allocation95_spill] sm:$0xff] }
 0x3cd   : > { %17104 = vst [vmem:[#allocation43_spill] sm:$0xff] %v14846_v2  ;;  %8237 = vmatprep.mubr.bf16.mxu1 %v17107_v12  ;;  %8389 = vmatpush1.bf16.msra.mxu0 %v11858_v17  ;;  %v4882_v49 = vpop.f32.mrf.mxu0  ;;  %v11867_v7 = vld [vmem:[#allocation8 + $0xa20] ss:$24 sps:$4 sm:$0xff]   ;;  %v11872_v27 = vld [vmem:[#allocation8 + $0x6f4] ss:$24 sps:$4 sm:$0xff]  }
 0x3ce   : > { %17102 = vst [vmem:[#allocation48_spill] sm:$0xff] %v14843_v25  ;;  %v4883_v10 = vadd.f32 %v4882_v49, %v17108_v28  ;;  %v14852_v62 = vpop.f32.mrf.mxu1  ;;  %8582 = vmatpush1.bf16.msra.mxu1 %v11861_v46  ;;  %8390 = vmatprep.subr.bf16.mxu0 %v11866_v55  ;;  %v11875_v24 = vld [vmem:[#allocation8 + $0x9f4] ss:$24 sps:$4 sm:$0xff]   ;;  %v11870_v17 = vld [vmem:[#allocation8 + $0x6f0] ss:$24 sps:$4 sm:$0xff]  }
 0x3cf   : > { %17109 = vst [vmem:[#allocation52_spill] sm:$0xff] %v14852_v62  ;;  %v4884_v61 = vpop.f32.mrf.mxu0  ;;  %8583 = vmatprep.subr.bf16.mxu1 %v11869_v8  ;;  %v17113_v2 = vld [vmem:[#allocation96_spill] sm:$0xff] }
 0x3d0   : > { %v4885_v0 = vadd.f32 %v4884_v61, %v17110_v41  ;;  %v14855_v25 = vpop.f32.mrf.mxu1  ;;  %v11873_v46 = vld [vmem:[#allocation8 + $0x9f0] ss:$24 sps:$4 sm:$0xff]   ;;  %v11878_v55 = vld [vmem:[#allocation8 + $0x6c4] ss:$24 sps:$4 sm:$0xff]  }
 0x3d1   : > { %17111 = vst [vmem:[#allocation49_spill] sm:$0xff] %v14855_v25  ;;  %v4886_v13 = vpop.f32.mrf.mxu0  ;;  %8391 = vmatpush1.bf16.msra.mxu0 %v11864_v18  ;;  %v17115_v8 = vld [vmem:[#allocation60_spill] sm:$0xff]  ;;  %v17117_v25 = vld [vmem:[#allocation97_spill] sm:$0xff] }
 0x3d2   : > { %v14857_v12 = vpack.c.bf16 %v4885_v0, %v4881_v56  ;;  %v4887_v28 = vadd.f32 %v4886_v13, %v17113_v2  ;;  %v14860_v49 = vpop.f32.mrf.mxu1  ;;  %8584 = vmatpush1.bf16.msra.mxu1 %v11867_v7  ;;  %8392 = vmatprep.subr.bf16.mxu0 %v11872_v27  ;;  %v11881_v41 = vld [vmem:[#allocation8 + $0x9c4] ss:$24 sps:$4 sm:$0xff]   ;;  %v17121_v2 = vld [vmem:[#allocation65_spill] sm:$0xff]  ;;  %v11876_v7 = vld [vmem:[#allocation8 + $0x6c0] ss:$24 sps:$4 sm:$0xff]  }
 0x3d3   : > { %17114 = vst [vmem:[#allocation93_spill] sm:$0xff] %v14860_v49  ;;  %v4890_v62 = vpop.f32.mrf.mxu0  ;;  %8045 = vmatmul.mubr.bf16.gmra.mxu0 %v17115_v8  ;;  %8585 = vmatprep.subr.bf16.mxu1 %v11875_v24  ;;  %v17119_v0 = vld [vmem:[#allocation91_spill] sm:$0xff]  ;;  %v17120_v56 = vld [vmem:[#allocation64_spill] sm:$0xff]  ;;  %v17122_v27 = vld [vmem:[#allocation98_spill] sm:$0xff] }
 0x3d4   : > { %17112 = vst [vmem:[#allocation51_spill] sm:$0xff] %v14857_v12  ;;  %v14863_v61 = vpack.c.bf16 %v4887_v28, %v4883_v10  ;;  %v4891_v18 = vadd.f32 %v4890_v62, %v17117_v25  ;;  %v14866_v48 = vpop.f32.mrf.mxu1  ;;  %8238 = vmatmul.mubr.bf16.gmra.mxu1 %v17119_v0  ;;  %8054 = vmatprep.mubr.bf16.mxu0 %v17120_v56  ;;  %v11879_v10 = vld [vmem:[#allocation8 + $0x9c0] ss:$24 sps:$4 sm:$0xff]   ;;  %v11884_v24 = vld [vmem:[#allocation8 + $0x694] ss:$24 sps:$4 sm:$0xff]  }
 0x3d5   : > { %17118 = vst [vmem:[#allocation95_spill] sm:$0xff] %v14866_v48  ;;  %8247 = vmatprep.mubr.bf16.mxu1 %v17121_v2  ;;  %v4892_v13 = vpop.f32.mrf.mxu0  ;;  %8393 = vmatpush1.bf16.msra.mxu0 %v11870_v17  ;;  %v11887_v25 = vld [vmem:[#allocation8 + $0x994] ss:$24 sps:$4 sm:$0xff]   ;;  %v17124_v28 = vld [vmem:[#allocation99_spill] sm:$0xff]  ;;  %v11882_v2 = vld [vmem:[#allocation8 + $0x690] ss:$24 sps:$4 sm:$0xff]  }
 0x3d6   : > { %17116 = vst [vmem:[#allocation94_spill] sm:$0xff] %v14863_v61  ;;  %v4893_v12 = vadd.f32 %v4892_v13, %v17122_v27  ;;  %v14872_v8 = vpop.f32.mrf.mxu1  ;;  %8586 = vmatpush1.bf16.msra.mxu1 %v11873_v46  ;;  %8394 = vmatprep.subr.bf16.mxu0 %v11878_v55  ;;  %v17127_v48 = vld [vmem:[#allocation100_spill] sm:$0xff] }
 0x3d7   : > { %17123 = vst [vmem:[#allocation96_spill] sm:$0xff] %v14872_v8  ;;  %v4894_v62 = vpop.f32.mrf.mxu0  ;;  %8587 = vmatprep.subr.bf16.mxu1 %v11881_v41  ;;  %v11885_v46 = vld [vmem:[#allocation8 + $0x990] ss:$24 sps:$4 sm:$0xff]   ;;  %v11890_v55 = vld [vmem:[#allocation8 + $0x664] ss:$24 sps:$4 sm:$0xff]  }
 0x3d8   : > { %v4895_v0 = vadd.f32 %v4894_v62, %v17124_v28  ;;  %v14875_v61 = vpop.f32.mrf.mxu1  ;;  %v17129_v41 = vld [vmem:[#allocation63_spill] sm:$0xff] }
 0x3d9   : > { %17125 = vst [vmem:[#allocation97_spill] sm:$0xff] %v14875_v61  ;;  %v4896_v56 = vpop.f32.mrf.mxu0  ;;  %8395 = vmatpush1.bf16.msra.mxu0 %v11876_v7  ;;  %v11893_v62 = vld [vmem:[#allocation8 + $0x964] ss:$24 sps:$4 sm:$0xff]   ;;  %v17131_v61 = vld [vmem:[#allocation101_spill] sm:$0xff] }
 0x3da   : > { %v14877_v17 = vpack.c.bf16 %v4895_v0, %v4891_v18  ;;  %v4897_v13 = vadd.f32 %v4896_v56, %v17127_v48  ;;  %v14880_v27 = vpop.f32.mrf.mxu1  ;;  %8588 = vmatpush1.bf16.msra.mxu1 %v11879_v10  ;;  %8396 = vmatprep.subr.bf16.mxu0 %v11884_v24  ;;  %v17133_v18 = vld [vmem:[#allocation92_spill] sm:$0xff]  ;;  %v17134_v48 = vld [vmem:[#allocation67_spill] sm:$0xff]  ;;  %v17135_v0 = vld [vmem:[#allocation69_spill] sm:$0xff] }
 0x3db   : > { %17128 = vst [vmem:[#allocation99_spill] sm:$0xff] %v14880_v27  ;;  %v4900_v8 = vpop.f32.mrf.mxu0  ;;  %8055 = vmatmul.mubr.bf16.gmra.mxu0 %v17129_v41  ;;  %8589 = vmatprep.subr.bf16.mxu1 %v11887_v25  ;;  %v11888_v10 = vld [vmem:[#allocation8 + $0x660] ss:$24 sps:$4 sm:$0xff]   ;;  %v11896_v25 = vld [vmem:[#allocation8 + $0x634] ss:$24 sps:$4 sm:$0xff]  }
 0x3dc   : > { %17126 = vst [vmem:[#allocation98_spill] sm:$0xff] %v14877_v17  ;;  %v14883_v28 = vpack.c.bf16 %v4897_v13, %v4893_v12  ;;  %v4901_v7 = vadd.f32 %v4900_v8, %v17131_v61  ;;  %v14886_v49 = vpop.f32.mrf.mxu1  ;;  %8248 = vmatmul.mubr.bf16.gmra.mxu1 %v17133_v18  ;;  %8064 = vmatprep.mubr.bf16.mxu0 %v17134_v48  ;;  %v17136_v24 = vld [vmem:[#allocation102_spill] sm:$0xff]  ;;  %v17138_v13 = vld [vmem:[#allocation103_spill] sm:$0xff] }
 0x3dd   : > { %17132 = vst [vmem:[#allocation101_spill] sm:$0xff] %v14886_v49  ;;  %8257 = vmatprep.mubr.bf16.mxu1 %v17135_v0  ;;  %v4902_v56 = vpop.f32.mrf.mxu0  ;;  %8397 = vmatpush1.bf16.msra.mxu0 %v11882_v2  ;;  %v11891_v12 = vld [vmem:[#allocation8 + $0x960] ss:$24 sps:$4 sm:$0xff]   ;;  %v11899_v61 = vld [vmem:[#allocation8 + $0x934] ss:$24 sps:$4 sm:$0xff]  }
 0x3de   : > { %17130 = vst [vmem:[#allocation100_spill] sm:$0xff] %v14883_v28  ;;  %v4903_v17 = vadd.f32 %v4902_v56, %v17136_v24  ;;  %v14892_v41 = vpop.f32.mrf.mxu1  ;;  %8590 = vmatpush1.bf16.msra.mxu1 %v11885_v46  ;;  %8398 = vmatprep.subr.bf16.mxu0 %v11890_v55  ;;  %v11894_v0 = vld [vmem:[#allocation8 + $0x630] ss:$24 sps:$4 sm:$0xff]   ;;  %v11902_v55 = vld [vmem:[#allocation8 + $0x604] ss:$24 sps:$4 sm:$0xff]  }
 0x3df   : > { %17137 = vst [vmem:[#allocation102_spill] sm:$0xff] %v14892_v41  ;;  %v4904_v8 = vpop.f32.mrf.mxu0  ;;  %8591 = vmatprep.subr.bf16.mxu1 %v11893_v62  ;;  %v17141_v49 = vld [vmem:[#allocation104_spill] sm:$0xff]  ;;  %v17142_v62 = vld [vmem:[#allocation66_spill] sm:$0xff] }
 0x3e0   : > { %v4905_v18 = vadd.f32 %v4904_v8, %v17138_v13  ;;  %v14895_v28 = vpop.f32.mrf.mxu1  ;;  %v11897_v46 = vld [vmem:[#allocation8 + $0x930] ss:$24 sps:$4 sm:$0xff]   ;;  %v11905_v8 = vld [vmem:[#allocation8 + $0x904] ss:$24 sps:$4 sm:$0xff]  }
 0x3e1   : > { %17139 = vst [vmem:[#allocation103_spill] sm:$0xff] %v14895_v28  ;;  %v4906_v48 = vpop.f32.mrf.mxu0  ;;  %8399 = vmatpush1.bf16.msra.mxu0 %v11888_v10  ;;  %v17144_v28 = vld [vmem:[#allocation105_spill] sm:$0xff] }
 0x3e2   : > { %v14897_v2 = vpack.c.bf16 %v4905_v18, %v4901_v7  ;;  %v4907_v56 = vadd.f32 %v4906_v48, %v17141_v49  ;;  %v14900_v24 = vpop.f32.mrf.mxu1  ;;  %8592 = vmatpush1.bf16.msra.mxu1 %v11891_v12  ;;  %8400 = vmatprep.subr.bf16.mxu0 %v11896_v25  ;;  %v17145_v7 = vld [vmem:[#allocation68_spill] sm:$0xff]  ;;  %v17147_v18 = vld [vmem:[#allocation73_spill] sm:$0xff]  ;;  %v11900_v12 = vld [vmem:[#allocation8 + $0x600] ss:$24 sps:$4 sm:$0xff]  }
 0x3e3   : > { %v4910_v41 = vpop.f32.mrf.mxu0  ;;  %8065 = vmatmul.mubr.bf16.gmra.mxu0 %v17142_v62  ;;  %8593 = vmatprep.subr.bf16.mxu1 %v11899_v61  ;;  %v17146_v49 = vld [vmem:[#allocation72_spill] sm:$0xff] }
 0x3e4   : > { %17140 = vst [vmem:[#allocation123_spill] sm:$0xff] %v14897_v2  ;;  %v14903_v13 = vpack.c.bf16 %v4907_v56, %v4903_v17  ;;  %v4911_v10 = vadd.f32 %v4910_v41, %v17144_v28  ;;  %v14906_v27 = vpop.f32.mrf.mxu1  ;;  %8258 = vmatmul.mubr.bf16.gmra.mxu1 %v17145_v7  ;;  %8074 = vmatprep.mubr.bf16.mxu0 %v17146_v49  ;;  %v11903_v17 = vld [vmem:[#allocation8 + $0x900] ss:$24 sps:$4 sm:$0xff]   ;;  %v11908_v61 = vld [vmem:[#allocation8 + $0x8d4] ss:$24 sps:$4 sm:$0xff]  }
 0x3e5   : > { %8267 = vmatprep.mubr.bf16.mxu1 %v17147_v18  ;;  %v4912_v48 = vpop.f32.mrf.mxu0  ;;  %8401 = vmatpush1.bf16.msra.mxu0 %v11894_v0  ;;  %v11911_v28 = vld [vmem:[#allocation8 + $0xbd4] ss:$24 sps:$4 sm:$0xff]   ;;  %v11906_v18 = vld [vmem:[#allocation8 + $0x8d0] ss:$24 sps:$4 sm:$0xff]  }
 0x3e6   : > { %17143 = vst [vmem:[#allocation104_spill] sm:$0xff] %v14903_v13  ;;  %v4913_v25 = vadd.f32 %v4912_v48, %v14612_v38  ;;  %v14912_v62 = vpop.f32.mrf.mxu1  ;;  %8594 = vmatpush1.bf16.msra.mxu1 %v11897_v46  ;;  %8402 = vmatprep.subr.bf16.mxu0 %v11902_v55  ;;  %v17151_v2 = vld [vmem:[#allocation106_spill] sm:$0xff]  ;;  %v11909_v46 = vld [vmem:[#allocation8 + $0xbd0] ss:$24 sps:$4 sm:$0xff]  }
 0x3e7   : > { %17148 = vst [vmem:[#allocation105_spill] sm:$0xff] %v14912_v62  ;;  %v4914_v41 = vpop.f32.mrf.mxu0  ;;  %8595 = vmatprep.subr.bf16.mxu1 %v11905_v8  ;;  %v11914_v55 = vld [vmem:[#allocation8 + $0x8a4] ss:$24 sps:$4 sm:$0xff]  }
 0x3e8   : > { %v4915_v56 = vadd.f32 %v4914_v41, %v14615_v3  ;;  %v14915_v7 = vpop.f32.mrf.mxu1  ;;  %v17152_v8 = vld [vmem:[#allocation70_spill] sm:$0xff] }
 0x3e9   : > { %17149 = vst [vmem:[#allocation124_spill] sm:$0xff] %v14915_v7  ;;  %v4916_v49 = vpop.f32.mrf.mxu0  ;;  %8403 = vmatpush1.bf16.msra.mxu0 %v11900_v12  ;;  %v11917_v3 = vld [vmem:[#allocation8 + $0xba4] ss:$24 sps:$4 sm:$0xff]  }
 0x3ea   : > { %v14917_v0 = vpack.c.bf16 %v4915_v56, %v4911_v10  ;;  %v4917_v38 = vadd.f32 %v4916_v49, %v17151_v2  ;;  %v14920_v48 = vpop.f32.mrf.mxu1  ;;  %8596 = vmatpush1.bf16.msra.mxu1 %v11903_v17  ;;  %8404 = vmatprep.subr.bf16.mxu0 %v11908_v61  ;;  %v17154_v7 = vld [vmem:[#allocation107_spill] sm:$0xff]  ;;  %v17156_v2 = vld [vmem:[#allocation78_spill] sm:$0xff] }
 0x3eb   : > { %v4920_v13 = vpop.f32.mrf.mxu0  ;;  %8075 = vmatmul.mubr.bf16.gmra.mxu0 %v17152_v8  ;;  %8597 = vmatprep.subr.bf16.mxu1 %v11911_v28  ;;  %v17155_v10 = vld [vmem:[#allocation71_spill] sm:$0xff]  ;;  %v11920_v28 = vld [vmem:[#allocation8 + $0x874] ss:$24 sps:$4 sm:$0xff]  }
 0x3ec   : > { %17150 = vst [vmem:[#allocation125_spill] sm:$0xff] %v14917_v0  ;;  %v14923_v41 = vpack.c.bf16 %v4917_v38, %v4913_v25  ;;  %v4921_v12 = vadd.f32 %v4920_v13, %v17154_v7  ;;  %v14926_v62 = vpop.f32.mrf.mxu1  ;;  %8268 = vmatmul.mubr.bf16.gmra.mxu1 %v17155_v10  ;;  %8084 = vmatprep.mubr.bf16.mxu0 %v17156_v2  ;;  %v17157_v49 = vld [vmem:[#allocation75_spill] sm:$0xff]  ;;  %v11923_v7 = vld [vmem:[#allocation8 + $0xb74] ss:$24 sps:$4 sm:$0xff]  }
 0x3ed   : > { %8277 = vmatprep.mubr.bf16.mxu1 %v17157_v49  ;;  %v4922_v17 = vpop.f32.mrf.mxu0  ;;  %8405 = vmatpush2.bf16.msra.mxu0 %v11906_v18  ;;  %v11912_v61 = vld [vmem:[#allocation8 + $0x8a0] ss:$24 sps:$4 sm:$0xff]   ;;  %v11918_v49 = vld [vmem:[#allocation8 + $0x870] ss:$24 sps:$4 sm:$0xff]  }
 0x3ee   : > { %17153 = vst [vmem:[#allocation106_spill] sm:$0xff] %v14923_v41  ;;  %v4923_v56 = vadd.f32 %v4922_v17, %v14628_v35  ;;  %v14932_v8 = vpop.f32.mrf.mxu1  ;;  %8598 = vmatpush2.bf16.msra.mxu1 %v11909_v46  ;;  %8406 = vmatprep.subr.bf16.mxu0 %v11914_v55  ;;  %v11915_v25 = vld [vmem:[#allocation8 + $0xba0] ss:$24 sps:$4 sm:$0xff]   ;;  %v17161_v0 = vld [vmem:[#allocation108_spill] sm:$0xff] }
 0x3ef   : > { %17158 = vst [vmem:[#allocation107_spill] sm:$0xff] %v14932_v8  ;;  %v4924_v13 = vpop.f32.mrf.mxu0  ;;  %8599 = vmatprep.subr.bf16.mxu1 %v11917_v3  ;;  %v11921_v46 = vld [vmem:[#allocation8 + $0xb70] ss:$24 sps:$4 sm:$0xff]   ;;  %v11926_v55 = vld [vmem:[#allocation8 + $0x844] ss:$24 sps:$4 sm:$0xff]  }
 0x3f0   : > { %v4925_v38 = vadd.f32 %v4924_v13, %v14631_v63  ;;  %v14935_v10 = vpop.f32.mrf.mxu1  ;;  %v17162_v3 = vld [vmem:[#allocation76_spill] sm:$0xff] }
 0x3f1   : > { %17159 = vst [vmem:[#allocation126_spill] sm:$0xff] %v14935_v10  ;;  %v4926_v2 = vpop.f32.mrf.mxu0  ;;  %8407 = vmatpush2.bf16.msra.mxu0 %v11912_v61  ;;  %v11929_v63 = vld [vmem:[#allocation8 + $0xb44] ss:$24 sps:$4 sm:$0xff]   ;;  %v17164_v10 = vld [vmem:[#allocation109_spill] sm:$0xff] }
 0x3f2   : > { %v14937_v18 = vpack.c.bf16 %v4925_v38, %v4921_v12  ;;  %v4927_v35 = vadd.f32 %v4926_v2, %v17161_v0  ;;  %v14940_v17 = vpop.f32.mrf.mxu1  ;;  %8600 = vmatpush2.bf16.msra.mxu1 %v11915_v25  ;;  %8408 = vmatprep.subr.bf16.mxu0 %v11920_v28  ;;  %v17165_v12 = vld [vmem:[#allocation74_spill] sm:$0xff]  ;;  %v17166_v0 = vld [vmem:[#allocation84_spill] sm:$0xff]  ;;  %v17167_v2 = vld [vmem:[#allocation79_spill] sm:$0xff] }
 0x3f3   : > { %v4930_v41 = vpop.f32.mrf.mxu0  ;;  %8085 = vmatmul.mubr.bf16.gmra.mxu0 %v17162_v3  ;;  %8601 = vmatprep.subr.bf16.mxu1 %v11923_v7  ;;  %v11924_v28 = vld [vmem:[#allocation8 + $0x840] ss:$24 sps:$4 sm:$0xff]   ;;  %v11932_v7 = vld [vmem:[#allocation8 + $0x814] ss:$24 sps:$4 sm:$0xff]  }
 0x3f4   : > { %17160 = vst [vmem:[#allocation127_spill] sm:$0xff] %v14937_v18  ;;  %v14943_v13 = vpack.c.bf16 %v4927_v35, %v4923_v56  ;;  %v4931_v61 = vadd.f32 %v4930_v41, %v17164_v10  ;;  %v14946_v8 = vpop.f32.mrf.mxu1  ;;  %8278 = vmatmul.mubr.bf16.gmra.mxu1 %v17165_v12  ;;  %8094 = vmatprep.mubr.bf16.mxu0 %v17166_v0  ;;  %v11927_v56 = vld [vmem:[#allocation8 + $0xb40] ss:$24 sps:$4 sm:$0xff]   ;;  %v11935_v10 = vld [vmem:[#allocation8 + $0xb14] ss:$24 sps:$4 sm:$0xff]  }
 0x3f5   : > { %8287 = vmatprep.mubr.bf16.mxu1 %v17167_v2  ;;  %v4932_v25 = vpop.f32.mrf.mxu0  ;;  %8409 = vmatpush2.bf16.msra.mxu0 %v11918_v49  ;;  %v11930_v2 = vld [vmem:[#allocation8 + $0x810] ss:$24 sps:$4 sm:$0xff]   ;;  %v17171_v18 = vld [vmem:[#allocation110_spill] sm:$0xff] }
 0x3f6   : > { %17163 = vst [vmem:[#allocation108_spill] sm:$0xff] %v14943_v13  ;;  %v4933_v38 = vadd.f32 %v4932_v25, %v14644_v22  ;;  %v14952_v3 = vpop.f32.mrf.mxu1  ;;  %8602 = vmatpush2.bf16.msra.mxu1 %v11921_v46  ;;  %8410 = vmatprep.subr.bf16.mxu0 %v11926_v55  ;;  %v11933_v46 = vld [vmem:[#allocation8 + $0xb10] ss:$24 sps:$4 sm:$0xff]   ;;  %v11938_v55 = vld [vmem:[#allocation8 + $0x7e4] ss:$24 sps:$4 sm:$0xff]  }
 0x3f7   : > { %17168 = vst [vmem:[#allocation109_spill] sm:$0xff] %v14952_v3  ;;  %v4934_v41 = vpop.f32.mrf.mxu0  ;;  %8603 = vmatprep.subr.bf16.mxu1 %v11929_v63  ;;  %v17172_v63 = vld [vmem:[#allocation82_spill] sm:$0xff] }
 0x3f8   : > { %v4935_v35 = vadd.f32 %v4934_v41, %v14647_v59  ;;  %v14955_v12 = vpop.f32.mrf.mxu1  ;;  %v11941_v59 = vld [vmem:[#allocation8 + $0xae4] ss:$24 sps:$4 sm:$0xff]  }
 0x3f9   : > { %17169 = vst [vmem:[#allocation128_spill] sm:$0xff] %v14955_v12  ;;  %v4936_v0 = vpop.f32.mrf.mxu0  ;;  %8411 = vmatpush2.bf16.msra.mxu0 %v11924_v28  ;;  %v17174_v12 = vld [vmem:[#allocation111_spill] sm:$0xff] }
 0x3fa   : > { %v14957_v49 = vpack.c.bf16 %v4935_v35, %v4931_v61  ;;  %v4937_v22 = vadd.f32 %v4936_v0, %v17171_v18  ;;  %v14960_v25 = vpop.f32.mrf.mxu1  ;;  %8604 = vmatpush2.bf16.msra.mxu1 %v11927_v56  ;;  %8412 = vmatprep.subr.bf16.mxu0 %v11932_v7  ;;  %v17175_v61 = vld [vmem:[#allocation77_spill] sm:$0xff]  ;;  %v17176_v18 = vld [vmem:[#allocation87_spill] sm:$0xff] }
 0x3fb   : > { %v4940_v13 = vpop.f32.mrf.mxu0  ;;  %8095 = vmatmul.mubr.bf16.gmra.mxu0 %v17172_v63  ;;  %8605 = vmatprep.subr.bf16.mxu1 %v11935_v10  ;;  %v17177_v0 = vld [vmem:[#allocation81_spill] sm:$0xff]  ;;  %v11936_v7 = vld [vmem:[#allocation8 + $0x7e0] ss:$24 sps:$4 sm:$0xff]  }
 0x3fc   : > { %17170 = vst [vmem:[#allocation129_spill] sm:$0xff] %v14957_v49  ;;  %v14963_v41 = vpack.c.bf16 %v4937_v22, %v4933_v38  ;;  %v4941_v28 = vadd.f32 %v4940_v13, %v17174_v12  ;;  %v14966_v3 = vpop.f32.mrf.mxu1  ;;  %8288 = vmatmul.mubr.bf16.gmra.mxu1 %v17175_v61  ;;  %8104 = vmatprep.mubr.bf16.mxu0 %v17176_v18  ;;  %v11939_v38 = vld [vmem:[#allocation8 + $0xae0] ss:$24 sps:$4 sm:$0xff]   ;;  %v11944_v10 = vld [vmem:[#allocation8 + $0x7b4] ss:$24 sps:$4 sm:$0xff]  }
 0x3fd   : > { %8297 = vmatprep.mubr.bf16.mxu1 %v17177_v0  ;;  %v4942_v56 = vpop.f32.mrf.mxu0  ;;  %8413 = vmatpush2.bf16.msra.mxu0 %v11930_v2  ;;  %v11947_v12 = vld [vmem:[#allocation8 + $0xab4] ss:$24 sps:$4 sm:$0xff]   ;;  %v11942_v0 = vld [vmem:[#allocation8 + $0x7b0] ss:$24 sps:$4 sm:$0xff]  }
 0x3fe   : > { %17173 = vst [vmem:[#allocation110_spill] sm:$0xff] %v14963_v41  ;;  %v4943_v35 = vadd.f32 %v4942_v56, %v14660_v44  ;;  %v14972_v63 = vpop.f32.mrf.mxu1  ;;  %8606 = vmatpush2.bf16.msra.mxu1 %v11933_v46  ;;  %8414 = vmatprep.subr.bf16.mxu0 %v11938_v55  ;;  %v11945_v46 = vld [vmem:[#allocation8 + $0xab0] ss:$24 sps:$4 sm:$0xff]   ;;  %v11950_v55 = vld [vmem:[#allocation8 + $0x784] ss:$24 sps:$4 sm:$0xff]  }
 0x3ff   : > { %v4944_v13 = vpop.f32.mrf.mxu0  ;;  %8607 = vmatprep.subr.bf16.mxu1 %v11941_v59  ;;  %v17180_v59 = vld [vmem:[#allocation86_spill] sm:$0xff] }
 0x400   : > { %v4945_v22 = vadd.f32 %v4944_v13, %v14663_v50  ;;  %v14975_v61 = vpop.f32.mrf.mxu1  ;;  %v11953_v50 = vld [vmem:[#allocation8 + $0xa84] ss:$24 sps:$4 sm:$0xff]  }
 0x401   : > { %17178 = vst [vmem:[#allocation111_spill] sm:$0xff] %v14975_v61  ;;  %v4946_v18 = vpop.f32.mrf.mxu0  ;;  %8415 = vmatpush2.bf16.msra.mxu0 %v11936_v7  ;;  %v17181_v13 = vld [vmem:[#allocation16_spill] sm:$0xff] }
 0x402   : > { %v14977_v2 = vpack.c.bf16 %v4945_v22, %v4941_v28  ;;  %v4947_v44 = vadd.f32 %v4946_v18, %v14667_v32  ;;  %v14980_v56 = vpop.f32.mrf.mxu1  ;;  %8608 = vmatpush2.bf16.msra.mxu1 %v11939_v38  ;;  %8416 = vmatprep.subr.bf16.mxu0 %v11944_v10  ;;  %v808_v41 = vsub.s32 6, %v17181_v13  ;;  %v17183_v32 = vld [vmem:[#allocation80_spill] sm:$0xff]  ;;  %v17184_v18 = vld [vmem:[#allocation26_spill] sm:$0xff]  ;;  %v17185_v38 = vld [vmem:[#allocation85_spill] sm:$0xff] }
 0x403   : > { %v4950_v49 = vpop.f32.mrf.mxu0  ;;  %8105 = vmatmul.mubr.bf16.gmra.mxu0 %v17180_v59  ;;  %8609 = vmatprep.subr.bf16.mxu1 %v11947_v12  ;;  %v11948_v22 = vld [vmem:[#allocation8 + $0x780] ss:$24 sps:$4 sm:$0xff]   ;;  %v812_v12 = vsub.s32 7, %v17181_v13 }
 0x404   : > { %17179 = vst [vmem:[#allocation130_spill] sm:$0xff] %v14977_v2  ;;  %v14984_v61 = vpack.c.bf16 %v4947_v44, %v4943_v35  ;;  %v4951_v28 = vadd.f32 %v4950_v49, %v14673_v20  ;;  %v14987_v7 = vpop.f32.mrf.mxu1  ;;  %8298 = vmatmul.mubr.bf16.gmra.mxu1 %v17183_v32  ;;  %8114 = vmatprep.mubr.bf16.mxu0 %v17184_v18  ;;  %v11951_v20 = vld [vmem:[#allocation8 + $0xa80] ss:$24 sps:$4 sm:$0xff]   ;;  %v11956_v49 = vld [vmem:[#allocation8 + $0x15c] ss:$24 sps:$4 sm:$0xff]  }
 0x405   : > { %8307 = vmatprep.mubr.bf16.mxu1 %v17185_v38  ;;  %v4952_v10 = vpop.f32.mrf.mxu0  ;;  %8417 = vmatpush2.bf16.msra.mxu0 %v11942_v0  ;;  %v11959_v44 = vld [vmem:[#allocation8 + $0x45c] ss:$24 sps:$4 sm:$0xff]  }
 0x406   : > { %17182 = vst [vmem:[#allocation131_spill] sm:$0xff] %v14984_v61  ;;  %v4953_v59 = vadd.f32 %v4952_v10, %v14676_v33  ;;  %v14994_v2 = vpop.f32.mrf.mxu1  ;;  %8610 = vmatpush2.bf16.msra.mxu1 %v11945_v46  ;;  %8418 = vmatprep.subr.bf16.mxu0 %v11950_v55  ;;  %v12580_v32 = vld [vmem:[#allocation7] sm:$0xff]  ;;  %v17189_v10 = vld [vmem:[#allocation21_spill] sm:$0xff] }
 0x407   : > { %v4954_v35 = vpop.f32.mrf.mxu0  ;;  %8611 = vmatprep.subr.bf16.mxu1 %v11953_v50  ;;  %v14996_v18 = vrot.slane %v12580_v32, %v808_v41  ;;  %v15001_v13 = vrot.slane %v12580_v32, %v812_v12  ;;  %v17191_v32 = vld [vmem:[#allocation83_spill] sm:$0xff] }
 0x408   : > { %v4955_v38 = vadd.f32 %v4954_v35, %v14679_v1  ;;  %v14999_v0 = vpop.f32.mrf.mxu1 }
 0x409   : > { %17186 = vst [vmem:[#allocation132_spill] sm:$0xff] %v14999_v0  ;;  %v4956_v61 = vpop.f32.mrf.mxu0  ;;  %8419 = vmatpush2.bf16.msra.mxu0 %v11948_v22  ;;  %v4994_v1 = vadd.f32 %v14686_v21, %v14996_v18  ;;  %v4998_v12 = vadd.f32 %v14695_v58, %v14996_v18  ;;  %v5000_v21 = vadd.f32 %v14700_v6, %v15001_v13  ;;  %v17196_v6 = vld [vmem:[#allocation17_spill] sm:$0xff] }
 0x40a   : > { %v15003_v33 = vpack.c.bf16 %v4955_v38, %v4951_v28  ;;  %v4957_v46 = vadd.f32 %v4956_v61, %v14683_v16  ;;  %v15006_v55 = vpop.f32.mrf.mxu1  ;;  %8612 = vmatpush2.bf16.msra.mxu1 %v11951_v20  ;;  %8774 = vmatprep.subr.bf16.mxu0 %v11956_v49  ;;  %v17192_v28 = vld [vmem:[#allocation32_spill] sm:$0xff]  ;;  %v17193_v38 = vld [vmem:[#allocation18_spill] sm:$0xff]  ;;  %v4996_v61 = vadd.f32 %v14692_v31, %v15001_v13 }
 0x40b   : > { %17188 = vst [vmem:[#allocation134_spill] sm:$0xff] %v15006_v55  ;;  %v5186_v50 = vpop.f32.mrf.mxu0  ;;  %8115 = vmatmul.mubr.bf16.gmra.mxu0 %v17189_v10  ;;  %8967 = vmatprep.subr.bf16.mxu1 %v11959_v44  ;;  %v5004_v31 = vadd.f32 %v14706_v19, %v14996_v18  ;;  %v17194_v55 = vld [vmem:[#allocation29_spill] sm:$0xff]  ;;  %v5008_v19 = vadd.f32 %v14715_v39, %v14996_v18 }
 0x40c   : > { %17187 = vst [vmem:[#allocation133_spill] sm:$0xff] %v15003_v33  ;;  %v15011_v41 = vpack.c.bf16 %v4957_v46, %v4953_v59  ;;  %v5379_v22 = vpop.f32.mrf.mxu1  ;;  %8308 = vmatmul.mubr.bf16.gmra.mxu1 %v17191_v32  ;;  %8124 = vmatprep.mubr.bf16.mxu0 %v17192_v28  ;;  %v5187_v20 = vadd.f32 %v5186_v50, %v4994_v1 }
 0x40d   : > { %8317 = vmatprep.mubr.bf16.mxu1 %v17193_v38  ;;  %v5188_v16 = vpop.f32.mrf.mxu0 }
 0x40e   : > { %17190 = vst [vmem:[#allocation135_spill] sm:$0xff] %v15011_v41  ;;  %v5381_v49 = vpop.f32.mrf.mxu1  ;;  %v5189_v59 = vadd.f32 %v5188_v16, %v4996_v61  ;;  %v5380_v28 = vadd.f32 %v5379_v22, %v5187_v20  ;;  %v17197_v16 = vld [vmem:[#allocation38_spill] sm:$0xff] }
 0x40f   : > { %v5190_v35 = vpop.f32.mrf.mxu0  ;;  %v17198_v61 = vld [vmem:[#allocation22_spill] sm:$0xff] }
 0x410   : > { %v5191_v44 = vadd.f32 %v5190_v35, %v4998_v12  ;;  %v5383_v46 = vpop.f32.mrf.mxu1  ;;  %v5382_v58 = vadd.f32 %v5381_v49, %v5189_v59 }
 0x411   : > { %v5192_v32 = vpop.f32.mrf.mxu0 }
 0x412   : > { %v5384_v10 = vadd.f32 %v5383_v46, %v5191_v44  ;;  %v5193_v38 = vadd.f32 %v5192_v32, %v5000_v21  ;;  %v5385_v33 = vpop.f32.mrf.mxu1  ;;  %v5006_v32 = vadd.f32 %v14712_v34, %v15001_v13  ;;  %v5014_v34 = vadd.f32 %v14726_v40, %v14996_v18 }
 0x413   : > { %v5196_v41 = vpop.f32.mrf.mxu0  ;;  %8125 = vmatmul.mubr.bf16.gmra.mxu0 %v17194_v55  ;;  %v5018_v40 = vadd.f32 %v14735_v52, %v14996_v18 }
 0x414   : > { %v15025_v50 = vpack.c.bf16 %v5384_v10, %v5380_v28  ;;  %v5386_v1 = vadd.f32 %v5385_v33, %v5193_v38  ;;  %v5389_v0 = vpop.f32.mrf.mxu1  ;;  %8318 = vmatmul.mubr.bf16.gmra.mxu1 %v17196_v6  ;;  %8134 = vmatprep.mubr.bf16.mxu0 %v17197_v16  ;;  %v5197_v20 = vadd.f32 %v5196_v41, %v5004_v31 }
 0x415   : > { %8327 = vmatprep.mubr.bf16.mxu1 %v17198_v61  ;;  %v5198_v22 = vpop.f32.mrf.mxu0  ;;  %v5010_v33 = vadd.f32 %v14720_v36, %v15001_v13  ;;  %v17202_v36 = vld [vmem:[#allocation20_spill] sm:$0xff] }
 0x416   : > { %17195 = vst [vmem:[#allocation29_spill] sm:$0xff] %v15025_v50  ;;  %v15034_v12 = vpack.c.bf16 %v5386_v1, %v5382_v58  ;;  %v5391_v10 = vpop.f32.mrf.mxu1  ;;  %v5199_v38 = vadd.f32 %v5198_v22, %v5006_v32  ;;  %v5390_v59 = vadd.f32 %v5389_v0, %v5197_v20  ;;  %v17200_v58 = vld [vmem:[#allocation35_spill] sm:$0xff]  ;;  %v17203_v22 = vld [vmem:[#allocation44_spill] sm:$0xff] }
 0x417   : > { %v5200_v28 = vpop.f32.mrf.mxu0  ;;  %v17204_v32 = vld [vmem:[#allocation23_spill] sm:$0xff] }
 0x418   : > { %17199 = vst [vmem:[#allocation17_spill] sm:$0xff] %v15034_v12  ;;  %v5201_v49 = vadd.f32 %v5200_v28, %v5008_v19  ;;  %v5393_v35 = vpop.f32.mrf.mxu1  ;;  %v5392_v41 = vadd.f32 %v5391_v10, %v5199_v38  ;;  %v5016_v19 = vadd.f32 %v14732_v4, %v15001_v13  ;;  %v5024_v4 = vadd.f32 %v14746_v51, %v14996_v18 }
 0x419   : > { %v5202_v21 = vpop.f32.mrf.mxu0  ;;  %v5028_v51 = vadd.f32 %v14755_v30, %v14996_v18 }
 0x41a   : > { %v5394_v44 = vadd.f32 %v5393_v35, %v5201_v49  ;;  %v5203_v46 = vadd.f32 %v5202_v21, %v5010_v33  ;;  %v5395_v61 = vpop.f32.mrf.mxu1 }
 0x41b   : > { %v5206_v39 = vpop.f32.mrf.mxu0  ;;  %8135 = vmatmul.mubr.bf16.gmra.mxu0 %v17200_v58 }
 0x41c   : > { %v15041_v31 = vpack.c.bf16 %v5394_v44, %v5390_v59  ;;  %v5396_v1 = vadd.f32 %v5395_v61, %v5203_v46  ;;  %v5399_v16 = vpop.f32.mrf.mxu1  ;;  %8328 = vmatmul.mubr.bf16.gmra.mxu1 %v17202_v36  ;;  %8144 = vmatprep.mubr.bf16.mxu0 %v17203_v22  ;;  %v5207_v10 = vadd.f32 %v5206_v39, %v5014_v34 }
 0x41d   : > { %8337 = vmatprep.mubr.bf16.mxu1 %v17204_v32  ;;  %v5208_v0 = vpop.f32.mrf.mxu0  ;;  %v5020_v61 = vadd.f32 %v14740_v15, %v15001_v13  ;;  %v17208_v15 = vld [vmem:[#allocation19_spill] sm:$0xff] }
 0x41e   : > { %17201 = vst [vmem:[#allocation35_spill] sm:$0xff] %v15041_v31  ;;  %v15050_v20 = vpack.c.bf16 %v5396_v1, %v5392_v41  ;;  %v5401_v28 = vpop.f32.mrf.mxu1  ;;  %v5209_v38 = vadd.f32 %v5208_v0, %v5016_v19  ;;  %v5400_v59 = vadd.f32 %v5399_v16, %v5207_v10  ;;  %v17206_v41 = vld [vmem:[#allocation41_spill] sm:$0xff]  ;;  %v17209_v0 = vld [vmem:[#allocation50_spill] sm:$0xff]  ;;  %v17210_v19 = vld [vmem:[#allocation28_spill] sm:$0xff] }
 0x41f   : > { %v5210_v33 = vpop.f32.mrf.mxu0 }
 0x420   : > { %17205 = vst [vmem:[#allocation20_spill] sm:$0xff] %v15050_v20  ;;  %v5211_v49 = vadd.f32 %v5210_v33, %v5018_v40  ;;  %v5403_v35 = vpop.f32.mrf.mxu1  ;;  %v5402_v34 = vadd.f32 %v5401_v28, %v5209_v38  ;;  %v5026_v40 = vadd.f32 %v14752_v23, %v15001_v13  ;;  %v5034_v23 = vadd.f32 %v14766_v54, %v14996_v18 }
 0x421   : > { %v5212_v21 = vpop.f32.mrf.mxu0  ;;  %v5038_v54 = vadd.f32 %v14775_v9, %v14996_v18 }
 0x422   : > { %v5404_v44 = vadd.f32 %v5403_v35, %v5211_v49  ;;  %v5213_v46 = vadd.f32 %v5212_v21, %v5020_v61  ;;  %v5405_v32 = vpop.f32.mrf.mxu1 }
 0x423   : > { %v5216_v52 = vpop.f32.mrf.mxu0  ;;  %8145 = vmatmul.mubr.bf16.gmra.mxu0 %v17206_v41 }
 0x424   : > { %v15057_v39 = vpack.c.bf16 %v5404_v44, %v5400_v59  ;;  %v5406_v1 = vadd.f32 %v5405_v32, %v5213_v46  ;;  %v5409_v22 = vpop.f32.mrf.mxu1  ;;  %8338 = vmatmul.mubr.bf16.gmra.mxu1 %v17208_v15  ;;  %8154 = vmatprep.mubr.bf16.mxu0 %v17209_v0  ;;  %v5217_v28 = vadd.f32 %v5216_v52, %v5024_v4 }
 0x425   : > { %8347 = vmatprep.mubr.bf16.mxu1 %v17210_v19  ;;  %v5218_v16 = vpop.f32.mrf.mxu0  ;;  %v5030_v32 = vadd.f32 %v14760_v47, %v15001_v13  ;;  %v17214_v47 = vld [vmem:[#allocation24_spill] sm:$0xff] }
 0x426   : > { %17207 = vst [vmem:[#allocation41_spill] sm:$0xff] %v15057_v39  ;;  %v15066_v10 = vpack.c.bf16 %v5406_v1, %v5402_v34  ;;  %v5411_v33 = vpop.f32.mrf.mxu1  ;;  %v5219_v38 = vadd.f32 %v5218_v16, %v5026_v40  ;;  %v5410_v59 = vadd.f32 %v5409_v22, %v5217_v28  ;;  %v17212_v34 = vld [vmem:[#allocation47_spill] sm:$0xff]  ;;  %v17215_v16 = vld [vmem:[#allocation54_spill] sm:$0xff] }
 0x427   : > { %v5220_v61 = vpop.f32.mrf.mxu0  ;;  %v17216_v40 = vld [vmem:[#allocation27_spill] sm:$0xff] }
 0x428   : > { %17211 = vst [vmem:[#allocation19_spill] sm:$0xff] %v15066_v10  ;;  %v5221_v49 = vadd.f32 %v5220_v61, %v5028_v51  ;;  %v5413_v35 = vpop.f32.mrf.mxu1  ;;  %v5412_v4 = vadd.f32 %v5411_v33, %v5219_v38  ;;  %v5036_v51 = vadd.f32 %v14772_v53, %v15001_v13  ;;  %v5044_v53 = vadd.f32 %v14786_v37, %v14996_v18 }
 0x429   : > { %v5222_v21 = vpop.f32.mrf.mxu0  ;;  %v5048_v37 = vadd.f32 %v14795_v5, %v14996_v18 }
 0x42a   : > { %v5414_v44 = vadd.f32 %v5413_v35, %v5221_v49  ;;  %v5223_v46 = vadd.f32 %v5222_v21, %v5030_v32  ;;  %v5415_v19 = vpop.f32.mrf.mxu1 }
 0x42b   : > { %v5226_v30 = vpop.f32.mrf.mxu0  ;;  %8155 = vmatmul.mubr.bf16.gmra.mxu0 %v17212_v34 }
 0x42c   : > { %v15073_v52 = vpack.c.bf16 %v5414_v44, %v5410_v59  ;;  %v5416_v1 = vadd.f32 %v5415_v19, %v5223_v46  ;;  %v5419_v0 = vpop.f32.mrf.mxu1  ;;  %8348 = vmatmul.mubr.bf16.gmra.mxu1 %v17214_v47  ;;  %8164 = vmatprep.mubr.bf16.mxu0 %v17215_v16  ;;  %v5227_v33 = vadd.f32 %v5226_v30, %v5034_v23 }
 0x42d   : > { %8357 = vmatprep.mubr.bf16.mxu1 %v17216_v40  ;;  %v5228_v22 = vpop.f32.mrf.mxu0  ;;  %v5040_v19 = vadd.f32 %v14780_v57, %v15001_v13  ;;  %v17220_v57 = vld [vmem:[#allocation25_spill] sm:$0xff] }
 0x42e   : > { %17213 = vst [vmem:[#allocation47_spill] sm:$0xff] %v15073_v52  ;;  %v15082_v28 = vpack.c.bf16 %v5416_v1, %v5412_v4  ;;  %v5421_v61 = vpop.f32.mrf.mxu1  ;;  %v5229_v38 = vadd.f32 %v5228_v22, %v5036_v51  ;;  %v5420_v59 = vadd.f32 %v5419_v0, %v5227_v33  ;;  %v17218_v4 = vld [vmem:[#allocation53_spill] sm:$0xff]  ;;  %v17221_v22 = vld [vmem:[#allocation55_spill] sm:$0xff]  ;;  %v17222_v51 = vld [vmem:[#allocation34_spill] sm:$0xff] }
 0x42f   : > { %v5230_v32 = vpop.f32.mrf.mxu0 }
 0x430   : > { %17217 = vst [vmem:[#allocation24_spill] sm:$0xff] %v15082_v28  ;;  %v5231_v49 = vadd.f32 %v5230_v32, %v5038_v54  ;;  %v5423_v35 = vpop.f32.mrf.mxu1  ;;  %v5422_v23 = vadd.f32 %v5421_v61, %v5229_v38  ;;  %v5046_v54 = vadd.f32 %v14792_v11, %v15001_v13  ;;  %v5054_v11 = vadd.f32 %v14806_v43, %v14996_v18 }
 0x431   : > { %v5232_v21 = vpop.f32.mrf.mxu0  ;;  %v5058_v43 = vadd.f32 %v14815_v26, %v14996_v18 }
 0x432   : > { %v5424_v44 = vadd.f32 %v5423_v35, %v5231_v49  ;;  %v5233_v46 = vadd.f32 %v5232_v21, %v5040_v19  ;;  %v5425_v40 = vpop.f32.mrf.mxu1 }
 0x433   : > { %v5236_v9 = vpop.f32.mrf.mxu0  ;;  %8165 = vmatmul.mubr.bf16.gmra.mxu0 %v17218_v4 }
 0x434   : > { %v15089_v30 = vpack.c.bf16 %v5424_v44, %v5420_v59  ;;  %v5426_v1 = vadd.f32 %v5425_v40, %v5233_v46  ;;  %v5429_v16 = vpop.f32.mrf.mxu1  ;;  %8358 = vmatmul.mubr.bf16.gmra.mxu1 %v17220_v57  ;;  %8174 = vmatprep.mubr.bf16.mxu0 %v17221_v22  ;;  %v5237_v61 = vadd.f32 %v5236_v9, %v5044_v53  ;;  %v17246_v57 = vld [vmem:[#allocation114_spill] sm:$0xff] }
 0x435   : > { %8367 = vmatprep.mubr.bf16.mxu1 %v17222_v51  ;;  %v5238_v0 = vpop.f32.mrf.mxu0  ;;  %v5050_v40 = vadd.f32 %v14800_v60, %v15001_v13  ;;  %v17226_v60 = vld [vmem:[#allocation30_spill] sm:$0xff] }
 0x436   : > { %17219 = vst [vmem:[#allocation53_spill] sm:$0xff] %v15089_v30  ;;  %v15098_v33 = vpack.c.bf16 %v5426_v1, %v5422_v23  ;;  %v5431_v32 = vpop.f32.mrf.mxu1  ;;  %v5239_v38 = vadd.f32 %v5238_v0, %v5046_v54  ;;  %v5430_v59 = vadd.f32 %v5429_v16, %v5237_v61  ;;  %v17224_v23 = vld [vmem:[#allocation56_spill] sm:$0xff]  ;;  %v17228_v54 = vld [vmem:[#allocation33_spill] sm:$0xff] }
 0x437   : > { %v5240_v19 = vpop.f32.mrf.mxu0  ;;  %v17227_v0 = vld [vmem:[#allocation88_spill] sm:$0xff] }
 0x438   : > { %17223 = vst [vmem:[#allocation136_spill] sm:$0xff] %v15098_v33  ;;  %v5241_v49 = vadd.f32 %v5240_v19, %v5048_v37  ;;  %v5433_v35 = vpop.f32.mrf.mxu1  ;;  %v5432_v53 = vadd.f32 %v5431_v32, %v5239_v38  ;;  %v5056_v37 = vadd.f32 %v14812_v45, %v15001_v13  ;;  %v5064_v45 = vadd.f32 %v14826_v14, %v14996_v18  ;;  %v17234_v14 = vld [vmem:[#allocation42_spill] sm:$0xff] }
 0x439   : > { %v5242_v21 = vpop.f32.mrf.mxu0 }
 0x43a   : > { %v5434_v44 = vadd.f32 %v5433_v35, %v5241_v49  ;;  %v5243_v46 = vadd.f32 %v5242_v21, %v5050_v40  ;;  %v5435_v51 = vpop.f32.mrf.mxu1 }
 0x43b   : > { %v5246_v5 = vpop.f32.mrf.mxu0  ;;  %8175 = vmatmul.mubr.bf16.gmra.mxu0 %v17224_v23 }
 0x43c   : > { %v15105_v9 = vpack.c.bf16 %v5434_v44, %v5430_v59  ;;  %v5436_v1 = vadd.f32 %v5435_v51, %v5243_v46  ;;  %v5439_v22 = vpop.f32.mrf.mxu1  ;;  %8368 = vmatmul.mubr.bf16.gmra.mxu1 %v17226_v60  ;;  %8184 = vmatprep.mubr.bf16.mxu0 %v17227_v0  ;;  %v5247_v32 = vadd.f32 %v5246_v5, %v5054_v11 }
 0x43d   : > { %8377 = vmatprep.mubr.bf16.mxu1 %v17228_v54  ;;  %v5248_v16 = vpop.f32.mrf.mxu0  ;;  %v5060_v51 = vadd.f32 %v14820_v42, %v15001_v13  ;;  %v17232_v42 = vld [vmem:[#allocation31_spill] sm:$0xff] }
 0x43e   : > { %17225 = vst [vmem:[#allocation137_spill] sm:$0xff] %v15105_v9  ;;  %v15114_v61 = vpack.c.bf16 %v5436_v1, %v5432_v53  ;;  %v5441_v19 = vpop.f32.mrf.mxu1  ;;  %v5249_v38 = vadd.f32 %v5248_v16, %v5056_v37  ;;  %v5440_v59 = vadd.f32 %v5439_v22, %v5247_v32  ;;  %v17230_v53 = vld [vmem:[#allocation57_spill] sm:$0xff] }
 0x43f   : > { %v5250_v40 = vpop.f32.mrf.mxu0  ;;  %v17233_v16 = vld [vmem:[#allocation37_spill] sm:$0xff] }
 0x440   : > { %17229 = vst [vmem:[#allocation138_spill] sm:$0xff] %v15114_v61  ;;  %v5251_v49 = vadd.f32 %v5250_v40, %v5058_v43  ;;  %v5443_v35 = vpop.f32.mrf.mxu1  ;;  %v5442_v11 = vadd.f32 %v5441_v19, %v5249_v38  ;;  %v5066_v37 = vadd.f32 %v17233_v16, %v15001_v13  ;;  %v5068_v43 = vadd.f32 %v17234_v14, %v14996_v18  ;;  %v11965_v14 = vld [vmem:[#allocation8 + $0x42c] ss:$24 sps:$4 sm:$0xff]  }
 0x441   : > { %v5252_v21 = vpop.f32.mrf.mxu0 }
 0x442   : > { %v5444_v44 = vadd.f32 %v5443_v35, %v5251_v49  ;;  %v5253_v46 = vadd.f32 %v5252_v21, %v5060_v51  ;;  %v5445_v54 = vpop.f32.mrf.mxu1 }
 0x443   : > { %v5256_v26 = vpop.f32.mrf.mxu0  ;;  %8185 = vmatmul.mubr.bf16.gmra.mxu0 %v17230_v53  ;;  %v11962_v53 = vld [vmem:[#allocation8 + $0x12c] ss:$24 sps:$4 sm:$0xff]  }
 0x444   : > { %v15121_v5 = vpack.c.bf16 %v5444_v44, %v5440_v59  ;;  %v5446_v1 = vadd.f32 %v5445_v54, %v5253_v46  ;;  %v5449_v0 = vpop.f32.mrf.mxu1  ;;  %8378 = vmatmul.mubr.bf16.gmra.mxu1 %v17232_v42  ;;  %8420 = vmatprep.mubr.bf16.mxu0 %v14703_v29  ;;  %v5257_v19 = vadd.f32 %v5256_v26, %v5064_v45  ;;  %v17236_v54 = vld [vmem:[#allocation45_spill] sm:$0xff]  ;;  %v17238_v26 = vld [vmem:[#allocation112_spill] sm:$0xff] }
 0x445   : > { %8613 = vmatprep.mubr.bf16.mxu1 %v15034_v12  ;;  %v5258_v22 = vpop.f32.mrf.mxu0  ;;  %v5070_v38 = vadd.f32 %v17236_v54, %v15001_v13  ;;  %v11954_v44 = vld [vmem:[#allocation8 + $0x158] ss:$24 sps:$4 sm:$0xff]  }
 0x446   : > { %17231 = vst [vmem:[#allocation139_spill] sm:$0xff] %v15121_v5  ;;  %v15130_v32 = vpack.c.bf16 %v5446_v1, %v5442_v11  ;;  %v5451_v40 = vpop.f32.mrf.mxu1  ;;  %v5259_v49 = vadd.f32 %v5258_v22, %v5066_v37  ;;  %v5450_v46 = vadd.f32 %v5449_v0, %v5257_v19  ;;  %v11957_v42 = vld [vmem:[#allocation8 + $0x458] ss:$24 sps:$4 sm:$0xff]   ;;  %v17237_v11 = vld [vmem:[#allocation43_spill] sm:$0xff] }
 0x447   : > { %v5260_v51 = vpop.f32.mrf.mxu0  ;;  %v5074_v1 = vadd.f32 %v17237_v11, %v14996_v18  ;;  %v17240_v0 = vld [vmem:[#allocation115_spill] sm:$0xff]  ;;  %v17244_v11 = vld [vmem:[#allocation93_spill] sm:$0xff] }
 0x448   : > { %17235 = vst [vmem:[#allocation37_spill] sm:$0xff] %v15130_v32  ;;  %v5261_v35 = vadd.f32 %v5260_v51, %v5068_v43  ;;  %v5453_v21 = vpop.f32.mrf.mxu1  ;;  %v5452_v60 = vadd.f32 %v5451_v40, %v5259_v49  ;;  %v17241_v43 = vld [vmem:[#allocation52_spill] sm:$0xff] }
 0x449   : > { %v5262_v59 = vpop.f32.mrf.mxu0  ;;  %v5076_v19 = vadd.f32 %v17241_v43, %v15001_v13  ;;  %v11963_v49 = vld [vmem:[#allocation8 + $0x428] ss:$24 sps:$4 sm:$0xff]   ;;  %v5080_v43 = vadd.f32 %v17244_v11, %v15001_v13 }
 0x44a   : > { %v5454_v12 = vadd.f32 %v5453_v21, %v5261_v35  ;;  %v5263_v29 = vadd.f32 %v5262_v59, %v5070_v38  ;;  %v5455_v16 = vpop.f32.mrf.mxu1  ;;  %v11960_v38 = vld [vmem:[#allocation8 + $0x128] ss:$24 sps:$4 sm:$0xff]   ;;  %v17242_v35 = vld [vmem:[#allocation49_spill] sm:$0xff] }
 0x44b   : > { %v5266_v45 = vpop.f32.mrf.mxu0  ;;  %8421 = vmatmul.mubr.bf16.vlgmr.msra.gmra.mxu0 %v17238_v26  ;;  %v5078_v21 = vadd.f32 %v17242_v35, %v14996_v18  ;;  %v11968_v59 = vld [vmem:[#allocation8 + $0xfc] ss:$24 sps:$4 sm:$0xff]   ;;  %v11966_v35 = vld [vmem:[#allocation8 + $0xf8] ss:$24 sps:$4 sm:$0xff]  }
 0x44c   : > { %v15137_v54 = vpack.c.bf16 %v5454_v12, %v5450_v46  ;;  %v5456_v22 = vadd.f32 %v5455_v16, %v5263_v29  ;;  %v5459_v37 = vpop.f32.mrf.mxu1  ;;  %8614 = vmatmul.mubr.bf16.vlgmr.msra.gmra.mxu1 %v15025_v50  ;;  %8430 = vmatprep.mubr.bf16.mxu0 %v17240_v0  ;;  %v5267_v12 = vadd.f32 %v5266_v45, %v5074_v1  ;;  %v11971_v16 = vld [vmem:[#allocation8 + $0x3fc] ss:$24 sps:$4 sm:$0xff]  }
 0x44d   : > { %8623 = vmatprep.mubr.bf16.mxu1 %v15050_v20  ;;  %8775 = vmatpush1.bf16.msra.mxu0 %v11954_v44  ;;  %v5268_v51 = vpop.f32.mrf.mxu0 }
 0x44e   : > { %17239 = vst [vmem:[#allocation42_spill] sm:$0xff] %v15137_v54  ;;  %v15146_v40 = vpack.c.bf16 %v5456_v22, %v5452_v60  ;;  %v5461_v29 = vpop.f32.mrf.mxu1  ;;  %8968 = vmatpush1.bf16.msra.mxu1 %v11957_v42  ;;  %8776 = vmatprep.subr.bf16.mxu0 %v11962_v53  ;;  %v5269_v44 = vadd.f32 %v5268_v51, %v5076_v19  ;;  %v11969_v53 = vld [vmem:[#allocation8 + $0x3f8] ss:$24 sps:$4 sm:$0xff]   ;;  %v11974_v42 = vld [vmem:[#allocation8 + $0xcc] ss:$24 sps:$4 sm:$0xff]  }
 0x44f   : > { %v5270_v46 = vpop.f32.mrf.mxu0  ;;  %8969 = vmatprep.subr.bf16.mxu1 %v11965_v14  ;;  %v5460_v60 = vadd.f32 %v5459_v37, %v5267_v12  ;;  %v17245_v14 = vld [vmem:[#allocation95_spill] sm:$0xff] }
 0x450   : > { %17243 = vst [vmem:[#allocation45_spill] sm:$0xff] %v15146_v40  ;;  %v5271_v20 = vadd.f32 %v5270_v46, %v5078_v21  ;;  %v5463_v0 = vpop.f32.mrf.mxu1  ;;  %v5084_v26 = vadd.f32 %v17245_v14, %v14996_v18  ;;  %v11977_v19 = vld [vmem:[#allocation8 + $0x3cc] ss:$24 sps:$4 sm:$0xff]   ;;  %v5462_v51 = vadd.f32 %v5461_v29, %v5269_v44  ;;  %v11980_v44 = vld [vmem:[#allocation8 + $0x9c] ss:$24 sps:$4 sm:$0xff]  }
 0x451   : > { %v5272_v50 = vpop.f32.mrf.mxu0  ;;  %8777 = vmatpush1.bf16.msra.mxu0 %v11960_v38 }
 0x452   : > { %v5464_v22 = vadd.f32 %v5463_v0, %v5271_v20  ;;  %v5273_v1 = vadd.f32 %v5272_v50, %v5080_v43  ;;  %v5465_v45 = vpop.f32.mrf.mxu1  ;;  %8970 = vmatpush1.bf16.msra.mxu1 %v11963_v49  ;;  %8778 = vmatprep.subr.bf16.mxu0 %v11968_v59  ;;  %v17248_v50 = vld [vmem:[#allocation117_spill] sm:$0xff]  ;;  %v17249_v20 = vld [vmem:[#allocation96_spill] sm:$0xff] }
 0x453   : > { %v5276_v23 = vpop.f32.mrf.mxu0  ;;  %8431 = vmatmul.mubr.bf16.gmra.mxu0 %v17246_v57  ;;  %8971 = vmatprep.subr.bf16.mxu1 %v11971_v16  ;;  %v5086_v0 = vadd.f32 %v17249_v20, %v15001_v13  ;;  %v11972_v49 = vld [vmem:[#allocation8 + $0xc8] ss:$24 sps:$4 sm:$0xff]   ;;  %v17250_v59 = vld [vmem:[#allocation97_spill] sm:$0xff] }
 0x454   : > { %v15153_v21 = vpack.c.bf16 %v5464_v22, %v5460_v60  ;;  %v5466_v38 = vadd.f32 %v5465_v45, %v5273_v1  ;;  %v5469_v37 = vpop.f32.mrf.mxu1  ;;  %8624 = vmatmul.mubr.bf16.gmra.mxu1 %v15041_v31  ;;  %8440 = vmatprep.mubr.bf16.mxu0 %v17248_v50  ;;  %v5088_v46 = vadd.f32 %v17250_v59, %v14996_v18  ;;  %v11975_v43 = vld [vmem:[#allocation8 + $0x3c8] ss:$24 sps:$4 sm:$0xff]   ;;  %v11983_v22 = vld [vmem:[#allocation8 + $0x39c] ss:$24 sps:$4 sm:$0xff]   ;;  %v11978_v59 = vld [vmem:[#allocation8 + $0x98] ss:$24 sps:$4 sm:$0xff]  }
 0x455   : > { %8633 = vmatprep.mubr.bf16.mxu1 %v15066_v10  ;;  %v5278_v12 = vpop.f32.mrf.mxu0  ;;  %8779 = vmatpush1.bf16.msra.mxu0 %v11966_v35  ;;  %v5277_v16 = vadd.f32 %v5276_v23, %v5084_v26  ;;  %v17252_v1 = vld [vmem:[#allocation99_spill] sm:$0xff]  ;;  %v17254_v57 = vld [vmem:[#allocation116_spill] sm:$0xff] }
 0x456   : > { %17247 = vst [vmem:[#allocation43_spill] sm:$0xff] %v15153_v21  ;;  %v15162_v29 = vpack.c.bf16 %v5466_v38, %v5462_v51  ;;  %v5471_v11 = vpop.f32.mrf.mxu1  ;;  %8972 = vmatpush1.bf16.msra.mxu1 %v11969_v53  ;;  %8780 = vmatprep.subr.bf16.mxu0 %v11974_v42  ;;  %v5090_v45 = vadd.f32 %v17252_v1, %v15001_v13  ;;  %v11981_v53 = vld [vmem:[#allocation8 + $0x398] ss:$24 sps:$4 sm:$0xff]   ;;  %v11986_v42 = vld [vmem:[#allocation8 + $0x6c] ss:$24 sps:$4 sm:$0xff]  }
 0x457   : > { %v5280_v60 = vpop.f32.mrf.mxu0  ;;  %8973 = vmatprep.subr.bf16.mxu1 %v11977_v19  ;;  %v5279_v14 = vadd.f32 %v5278_v12, %v5086_v0  ;;  %v5470_v51 = vadd.f32 %v5469_v37, %v5277_v16  ;;  %v17253_v19 = vld [vmem:[#allocation101_spill] sm:$0xff]  ;;  %v17257_v16 = vld [vmem:[#allocation102_spill] sm:$0xff] }
 0x458   : > { %17251 = vst [vmem:[#allocation52_spill] sm:$0xff] %v15162_v29  ;;  %v5281_v35 = vadd.f32 %v5280_v60, %v5088_v46  ;;  %v5473_v20 = vpop.f32.mrf.mxu1  ;;  %v5094_v50 = vadd.f32 %v17253_v19, %v14996_v18  ;;  %v11989_v0 = vld [vmem:[#allocation8 + $0x36c] ss:$24 sps:$4 sm:$0xff]   ;;  %v11984_v60 = vld [vmem:[#allocation8 + $0x68] ss:$24 sps:$4 sm:$0xff]  }
 0x459   : > { %v5282_v10 = vpop.f32.mrf.mxu0  ;;  %8781 = vmatpush1.bf16.msra.mxu0 %v11972_v49  ;;  %v5472_v12 = vadd.f32 %v5471_v11, %v5279_v14 }
 0x45a   : > { %v5474_v38 = vadd.f32 %v5473_v20, %v5281_v35  ;;  %v5283_v23 = vadd.f32 %v5282_v10, %v5090_v45  ;;  %v5475_v26 = vpop.f32.mrf.mxu1  ;;  %8974 = vmatpush1.bf16.msra.mxu1 %v11975_v43  ;;  %8782 = vmatprep.subr.bf16.mxu0 %v11980_v44  ;;  %v17256_v10 = vld [vmem:[#allocation119_spill] sm:$0xff]  ;;  %v5096_v43 = vadd.f32 %v17257_v16, %v15001_v13 }
 0x45b   : > { %v5286_v31 = vpop.f32.mrf.mxu0  ;;  %8441 = vmatmul.mubr.bf16.gmra.mxu0 %v17254_v57  ;;  %8975 = vmatprep.subr.bf16.mxu1 %v11983_v22  ;;  %v17258_v22 = vld [vmem:[#allocation103_spill] sm:$0xff] }
 0x45c   : > { %v15169_v46 = vpack.c.bf16 %v5474_v38, %v5470_v51  ;;  %v5476_v49 = vadd.f32 %v5475_v26, %v5283_v23  ;;  %v5479_v37 = vpop.f32.mrf.mxu1  ;;  %8634 = vmatmul.mubr.bf16.gmra.mxu1 %v15057_v39  ;;  %8450 = vmatprep.mubr.bf16.mxu0 %v17256_v10  ;;  %v5098_v1 = vadd.f32 %v17258_v22, %v14996_v18  ;;  %v11987_v35 = vld [vmem:[#allocation8 + $0x368] ss:$24 sps:$4 sm:$0xff]   ;;  %v11992_v20 = vld [vmem:[#allocation8 + $0x3c] ss:$24 sps:$4 sm:$0xff]   ;;  %v11990_v22 = vld [vmem:[#allocation8 + $0x38] ss:$24 sps:$4 sm:$0xff]  }
 0x45d   : > { %8643 = vmatprep.mubr.bf16.mxu1 %v15082_v28  ;;  %v5288_v44 = vpop.f32.mrf.mxu0  ;;  %8783 = vmatpush1.bf16.msra.mxu0 %v11978_v59  ;;  %v5287_v45 = vadd.f32 %v5286_v31, %v5094_v50  ;;  %v11995_v38 = vld [vmem:[#allocation8 + $0x33c] ss:$24 sps:$4 sm:$0xff]   ;;  %v5100_v23 = vadd.f32 %v14900_v24, %v15001_v13  ;;  %v12001_v24 = vld [vmem:[#allocation8 + $0x30c] ss:$24 sps:$4 sm:$0xff]  }
 0x45e   : > { %17255 = vst [vmem:[#allocation49_spill] sm:$0xff] %v15169_v46  ;;  %v15178_v11 = vpack.c.bf16 %v5476_v49, %v5472_v12  ;;  %v5481_v14 = vpop.f32.mrf.mxu1  ;;  %8976 = vmatpush1.bf16.msra.mxu1 %v11981_v53  ;;  %8784 = vmatprep.subr.bf16.mxu0 %v11986_v42  ;;  %v5289_v26 = vadd.f32 %v5288_v44, %v5096_v43  ;;  %v11993_v53 = vld [vmem:[#allocation8 + $0x338] ss:$24 sps:$4 sm:$0xff]   ;;  %v11998_v42 = vld [vmem:[#allocation8 + $0xc] ss:$24 sps:$4 sm:$0xff]  }
 0x45f   : > { %v5290_v51 = vpop.f32.mrf.mxu0  ;;  %8977 = vmatprep.subr.bf16.mxu1 %v11989_v0  ;;  %v5480_v12 = vadd.f32 %v5479_v37, %v5287_v45  ;;  %v5104_v0 = vadd.f32 %v14906_v27, %v14996_v18  ;;  %v17260_v10 = vld [vmem:[#allocation118_spill] sm:$0xff]  ;;  %v17263_v45 = vld [vmem:[#allocation105_spill] sm:$0xff]  ;;  %v17318_v57 = vld [vmem:[#allocation91_spill] sm:$0xff] }
 0x460   : > { %17259 = vst [vmem:[#allocation93_spill] sm:$0xff] %v15178_v11  ;;  %v5291_v59 = vadd.f32 %v5290_v51, %v5098_v1  ;;  %v5483_v19 = vpop.f32.mrf.mxu1  ;;  %v5482_v43 = vadd.f32 %v5481_v14, %v5289_v26  ;;  %v17262_v1 = vld [vmem:[#allocation121_spill] sm:$0xff]  ;;  %v17264_v51 = vld [vmem:[#allocation124_spill] sm:$0xff] }
 0x461   : > { %v5292_v16 = vpop.f32.mrf.mxu0  ;;  %8785 = vmatpush1.bf16.msra.mxu0 %v11984_v60 }
 0x462   : > { %v5484_v49 = vadd.f32 %v5483_v19, %v5291_v59  ;;  %v5293_v31 = vadd.f32 %v5292_v16, %v5100_v23  ;;  %v5485_v50 = vpop.f32.mrf.mxu1  ;;  %8978 = vmatpush1.bf16.msra.mxu1 %v11987_v35  ;;  %8786 = vmatprep.subr.bf16.mxu0 %v11992_v20  ;;  %v5106_v35 = vadd.f32 %v17263_v45, %v15001_v13  ;;  %v11996_v20 = vld [vmem:[#allocation8 + $0x8] ss:$24 sps:$4 sm:$0xff]   ;;  %v12004_v19 = vld [vmem:[#allocation8 + $0x2dc] ss:$24 sps:$4 sm:$0xff]  }
 0x463   : > { %v5296_v28 = vpop.f32.mrf.mxu0  ;;  %8451 = vmatmul.mubr.bf16.gmra.mxu0 %v17260_v10  ;;  %8979 = vmatprep.subr.bf16.mxu1 %v11995_v38  ;;  %v5108_v38 = vadd.f32 %v17264_v51, %v14996_v18  ;;  %v11999_v59 = vld [vmem:[#allocation8 + $0x308] ss:$24 sps:$4 sm:$0xff]   ;;  %v12002_v51 = vld [vmem:[#allocation8 + $0x2d8] ss:$24 sps:$4 sm:$0xff]  }
 0x464   : > { %v15185_v44 = vpack.c.bf16 %v5484_v49, %v5480_v12  ;;  %v5486_v60 = vadd.f32 %v5485_v50, %v5293_v31  ;;  %v5489_v37 = vpop.f32.mrf.mxu1  ;;  %8644 = vmatmul.mubr.bf16.gmra.mxu1 %v15073_v52  ;;  %8460 = vmatprep.mubr.bf16.mxu0 %v17262_v1  ;;  %v5297_v23 = vadd.f32 %v5296_v28, %v5104_v0  ;;  %v12007_v12 = vld [vmem:[#allocation8 + $0x5dc] ss:$24 sps:$4 sm:$0xff]   ;;  %v17266_v1 = vld [vmem:[#allocation120_spill] sm:$0xff]  ;;  %v12062_v10 = vld [vmem:[#allocation8 + $0x6f8] ss:$24 sps:$4 sm:$0xff]  }
 0x465   : > { %8653 = vmatprep.mubr.bf16.mxu1 %v15098_v33  ;;  %v5298_v27 = vpop.f32.mrf.mxu0  ;;  %8787 = vmatpush1.bf16.msra.mxu0 %v11990_v22  ;;  %v5110_v49 = vadd.f32 %v14920_v48, %v15001_v13  ;;  %v12013_v48 = vld [vmem:[#allocation8 + $0x5ac] ss:$24 sps:$4 sm:$0xff]   ;;  %v12067_v52 = vld [vmem:[#allocation8 + $0x9fc] ss:$24 sps:$4 sm:$0xff]  }
 0x466   : > { %17261 = vst [vmem:[#allocation95_spill] sm:$0xff] %v15185_v44  ;;  %v15194_v14 = vpack.c.bf16 %v5486_v60, %v5482_v43  ;;  %v5491_v26 = vpop.f32.mrf.mxu1  ;;  %8980 = vmatpush1.bf16.msra.mxu1 %v11993_v53  ;;  %8788 = vmatprep.subr.bf16.mxu0 %v11998_v42  ;;  %v5299_v31 = vadd.f32 %v5298_v27, %v5106_v35  ;;  %v12005_v53 = vld [vmem:[#allocation8 + $0x5d8] ss:$24 sps:$4 sm:$0xff]   ;;  %v12010_v42 = vld [vmem:[#allocation8 + $0x2ac] ss:$24 sps:$4 sm:$0xff]  }
 0x467   : > { %v5300_v16 = vpop.f32.mrf.mxu0  ;;  %8981 = vmatprep.subr.bf16.mxu1 %v12001_v24  ;;  %v5490_v43 = vadd.f32 %v5489_v37, %v5297_v23  ;;  %v5114_v24 = vadd.f32 %v14926_v62, %v14996_v18  ;;  %v17269_v23 = vld [vmem:[#allocation107_spill] sm:$0xff] }
 0x468   : > { %17265 = vst [vmem:[#allocation96_spill] sm:$0xff] %v15194_v14  ;;  %v5301_v22 = vadd.f32 %v5300_v16, %v5108_v38  ;;  %v5493_v50 = vpop.f32.mrf.mxu1  ;;  %v5492_v35 = vadd.f32 %v5491_v26, %v5299_v31  ;;  %v17268_v38 = vld [vmem:[#allocation40_spill] sm:$0xff]  ;;  %v17270_v16 = vld [vmem:[#allocation126_spill] sm:$0xff] }
 0x469   : > { %v5302_v45 = vpop.f32.mrf.mxu0  ;;  %8789 = vmatpush1.bf16.msra.mxu0 %v11996_v20 }
 0x46a   : > { %v5494_v60 = vadd.f32 %v5493_v50, %v5301_v22  ;;  %v5303_v28 = vadd.f32 %v5302_v45, %v5110_v49  ;;  %v5495_v0 = vpop.f32.mrf.mxu1  ;;  %8982 = vmatpush1.bf16.msra.mxu1 %v11999_v59  ;;  %8790 = vmatprep.subr.bf16.mxu0 %v12004_v19  ;;  %v5116_v59 = vadd.f32 %v17269_v23, %v15001_v13  ;;  %v12008_v19 = vld [vmem:[#allocation8 + $0x2a8] ss:$24 sps:$4 sm:$0xff]   ;;  %v12016_v50 = vld [vmem:[#allocation8 + $0x27c] ss:$24 sps:$4 sm:$0xff]  }
 0x46b   : > { %v5306_v33 = vpop.f32.mrf.mxu0  ;;  %8461 = vmatmul.mubr.bf16.gmra.mxu0 %v17266_v1  ;;  %8983 = vmatprep.subr.bf16.mxu1 %v12007_v12  ;;  %v5118_v12 = vadd.f32 %v17270_v16, %v14996_v18  ;;  %v12011_v22 = vld [vmem:[#allocation8 + $0x5a8] ss:$24 sps:$4 sm:$0xff]   ;;  %v12014_v16 = vld [vmem:[#allocation8 + $0x278] ss:$24 sps:$4 sm:$0xff]  }
 0x46c   : > { %v15201_v27 = vpack.c.bf16 %v5494_v60, %v5490_v43  ;;  %v5496_v20 = vadd.f32 %v5495_v0, %v5303_v28  ;;  %v5499_v37 = vpop.f32.mrf.mxu1  ;;  %8654 = vmatmul.mubr.bf16.gmra.mxu1 %v15089_v30  ;;  %8470 = vmatprep.mubr.bf16.mxu0 %v17268_v38  ;;  %v5307_v49 = vadd.f32 %v5306_v33, %v5114_v24  ;;  %v12019_v43 = vld [vmem:[#allocation8 + $0x57c] ss:$24 sps:$4 sm:$0xff]  }
 0x46d   : > { %8663 = vmatprep.mubr.bf16.mxu1 %v15114_v61  ;;  %v5308_v62 = vpop.f32.mrf.mxu0  ;;  %8791 = vmatpush2.bf16.msra.mxu0 %v12002_v51  ;;  %v5120_v60 = vadd.f32 %v14940_v17, %v15001_v13  ;;  %v17272_v38 = vld [vmem:[#allocation122_spill] sm:$0xff]  ;;  %v12025_v17 = vld [vmem:[#allocation8 + $0x54c] ss:$24 sps:$4 sm:$0xff]  }
 0x46e   : > { %17267 = vst [vmem:[#allocation97_spill] sm:$0xff] %v15201_v27  ;;  %v15210_v26 = vpack.c.bf16 %v5496_v20, %v5492_v35  ;;  %v5501_v31 = vpop.f32.mrf.mxu1  ;;  %8984 = vmatpush2.bf16.msra.mxu1 %v12005_v53  ;;  %8792 = vmatprep.subr.bf16.mxu0 %v12010_v42  ;;  %v5309_v28 = vadd.f32 %v5308_v62, %v5116_v59  ;;  %v12017_v53 = vld [vmem:[#allocation8 + $0x578] ss:$24 sps:$4 sm:$0xff]   ;;  %v12022_v42 = vld [vmem:[#allocation8 + $0x24c] ss:$24 sps:$4 sm:$0xff]  }
 0x46f   : > { %v5310_v45 = vpop.f32.mrf.mxu0  ;;  %8985 = vmatprep.subr.bf16.mxu1 %v12013_v48  ;;  %v5500_v35 = vadd.f32 %v5499_v37, %v5307_v49  ;;  %v5124_v48 = vadd.f32 %v14946_v8, %v14996_v18  ;;  %v17275_v49 = vld [vmem:[#allocation109_spill] sm:$0xff] }
 0x470   : > { %17271 = vst [vmem:[#allocation99_spill] sm:$0xff] %v15210_v26  ;;  %v5311_v51 = vadd.f32 %v5310_v45, %v5118_v12  ;;  %v5503_v0 = vpop.f32.mrf.mxu1  ;;  %v5502_v59 = vadd.f32 %v5501_v31, %v5309_v28  ;;  %v17274_v12 = vld [vmem:[#allocation36_spill] sm:$0xff] }
 0x471   : > { %v5312_v23 = vpop.f32.mrf.mxu0  ;;  %8793 = vmatpush2.bf16.msra.mxu0 %v12008_v19  ;;  %v17276_v45 = vld [vmem:[#allocation128_spill] sm:$0xff] }
 0x472   : > { %v5504_v20 = vadd.f32 %v5503_v0, %v5311_v51  ;;  %v5313_v33 = vadd.f32 %v5312_v23, %v5120_v60  ;;  %v5505_v24 = vpop.f32.mrf.mxu1  ;;  %8986 = vmatpush2.bf16.msra.mxu1 %v12011_v22  ;;  %8794 = vmatprep.subr.bf16.mxu0 %v12016_v50  ;;  %v5126_v22 = vadd.f32 %v17275_v49, %v15001_v13  ;;  %v12020_v50 = vld [vmem:[#allocation8 + $0x248] ss:$24 sps:$4 sm:$0xff]   ;;  %v12028_v0 = vld [vmem:[#allocation8 + $0x21c] ss:$24 sps:$4 sm:$0xff]  }
 0x473   : > { %v5316_v61 = vpop.f32.mrf.mxu0  ;;  %8471 = vmatmul.mubr.bf16.gmra.mxu0 %v17272_v38  ;;  %8987 = vmatprep.subr.bf16.mxu1 %v12019_v43  ;;  %v5128_v43 = vadd.f32 %v17276_v45, %v14996_v18  ;;  %v12023_v51 = vld [vmem:[#allocation8 + $0x548] ss:$24 sps:$4 sm:$0xff]   ;;  %v12026_v45 = vld [vmem:[#allocation8 + $0x218] ss:$24 sps:$4 sm:$0xff]  }
 0x474   : > { %v15217_v62 = vpack.c.bf16 %v5504_v20, %v5500_v35  ;;  %v5506_v19 = vadd.f32 %v5505_v24, %v5313_v33  ;;  %v5509_v37 = vpop.f32.mrf.mxu1  ;;  %8664 = vmatmul.mubr.bf16.gmra.mxu1 %v15105_v9  ;;  %8480 = vmatprep.mubr.bf16.mxu0 %v17274_v12  ;;  %v5317_v60 = vadd.f32 %v5316_v61, %v5124_v48  ;;  %v12031_v35 = vld [vmem:[#allocation8 + $0x51c] ss:$24 sps:$4 sm:$0xff]  }
 0x475   : > { %8673 = vmatprep.mubr.bf16.mxu1 %v15130_v32  ;;  %v5318_v8 = vpop.f32.mrf.mxu0  ;;  %8795 = vmatpush2.bf16.msra.mxu0 %v12014_v16  ;;  %v5130_v20 = vadd.f32 %v14960_v25, %v15001_v13  ;;  %v17278_v12 = vld [vmem:[#allocation39_spill] sm:$0xff]  ;;  %v17313_v38 = vld [vmem:[#allocation61_spill] sm:$0xff] }
 0x476   : > { %17273 = vst [vmem:[#allocation101_spill] sm:$0xff] %v15217_v62  ;;  %v15226_v31 = vpack.c.bf16 %v5506_v19, %v5502_v59  ;;  %v5511_v28 = vpop.f32.mrf.mxu1  ;;  %8988 = vmatpush2.bf16.msra.mxu1 %v12017_v53  ;;  %8796 = vmatprep.subr.bf16.mxu0 %v12022_v42  ;;  %v5319_v33 = vadd.f32 %v5318_v8, %v5126_v22  ;;  %v12029_v53 = vld [vmem:[#allocation8 + $0x518] ss:$24 sps:$4 sm:$0xff]   ;;  %v12034_v42 = vld [vmem:[#allocation8 + $0x1ec] ss:$24 sps:$4 sm:$0xff]  }
 0x477   : > { %v5320_v23 = vpop.f32.mrf.mxu0  ;;  %8989 = vmatprep.subr.bf16.mxu1 %v12025_v17  ;;  %v5510_v59 = vadd.f32 %v5509_v37, %v5317_v60  ;;  %v5134_v17 = vadd.f32 %v14966_v3, %v14996_v18  ;;  %v12037_v25 = vld [vmem:[#allocation8 + $0x4ec] ss:$24 sps:$4 sm:$0xff]   ;;  %v5136_v60 = vadd.f32 %v14972_v63, %v15001_v13  ;;  %v5140_v63 = vadd.f32 %v14980_v56, %v15001_v13 }
 0x478   : > { %17277 = vst [vmem:[#allocation102_spill] sm:$0xff] %v15226_v31  ;;  %v5321_v16 = vadd.f32 %v5320_v23, %v5128_v43  ;;  %v5513_v24 = vpop.f32.mrf.mxu1  ;;  %v5512_v22 = vadd.f32 %v5511_v28, %v5319_v33  ;;  %v17280_v43 = vld [vmem:[#allocation48_spill] sm:$0xff] }
 0x479   : > { %v5322_v49 = vpop.f32.mrf.mxu0  ;;  %8797 = vmatpush2.bf16.msra.mxu0 %v12020_v50  ;;  %v12035_v33 = vld [vmem:[#allocation8 + $0x4e8] ss:$24 sps:$4 sm:$0xff]   ;;  %v12049_v56 = vld [vmem:[#allocation8 + $0x48c] ss:$24 sps:$4 sm:$0xff]  }
 0x47a   : > { %v5514_v19 = vadd.f32 %v5513_v24, %v5321_v16  ;;  %v5323_v61 = vadd.f32 %v5322_v49, %v5130_v20  ;;  %v5515_v48 = vpop.f32.mrf.mxu1  ;;  %8990 = vmatpush2.bf16.msra.mxu1 %v12023_v51  ;;  %8798 = vmatprep.subr.bf16.mxu0 %v12028_v0  ;;  %v12032_v51 = vld [vmem:[#allocation8 + $0x1e8] ss:$24 sps:$4 sm:$0xff]   ;;  %v12040_v16 = vld [vmem:[#allocation8 + $0x1bc] ss:$24 sps:$4 sm:$0xff]  }
 0x47b   : > { %v5326_v32 = vpop.f32.mrf.mxu0  ;;  %8481 = vmatmul.mubr.bf16.gmra.mxu0 %v17278_v12  ;;  %8991 = vmatprep.subr.bf16.mxu1 %v12031_v35  ;;  %v17281_v0 = vld [vmem:[#allocation111_spill] sm:$0xff] }
 0x47c   : > { %v15233_v8 = vpack.c.bf16 %v5514_v19, %v5510_v59  ;;  %v5516_v50 = vadd.f32 %v5515_v48, %v5323_v61  ;;  %v5519_v37 = vpop.f32.mrf.mxu1  ;;  %8674 = vmatmul.mubr.bf16.gmra.mxu1 %v15121_v5  ;;  %8490 = vmatprep.mubr.bf16.mxu0 %v17280_v43  ;;  %v5138_v23 = vadd.f32 %v17281_v0, %v14996_v18  ;;  %v12043_v49 = vld [vmem:[#allocation8 + $0x4bc] ss:$24 sps:$4 sm:$0xff]   ;;  %v12038_v48 = vld [vmem:[#allocation8 + $0x1b8] ss:$24 sps:$4 sm:$0xff]   ;;  %v12058_v12 = vld [vmem:[#allocation8 + $0x72c] ss:$24 sps:$4 sm:$0xff]  }
 0x47d   : > { %8683 = vmatprep.mubr.bf16.mxu1 %v15146_v40  ;;  %v5328_v3 = vpop.f32.mrf.mxu0  ;;  %8799 = vmatpush2.bf16.msra.mxu0 %v12026_v45  ;;  %v5327_v35 = vadd.f32 %v5326_v32, %v5134_v17  ;;  %v17283_v40 = vld [vmem:[#allocation46_spill] sm:$0xff] }
 0x47e   : > { %17279 = vst [vmem:[#allocation103_spill] sm:$0xff] %v15233_v8  ;;  %v15242_v28 = vpack.c.bf16 %v5516_v50, %v5512_v22  ;;  %v5521_v20 = vpop.f32.mrf.mxu1  ;;  %8992 = vmatpush2.bf16.msra.mxu1 %v12029_v53  ;;  %8800 = vmatprep.subr.bf16.mxu0 %v12034_v42  ;;  %v5329_v59 = vadd.f32 %v5328_v3, %v5136_v60  ;;  %v12041_v53 = vld [vmem:[#allocation8 + $0x4b8] ss:$24 sps:$4 sm:$0xff]   ;;  %v12046_v42 = vld [vmem:[#allocation8 + $0x18c] ss:$24 sps:$4 sm:$0xff]  }
 0x47f   : > { %v5330_v24 = vpop.f32.mrf.mxu0  ;;  %8993 = vmatprep.subr.bf16.mxu1 %v12037_v25  ;;  %v5520_v22 = vadd.f32 %v5519_v37, %v5327_v35  ;;  %v5144_v25 = vadd.f32 %v14987_v7, %v14996_v18  ;;  %v5146_v35 = vadd.f32 %v14994_v2, %v15001_v13  ;;  %v12055_v2 = vld [vmem:[#allocation8 + $0xa5c] ss:$24 sps:$4 sm:$0xff]  }
 0x480   : > { %17282 = vst [vmem:[#allocation105_spill] sm:$0xff] %v15242_v28  ;;  %v5331_v45 = vadd.f32 %v5330_v24, %v5138_v23  ;;  %v5523_v19 = vpop.f32.mrf.mxu1  ;;  %v5522_v60 = vadd.f32 %v5521_v20, %v5329_v59  ;;  %v17285_v23 = vld [vmem:[#allocation94_spill] sm:$0xff]  ;;  %v17286_v24 = vld [vmem:[#allocation132_spill] sm:$0xff] }
 0x481   : > { %v5332_v61 = vpop.f32.mrf.mxu0  ;;  %8801 = vmatpush2.bf16.msra.mxu0 %v12032_v51  ;;  %v5148_v20 = vadd.f32 %v17286_v24, %v14996_v18 }
 0x482   : > { %v5524_v50 = vadd.f32 %v5523_v19, %v5331_v45  ;;  %v5333_v32 = vadd.f32 %v5332_v61, %v5140_v63  ;;  %v5525_v17 = vpop.f32.mrf.mxu1  ;;  %8994 = vmatpush2.bf16.msra.mxu1 %v12035_v33  ;;  %8802 = vmatprep.subr.bf16.mxu0 %v12040_v16  ;;  %v6050_v33 = vld [vmem:[#allocation10] sm:$0x3f]  ;;  %v12052_v19 = vld [vmem:[#allocation8 + $0x75c] ss:$24 sps:$4 sm:$0xff]  }
 0x483   : > { %v5336_v0 = vpop.f32.mrf.mxu0  ;;  %8491 = vmatmul.mubr.bf16.gmra.mxu0 %v17283_v40  ;;  %8995 = vmatprep.subr.bf16.mxu1 %v12043_v49  ;;  %v12044_v16 = vld [vmem:[#allocation8 + $0x188] ss:$24 sps:$4 sm:$0xff]  }
 0x484   : > { %v15249_v3 = vpack.c.bf16 %v5524_v50, %v5520_v22  ;;  %v5526_v51 = vadd.f32 %v5525_v17, %v5333_v32  ;;  %v5529_v37 = vpop.f32.mrf.mxu1  ;;  %8684 = vmatmul.mubr.bf16.gmra.mxu1 %v15137_v54  ;;  %8500 = vmatprep.mubr.bf16.mxu0 %v17285_v23  ;;  %v5337_v63 = vadd.f32 %v5336_v0, %v5144_v25  ;;  %v12047_v45 = vld [vmem:[#allocation8 + $0x488] ss:$24 sps:$4 sm:$0xff]   ;;  %v17288_v50 = vld [vmem:[#allocation134_spill] sm:$0xff] }
 0x485   : > { %8693 = vmatprep.mubr.bf16.mxu1 %v15162_v29  ;;  %v5338_v7 = vpop.f32.mrf.mxu0  ;;  %8803 = vmatpush2.bf16.msra.mxu0 %v12038_v48  ;;  %v5150_v32 = vadd.f32 %v17288_v50, %v15001_v13  ;;  %v17289_v29 = vld [vmem:[#allocation16_spill] sm:$0xff] }
 0x486   : > { %17284 = vst [vmem:[#allocation124_spill] sm:$0xff] %v15249_v3  ;;  %v15258_v49 = vpack.c.bf16 %v5526_v51, %v5522_v60  ;;  %v5531_v59 = vpop.f32.mrf.mxu1  ;;  %8996 = vmatpush2.bf16.msra.mxu1 %v12041_v53  ;;  %8804 = vmatprep.subr.bf16.mxu0 %v12046_v42  ;;  %v5339_v61 = vadd.f32 %v5338_v7, %v5146_v35  ;;  %v17290_v23 = vsub.s32 0, %v17289_v29  ;;  %v17291_v25 = vsub.s32 1, %v17289_v29  ;;  %v17292_v7 = vld [vmem:[#allocation51_spill] sm:$0xff] }
 0x487   : > { %v5340_v22 = vpop.f32.mrf.mxu0  ;;  %8997 = vmatprep.subr.bf16.mxu1 %v12049_v56  ;;  %v5530_v42 = vadd.f32 %v5529_v37, %v5337_v63 }
 0x488   : > { %17287 = vst [vmem:[#allocation107_spill] sm:$0xff] %v15258_v49  ;;  %v5341_v48 = vadd.f32 %v5340_v22, %v5148_v20  ;;  %v5533_v17 = vpop.f32.mrf.mxu1  ;;  %v15264_v18 = vrot.slane %v6050_v33, %v17290_v23  ;;  %v15268_v53 = vrot.slane %v6050_v33, %v17291_v25  ;;  %v5532_v35 = vadd.f32 %v5531_v59, %v5339_v61  ;;  %v17294_v33 = vld [vmem:[#allocation100_spill] sm:$0xff] }
 0x489   : > { %v5342_v60 = vpop.f32.mrf.mxu0  ;;  %8805 = vmatpush2.bf16.msra.mxu0 %v12044_v16 }
 0x48a   : > { %v5534_v0 = vadd.f32 %v5533_v17, %v5341_v48  ;;  %v5343_v51 = vadd.f32 %v5342_v60, %v5150_v32  ;;  %v5535_v56 = vpop.f32.mrf.mxu1  ;;  %8998 = vmatpush2.bf16.msra.mxu1 %v12047_v45  ;;  %9160 = vmatprep.subr.bf16.mxu0 %v12052_v19 }
 0x48b   : > { %v8036_v13 = vpop.f32.mrf.mxu0  ;;  %8501 = vmatmul.mubr.bf16.gmra.mxu0 %v17292_v7  ;;  %9353 = vmatprep.subr.bf16.mxu1 %v12055_v2 }
 0x48c   : > { %v15271_v24 = vpack.c.bf16 %v5534_v0, %v5530_v42  ;;  %v5536_v23 = vadd.f32 %v5535_v56, %v5343_v51  ;;  %v8037_v20 = vadd.f32 %v8036_v13, %v15264_v18  ;;  %v8229_v22 = vpop.f32.mrf.mxu1  ;;  %8694 = vmatmul.mubr.bf16.gmra.mxu1 %v15153_v21  ;;  %8510 = vmatprep.mubr.bf16.mxu0 %v17294_v33  ;;  %v17296_v42 = vld [vmem:[#allocation98_spill] sm:$0xff] }
 0x48d   : > { %8703 = vmatprep.mubr.bf16.mxu1 %v15178_v11  ;;  %v8038_v37 = vpop.f32.mrf.mxu0 }
 0x48e   : > { %17293 = vst [vmem:[#allocation126_spill] sm:$0xff] %v15271_v24  ;;  %v15277_v16 = vpack.c.bf16 %v5536_v23, %v5532_v35  ;;  %v15279_v63 = vadd.f32 %v8229_v22, %v8037_v20  ;;  %v8039_v59 = vadd.f32 %v8038_v37, %v15268_v53  ;;  %v8231_v45 = vpop.f32.mrf.mxu1  ;;  %v17297_v35 = vld [vmem:[#allocation104_spill] sm:$0xff] }
 0x48f   : > { %v8040_v19 = vpop.f32.mrf.mxu0 }
 0x490   : > { %17295 = vst [vmem:[#allocation109_spill] sm:$0xff] %v15277_v16  ;;  %v15282_v61 = vadd.f32 %v8231_v45, %v8039_v59  ;;  %v8041_v2 = vadd.f32 %v8040_v19, %v15264_v18  ;;  %v8233_v50 = vpop.f32.mrf.mxu1 }
 0x491   : > { %v8042_v32 = vpop.f32.mrf.mxu0 }
 0x492   : > { %v15285_v48 = vadd.f32 %v8233_v50, %v8041_v2  ;;  %v8043_v17 = vadd.f32 %v8042_v32, %v15268_v53  ;;  %v8235_v60 = vpop.f32.mrf.mxu1 }
 0x493   : > { %v8046_v25 = vpop.f32.mrf.mxu0  ;;  %8511 = vmatmul.mubr.bf16.gmra.mxu0 %v17296_v42 }
 0x494   : > { %v15289_v0 = vadd.f32 %v8235_v60, %v8043_v17  ;;  %v8047_v51 = vadd.f32 %v8046_v25, %v15264_v18  ;;  %v8239_v56 = vpop.f32.mrf.mxu1  ;;  %8704 = vmatmul.mubr.bf16.gmra.mxu1 %v15169_v46  ;;  %8520 = vmatprep.mubr.bf16.mxu0 %v17297_v35  ;;  %v17298_v25 = vld [vmem:[#allocation123_spill] sm:$0xff] }
 0x495   : > { %8713 = vmatprep.mubr.bf16.mxu1 %v15194_v14  ;;  %v8048_v13 = vpop.f32.mrf.mxu0 }
 0x496   : > { %v15295_v23 = vadd.f32 %v8239_v56, %v8047_v51  ;;  %v8049_v20 = vadd.f32 %v8048_v13, %v15268_v53  ;;  %v8241_v22 = vpop.f32.mrf.mxu1 }
 0x497   : > { %v8050_v37 = vpop.f32.mrf.mxu0 }
 0x498   : > { %v15298_v59 = vadd.f32 %v8241_v22, %v8049_v20  ;;  %v8051_v45 = vadd.f32 %v8050_v37, %v15264_v18  ;;  %v8243_v19 = vpop.f32.mrf.mxu1  ;;  %v17299_v20 = vld [vmem:[#allocation106_spill] sm:$0xff] }
 0x499   : > { %v8052_v2 = vpop.f32.mrf.mxu0 }
 0x49a   : > { %v15301_v50 = vadd.f32 %v8243_v19, %v8051_v45  ;;  %v8053_v32 = vadd.f32 %v8052_v2, %v15268_v53  ;;  %v8245_v17 = vpop.f32.mrf.mxu1 }
 0x49b   : > { %v8056_v60 = vpop.f32.mrf.mxu0  ;;  %8521 = vmatmul.mubr.bf16.gmra.mxu0 %v17298_v25 }
 0x49c   : > { %v15305_v51 = vadd.f32 %v8245_v17, %v8053_v32  ;;  %v8057_v56 = vadd.f32 %v8056_v60, %v15264_v18  ;;  %v8249_v13 = vpop.f32.mrf.mxu1  ;;  %8714 = vmatmul.mubr.bf16.gmra.mxu1 %v15185_v44  ;;  %8530 = vmatprep.mubr.bf16.mxu0 %v17299_v20 }
 0x49d   : > { %8723 = vmatprep.mubr.bf16.mxu1 %v15210_v26  ;;  %v8058_v22 = vpop.f32.mrf.mxu0  ;;  %v17300_v26 = vld [vmem:[#allocation125_spill] sm:$0xff] }
 0x49e   : > { %v15311_v37 = vadd.f32 %v8249_v13, %v8057_v56  ;;  %v8059_v45 = vadd.f32 %v8058_v22, %v15268_v53  ;;  %v8251_v19 = vpop.f32.mrf.mxu1 }
 0x49f   : > { %v8060_v2 = vpop.f32.mrf.mxu0 }
 0x4a0   : > { %v15314_v14 = vadd.f32 %v8251_v19, %v8059_v45  ;;  %v8061_v32 = vadd.f32 %v8060_v2, %v15264_v18  ;;  %v8253_v17 = vpop.f32.mrf.mxu1  ;;  %v17301_v45 = vld [vmem:[#allocation108_spill] sm:$0xff] }
 0x4a1   : > { %v8062_v60 = vpop.f32.mrf.mxu0 }
 0x4a2   : > { %v15317_v25 = vadd.f32 %v8253_v17, %v8061_v32  ;;  %v8063_v44 = vadd.f32 %v8062_v60, %v15268_v53  ;;  %v8255_v20 = vpop.f32.mrf.mxu1 }
 0x4a3   : > { %v8066_v35 = vpop.f32.mrf.mxu0  ;;  %8531 = vmatmul.mubr.bf16.gmra.mxu0 %v17300_v26 }
 0x4a4   : > { %v15321_v56 = vadd.f32 %v8255_v20, %v8063_v44  ;;  %v8067_v13 = vadd.f32 %v8066_v35, %v15264_v18  ;;  %v8259_v22 = vpop.f32.mrf.mxu1  ;;  %8724 = vmatmul.mubr.bf16.gmra.mxu1 %v15201_v27  ;;  %8540 = vmatprep.mubr.bf16.mxu0 %v17301_v45 }
 0x4a5   : > { %8733 = vmatprep.mubr.bf16.mxu1 %v15226_v31  ;;  %v8068_v19 = vpop.f32.mrf.mxu0  ;;  %v17302_v31 = vld [vmem:[#allocation127_spill] sm:$0xff] }
 0x4a6   : > { %v15327_v2 = vadd.f32 %v8259_v22, %v8067_v13  ;;  %v8069_v32 = vadd.f32 %v8068_v19, %v15268_v53  ;;  %v8261_v17 = vpop.f32.mrf.mxu1 }
 0x4a7   : > { %v8070_v60 = vpop.f32.mrf.mxu0 }
 0x4a8   : > { %v15330_v46 = vadd.f32 %v8261_v17, %v8069_v32  ;;  %v8071_v44 = vadd.f32 %v8070_v60, %v15264_v18  ;;  %v8263_v20 = vpop.f32.mrf.mxu1  ;;  %v17303_v32 = vld [vmem:[#allocation110_spill] sm:$0xff] }
 0x4a9   : > { %v8072_v35 = vpop.f32.mrf.mxu0 }
 0x4aa   : > { %v15333_v26 = vadd.f32 %v8263_v20, %v8071_v44  ;;  %v8073_v27 = vadd.f32 %v8072_v35, %v15268_v53  ;;  %v8265_v45 = vpop.f32.mrf.mxu1 }
 0x4ab   : > { %v8076_v42 = vpop.f32.mrf.mxu0  ;;  %8541 = vmatmul.mubr.bf16.gmra.mxu0 %v17302_v31 }
 0x4ac   : > { %v15337_v13 = vadd.f32 %v8265_v45, %v8073_v27  ;;  %v8077_v22 = vadd.f32 %v8076_v42, %v15264_v18  ;;  %v8269_v19 = vpop.f32.mrf.mxu1  ;;  %8734 = vmatmul.mubr.bf16.gmra.mxu1 %v15217_v62  ;;  %8550 = vmatprep.mubr.bf16.mxu0 %v17303_v32 }
 0x4ad   : > { %8743 = vmatprep.mubr.bf16.mxu1 %v15242_v28  ;;  %v8078_v17 = vpop.f32.mrf.mxu0  ;;  %v17304_v28 = vld [vmem:[#allocation129_spill] sm:$0xff] }
 0x4ae   : > { %v15343_v60 = vadd.f32 %v8269_v19, %v8077_v22  ;;  %v8079_v44 = vadd.f32 %v8078_v17, %v15268_v53  ;;  %v8271_v20 = vpop.f32.mrf.mxu1 }
 0x4af   : > { %v8080_v35 = vpop.f32.mrf.mxu0 }
 0x4b0   : > { %v15346_v11 = vadd.f32 %v8271_v20, %v8079_v44  ;;  %v8081_v27 = vadd.f32 %v8080_v35, %v15264_v18  ;;  %v8273_v45 = vpop.f32.mrf.mxu1  ;;  %v17305_v44 = vld [vmem:[#allocation131_spill] sm:$0xff] }
 0x4b1   : > { %v8082_v42 = vpop.f32.mrf.mxu0 }
 0x4b2   : > { %v15349_v31 = vadd.f32 %v8273_v45, %v8081_v27  ;;  %v8083_v62 = vadd.f32 %v8082_v42, %v15268_v53  ;;  %v8275_v32 = vpop.f32.mrf.mxu1 }
 0x4b3   : > { %v8086_v33 = vpop.f32.mrf.mxu0  ;;  %8551 = vmatmul.mubr.bf16.gmra.mxu0 %v17304_v28 }
 0x4b4   : > { %v15353_v22 = vadd.f32 %v8275_v32, %v8083_v62  ;;  %v8087_v19 = vadd.f32 %v8086_v33, %v15264_v18  ;;  %v8279_v17 = vpop.f32.mrf.mxu1  ;;  %8744 = vmatmul.mubr.bf16.gmra.mxu1 %v15233_v8  ;;  %8560 = vmatprep.mubr.bf16.mxu0 %v17305_v44 }
 0x4b5   : > { %8753 = vmatprep.mubr.bf16.mxu1 %v15258_v49  ;;  %v8088_v20 = vpop.f32.mrf.mxu0  ;;  %v17306_v49 = vld [vmem:[#allocation130_spill] sm:$0xff] }
 0x4b6   : > { %v15359_v35 = vadd.f32 %v8279_v17, %v8087_v19  ;;  %v8089_v27 = vadd.f32 %v8088_v20, %v15268_v53  ;;  %v8281_v45 = vpop.f32.mrf.mxu1 }
 0x4b7   : > { %v8090_v42 = vpop.f32.mrf.mxu0 }
 0x4b8   : > { %v15362_v21 = vadd.f32 %v8281_v45, %v8089_v27  ;;  %v8091_v62 = vadd.f32 %v8090_v42, %v15264_v18  ;;  %v8283_v32 = vpop.f32.mrf.mxu1  ;;  %v17307_v27 = vld [vmem:[#allocation135_spill] sm:$0xff] }
 0x4b9   : > { %v8092_v33 = vpop.f32.mrf.mxu0 }
 0x4ba   : > { %v15365_v28 = vadd.f32 %v8283_v32, %v8091_v62  ;;  %v8093_v8 = vadd.f32 %v8092_v33, %v15268_v53  ;;  %v8285_v44 = vpop.f32.mrf.mxu1 }
 0x4bb   : > { %v8096_v7 = vpop.f32.mrf.mxu0  ;;  %8561 = vmatmul.mubr.bf16.gmra.mxu0 %v17306_v49 }
 0x4bc   : > { %v15369_v19 = vadd.f32 %v8285_v44, %v8093_v8  ;;  %v8097_v17 = vadd.f32 %v8096_v7, %v15264_v18  ;;  %v8289_v20 = vpop.f32.mrf.mxu1  ;;  %8754 = vmatmul.mubr.bf16.gmra.mxu1 %v15249_v3  ;;  %8570 = vmatprep.mubr.bf16.mxu0 %v17307_v27 }
 0x4bd   : > { %8763 = vmatprep.mubr.bf16.mxu1 %v15277_v16  ;;  %v8098_v45 = vpop.f32.mrf.mxu0  ;;  %v17308_v16 = vld [vmem:[#allocation133_spill] sm:$0xff] }
 0x4be   : > { %v15375_v42 = vadd.f32 %v8289_v20, %v8097_v17  ;;  %v8099_v62 = vadd.f32 %v8098_v45, %v15268_v53  ;;  %v8291_v32 = vpop.f32.mrf.mxu1 }
 0x4bf   : > { %v8100_v33 = vpop.f32.mrf.mxu0 }
 0x4c0   : > { %v15378_v29 = vadd.f32 %v8291_v32, %v8099_v62  ;;  %v8101_v8 = vadd.f32 %v8100_v33, %v15264_v18  ;;  %v8293_v44 = vpop.f32.mrf.mxu1  ;;  %v17309_v62 = vld [vmem:[#allocation59_spill] sm:$0xff]  ;;  %v17310_v32 = vld [vmem:[#allocation90_spill] sm:$0xff] }
 0x4c1   : > { %v8102_v7 = vpop.f32.mrf.mxu0 }
 0x4c2   : > { %v15381_v49 = vadd.f32 %v8293_v44, %v8101_v8  ;;  %v8103_v3 = vadd.f32 %v8102_v7, %v15268_v53  ;;  %v8295_v27 = vpop.f32.mrf.mxu1 }
 0x4c3   : > { %v8106_v54 = vpop.f32.mrf.mxu0  ;;  %8571 = vmatmul.mubr.bf16.gmra.mxu0 %v17308_v16  ;;  %v12050_v16 = vld [vmem:[#allocation8 + $0x758] ss:$24 sps:$4 sm:$0xff]  }
 0x4c4   : > { %v15385_v17 = vadd.f32 %v8295_v27, %v8103_v3  ;;  %v8107_v20 = vadd.f32 %v8106_v54, %v15264_v18  ;;  %v8299_v45 = vpop.f32.mrf.mxu1  ;;  %8764 = vmatmul.mubr.bf16.gmra.mxu1 %v15271_v24  ;;  %8806 = vmatprep.mubr.bf16.mxu0 %v17309_v62 }
 0x4c5   : > { %8999 = vmatprep.mubr.bf16.mxu1 %v17310_v32  ;;  %v8108_v33 = vpop.f32.mrf.mxu0  ;;  %v12053_v32 = vld [vmem:[#allocation8 + $0xa58] ss:$24 sps:$4 sm:$0xff]  }
 0x4c6   : > { %v15391_v8 = vadd.f32 %v8299_v45, %v8107_v20  ;;  %v8109_v44 = vadd.f32 %v8108_v33, %v15268_v53  ;;  %v8301_v7 = vpop.f32.mrf.mxu1  ;;  %v17311_v45 = vld [vmem:[#allocation58_spill] sm:$0xff]  ;;  %v12061_v33 = vld [vmem:[#allocation8 + $0xa2c] ss:$24 sps:$4 sm:$0xff]  }
 0x4c7   : > { %v8110_v40 = vpop.f32.mrf.mxu0 }
 0x4c8   : > { %v15394_v43 = vadd.f32 %v8301_v7, %v8109_v44  ;;  %v8111_v3 = vadd.f32 %v8110_v40, %v15264_v18  ;;  %v8303_v27 = vpop.f32.mrf.mxu1  ;;  %v17312_v40 = vld [vmem:[#allocation89_spill] sm:$0xff] }
 0x4c9   : > { %v8112_v54 = vpop.f32.mrf.mxu0 }
 0x4ca   : > { %v15397_v5 = vadd.f32 %v8303_v27, %v8111_v3  ;;  %v8113_v62 = vadd.f32 %v8112_v54, %v15268_v53  ;;  %v8305_v24 = vpop.f32.mrf.mxu1  ;;  %v17314_v3 = vld [vmem:[#allocation62_spill] sm:$0xff]  ;;  %v12056_v54 = vld [vmem:[#allocation8 + $0x728] ss:$24 sps:$4 sm:$0xff]  }
 0x4cb   : > { %v8116_v20 = vpop.f32.mrf.mxu0  ;;  %8807 = vmatmul.mubr.bf16.vlgmr.msra.gmra.mxu0 %v17311_v45 }
 0x4cc   : > { %v15401_v9 = vadd.f32 %v8305_v24, %v8113_v62  ;;  %v8117_v44 = vadd.f32 %v8116_v20, %v15264_v18  ;;  %v8309_v7 = vpop.f32.mrf.mxu1  ;;  %9000 = vmatmul.mubr.bf16.vlgmr.msra.gmra.mxu1 %v17312_v40  ;;  %8816 = vmatprep.mubr.bf16.mxu0 %v17313_v38  ;;  %v12059_v24 = vld [vmem:[#allocation8 + $0xa28] ss:$24 sps:$4 sm:$0xff]   ;;  %v12064_v62 = vld [vmem:[#allocation8 + $0x6fc] ss:$24 sps:$4 sm:$0xff]  }
 0x4cd   : > { %9009 = vmatprep.mubr.bf16.mxu1 %v17314_v3  ;;  %9161 = vmatpush1.bf16.msra.mxu0 %v12050_v16  ;;  %v8118_v27 = vpop.f32.mrf.mxu0 }
 0x4ce   : > { %v15407_v30 = vadd.f32 %v8309_v7, %v8117_v44  ;;  %v8119_v1 = vadd.f32 %v8118_v27, %v15268_v53  ;;  %v8311_v45 = vpop.f32.mrf.mxu1  ;;  %9354 = vmatpush1.bf16.msra.mxu1 %v12053_v32  ;;  %9162 = vmatprep.subr.bf16.mxu0 %v12058_v12  ;;  %v12065_v12 = vld [vmem:[#allocation8 + $0x9f8] ss:$24 sps:$4 sm:$0xff]   ;;  %v12070_v32 = vld [vmem:[#allocation8 + $0x6cc] ss:$24 sps:$4 sm:$0xff]  }
 0x4cf   : > { %v8120_v20 = vpop.f32.mrf.mxu0  ;;  %9355 = vmatprep.subr.bf16.mxu1 %v12061_v33  ;;  %v17316_v33 = vld [vmem:[#allocation60_spill] sm:$0xff] }
 0x4d0   : > { %v15410_v40 = vadd.f32 %v8311_v45, %v8119_v1  ;;  %v8121_v38 = vadd.f32 %v8120_v20, %v15264_v18  ;;  %v8313_v3 = vpop.f32.mrf.mxu1  ;;  %v12073_v1 = vld [vmem:[#allocation8 + $0x9cc] ss:$24 sps:$4 sm:$0xff]  }
 0x4d1   : > { %v8122_v16 = vpop.f32.mrf.mxu0  ;;  %9163 = vmatpush1.bf16.msra.mxu0 %v12056_v54 }
 0x4d2   : > { %v15413_v44 = vadd.f32 %v8313_v3, %v8121_v38  ;;  %v8123_v7 = vadd.f32 %v8122_v16, %v15268_v53  ;;  %v8315_v27 = vpop.f32.mrf.mxu1  ;;  %9356 = vmatpush1.bf16.msra.mxu1 %v12059_v24  ;;  %9164 = vmatprep.subr.bf16.mxu0 %v12064_v62  ;;  %v17319_v38 = vld [vmem:[#allocation64_spill] sm:$0xff]  ;;  %v17320_v3 = vld [vmem:[#allocation65_spill] sm:$0xff] }
 0x4d3   : > { %v8126_v39 = vpop.f32.mrf.mxu0  ;;  %8817 = vmatmul.mubr.bf16.gmra.mxu0 %v17316_v33  ;;  %9357 = vmatprep.subr.bf16.mxu1 %v12067_v52  ;;  %v12068_v62 = vld [vmem:[#allocation8 + $0x6c8] ss:$24 sps:$4 sm:$0xff]  }
 0x4d4   : > { %17315 = vst [vmem:[#allocation128_spill] sm:$0xff] %v15413_v44  ;;  %v15417_v45 = vadd.f32 %v8315_v27, %v8123_v7  ;;  %v8127_v20 = vadd.f32 %v8126_v39, %v15264_v18  ;;  %v8319_v54 = vpop.f32.mrf.mxu1  ;;  %9010 = vmatmul.mubr.bf16.gmra.mxu1 %v17318_v57  ;;  %8826 = vmatprep.mubr.bf16.mxu0 %v17319_v38  ;;  %v12071_v7 = vld [vmem:[#allocation8 + $0x9c8] ss:$24 sps:$4 sm:$0xff]   ;;  %v12076_v27 = vld [vmem:[#allocation8 + $0x69c] ss:$24 sps:$4 sm:$0xff]  }
 0x4d5   : > { %9019 = vmatprep.mubr.bf16.mxu1 %v17320_v3  ;;  %v8128_v24 = vpop.f32.mrf.mxu0  ;;  %9165 = vmatpush1.bf16.msra.mxu0 %v12062_v10  ;;  %v12074_v10 = vld [vmem:[#allocation8 + $0x698] ss:$24 sps:$4 sm:$0xff]  }
 0x4d6   : > { %17317 = vst [vmem:[#allocation111_spill] sm:$0xff] %v15417_v45  ;;  %v15423_v16 = vadd.f32 %v8319_v54, %v8127_v20  ;;  %v8129_v33 = vadd.f32 %v8128_v24, %v15268_v53  ;;  %v8321_v52 = vpop.f32.mrf.mxu1  ;;  %9358 = vmatpush1.bf16.msra.mxu1 %v12065_v12  ;;  %9166 = vmatprep.subr.bf16.mxu0 %v12070_v32  ;;  %v12079_v45 = vld [vmem:[#allocation8 + $0x99c] ss:$24 sps:$4 sm:$0xff]   ;;  %v12077_v12 = vld [vmem:[#allocation8 + $0x998] ss:$24 sps:$4 sm:$0xff]  }
 0x4d7   : > { %v8130_v39 = vpop.f32.mrf.mxu0  ;;  %9359 = vmatprep.subr.bf16.mxu1 %v12073_v1  ;;  %v12082_v32 = vld [vmem:[#allocation8 + $0x66c] ss:$24 sps:$4 sm:$0xff]  }
 0x4d8   : > { %17321 = vst [vmem:[#allocation132_spill] sm:$0xff] %v15423_v16  ;;  %v15426_v57 = vadd.f32 %v8321_v52, %v8129_v33  ;;  %v8131_v38 = vadd.f32 %v8130_v39, %v15264_v18  ;;  %v8323_v3 = vpop.f32.mrf.mxu1  ;;  %v17324_v1 = vld [vmem:[#allocation63_spill] sm:$0xff] }
 0x4d9   : > { %v8132_v44 = vpop.f32.mrf.mxu0  ;;  %9167 = vmatpush1.bf16.msra.mxu0 %v12068_v62  ;;  %v12085_v33 = vld [vmem:[#allocation8 + $0x96c] ss:$24 sps:$4 sm:$0xff]  }
 0x4da   : > { %17322 = vst [vmem:[#allocation134_spill] sm:$0xff] %v15426_v57  ;;  %v15429_v20 = vadd.f32 %v8323_v3, %v8131_v38  ;;  %v8133_v54 = vadd.f32 %v8132_v44, %v15268_v53  ;;  %v8325_v24 = vpop.f32.mrf.mxu1  ;;  %9360 = vmatpush1.bf16.msra.mxu1 %v12071_v7  ;;  %9168 = vmatprep.subr.bf16.mxu0 %v12076_v27  ;;  %v17326_v57 = vld [vmem:[#allocation92_spill] sm:$0xff]  ;;  %v17327_v38 = vld [vmem:[#allocation67_spill] sm:$0xff]  ;;  %v17328_v44 = vld [vmem:[#allocation69_spill] sm:$0xff] }
 0x4db   : > { %v8136_v16 = vpop.f32.mrf.mxu0  ;;  %8827 = vmatmul.mubr.bf16.gmra.mxu0 %v17324_v1  ;;  %9361 = vmatprep.subr.bf16.mxu1 %v12079_v45  ;;  %v12080_v7 = vld [vmem:[#allocation8 + $0x668] ss:$24 sps:$4 sm:$0xff]  }
 0x4dc   : > { %17323 = vst [vmem:[#allocation140_spill] sm:$0xff] %v15429_v20  ;;  %v15433_v52 = vadd.f32 %v8325_v24, %v8133_v54  ;;  %v8137_v39 = vadd.f32 %v8136_v16, %v15264_v18  ;;  %v8329_v62 = vpop.f32.mrf.mxu1  ;;  %9020 = vmatmul.mubr.bf16.gmra.mxu1 %v17326_v57  ;;  %8836 = vmatprep.mubr.bf16.mxu0 %v17327_v38  ;;  %v12083_v54 = vld [vmem:[#allocation8 + $0x968] ss:$24 sps:$4 sm:$0xff]   ;;  %v12088_v24 = vld [vmem:[#allocation8 + $0x63c] ss:$24 sps:$4 sm:$0xff]  }
 0x4dd   : > { %9029 = vmatprep.mubr.bf16.mxu1 %v17328_v44  ;;  %v8138_v3 = vpop.f32.mrf.mxu0  ;;  %9169 = vmatpush1.bf16.msra.mxu0 %v12074_v10  ;;  %v12086_v10 = vld [vmem:[#allocation8 + $0x638] ss:$24 sps:$4 sm:$0xff]  }
 0x4de   : > { %17325 = vst [vmem:[#allocation141_spill] sm:$0xff] %v15433_v52  ;;  %v15439_v27 = vadd.f32 %v8329_v62, %v8137_v39  ;;  %v8139_v1 = vadd.f32 %v8138_v3, %v15268_v53  ;;  %v8331_v45 = vpop.f32.mrf.mxu1  ;;  %9362 = vmatpush1.bf16.msra.mxu1 %v12077_v12  ;;  %9170 = vmatprep.subr.bf16.mxu0 %v12082_v32  ;;  %v12091_v52 = vld [vmem:[#allocation8 + $0x93c] ss:$24 sps:$4 sm:$0xff]   ;;  %v12089_v12 = vld [vmem:[#allocation8 + $0x938] ss:$24 sps:$4 sm:$0xff]  }
 0x4df   : > { %v8140_v16 = vpop.f32.mrf.mxu0  ;;  %9363 = vmatprep.subr.bf16.mxu1 %v12085_v33  ;;  %v12094_v32 = vld [vmem:[#allocation8 + $0x60c] ss:$24 sps:$4 sm:$0xff]   ;;  %v17332_v33 = vld [vmem:[#allocation66_spill] sm:$0xff] }
 0x4e0   : > { %17329 = vst [vmem:[#allocation142_spill] sm:$0xff] %v15439_v27  ;;  %v15442_v57 = vadd.f32 %v8331_v45, %v8139_v1  ;;  %v8141_v38 = vadd.f32 %v8140_v16, %v15264_v18  ;;  %v8333_v44 = vpop.f32.mrf.mxu1  ;;  %v12097_v1 = vld [vmem:[#allocation8 + $0x90c] ss:$24 sps:$4 sm:$0xff]  }
 0x4e1   : > { %v8142_v20 = vpop.f32.mrf.mxu0  ;;  %9171 = vmatpush1.bf16.msra.mxu0 %v12080_v7 }
 0x4e2   : > { %17330 = vst [vmem:[#allocation143_spill] sm:$0xff] %v15442_v57  ;;  %v15445_v39 = vadd.f32 %v8333_v44, %v8141_v38  ;;  %v8143_v62 = vadd.f32 %v8142_v20, %v15268_v53  ;;  %v8335_v3 = vpop.f32.mrf.mxu1  ;;  %9364 = vmatpush1.bf16.msra.mxu1 %v12083_v54  ;;  %9172 = vmatprep.subr.bf16.mxu0 %v12088_v24  ;;  %v17334_v57 = vld [vmem:[#allocation68_spill] sm:$0xff]  ;;  %v17336_v20 = vld [vmem:[#allocation73_spill] sm:$0xff] }
 0x4e3   : > { %v8146_v27 = vpop.f32.mrf.mxu0  ;;  %8837 = vmatmul.mubr.bf16.gmra.mxu0 %v17332_v33  ;;  %9365 = vmatprep.subr.bf16.mxu1 %v12091_v52  ;;  %v17335_v38 = vld [vmem:[#allocation72_spill] sm:$0xff] }
 0x4e4   : > { %17331 = vst [vmem:[#allocation144_spill] sm:$0xff] %v15445_v39  ;;  %v15449_v45 = vadd.f32 %v8335_v3, %v8143_v62  ;;  %v8147_v16 = vadd.f32 %v8146_v27, %v15264_v18  ;;  %v8339_v7 = vpop.f32.mrf.mxu1  ;;  %9030 = vmatmul.mubr.bf16.gmra.mxu1 %v17334_v57  ;;  %8846 = vmatprep.mubr.bf16.mxu0 %v17335_v38  ;;  %v12092_v54 = vld [vmem:[#allocation8 + $0x608] ss:$24 sps:$4 sm:$0xff]   ;;  %v12100_v3 = vld [vmem:[#allocation8 + $0x8dc] ss:$24 sps:$4 sm:$0xff]  }
 0x4e5   : > { %9039 = vmatprep.mubr.bf16.mxu1 %v17336_v20  ;;  %v8148_v44 = vpop.f32.mrf.mxu0  ;;  %9173 = vmatpush1.bf16.msra.mxu0 %v12086_v10  ;;  %v12095_v62 = vld [vmem:[#allocation8 + $0x908] ss:$24 sps:$4 sm:$0xff]   ;;  %v12098_v10 = vld [vmem:[#allocation8 + $0x8d8] ss:$24 sps:$4 sm:$0xff]  }
 0x4e6   : > { %17333 = vst [vmem:[#allocation145_spill] sm:$0xff] %v15449_v45  ;;  %v15455_v24 = vadd.f32 %v8339_v7, %v8147_v16  ;;  %v8149_v33 = vadd.f32 %v8148_v44, %v15268_v53  ;;  %v8341_v52 = vpop.f32.mrf.mxu1  ;;  %9366 = vmatpush1.bf16.msra.mxu1 %v12089_v12  ;;  %9174 = vmatprep.subr.bf16.mxu0 %v12094_v32  ;;  %v12103_v45 = vld [vmem:[#allocation8 + $0xbdc] ss:$24 sps:$4 sm:$0xff]   ;;  %v12101_v12 = vld [vmem:[#allocation8 + $0xbd8] ss:$24 sps:$4 sm:$0xff]  }
 0x4e7   : > { %v8150_v27 = vpop.f32.mrf.mxu0  ;;  %9367 = vmatprep.subr.bf16.mxu1 %v12097_v1  ;;  %v12106_v32 = vld [vmem:[#allocation8 + $0x8ac] ss:$24 sps:$4 sm:$0xff]   ;;  %v17340_v1 = vld [vmem:[#allocation70_spill] sm:$0xff] }
 0x4e8   : > { %17337 = vst [vmem:[#allocation146_spill] sm:$0xff] %v15455_v24  ;;  %v15458_v57 = vadd.f32 %v8341_v52, %v8149_v33  ;;  %v8151_v38 = vadd.f32 %v8150_v27, %v15264_v18  ;;  %v8343_v20 = vpop.f32.mrf.mxu1  ;;  %v12109_v33 = vld [vmem:[#allocation8 + $0xbac] ss:$24 sps:$4 sm:$0xff]  }
 0x4e9   : > { %v8152_v39 = vpop.f32.mrf.mxu0  ;;  %9175 = vmatpush1.bf16.msra.mxu0 %v12092_v54 }
 0x4ea   : > { %17338 = vst [vmem:[#allocation147_spill] sm:$0xff] %v15458_v57  ;;  %v15461_v16 = vadd.f32 %v8343_v20, %v8151_v38  ;;  %v8153_v7 = vadd.f32 %v8152_v39, %v15268_v53  ;;  %v8345_v44 = vpop.f32.mrf.mxu1  ;;  %9368 = vmatpush1.bf16.msra.mxu1 %v12095_v62  ;;  %9176 = vmatprep.subr.bf16.mxu0 %v12100_v3  ;;  %v17342_v57 = vld [vmem:[#allocation71_spill] sm:$0xff]  ;;  %v17343_v38 = vld [vmem:[#allocation78_spill] sm:$0xff] }
 0x4eb   : > { %v8156_v24 = vpop.f32.mrf.mxu0  ;;  %8847 = vmatmul.mubr.bf16.gmra.mxu0 %v17340_v1  ;;  %9369 = vmatprep.subr.bf16.mxu1 %v12103_v45  ;;  %v17344_v39 = vld [vmem:[#allocation75_spill] sm:$0xff] }
 0x4ec   : > { %17339 = vst [vmem:[#allocation148_spill] sm:$0xff] %v15461_v16  ;;  %v15465_v52 = vadd.f32 %v8345_v44, %v8153_v7  ;;  %v8157_v27 = vadd.f32 %v8156_v24, %v15264_v18  ;;  %v8349_v54 = vpop.f32.mrf.mxu1  ;;  %9040 = vmatmul.mubr.bf16.gmra.mxu1 %v17342_v57  ;;  %8856 = vmatprep.mubr.bf16.mxu0 %v17343_v38  ;;  %v12104_v62 = vld [vmem:[#allocation8 + $0x8a8] ss:$24 sps:$4 sm:$0xff]   ;;  %v12112_v44 = vld [vmem:[#allocation8 + $0x87c] ss:$24 sps:$4 sm:$0xff]  }
 0x4ed   : > { %9049 = vmatprep.mubr.bf16.mxu1 %v17344_v39  ;;  %v8158_v20 = vpop.f32.mrf.mxu0  ;;  %9177 = vmatpush2.bf16.msra.mxu0 %v12098_v10  ;;  %v12107_v7 = vld [vmem:[#allocation8 + $0xba8] ss:$24 sps:$4 sm:$0xff]   ;;  %v12110_v10 = vld [vmem:[#allocation8 + $0x878] ss:$24 sps:$4 sm:$0xff]  }
 0x4ee   : > { %17341 = vst [vmem:[#allocation149_spill] sm:$0xff] %v15465_v52  ;;  %v15471_v3 = vadd.f32 %v8349_v54, %v8157_v27  ;;  %v8159_v1 = vadd.f32 %v8158_v20, %v15268_v53  ;;  %v8351_v45 = vpop.f32.mrf.mxu1  ;;  %9370 = vmatpush2.bf16.msra.mxu1 %v12101_v12  ;;  %9178 = vmatprep.subr.bf16.mxu0 %v12106_v32  ;;  %v12115_v52 = vld [vmem:[#allocation8 + $0xb7c] ss:$24 sps:$4 sm:$0xff]   ;;  %v12113_v12 = vld [vmem:[#allocation8 + $0xb78] ss:$24 sps:$4 sm:$0xff]  }
 0x4ef   : > { %v8160_v24 = vpop.f32.mrf.mxu0  ;;  %9371 = vmatprep.subr.bf16.mxu1 %v12109_v33  ;;  %v12118_v32 = vld [vmem:[#allocation8 + $0x84c] ss:$24 sps:$4 sm:$0xff]  }
 0x4f0   : > { %17345 = vst [vmem:[#allocation150_spill] sm:$0xff] %v15471_v3  ;;  %v15474_v57 = vadd.f32 %v8351_v45, %v8159_v1  ;;  %v8161_v38 = vadd.f32 %v8160_v24, %v15264_v18  ;;  %v8353_v39 = vpop.f32.mrf.mxu1  ;;  %v17348_v33 = vld [vmem:[#allocation76_spill] sm:$0xff] }
 0x4f1   : > { %v8162_v16 = vpop.f32.mrf.mxu0  ;;  %9179 = vmatpush2.bf16.msra.mxu0 %v12104_v62  ;;  %v12121_v1 = vld [vmem:[#allocation8 + $0xb4c] ss:$24 sps:$4 sm:$0xff]  }
 0x4f2   : > { %17346 = vst [vmem:[#allocation151_spill] sm:$0xff] %v15474_v57  ;;  %v15477_v27 = vadd.f32 %v8353_v39, %v8161_v38  ;;  %v8163_v54 = vadd.f32 %v8162_v16, %v15268_v53  ;;  %v8355_v20 = vpop.f32.mrf.mxu1  ;;  %9372 = vmatpush2.bf16.msra.mxu1 %v12107_v7  ;;  %9180 = vmatprep.subr.bf16.mxu0 %v12112_v44  ;;  %v17350_v57 = vld [vmem:[#allocation74_spill] sm:$0xff]  ;;  %v17351_v38 = vld [vmem:[#allocation84_spill] sm:$0xff]  ;;  %v17352_v16 = vld [vmem:[#allocation79_spill] sm:$0xff] }
 0x4f3   : > { %v8166_v3 = vpop.f32.mrf.mxu0  ;;  %8857 = vmatmul.mubr.bf16.gmra.mxu0 %v17348_v33  ;;  %9373 = vmatprep.subr.bf16.mxu1 %v12115_v52  ;;  %v12116_v7 = vld [vmem:[#allocation8 + $0x848] ss:$24 sps:$4 sm:$0xff]  }
 0x4f4   : > { %17347 = vst [vmem:[#allocation152_spill] sm:$0xff] %v15477_v27  ;;  %v15481_v45 = vadd.f32 %v8355_v20, %v8163_v54  ;;  %v8167_v24 = vadd.f32 %v8166_v3, %v15264_v18  ;;  %v8359_v62 = vpop.f32.mrf.mxu1  ;;  %9050 = vmatmul.mubr.bf16.gmra.mxu1 %v17350_v57  ;;  %8866 = vmatprep.mubr.bf16.mxu0 %v17351_v38  ;;  %v12119_v54 = vld [vmem:[#allocation8 + $0xb48] ss:$24 sps:$4 sm:$0xff]   ;;  %v12124_v20 = vld [vmem:[#allocation8 + $0x81c] ss:$24 sps:$4 sm:$0xff]  }
 0x4f5   : > { %9059 = vmatprep.mubr.bf16.mxu1 %v17352_v16  ;;  %v8168_v39 = vpop.f32.mrf.mxu0  ;;  %9181 = vmatpush2.bf16.msra.mxu0 %v12110_v10  ;;  %v12122_v10 = vld [vmem:[#allocation8 + $0x818] ss:$24 sps:$4 sm:$0xff]  }
 0x4f6   : > { %17349 = vst [vmem:[#allocation153_spill] sm:$0xff] %v15481_v45  ;;  %v15487_v44 = vadd.f32 %v8359_v62, %v8167_v24  ;;  %v8169_v33 = vadd.f32 %v8168_v39, %v15268_v53  ;;  %v8361_v52 = vpop.f32.mrf.mxu1  ;;  %9374 = vmatpush2.bf16.msra.mxu1 %v12113_v12  ;;  %9182 = vmatprep.subr.bf16.mxu0 %v12118_v32  ;;  %v12127_v45 = vld [vmem:[#allocation8 + $0xb1c] ss:$24 sps:$4 sm:$0xff]   ;;  %v12125_v12 = vld [vmem:[#allocation8 + $0xb18] ss:$24 sps:$4 sm:$0xff]  }
 0x4f7   : > { %v8170_v3 = vpop.f32.mrf.mxu0  ;;  %9375 = vmatprep.subr.bf16.mxu1 %v12121_v1  ;;  %v12130_v32 = vld [vmem:[#allocation8 + $0x7ec] ss:$24 sps:$4 sm:$0xff]   ;;  %v17356_v1 = vld [vmem:[#allocation82_spill] sm:$0xff] }
 0x4f8   : > { %17353 = vst [vmem:[#allocation154_spill] sm:$0xff] %v15487_v44  ;;  %v15490_v57 = vadd.f32 %v8361_v52, %v8169_v33  ;;  %v8171_v38 = vadd.f32 %v8170_v3, %v15264_v18  ;;  %v8363_v16 = vpop.f32.mrf.mxu1  ;;  %v12133_v33 = vld [vmem:[#allocation8 + $0xaec] ss:$24 sps:$4 sm:$0xff]  }
 0x4f9   : > { %v8172_v27 = vpop.f32.mrf.mxu0  ;;  %9183 = vmatpush2.bf16.msra.mxu0 %v12116_v7 }
 0x4fa   : > { %17354 = vst [vmem:[#allocation155_spill] sm:$0xff] %v15490_v57  ;;  %v15493_v24 = vadd.f32 %v8363_v16, %v8171_v38  ;;  %v8173_v62 = vadd.f32 %v8172_v27, %v15268_v53  ;;  %v8365_v39 = vpop.f32.mrf.mxu1  ;;  %9376 = vmatpush2.bf16.msra.mxu1 %v12119_v54  ;;  %9184 = vmatprep.subr.bf16.mxu0 %v12124_v20  ;;  %v17358_v57 = vld [vmem:[#allocation77_spill] sm:$0xff]  ;;  %v17359_v38 = vld [vmem:[#allocation87_spill] sm:$0xff] }
 0x4fb   : > { %v8176_v44 = vpop.f32.mrf.mxu0  ;;  %8867 = vmatmul.mubr.bf16.gmra.mxu0 %v17356_v1  ;;  %9377 = vmatprep.subr.bf16.mxu1 %v12127_v45  ;;  %v17360_v27 = vld [vmem:[#allocation81_spill] sm:$0xff]  ;;  %v12128_v54 = vld [vmem:[#allocation8 + $0x7e8] ss:$24 sps:$4 sm:$0xff]  }
 0x4fc   : > { %17355 = vst [vmem:[#allocation156_spill] sm:$0xff] %v15493_v24  ;;  %v15497_v52 = vadd.f32 %v8365_v39, %v8173_v62  ;;  %v8177_v3 = vadd.f32 %v8176_v44, %v15264_v18  ;;  %v8369_v7 = vpop.f32.mrf.mxu1  ;;  %9060 = vmatmul.mubr.bf16.gmra.mxu1 %v17358_v57  ;;  %8876 = vmatprep.mubr.bf16.mxu0 %v17359_v38  ;;  %v12131_v62 = vld [vmem:[#allocation8 + $0xae8] ss:$24 sps:$4 sm:$0xff]   ;;  %v12136_v39 = vld [vmem:[#allocation8 + $0x7bc] ss:$24 sps:$4 sm:$0xff]  }
 0x4fd   : > { %9069 = vmatprep.mubr.bf16.mxu1 %v17360_v27  ;;  %v8178_v16 = vpop.f32.mrf.mxu0  ;;  %9185 = vmatpush2.bf16.msra.mxu0 %v12122_v10  ;;  %v12134_v10 = vld [vmem:[#allocation8 + $0x7b8] ss:$24 sps:$4 sm:$0xff]  }
 0x4fe   : > { %17357 = vst [vmem:[#allocation157_spill] sm:$0xff] %v15497_v52  ;;  %v15503_v20 = vadd.f32 %v8369_v7, %v8177_v3  ;;  %v8179_v1 = vadd.f32 %v8178_v16, %v15268_v53  ;;  %v8371_v45 = vpop.f32.mrf.mxu1  ;;  %9378 = vmatpush2.bf16.msra.mxu1 %v12125_v12  ;;  %9186 = vmatprep.subr.bf16.mxu0 %v12130_v32  ;;  %v12139_v52 = vld [vmem:[#allocation8 + $0xabc] ss:$24 sps:$4 sm:$0xff]   ;;  %v12137_v12 = vld [vmem:[#allocation8 + $0xab8] ss:$24 sps:$4 sm:$0xff]  }
 0x4ff   : > { %v8180_v44 = vpop.f32.mrf.mxu0  ;;  %9379 = vmatprep.subr.bf16.mxu1 %v12133_v33  ;;  %v12142_v32 = vld [vmem:[#allocation8 + $0x78c] ss:$24 sps:$4 sm:$0xff]   ;;  %v17363_v33 = vld [vmem:[#allocation86_spill] sm:$0xff] }
 0x500   : > { %17361 = vst [vmem:[#allocation158_spill] sm:$0xff] %v15503_v20  ;;  %v15506_v57 = vadd.f32 %v8371_v45, %v8179_v1  ;;  %v8181_v38 = vadd.f32 %v8180_v44, %v15264_v18  ;;  %v8373_v27 = vpop.f32.mrf.mxu1  ;;  %v12145_v1 = vld [vmem:[#allocation8 + $0xa8c] ss:$24 sps:$4 sm:$0xff]  }
 0x501   : > { %v8182_v24 = vpop.f32.mrf.mxu0  ;;  %9187 = vmatpush2.bf16.msra.mxu0 %v12128_v54 }
 0x502   : > { %17362 = vst [vmem:[#allocation159_spill] sm:$0xff] %v15506_v57  ;;  %v15509_v3 = vadd.f32 %v8373_v27, %v8181_v38  ;;  %v8183_v7 = vadd.f32 %v8182_v24, %v15268_v53  ;;  %v8375_v16 = vpop.f32.mrf.mxu1  ;;  %9380 = vmatpush2.bf16.msra.mxu1 %v12131_v62  ;;  %9188 = vmatprep.subr.bf16.mxu0 %v12136_v39  ;;  %v17365_v57 = vld [vmem:[#allocation80_spill] sm:$0xff]  ;;  %v17366_v38 = vld [vmem:[#allocation26_spill] sm:$0xff]  ;;  %v17367_v24 = vld [vmem:[#allocation85_spill] sm:$0xff] }
 0x503   : > { %v8186_v20 = vpop.f32.mrf.mxu0  ;;  %8877 = vmatmul.mubr.bf16.gmra.mxu0 %v17363_v33  ;;  %9381 = vmatprep.subr.bf16.mxu1 %v12139_v52  ;;  %v12140_v62 = vld [vmem:[#allocation8 + $0x788] ss:$24 sps:$4 sm:$0xff]  }
 0x504   : > { %v15513_v45 = vadd.f32 %v8375_v16, %v8183_v7  ;;  %v8187_v44 = vadd.f32 %v8186_v20, %v15264_v18  ;;  %v8379_v54 = vpop.f32.mrf.mxu1  ;;  %9070 = vmatmul.mubr.bf16.gmra.mxu1 %v17365_v57  ;;  %8886 = vmatprep.mubr.bf16.mxu0 %v17366_v38  ;;  %v12143_v7 = vld [vmem:[#allocation8 + $0xa88] ss:$24 sps:$4 sm:$0xff]   ;;  %v12148_v20 = vld [vmem:[#allocation8 + $0x164] ss:$24 sps:$4 sm:$0xff]  }
 0x505   : > { %9079 = vmatprep.mubr.bf16.mxu1 %v17367_v24  ;;  %v8188_v27 = vpop.f32.mrf.mxu0  ;;  %9189 = vmatpush2.bf16.msra.mxu0 %v12134_v10  ;;  %v12151_v57 = vld [vmem:[#allocation8 + $0x464] ss:$24 sps:$4 sm:$0xff]  }
 0x506   : > { %17364 = vst [vmem:[#allocation160_spill] sm:$0xff] %v15513_v45  ;;  %v15519_v39 = vadd.f32 %v8379_v54, %v8187_v44  ;;  %v8189_v52 = vadd.f32 %v8188_v27, %v15268_v53  ;;  %v8381_v33 = vpop.f32.mrf.mxu1  ;;  %9382 = vmatpush2.bf16.msra.mxu1 %v12137_v12  ;;  %9190 = vmatprep.subr.bf16.mxu0 %v12142_v32  ;;  %v17368_v32 = vld [vmem:[#allocation21_spill] sm:$0xff] }
 0x507   : > { %v8190_v16 = vpop.f32.mrf.mxu0  ;;  %9383 = vmatprep.subr.bf16.mxu1 %v12145_v1 }
 0x508   : > { %v15522_v45 = vadd.f32 %v8381_v33, %v8189_v52  ;;  %v8191_v24 = vadd.f32 %v8190_v16, %v15264_v18  ;;  %v8383_v38 = vpop.f32.mrf.mxu1  ;;  %v17369_v52 = vld [vmem:[#allocation83_spill] sm:$0xff]  ;;  %v17370_v16 = vld [vmem:[#allocation32_spill] sm:$0xff] }
 0x509   : > { %v8192_v10 = vpop.f32.mrf.mxu0  ;;  %9191 = vmatpush2.bf16.msra.mxu0 %v12140_v62 }
 0x50a   : > { %v15526_v44 = vadd.f32 %v8383_v38, %v8191_v24  ;;  %v8193_v54 = vadd.f32 %v8192_v10, %v15268_v53  ;;  %v8385_v27 = vpop.f32.mrf.mxu1  ;;  %9384 = vmatpush2.bf16.msra.mxu1 %v12143_v7  ;;  %9546 = vmatprep.subr.bf16.mxu0 %v12148_v20  ;;  %v17371_v38 = vld [vmem:[#allocation18_spill] sm:$0xff] }
 0x50b   : > { %v8422_v12 = vpop.f32.mrf.mxu0  ;;  %8887 = vmatmul.mubr.bf16.gmra.mxu0 %v17368_v32  ;;  %9739 = vmatprep.subr.bf16.mxu1 %v12151_v57 }
 0x50c   : > { %v15530_v1 = vadd.f32 %v8385_v27, %v8193_v54  ;;  %v8423_v33 = vadd.f32 %v8422_v12, %v15279_v63  ;;  %v8615_v18 = vpop.f32.mrf.mxu1  ;;  %9080 = vmatmul.mubr.bf16.gmra.mxu1 %v17369_v52  ;;  %8896 = vmatprep.mubr.bf16.mxu0 %v17370_v16 }
 0x50d   : > { %9089 = vmatprep.mubr.bf16.mxu1 %v17371_v38  ;;  %v8424_v24 = vpop.f32.mrf.mxu0 }
 0x50e   : > { %v8616_v53 = vadd.f32 %v8615_v18, %v8423_v33  ;;  %v8425_v62 = vadd.f32 %v8424_v24, %v15282_v61  ;;  %v8617_v7 = vpop.f32.mrf.mxu1 }
 0x50f   : > { %v8426_v20 = vpop.f32.mrf.mxu0 }
 0x510   : > { %10318 = vst [vmem:[%s15537_s26] sm:$0xff] %v8616_v53  ;;  %v8618_v57 = vadd.f32 %v8617_v7, %v8425_v62  ;;  %v8427_v63 = vadd.f32 %v8426_v20, %v15285_v48  ;;  %v8619_v10 = vpop.f32.mrf.mxu1  ;;  %v17372_v48 = vld [vmem:[#allocation38_spill] sm:$0xff] }
 0x511   : > { %v8428_v54 = vpop.f32.mrf.mxu0  ;;  %v17373_v62 = vld [vmem:[#allocation22_spill] sm:$0xff] }
 0x512   : > { %10319 = vst [vmem:[%s15537_s26 + $0x8] sm:$0xff] %v8618_v57  ;;  %v8620_v27 = vadd.f32 %v8619_v10, %v8427_v63  ;;  %v8429_v12 = vadd.f32 %v8428_v54, %v15289_v0  ;;  %v8621_v33 = vpop.f32.mrf.mxu1 }
 0x513   : > { %v8432_v61 = vpop.f32.mrf.mxu0  ;;  %8897 = vmatmul.mubr.bf16.gmra.mxu0 %v17194_v55 }
 0x514   : > { %10324 = vst [vmem:[%s15537_s26 + $0x30] sm:$0xff] %v8620_v27  ;;  %v8622_v18 = vadd.f32 %v8621_v33, %v8429_v12  ;;  %v8433_v24 = vadd.f32 %v8432_v61, %v15295_v23  ;;  %v8625_v53 = vpop.f32.mrf.mxu1  ;;  %9090 = vmatmul.mubr.bf16.gmra.mxu1 %v17196_v6  ;;  %8906 = vmatprep.mubr.bf16.mxu0 %v17372_v48 }
 0x515   : > { %9099 = vmatprep.mubr.bf16.mxu1 %v17373_v62  ;;  %v8434_v7 = vpop.f32.mrf.mxu0 }
 0x516   : > { %10325 = vst [vmem:[%s15537_s26 + $0x38] sm:$0xff] %v8622_v18  ;;  %v8626_v0 = vadd.f32 %v8625_v53, %v8433_v24  ;;  %v8435_v20 = vadd.f32 %v8434_v7, %v15298_v59  ;;  %v8627_v57 = vpop.f32.mrf.mxu1  ;;  %v17375_v7 = vld [vmem:[#allocation23_spill] sm:$0xff] }
 0x517   : > { %v8436_v63 = vpop.f32.mrf.mxu0 }
 0x518   : > { %10330 = vst [vmem:[%s15537_s26 + $0x60] sm:$0xff] %v8626_v0  ;;  %v8628_v10 = vadd.f32 %v8627_v57, %v8435_v20  ;;  %v8437_v23 = vadd.f32 %v8436_v63, %v15301_v50  ;;  %v8629_v54 = vpop.f32.mrf.mxu1  ;;  %v17374_v50 = vld [vmem:[#allocation44_spill] sm:$0xff] }
 0x519   : > { %v8438_v27 = vpop.f32.mrf.mxu0 }
 0x51a   : > { %10331 = vst [vmem:[%s15537_s26 + $0x68] sm:$0xff] %v8628_v10  ;;  %v8630_v12 = vadd.f32 %v8629_v54, %v8437_v23  ;;  %v8439_v33 = vadd.f32 %v8438_v27, %v15305_v51  ;;  %v8631_v61 = vpop.f32.mrf.mxu1 }
 0x51b   : > { %v8442_v18 = vpop.f32.mrf.mxu0  ;;  %8907 = vmatmul.mubr.bf16.gmra.mxu0 %v17200_v58 }
 0x51c   : > { %10336 = vst [vmem:[%s15537_s26 + $0x90] sm:$0xff] %v8630_v12  ;;  %v8632_v59 = vadd.f32 %v8631_v61, %v8439_v33  ;;  %v8443_v24 = vadd.f32 %v8442_v18, %v15311_v37  ;;  %v8635_v53 = vpop.f32.mrf.mxu1  ;;  %9100 = vmatmul.mubr.bf16.gmra.mxu1 %v17202_v36  ;;  %8916 = vmatprep.mubr.bf16.mxu0 %v17374_v50 }
 0x51d   : > { %9109 = vmatprep.mubr.bf16.mxu1 %v17375_v7  ;;  %v8444_v0 = vpop.f32.mrf.mxu0 }
 0x51e   : > { %10337 = vst [vmem:[%s15537_s26 + $0x98] sm:$0xff] %v8632_v59  ;;  %v8636_v51 = vadd.f32 %v8635_v53, %v8443_v24  ;;  %v8445_v20 = vadd.f32 %v8444_v0, %v15314_v14  ;;  %v8637_v57 = vpop.f32.mrf.mxu1  ;;  %v17377_v24 = vld [vmem:[#allocation28_spill] sm:$0xff] }
 0x51f   : > { %v8446_v63 = vpop.f32.mrf.mxu0 }
 0x520   : > { %10342 = vst [vmem:[%s15537_s26 + $0xc0] sm:$0xff] %v8636_v51  ;;  %v8638_v10 = vadd.f32 %v8637_v57, %v8445_v20  ;;  %v8447_v37 = vadd.f32 %v8446_v63, %v15317_v25  ;;  %v8639_v23 = vpop.f32.mrf.mxu1  ;;  %v17376_v25 = vld [vmem:[#allocation50_spill] sm:$0xff] }
 0x521   : > { %v8448_v54 = vpop.f32.mrf.mxu0 }
 0x522   : > { %10343 = vst [vmem:[%s15537_s26 + $0xc8] sm:$0xff] %v8638_v10  ;;  %v8640_v27 = vadd.f32 %v8639_v23, %v8447_v37  ;;  %v8449_v12 = vadd.f32 %v8448_v54, %v15321_v56  ;;  %v8641_v33 = vpop.f32.mrf.mxu1 }
 0x523   : > { %v8452_v61 = vpop.f32.mrf.mxu0  ;;  %8917 = vmatmul.mubr.bf16.gmra.mxu0 %v17206_v41 }
 0x524   : > { %10348 = vst [vmem:[%s15537_s26 + $0xf0] sm:$0xff] %v8640_v27  ;;  %v8642_v14 = vadd.f32 %v8641_v33, %v8449_v12  ;;  %v8453_v18 = vadd.f32 %v8452_v61, %v15327_v2  ;;  %v8645_v59 = vpop.f32.mrf.mxu1  ;;  %9110 = vmatmul.mubr.bf16.gmra.mxu1 %v17208_v15  ;;  %8926 = vmatprep.mubr.bf16.mxu0 %v17376_v25  ;;  %v17379_v61 = vld [vmem:[#allocation27_spill] sm:$0xff] }
 0x525   : > { %9119 = vmatprep.mubr.bf16.mxu1 %v17377_v24  ;;  %v8454_v53 = vpop.f32.mrf.mxu0 }
 0x526   : > { %10349 = vst [vmem:[%s15537_s26 + $0xf8] sm:$0xff] %v8642_v14  ;;  %v8646_v56 = vadd.f32 %v8645_v59, %v8453_v18  ;;  %v8455_v0 = vadd.f32 %v8454_v53, %v15330_v46  ;;  %v8647_v51 = vpop.f32.mrf.mxu1 }
 0x527   : > { %v8456_v20 = vpop.f32.mrf.mxu0 }
 0x528   : > { %10354 = vst [vmem:[%s15537_s26 + $0x120] sm:$0xff] %v8646_v56  ;;  %v8648_v57 = vadd.f32 %v8647_v51, %v8455_v0  ;;  %v8457_v2 = vadd.f32 %v8456_v20, %v15333_v26  ;;  %v8649_v63 = vpop.f32.mrf.mxu1  ;;  %v17378_v26 = vld [vmem:[#allocation54_spill] sm:$0xff] }
 0x529   : > { %v8458_v10 = vpop.f32.mrf.mxu0 }
 0x52a   : > { %10355 = vst [vmem:[%s15537_s26 + $0x128] sm:$0xff] %v8648_v57  ;;  %v8650_v37 = vadd.f32 %v8649_v63, %v8457_v2  ;;  %v8459_v23 = vadd.f32 %v8458_v10, %v15337_v13  ;;  %v8651_v54 = vpop.f32.mrf.mxu1 }
 0x52b   : > { %v8462_v27 = vpop.f32.mrf.mxu0  ;;  %8927 = vmatmul.mubr.bf16.gmra.mxu0 %v17212_v34 }
 0x52c   : > { %10360 = vst [vmem:[%s15537_s26 + $0x150] sm:$0xff] %v8650_v37  ;;  %v8652_v46 = vadd.f32 %v8651_v54, %v8459_v23  ;;  %v8463_v12 = vadd.f32 %v8462_v27, %v15343_v60  ;;  %v8655_v33 = vpop.f32.mrf.mxu1  ;;  %9120 = vmatmul.mubr.bf16.gmra.mxu1 %v17214_v47  ;;  %8936 = vmatprep.mubr.bf16.mxu0 %v17378_v26  ;;  %v17380_v23 = vld [vmem:[#allocation25_spill] sm:$0xff]  ;;  %v17382_v54 = vld [vmem:[#allocation34_spill] sm:$0xff] }
 0x52d   : > { %9129 = vmatprep.mubr.bf16.mxu1 %v17379_v61  ;;  %v8464_v14 = vpop.f32.mrf.mxu0 }
 0x52e   : > { %10361 = vst [vmem:[%s15537_s26 + $0x158] sm:$0xff] %v8652_v46  ;;  %v8656_v13 = vadd.f32 %v8655_v33, %v8463_v12  ;;  %v8465_v18 = vadd.f32 %v8464_v14, %v15346_v11  ;;  %v8657_v59 = vpop.f32.mrf.mxu1 }
 0x52f   : > { %v8466_v53 = vpop.f32.mrf.mxu0 }
 0x530   : > { %10366 = vst [vmem:[%s15537_s26 + $0x180] sm:$0xff] %v8656_v13  ;;  %v8658_v56 = vadd.f32 %v8657_v59, %v8465_v18  ;;  %v8467_v60 = vadd.f32 %v8466_v53, %v15349_v31  ;;  %v8659_v0 = vpop.f32.mrf.mxu1  ;;  %v17381_v31 = vld [vmem:[#allocation55_spill] sm:$0xff] }
 0x531   : > { %v8468_v51 = vpop.f32.mrf.mxu0 }
 0x532   : > { %10367 = vst [vmem:[%s15537_s26 + $0x188] sm:$0xff] %v8658_v56  ;;  %v8660_v20 = vadd.f32 %v8659_v0, %v8467_v60  ;;  %v8469_v57 = vadd.f32 %v8468_v51, %v15353_v22  ;;  %v8661_v2 = vpop.f32.mrf.mxu1  ;;  %v17383_v0 = vld [vmem:[#allocation56_spill] sm:$0xff] }
 0x533   : > { %v8472_v63 = vpop.f32.mrf.mxu0  ;;  %8937 = vmatmul.mubr.bf16.gmra.mxu0 %v17218_v4 }
 0x534   : > { %10372 = vst [vmem:[%s15537_s26 + $0x1b0] sm:$0xff] %v8660_v20  ;;  %v8662_v11 = vadd.f32 %v8661_v2, %v8469_v57  ;;  %v8473_v10 = vadd.f32 %v8472_v63, %v15359_v35  ;;  %v8665_v37 = vpop.f32.mrf.mxu1  ;;  %9130 = vmatmul.mubr.bf16.gmra.mxu1 %v17380_v23  ;;  %8946 = vmatprep.mubr.bf16.mxu0 %v17381_v31  ;;  %v17384_v57 = vld [vmem:[#allocation30_spill] sm:$0xff]  ;;  %v17386_v2 = vld [vmem:[#allocation33_spill] sm:$0xff] }
 0x535   : > { %9139 = vmatprep.mubr.bf16.mxu1 %v17382_v54  ;;  %v8474_v27 = vpop.f32.mrf.mxu0  ;;  %v12254_v31 = vld [vmem:[#allocation8 + $0x700] ss:$24 sps:$4 sm:$0xff]  }
 0x536   : > { %10373 = vst [vmem:[%s15537_s26 + $0x1b8] sm:$0xff] %v8662_v11  ;;  %v8666_v22 = vadd.f32 %v8665_v37, %v8473_v10  ;;  %v8475_v46 = vadd.f32 %v8474_v27, %v15362_v21  ;;  %v8667_v12 = vpop.f32.mrf.mxu1 }
 0x537   : > { %v8476_v33 = vpop.f32.mrf.mxu0 }
 0x538   : > { %10378 = vst [vmem:[%s15537_s26 + $0x1e0] sm:$0xff] %v8666_v22  ;;  %v8668_v14 = vadd.f32 %v8667_v12, %v8475_v46  ;;  %v8477_v35 = vadd.f32 %v8476_v33, %v15365_v28  ;;  %v8669_v13 = vpop.f32.mrf.mxu1  ;;  %v17385_v28 = vld [vmem:[#allocation88_spill] sm:$0xff] }
 0x539   : > { %v8478_v18 = vpop.f32.mrf.mxu0 }
 0x53a   : > { %10379 = vst [vmem:[%s15537_s26 + $0x1e8] sm:$0xff] %v8668_v14  ;;  %v8670_v59 = vadd.f32 %v8669_v13, %v8477_v35  ;;  %v8479_v53 = vadd.f32 %v8478_v18, %v15369_v19  ;;  %v8671_v56 = vpop.f32.mrf.mxu1  ;;  %v17387_v13 = vld [vmem:[#allocation57_spill] sm:$0xff] }
 0x53b   : > { %v8482_v60 = vpop.f32.mrf.mxu0  ;;  %8947 = vmatmul.mubr.bf16.gmra.mxu0 %v17383_v0 }
 0x53c   : > { %10384 = vst [vmem:[%s15537_s26 + $0x210] sm:$0xff] %v8670_v59  ;;  %v8672_v21 = vadd.f32 %v8671_v56, %v8479_v53  ;;  %v8483_v51 = vadd.f32 %v8482_v60, %v15375_v42  ;;  %v8675_v20 = vpop.f32.mrf.mxu1  ;;  %9140 = vmatmul.mubr.bf16.gmra.mxu1 %v17384_v57  ;;  %8956 = vmatprep.mubr.bf16.mxu0 %v17385_v28  ;;  %v17388_v53 = vld [vmem:[#allocation31_spill] sm:$0xff]  ;;  %v17390_v56 = vld [vmem:[#allocation17_spill] sm:$0xff]  ;;  %v17479_v57 = vld [vmem:[#allocation124_spill] sm:$0xff] }
 0x53d   : > { %9149 = vmatprep.mubr.bf16.mxu1 %v17386_v2  ;;  %v8484_v63 = vpop.f32.mrf.mxu0 }
 0x53e   : > { %10385 = vst [vmem:[%s15537_s26 + $0x218] sm:$0xff] %v8672_v21  ;;  %v8676_v19 = vadd.f32 %v8675_v20, %v8483_v51  ;;  %v8485_v11 = vadd.f32 %v8484_v63, %v15378_v29  ;;  %v8677_v10 = vpop.f32.mrf.mxu1 }
 0x53f   : > { %v8486_v37 = vpop.f32.mrf.mxu0 }
 0x540   : > { %10390 = vst [vmem:[%s15537_s26 + $0x240] sm:$0xff] %v8676_v19  ;;  %v8678_v27 = vadd.f32 %v8677_v10, %v8485_v11  ;;  %v8487_v42 = vadd.f32 %v8486_v37, %v15381_v49  ;;  %v8679_v22 = vpop.f32.mrf.mxu1  ;;  %v17389_v49 = vld [vmem:[#allocation113_spill] sm:$0xff]  ;;  %v12146_v10 = vld [vmem:[#allocation8 + $0x160] ss:$24 sps:$4 sm:$0xff]  }
 0x541   : > { %v8488_v46 = vpop.f32.mrf.mxu0 }
 0x542   : > { %10391 = vst [vmem:[%s15537_s26 + $0x248] sm:$0xff] %v8678_v27  ;;  %v8680_v12 = vadd.f32 %v8679_v22, %v8487_v42  ;;  %v8489_v33 = vadd.f32 %v8488_v46, %v15385_v17  ;;  %v8681_v14 = vpop.f32.mrf.mxu1  ;;  %v12149_v22 = vld [vmem:[#allocation8 + $0x460] ss:$24 sps:$4 sm:$0xff]   ;;  %v12154_v46 = vld [vmem:[#allocation8 + $0x134] ss:$24 sps:$4 sm:$0xff]  }
 0x543   : > { %v8492_v35 = vpop.f32.mrf.mxu0  ;;  %8957 = vmatmul.mubr.bf16.gmra.mxu0 %v17387_v13 }
 0x544   : > { %10396 = vst [vmem:[%s15537_s26 + $0x270] sm:$0xff] %v8680_v12  ;;  %v8682_v29 = vadd.f32 %v8681_v14, %v8489_v33  ;;  %v8493_v18 = vadd.f32 %v8492_v35, %v15391_v8  ;;  %v8685_v59 = vpop.f32.mrf.mxu1  ;;  %9150 = vmatmul.mubr.bf16.gmra.mxu1 %v17388_v53  ;;  %9192 = vmatprep.mubr.bf16.mxu0 %v17389_v49  ;;  %v12157_v33 = vld [vmem:[#allocation8 + $0x434] ss:$24 sps:$4 sm:$0xff]   ;;  %v17472_v53 = vld [vmem:[#allocation103_spill] sm:$0xff] }
 0x545   : > { %9385 = vmatprep.mubr.bf16.mxu1 %v17390_v56  ;;  %v8494_v60 = vpop.f32.mrf.mxu0 }
 0x546   : > { %10397 = vst [vmem:[%s15537_s26 + $0x278] sm:$0xff] %v8682_v29  ;;  %v8686_v17 = vadd.f32 %v8685_v59, %v8493_v18  ;;  %v8495_v21 = vadd.f32 %v8494_v60, %v15394_v43  ;;  %v8687_v51 = vpop.f32.mrf.mxu1  ;;  %v17391_v43 = vld [vmem:[#allocation112_spill] sm:$0xff]  ;;  %v17392_v29 = vld [vmem:[#allocation29_spill] sm:$0xff]  ;;  %v17393_v18 = vld [vmem:[#allocation115_spill] sm:$0xff] }
 0x547   : > { %v8496_v20 = vpop.f32.mrf.mxu0  ;;  %v17394_v59 = vld [vmem:[#allocation20_spill] sm:$0xff] }
 0x548   : > { %10402 = vst [vmem:[%s15537_s26 + $0x2a0] sm:$0xff] %v8686_v17  ;;  %v8688_v63 = vadd.f32 %v8687_v51, %v8495_v21  ;;  %v8497_v8 = vadd.f32 %v8496_v20, %v15397_v5  ;;  %v8689_v19 = vpop.f32.mrf.mxu1  ;;  %v12152_v60 = vld [vmem:[#allocation8 + $0x130] ss:$24 sps:$4 sm:$0xff]   ;;  %v12160_v20 = vld [vmem:[#allocation8 + $0x104] ss:$24 sps:$4 sm:$0xff]  }
 0x549   : > { %v8498_v11 = vpop.f32.mrf.mxu0 }
 0x54a   : > { %10403 = vst [vmem:[%s15537_s26 + $0x2a8] sm:$0xff] %v8688_v63  ;;  %v8690_v37 = vadd.f32 %v8689_v19, %v8497_v8  ;;  %v8499_v27 = vadd.f32 %v8498_v11, %v15401_v9  ;;  %v8691_v42 = vpop.f32.mrf.mxu1  ;;  %v12163_v8 = vld [vmem:[#allocation8 + $0x404] ss:$24 sps:$4 sm:$0xff]  }
 0x54b   : > { %v8502_v12 = vpop.f32.mrf.mxu0  ;;  %9193 = vmatmul.mubr.bf16.vlgmr.msra.gmra.mxu0 %v17391_v43  ;;  %v17395_v11 = vld [vmem:[#allocation128_spill] sm:$0xff] }
 0x54c   : > { %10408 = vst [vmem:[%s15537_s26 + $0x2d0] sm:$0xff] %v8690_v37  ;;  %v8692_v14 = vadd.f32 %v8691_v42, %v8499_v27  ;;  %v8503_v35 = vadd.f32 %v8502_v12, %v15407_v30  ;;  %v8695_v5 = vpop.f32.mrf.mxu1  ;;  %9386 = vmatmul.mubr.bf16.vlgmr.msra.gmra.mxu1 %v17392_v29  ;;  %9202 = vmatprep.mubr.bf16.mxu0 %v17393_v18  ;;  %v12155_v30 = vld [vmem:[#allocation8 + $0x430] ss:$24 sps:$4 sm:$0xff]   ;;  %v12158_v42 = vld [vmem:[#allocation8 + $0x100] ss:$24 sps:$4 sm:$0xff]  }
 0x54d   : > { %9395 = vmatprep.mubr.bf16.mxu1 %v17394_v59  ;;  %9547 = vmatpush1.bf16.msra.mxu0 %v12146_v10  ;;  %v8504_v9 = vpop.f32.mrf.mxu0  ;;  %v17396_v12 = vld [vmem:[#allocation111_spill] sm:$0xff]  ;;  %v17468_v29 = vld [vmem:[#allocation101_spill] sm:$0xff] }
 0x54e   : > { %10409 = vst [vmem:[%s15537_s26 + $0x2d8] sm:$0xff] %v8692_v14  ;;  %v8696_v17 = vadd.f32 %v8695_v5, %v8503_v35  ;;  %v8505_v21 = vadd.f32 %v8504_v9, %v15410_v40  ;;  %v8697_v51 = vpop.f32.mrf.mxu1  ;;  %9740 = vmatpush1.bf16.msra.mxu1 %v12149_v22  ;;  %9548 = vmatprep.subr.bf16.mxu0 %v12154_v46  ;;  %v12161_v46 = vld [vmem:[#allocation8 + $0x400] ss:$24 sps:$4 sm:$0xff]   ;;  %v12169_v9 = vld [vmem:[#allocation8 + $0x3d4] ss:$24 sps:$4 sm:$0xff]  }
 0x54f   : > { %v8506_v63 = vpop.f32.mrf.mxu0  ;;  %9741 = vmatprep.subr.bf16.mxu1 %v12157_v33  ;;  %v12166_v33 = vld [vmem:[#allocation8 + $0xd4] ss:$24 sps:$4 sm:$0xff]  }
 0x550   : > { %10414 = vst [vmem:[%s15537_s26 + $0x300] sm:$0xff] %v8696_v17  ;;  %v8698_v19 = vadd.f32 %v8697_v51, %v8505_v21  ;;  %v8507_v37 = vadd.f32 %v8506_v63, %v17395_v11  ;;  %v8699_v10 = vpop.f32.mrf.mxu1  ;;  %v17397_v5 = vld [vmem:[#allocation114_spill] sm:$0xff]  ;;  %v17398_v21 = vld [vmem:[#allocation132_spill] sm:$0xff]  ;;  %v17399_v63 = vld [vmem:[#allocation35_spill] sm:$0xff] }
 0x551   : > { %v8508_v27 = vpop.f32.mrf.mxu0  ;;  %9549 = vmatpush1.bf16.msra.mxu0 %v12152_v60  ;;  %v17401_v11 = vld [vmem:[#allocation19_spill] sm:$0xff] }
 0x552   : > { %10415 = vst [vmem:[%s15537_s26 + $0x308] sm:$0xff] %v8698_v19  ;;  %v8700_v40 = vadd.f32 %v8699_v10, %v8507_v37  ;;  %v8509_v14 = vadd.f32 %v8508_v27, %v17396_v12  ;;  %v8701_v22 = vpop.f32.mrf.mxu1  ;;  %9742 = vmatpush1.bf16.msra.mxu1 %v12155_v30  ;;  %9550 = vmatprep.subr.bf16.mxu0 %v12160_v20  ;;  %v17400_v19 = vld [vmem:[#allocation117_spill] sm:$0xff]  ;;  %v17402_v10 = vld [vmem:[#allocation134_spill] sm:$0xff] }
 0x553   : > { %v8512_v35 = vpop.f32.mrf.mxu0  ;;  %9203 = vmatmul.mubr.bf16.gmra.mxu0 %v17397_v5  ;;  %9743 = vmatprep.subr.bf16.mxu1 %v12163_v8  ;;  %v12164_v20 = vld [vmem:[#allocation8 + $0xd0] ss:$24 sps:$4 sm:$0xff]   ;;  %v12172_v12 = vld [vmem:[#allocation8 + $0xa4] ss:$24 sps:$4 sm:$0xff]  }
 0x554   : > { %10420 = vst [vmem:[%s15537_s26 + $0x330] sm:$0xff] %v8700_v40  ;;  %v8702_v17 = vadd.f32 %v8701_v22, %v8509_v14  ;;  %v8513_v60 = vadd.f32 %v8512_v35, %v17398_v21  ;;  %v8705_v51 = vpop.f32.mrf.mxu1  ;;  %9396 = vmatmul.mubr.bf16.gmra.mxu1 %v17399_v63  ;;  %9212 = vmatprep.mubr.bf16.mxu0 %v17400_v19  ;;  %v12167_v40 = vld [vmem:[#allocation8 + $0x3d0] ss:$24 sps:$4 sm:$0xff]   ;;  %v12175_v22 = vld [vmem:[#allocation8 + $0x3a4] ss:$24 sps:$4 sm:$0xff]  }
 0x555   : > { %9405 = vmatprep.mubr.bf16.mxu1 %v17401_v11  ;;  %v8514_v30 = vpop.f32.mrf.mxu0  ;;  %9551 = vmatpush1.bf16.msra.mxu0 %v12158_v42  ;;  %v17403_v21 = vld [vmem:[#allocation140_spill] sm:$0xff]  ;;  %v17464_v63 = vld [vmem:[#allocation97_spill] sm:$0xff] }
 0x556   : > { %10421 = vst [vmem:[%s15537_s26 + $0x338] sm:$0xff] %v8702_v17  ;;  %v8706_v37 = vadd.f32 %v8705_v51, %v8513_v60  ;;  %v8515_v8 = vadd.f32 %v8514_v30, %v17402_v10  ;;  %v8707_v27 = vpop.f32.mrf.mxu1  ;;  %9744 = vmatpush1.bf16.msra.mxu1 %v12161_v46  ;;  %9552 = vmatprep.subr.bf16.mxu0 %v12166_v33  ;;  %v12170_v17 = vld [vmem:[#allocation8 + $0xa0] ss:$24 sps:$4 sm:$0xff]   ;;  %v17404_v51 = vld [vmem:[#allocation141_spill] sm:$0xff] }
 0x557   : > { %v8516_v14 = vpop.f32.mrf.mxu0  ;;  %9745 = vmatprep.subr.bf16.mxu1 %v12169_v9  ;;  %v12173_v33 = vld [vmem:[#allocation8 + $0x3a0] ss:$24 sps:$4 sm:$0xff]   ;;  %v12178_v9 = vld [vmem:[#allocation8 + $0x74] ss:$24 sps:$4 sm:$0xff]  }
 0x558   : > { %10426 = vst [vmem:[%s15537_s26 + $0x360] sm:$0xff] %v8706_v37  ;;  %v8708_v35 = vadd.f32 %v8707_v27, %v8515_v8  ;;  %v8517_v11 = vadd.f32 %v8516_v14, %v17403_v21  ;;  %v8709_v19 = vpop.f32.mrf.mxu1  ;;  %v17405_v37 = vld [vmem:[#allocation116_spill] sm:$0xff]  ;;  %v17406_v14 = vld [vmem:[#allocation142_spill] sm:$0xff] }
 0x559   : > { %v8518_v42 = vpop.f32.mrf.mxu0  ;;  %9553 = vmatpush1.bf16.msra.mxu0 %v12164_v20  ;;  %v12181_v8 = vld [vmem:[#allocation8 + $0x374] ss:$24 sps:$4 sm:$0xff]  }
 0x55a   : > { %10427 = vst [vmem:[%s15537_s26 + $0x368] sm:$0xff] %v8708_v35  ;;  %v8710_v60 = vadd.f32 %v8709_v19, %v8517_v11  ;;  %v8519_v30 = vadd.f32 %v8518_v42, %v17404_v51  ;;  %v8711_v46 = vpop.f32.mrf.mxu1  ;;  %9746 = vmatpush1.bf16.msra.mxu1 %v12167_v40  ;;  %9554 = vmatprep.subr.bf16.mxu0 %v12172_v12  ;;  %v17407_v35 = vld [vmem:[#allocation41_spill] sm:$0xff]  ;;  %v17408_v19 = vld [vmem:[#allocation119_spill] sm:$0xff]  ;;  %v17409_v11 = vld [vmem:[#allocation24_spill] sm:$0xff] }
 0x55b   : > { %v8522_v10 = vpop.f32.mrf.mxu0  ;;  %9213 = vmatmul.mubr.bf16.gmra.mxu0 %v17405_v37  ;;  %9747 = vmatprep.subr.bf16.mxu1 %v12175_v22  ;;  %v12176_v12 = vld [vmem:[#allocation8 + $0x70] ss:$24 sps:$4 sm:$0xff]   ;;  %v17410_v51 = vld [vmem:[#allocation143_spill] sm:$0xff] }
 0x55c   : > { %10432 = vst [vmem:[%s15537_s26 + $0x390] sm:$0xff] %v8710_v60  ;;  %v8712_v27 = vadd.f32 %v8711_v46, %v8519_v30  ;;  %v8523_v20 = vadd.f32 %v8522_v10, %v17406_v14  ;;  %v8715_v21 = vpop.f32.mrf.mxu1  ;;  %9406 = vmatmul.mubr.bf16.gmra.mxu1 %v17407_v35  ;;  %9222 = vmatprep.mubr.bf16.mxu0 %v17408_v19  ;;  %v12179_v30 = vld [vmem:[#allocation8 + $0x370] ss:$24 sps:$4 sm:$0xff]   ;;  %v12184_v46 = vld [vmem:[#allocation8 + $0x44] ss:$24 sps:$4 sm:$0xff]  }
 0x55d   : > { %9415 = vmatprep.mubr.bf16.mxu1 %v17409_v11  ;;  %v8524_v40 = vpop.f32.mrf.mxu0  ;;  %9555 = vmatpush1.bf16.msra.mxu0 %v12170_v17  ;;  %v12187_v14 = vld [vmem:[#allocation8 + $0x344] ss:$24 sps:$4 sm:$0xff]  }
 0x55e   : > { %10433 = vst [vmem:[%s15537_s26 + $0x398] sm:$0xff] %v8712_v27  ;;  %v8716_v42 = vadd.f32 %v8715_v21, %v8523_v20  ;;  %v8525_v22 = vadd.f32 %v8524_v40, %v17410_v51  ;;  %v8717_v60 = vpop.f32.mrf.mxu1  ;;  %9748 = vmatpush1.bf16.msra.mxu1 %v12173_v33  ;;  %9556 = vmatprep.subr.bf16.mxu0 %v12178_v9  ;;  %v17411_v35 = vld [vmem:[#allocation144_spill] sm:$0xff]  ;;  %v12182_v27 = vld [vmem:[#allocation8 + $0x40] ss:$24 sps:$4 sm:$0xff]   ;;  %v17412_v21 = vld [vmem:[#allocation145_spill] sm:$0xff] }
 0x55f   : > { %v8526_v10 = vpop.f32.mrf.mxu0  ;;  %9749 = vmatprep.subr.bf16.mxu1 %v12181_v8  ;;  %v12185_v9 = vld [vmem:[#allocation8 + $0x340] ss:$24 sps:$4 sm:$0xff]   ;;  %v12190_v8 = vld [vmem:[#allocation8 + $0x14] ss:$24 sps:$4 sm:$0xff]  }
 0x560   : > { %10438 = vst [vmem:[%s15537_s26 + $0x3c0] sm:$0xff] %v8716_v42  ;;  %v8718_v19 = vadd.f32 %v8717_v60, %v8525_v22  ;;  %v8527_v11 = vadd.f32 %v8526_v10, %v17411_v35  ;;  %v8719_v37 = vpop.f32.mrf.mxu1  ;;  %v17413_v42 = vld [vmem:[#allocation118_spill] sm:$0xff] }
 0x561   : > { %v8528_v17 = vpop.f32.mrf.mxu0  ;;  %9557 = vmatpush1.bf16.msra.mxu0 %v12176_v12  ;;  %v12193_v35 = vld [vmem:[#allocation8 + $0x314] ss:$24 sps:$4 sm:$0xff]  }
 0x562   : > { %10439 = vst [vmem:[%s15537_s26 + $0x3c8] sm:$0xff] %v8718_v19  ;;  %v8720_v20 = vadd.f32 %v8719_v37, %v8527_v11  ;;  %v8529_v40 = vadd.f32 %v8528_v17, %v17412_v21  ;;  %v8721_v33 = vpop.f32.mrf.mxu1  ;;  %9750 = vmatpush1.bf16.msra.mxu1 %v12179_v30  ;;  %9558 = vmatprep.subr.bf16.mxu0 %v12184_v46  ;;  %v17414_v60 = vld [vmem:[#allocation146_spill] sm:$0xff]  ;;  %v17415_v19 = vld [vmem:[#allocation47_spill] sm:$0xff]  ;;  %v17416_v37 = vld [vmem:[#allocation121_spill] sm:$0xff] }
 0x563   : > { %v8532_v51 = vpop.f32.mrf.mxu0  ;;  %9223 = vmatmul.mubr.bf16.gmra.mxu0 %v17413_v42  ;;  %9751 = vmatprep.subr.bf16.mxu1 %v12187_v14  ;;  %v17417_v11 = vld [vmem:[#allocation136_spill] sm:$0xff]  ;;  %v17418_v21 = vld [vmem:[#allocation147_spill] sm:$0xff] }
 0x564   : > { %10444 = vst [vmem:[%s15537_s26 + $0x3f0] sm:$0xff] %v8720_v20  ;;  %v8722_v22 = vadd.f32 %v8721_v33, %v8529_v40  ;;  %v8533_v12 = vadd.f32 %v8532_v51, %v17414_v60  ;;  %v8725_v10 = vpop.f32.mrf.mxu1  ;;  %9416 = vmatmul.mubr.bf16.gmra.mxu1 %v17415_v19  ;;  %9232 = vmatprep.mubr.bf16.mxu0 %v17416_v37  ;;  %v12188_v46 = vld [vmem:[#allocation8 + $0x10] ss:$24 sps:$4 sm:$0xff]   ;;  %v12196_v33 = vld [vmem:[#allocation8 + $0x2e4] ss:$24 sps:$4 sm:$0xff]  }
 0x565   : > { %9425 = vmatprep.mubr.bf16.mxu1 %v17417_v11  ;;  %v8534_v30 = vpop.f32.mrf.mxu0  ;;  %9559 = vmatpush1.bf16.msra.mxu0 %v12182_v27  ;;  %v12191_v40 = vld [vmem:[#allocation8 + $0x310] ss:$24 sps:$4 sm:$0xff]   ;;  %v12199_v60 = vld [vmem:[#allocation8 + $0x5e4] ss:$24 sps:$4 sm:$0xff]  }
 0x566   : > { %10445 = vst [vmem:[%s15537_s26 + $0x3f8] sm:$0xff] %v8722_v22  ;;  %v8726_v17 = vadd.f32 %v8725_v10, %v8533_v12  ;;  %v8535_v14 = vadd.f32 %v8534_v30, %v17418_v21  ;;  %v8727_v20 = vpop.f32.mrf.mxu1  ;;  %9752 = vmatpush1.bf16.msra.mxu1 %v12185_v9  ;;  %9560 = vmatprep.subr.bf16.mxu0 %v12190_v8  ;;  %v17419_v19 = vld [vmem:[#allocation148_spill] sm:$0xff]  ;;  %v12194_v22 = vld [vmem:[#allocation8 + $0x2e0] ss:$24 sps:$4 sm:$0xff]   ;;  %v17420_v10 = vld [vmem:[#allocation149_spill] sm:$0xff] }
 0x567   : > { %v8536_v51 = vpop.f32.mrf.mxu0  ;;  %9753 = vmatprep.subr.bf16.mxu1 %v12193_v35  ;;  %v12197_v8 = vld [vmem:[#allocation8 + $0x5e0] ss:$24 sps:$4 sm:$0xff]   ;;  %v12202_v35 = vld [vmem:[#allocation8 + $0x2b4] ss:$24 sps:$4 sm:$0xff]  }
 0x568   : > { %10450 = vst [vmem:[%s15537_s26 + $0x420] sm:$0xff] %v8726_v17  ;;  %v8728_v37 = vadd.f32 %v8727_v20, %v8535_v14  ;;  %v8537_v11 = vadd.f32 %v8536_v51, %v17419_v19  ;;  %v8729_v42 = vpop.f32.mrf.mxu1  ;;  %v17421_v17 = vld [vmem:[#allocation120_spill] sm:$0xff]  ;;  %v17422_v20 = vld [vmem:[#allocation150_spill] sm:$0xff] }
 0x569   : > { %v8538_v27 = vpop.f32.mrf.mxu0  ;;  %9561 = vmatpush1.bf16.msra.mxu0 %v12188_v46  ;;  %v12205_v19 = vld [vmem:[#allocation8 + $0x5b4] ss:$24 sps:$4 sm:$0xff]  }
 0x56a   : > { %10451 = vst [vmem:[%s15537_s26 + $0x428] sm:$0xff] %v8728_v37  ;;  %v8730_v12 = vadd.f32 %v8729_v42, %v8537_v11  ;;  %v8539_v30 = vadd.f32 %v8538_v27, %v17420_v10  ;;  %v8731_v9 = vpop.f32.mrf.mxu1  ;;  %9754 = vmatpush1.bf16.msra.mxu1 %v12191_v40  ;;  %9562 = vmatprep.subr.bf16.mxu0 %v12196_v33  ;;  %v17423_v37 = vld [vmem:[#allocation53_spill] sm:$0xff]  ;;  %v17424_v42 = vld [vmem:[#allocation40_spill] sm:$0xff]  ;;  %v17425_v11 = vld [vmem:[#allocation138_spill] sm:$0xff] }
 0x56b   : > { %v8542_v21 = vpop.f32.mrf.mxu0  ;;  %9233 = vmatmul.mubr.bf16.gmra.mxu0 %v17421_v17  ;;  %9755 = vmatprep.subr.bf16.mxu1 %v12199_v60  ;;  %v12200_v33 = vld [vmem:[#allocation8 + $0x2b0] ss:$24 sps:$4 sm:$0xff]   ;;  %v17426_v10 = vld [vmem:[#allocation151_spill] sm:$0xff] }
 0x56c   : > { %10456 = vst [vmem:[%s15537_s26 + $0x450] sm:$0xff] %v8730_v12  ;;  %v8732_v14 = vadd.f32 %v8731_v9, %v8539_v30  ;;  %v8543_v46 = vadd.f32 %v8542_v21, %v17422_v20  ;;  %v8735_v51 = vpop.f32.mrf.mxu1  ;;  %9426 = vmatmul.mubr.bf16.gmra.mxu1 %v17423_v37  ;;  %9242 = vmatprep.mubr.bf16.mxu0 %v17424_v42  ;;  %v12203_v30 = vld [vmem:[#allocation8 + $0x5b0] ss:$24 sps:$4 sm:$0xff]   ;;  %v12208_v9 = vld [vmem:[#allocation8 + $0x284] ss:$24 sps:$4 sm:$0xff]  }
 0x56d   : > { %9435 = vmatprep.mubr.bf16.mxu1 %v17425_v11  ;;  %v8544_v40 = vpop.f32.mrf.mxu0  ;;  %9563 = vmatpush2.bf16.msra.mxu0 %v12194_v22  ;;  %v12211_v20 = vld [vmem:[#allocation8 + $0x584] ss:$24 sps:$4 sm:$0xff]  }
 0x56e   : > { %10457 = vst [vmem:[%s15537_s26 + $0x458] sm:$0xff] %v8732_v14  ;;  %v8736_v27 = vadd.f32 %v8735_v51, %v8543_v46  ;;  %v8545_v60 = vadd.f32 %v8544_v40, %v17426_v10  ;;  %v8737_v12 = vpop.f32.mrf.mxu1  ;;  %9756 = vmatpush2.bf16.msra.mxu1 %v12197_v8  ;;  %9564 = vmatprep.subr.bf16.mxu0 %v12202_v35  ;;  %v17427_v37 = vld [vmem:[#allocation152_spill] sm:$0xff]  ;;  %v12206_v14 = vld [vmem:[#allocation8 + $0x280] ss:$24 sps:$4 sm:$0xff]   ;;  %v17428_v51 = vld [vmem:[#allocation153_spill] sm:$0xff] }
 0x56f   : > { %v8546_v21 = vpop.f32.mrf.mxu0  ;;  %9757 = vmatprep.subr.bf16.mxu1 %v12205_v19  ;;  %v12209_v35 = vld [vmem:[#allocation8 + $0x580] ss:$24 sps:$4 sm:$0xff]   ;;  %v12214_v19 = vld [vmem:[#allocation8 + $0x254] ss:$24 sps:$4 sm:$0xff]  }
 0x570   : > { %10462 = vst [vmem:[%s15537_s26 + $0x480] sm:$0xff] %v8736_v27  ;;  %v8738_v42 = vadd.f32 %v8737_v12, %v8545_v60  ;;  %v8547_v11 = vadd.f32 %v8546_v21, %v17427_v37  ;;  %v8739_v17 = vpop.f32.mrf.mxu1  ;;  %v17429_v27 = vld [vmem:[#allocation122_spill] sm:$0xff] }
 0x571   : > { %v8548_v22 = vpop.f32.mrf.mxu0  ;;  %9565 = vmatpush2.bf16.msra.mxu0 %v12200_v33  ;;  %v12217_v37 = vld [vmem:[#allocation8 + $0x554] ss:$24 sps:$4 sm:$0xff]  }
 0x572   : > { %10463 = vst [vmem:[%s15537_s26 + $0x488] sm:$0xff] %v8738_v42  ;;  %v8740_v46 = vadd.f32 %v8739_v17, %v8547_v11  ;;  %v8549_v40 = vadd.f32 %v8548_v22, %v17428_v51  ;;  %v8741_v8 = vpop.f32.mrf.mxu1  ;;  %9758 = vmatpush2.bf16.msra.mxu1 %v12203_v30  ;;  %9566 = vmatprep.subr.bf16.mxu0 %v12208_v9  ;;  %v17430_v12 = vld [vmem:[#allocation154_spill] sm:$0xff]  ;;  %v17431_v42 = vld [vmem:[#allocation137_spill] sm:$0xff]  ;;  %v17432_v17 = vld [vmem:[#allocation36_spill] sm:$0xff] }
 0x573   : > { %v8552_v10 = vpop.f32.mrf.mxu0  ;;  %9243 = vmatmul.mubr.bf16.gmra.mxu0 %v17429_v27  ;;  %9759 = vmatprep.subr.bf16.mxu1 %v12211_v20  ;;  %v17433_v11 = vld [vmem:[#allocation37_spill] sm:$0xff]  ;;  %v17434_v51 = vld [vmem:[#allocation155_spill] sm:$0xff] }
 0x574   : > { %10468 = vst [vmem:[%s15537_s26 + $0x4b0] sm:$0xff] %v8740_v46  ;;  %v8742_v60 = vadd.f32 %v8741_v8, %v8549_v40  ;;  %v8553_v33 = vadd.f32 %v8552_v10, %v17430_v12  ;;  %v8745_v21 = vpop.f32.mrf.mxu1  ;;  %9436 = vmatmul.mubr.bf16.gmra.mxu1 %v17431_v42  ;;  %9252 = vmatprep.mubr.bf16.mxu0 %v17432_v17  ;;  %v12212_v9 = vld [vmem:[#allocation8 + $0x250] ss:$24 sps:$4 sm:$0xff]   ;;  %v12220_v8 = vld [vmem:[#allocation8 + $0x224] ss:$24 sps:$4 sm:$0xff]  }
 0x575   : > { %9445 = vmatprep.mubr.bf16.mxu1 %v17433_v11  ;;  %v8554_v30 = vpop.f32.mrf.mxu0  ;;  %9567 = vmatpush2.bf16.msra.mxu0 %v12206_v14  ;;  %v12215_v40 = vld [vmem:[#allocation8 + $0x550] ss:$24 sps:$4 sm:$0xff]   ;;  %v12223_v12 = vld [vmem:[#allocation8 + $0x524] ss:$24 sps:$4 sm:$0xff]  }
 0x576   : > { %10469 = vst [vmem:[%s15537_s26 + $0x4b8] sm:$0xff] %v8742_v60  ;;  %v8746_v22 = vadd.f32 %v8745_v21, %v8553_v33  ;;  %v8555_v20 = vadd.f32 %v8554_v30, %v17434_v51  ;;  %v8747_v46 = vpop.f32.mrf.mxu1  ;;  %9760 = vmatpush2.bf16.msra.mxu1 %v12209_v35  ;;  %9568 = vmatprep.subr.bf16.mxu0 %v12214_v19  ;;  %v17435_v42 = vld [vmem:[#allocation156_spill] sm:$0xff]  ;;  %v12218_v60 = vld [vmem:[#allocation8 + $0x220] ss:$24 sps:$4 sm:$0xff]   ;;  %v17436_v21 = vld [vmem:[#allocation157_spill] sm:$0xff] }
 0x577   : > { %v8556_v10 = vpop.f32.mrf.mxu0  ;;  %9761 = vmatprep.subr.bf16.mxu1 %v12217_v37  ;;  %v12221_v19 = vld [vmem:[#allocation8 + $0x520] ss:$24 sps:$4 sm:$0xff]   ;;  %v12226_v37 = vld [vmem:[#allocation8 + $0x1f4] ss:$24 sps:$4 sm:$0xff]  }
 0x578   : > { %10474 = vst [vmem:[%s15537_s26 + $0x4e0] sm:$0xff] %v8746_v22  ;;  %v8748_v17 = vadd.f32 %v8747_v46, %v8555_v20  ;;  %v8557_v11 = vadd.f32 %v8556_v10, %v17435_v42  ;;  %v8749_v27 = vpop.f32.mrf.mxu1  ;;  %v17437_v22 = vld [vmem:[#allocation39_spill] sm:$0xff]  ;;  %v12229_v42 = vld [vmem:[#allocation8 + $0x4f4] ss:$24 sps:$4 sm:$0xff]  }
 0x579   : > { %v8558_v14 = vpop.f32.mrf.mxu0  ;;  %9569 = vmatpush2.bf16.msra.mxu0 %v12212_v9  ;;  %v17438_v46 = vld [vmem:[#allocation158_spill] sm:$0xff] }
 0x57a   : > { %10475 = vst [vmem:[%s15537_s26 + $0x4e8] sm:$0xff] %v8748_v17  ;;  %v8750_v33 = vadd.f32 %v8749_v27, %v8557_v11  ;;  %v8559_v30 = vadd.f32 %v8558_v14, %v17436_v21  ;;  %v8751_v35 = vpop.f32.mrf.mxu1  ;;  %9762 = vmatpush2.bf16.msra.mxu1 %v12215_v40  ;;  %9570 = vmatprep.subr.bf16.mxu0 %v12220_v8  ;;  %v17439_v17 = vld [vmem:[#allocation139_spill] sm:$0xff]  ;;  %v17440_v27 = vld [vmem:[#allocation48_spill] sm:$0xff]  ;;  %v17441_v11 = vld [vmem:[#allocation45_spill] sm:$0xff] }
 0x57b   : > { %v8562_v51 = vpop.f32.mrf.mxu0  ;;  %9253 = vmatmul.mubr.bf16.gmra.mxu0 %v17437_v22  ;;  %9763 = vmatprep.subr.bf16.mxu1 %v12223_v12  ;;  %v12224_v8 = vld [vmem:[#allocation8 + $0x1f0] ss:$24 sps:$4 sm:$0xff]   ;;  %v17442_v21 = vld [vmem:[#allocation159_spill] sm:$0xff] }
 0x57c   : > { %10480 = vst [vmem:[%s15537_s26 + $0x510] sm:$0xff] %v8750_v33  ;;  %v8752_v20 = vadd.f32 %v8751_v35, %v8559_v30  ;;  %v8563_v9 = vadd.f32 %v8562_v51, %v17438_v46  ;;  %v8755_v10 = vpop.f32.mrf.mxu1  ;;  %9446 = vmatmul.mubr.bf16.gmra.mxu1 %v17439_v17  ;;  %9262 = vmatprep.mubr.bf16.mxu0 %v17440_v27  ;;  %v12227_v30 = vld [vmem:[#allocation8 + $0x4f0] ss:$24 sps:$4 sm:$0xff]   ;;  %v12232_v35 = vld [vmem:[#allocation8 + $0x1c4] ss:$24 sps:$4 sm:$0xff]  }
 0x57d   : > { %9455 = vmatprep.mubr.bf16.mxu1 %v17441_v11  ;;  %v8564_v40 = vpop.f32.mrf.mxu0  ;;  %9571 = vmatpush2.bf16.msra.mxu0 %v12218_v60  ;;  %v12235_v46 = vld [vmem:[#allocation8 + $0x4c4] ss:$24 sps:$4 sm:$0xff]  }
 0x57e   : > { %10481 = vst [vmem:[%s15537_s26 + $0x518] sm:$0xff] %v8752_v20  ;;  %v8756_v14 = vadd.f32 %v8755_v10, %v8563_v9  ;;  %v8565_v12 = vadd.f32 %v8564_v40, %v17442_v21  ;;  %v8757_v33 = vpop.f32.mrf.mxu1  ;;  %9764 = vmatpush2.bf16.msra.mxu1 %v12221_v19  ;;  %9572 = vmatprep.subr.bf16.mxu0 %v12226_v37  ;;  %v12230_v20 = vld [vmem:[#allocation8 + $0x1c0] ss:$24 sps:$4 sm:$0xff]   ;;  %v17443_v10 = vld [vmem:[#allocation160_spill] sm:$0xff] }
 0x57f   : > { %v8566_v51 = vpop.f32.mrf.mxu0  ;;  %9765 = vmatprep.subr.bf16.mxu1 %v12229_v42  ;;  %v12233_v37 = vld [vmem:[#allocation8 + $0x4c0] ss:$24 sps:$4 sm:$0xff]   ;;  %v12238_v42 = vld [vmem:[#allocation8 + $0x194] ss:$24 sps:$4 sm:$0xff]  }
 0x580   : > { %10486 = vst [vmem:[%s15537_s26 + $0x540] sm:$0xff] %v8756_v14  ;;  %v8758_v27 = vadd.f32 %v8757_v33, %v8565_v12  ;;  %v8567_v11 = vadd.f32 %v8566_v51, %v15509_v3  ;;  %v8759_v17 = vpop.f32.mrf.mxu1  ;;  %v17444_v14 = vld [vmem:[#allocation46_spill] sm:$0xff] }
 0x581   : > { %v8568_v60 = vpop.f32.mrf.mxu0  ;;  %9573 = vmatpush2.bf16.msra.mxu0 %v12224_v8  ;;  %v12241_v3 = vld [vmem:[#allocation8 + $0x494] ss:$24 sps:$4 sm:$0xff]  }
 0x582   : > { %10487 = vst [vmem:[%s15537_s26 + $0x548] sm:$0xff] %v8758_v27  ;;  %v8760_v9 = vadd.f32 %v8759_v17, %v8567_v11  ;;  %v8569_v40 = vadd.f32 %v8568_v60, %v17443_v10  ;;  %v8761_v19 = vpop.f32.mrf.mxu1  ;;  %9766 = vmatpush2.bf16.msra.mxu1 %v12227_v30  ;;  %9574 = vmatprep.subr.bf16.mxu0 %v12232_v35  ;;  %v17445_v27 = vld [vmem:[#allocation42_spill] sm:$0xff]  ;;  %v17447_v11 = vld [vmem:[#allocation52_spill] sm:$0xff] }
 0x583   : > { %v8572_v21 = vpop.f32.mrf.mxu0  ;;  %9263 = vmatmul.mubr.bf16.gmra.mxu0 %v17444_v14  ;;  %9767 = vmatprep.subr.bf16.mxu1 %v12235_v46  ;;  %v17446_v17 = vld [vmem:[#allocation94_spill] sm:$0xff]  ;;  %v12236_v35 = vld [vmem:[#allocation8 + $0x190] ss:$24 sps:$4 sm:$0xff]  }
 0x584   : > { %10492 = vst [vmem:[%s15537_s26 + $0x570] sm:$0xff] %v8760_v9  ;;  %v8762_v12 = vadd.f32 %v8761_v19, %v8569_v40  ;;  %v8573_v8 = vadd.f32 %v8572_v21, %v15519_v39  ;;  %v8765_v33 = vpop.f32.mrf.mxu1  ;;  %9456 = vmatmul.mubr.bf16.gmra.mxu1 %v17445_v27  ;;  %9272 = vmatprep.mubr.bf16.mxu0 %v17446_v17  ;;  %v12239_v39 = vld [vmem:[#allocation8 + $0x490] ss:$24 sps:$4 sm:$0xff]   ;;  %v12244_v9 = vld [vmem:[#allocation8 + $0x764] ss:$24 sps:$4 sm:$0xff]  }
 0x585   : > { %9465 = vmatprep.mubr.bf16.mxu1 %v17447_v11  ;;  %v8574_v30 = vpop.f32.mrf.mxu0  ;;  %9575 = vmatpush2.bf16.msra.mxu0 %v12230_v20  ;;  %v12247_v40 = vld [vmem:[#allocation8 + $0xa64] ss:$24 sps:$4 sm:$0xff]  }
 0x586   : > { %10493 = vst [vmem:[%s15537_s26 + $0x578] sm:$0xff] %v8762_v12  ;;  %v8766_v51 = vadd.f32 %v8765_v33, %v8573_v8  ;;  %v8575_v46 = vadd.f32 %v8574_v30, %v15522_v45  ;;  %v8767_v60 = vpop.f32.mrf.mxu1  ;;  %9768 = vmatpush2.bf16.msra.mxu1 %v12233_v37  ;;  %9576 = vmatprep.subr.bf16.mxu0 %v12238_v42  ;;  %v12581_v11 = vld [vmem:[#allocation10] sm:$0x3f]  ;;  %v17448_v12 = vld [vmem:[#allocation16_spill] sm:$0xff] }
 0x587   : > { %v8576_v10 = vpop.f32.mrf.mxu0  ;;  %9769 = vmatprep.subr.bf16.mxu1 %v12241_v3  ;;  %v17449_v8 = vsub.s32 2, %v17448_v12  ;;  %v17450_v30 = vsub.s32 3, %v17448_v12  ;;  %v17460_v17 = vld [vmem:[#allocation95_spill] sm:$0xff] }
 0x588   : > { %10498 = vst [vmem:[%s15537_s26 + $0x5a0] sm:$0xff] %v8766_v51  ;;  %v8768_v19 = vadd.f32 %v8767_v60, %v8575_v46  ;;  %v8577_v21 = vadd.f32 %v8576_v10, %v15526_v44  ;;  %v8769_v20 = vpop.f32.mrf.mxu1  ;;  %v17451_v46 = vld [vmem:[#allocation51_spill] sm:$0xff] }
 0x589   : > { %v15723_v33 = vrot.slane %v12581_v11, %v17449_v8  ;;  %v8578_v45 = vpop.f32.mrf.mxu0  ;;  %9577 = vmatpush2.bf16.msra.mxu0 %v12236_v35  ;;  %v15729_v51 = vrot.slane %v12581_v11, %v17450_v30 }
 0x58a   : > { %10499 = vst [vmem:[%s15537_s26 + $0x5a8] sm:$0xff] %v8768_v19  ;;  %v8770_v37 = vadd.f32 %v8769_v20, %v8577_v21  ;;  %v8579_v42 = vadd.f32 %v8578_v45, %v15530_v1  ;;  %v8771_v3 = vpop.f32.mrf.mxu1  ;;  %9770 = vmatpush2.bf16.msra.mxu1 %v12239_v39  ;;  %9932 = vmatprep.subr.bf16.mxu0 %v12244_v9  ;;  %v17452_v19 = vld [vmem:[#allocation43_spill] sm:$0xff]  ;;  %v17453_v1 = vld [vmem:[#allocation100_spill] sm:$0xff]  ;;  %v17454_v21 = vld [vmem:[#allocation93_spill] sm:$0xff] }
 0x58b   : > { %v8808_v44 = vpop.f32.mrf.mxu0  ;;  %9273 = vmatmul.mubr.bf16.gmra.mxu0 %v17451_v46  ;;  %10125 = vmatprep.subr.bf16.mxu1 %v12247_v40 }
 0x58c   : > { %10504 = vst [vmem:[%s15537_s26 + $0x5d0] sm:$0xff] %v8770_v37  ;;  %v8772_v60 = vadd.f32 %v8771_v3, %v8579_v42  ;;  %v8809_v35 = vadd.f32 %v8808_v44, %v15723_v33  ;;  %v9001_v10 = vpop.f32.mrf.mxu1  ;;  %9466 = vmatmul.mubr.bf16.gmra.mxu1 %v17452_v19  ;;  %9282 = vmatprep.mubr.bf16.mxu0 %v17453_v1  ;;  %v17455_v1 = vld [vmem:[#allocation98_spill] sm:$0xff] }
 0x58d   : > { %9475 = vmatprep.mubr.bf16.mxu1 %v17454_v21  ;;  %v8810_v20 = vpop.f32.mrf.mxu0 }
 0x58e   : > { %10505 = vst [vmem:[%s15537_s26 + $0x5d8] sm:$0xff] %v8772_v60  ;;  %v15738_v11 = vadd.f32 %v9001_v10, %v8809_v35  ;;  %v8811_v39 = vadd.f32 %v8810_v20, %v15729_v51  ;;  %v9003_v9 = vpop.f32.mrf.mxu1  ;;  %v17456_v20 = vld [vmem:[#allocation49_spill] sm:$0xff] }
 0x58f   : > { %v8812_v8 = vpop.f32.mrf.mxu0 }
 0x590   : > { %v15741_v40 = vadd.f32 %v9003_v9, %v8811_v39  ;;  %v8813_v45 = vadd.f32 %v8812_v8, %v15723_v33  ;;  %v9005_v37 = vpop.f32.mrf.mxu1  ;;  %v17457_v39 = vld [vmem:[#allocation104_spill] sm:$0xff] }
 0x591   : > { %v8814_v42 = vpop.f32.mrf.mxu0  ;;  %v17458_v9 = vld [vmem:[#allocation96_spill] sm:$0xff] }
 0x592   : > { %v15744_v3 = vadd.f32 %v9005_v37, %v8813_v45  ;;  %v8815_v30 = vadd.f32 %v8814_v42, %v15729_v51  ;;  %v9007_v44 = vpop.f32.mrf.mxu1 }
 0x593   : > { %v8818_v21 = vpop.f32.mrf.mxu0  ;;  %9283 = vmatmul.mubr.bf16.gmra.mxu0 %v17455_v1 }
 0x594   : > { %v15748_v60 = vadd.f32 %v9007_v44, %v8815_v30  ;;  %v8819_v35 = vadd.f32 %v8818_v21, %v15723_v33  ;;  %v9011_v10 = vpop.f32.mrf.mxu1  ;;  %9476 = vmatmul.mubr.bf16.gmra.mxu1 %v17456_v20  ;;  %9292 = vmatprep.mubr.bf16.mxu0 %v17457_v39 }
 0x595   : > { %9485 = vmatprep.mubr.bf16.mxu1 %v17458_v9  ;;  %v8820_v8 = vpop.f32.mrf.mxu0  ;;  %v17459_v9 = vld [vmem:[#allocation123_spill] sm:$0xff] }
 0x596   : > { %v15754_v45 = vadd.f32 %v9011_v10, %v8819_v35  ;;  %v8821_v37 = vadd.f32 %v8820_v8, %v15729_v51  ;;  %v9013_v42 = vpop.f32.mrf.mxu1 }
 0x597   : > { %v8822_v19 = vpop.f32.mrf.mxu0 }
 0x598   : > { %v15757_v46 = vadd.f32 %v9013_v42, %v8821_v37  ;;  %v8823_v30 = vadd.f32 %v8822_v19, %v15723_v33  ;;  %v9015_v44 = vpop.f32.mrf.mxu1  ;;  %v17461_v37 = vld [vmem:[#allocation106_spill] sm:$0xff]  ;;  %v17462_v19 = vld [vmem:[#allocation99_spill] sm:$0xff] }
 0x599   : > { %v8824_v21 = vpop.f32.mrf.mxu0 }
 0x59a   : > { %v15760_v1 = vadd.f32 %v9015_v44, %v8823_v30  ;;  %v8825_v20 = vadd.f32 %v8824_v21, %v15729_v51  ;;  %v9017_v39 = vpop.f32.mrf.mxu1 }
 0x59b   : > { %v8828_v12 = vpop.f32.mrf.mxu0  ;;  %9293 = vmatmul.mubr.bf16.gmra.mxu0 %v17459_v9 }
 0x59c   : > { %v15764_v35 = vadd.f32 %v9017_v39, %v8825_v20  ;;  %v8829_v10 = vadd.f32 %v8828_v12, %v15723_v33  ;;  %v9021_v8 = vpop.f32.mrf.mxu1  ;;  %9486 = vmatmul.mubr.bf16.gmra.mxu1 %v17460_v17  ;;  %9302 = vmatprep.mubr.bf16.mxu0 %v17461_v37 }
 0x59d   : > { %9495 = vmatprep.mubr.bf16.mxu1 %v17462_v19  ;;  %v8830_v42 = vpop.f32.mrf.mxu0  ;;  %v17463_v19 = vld [vmem:[#allocation125_spill] sm:$0xff] }
 0x59e   : > { %v15770_v30 = vadd.f32 %v9021_v8, %v8829_v10  ;;  %v8831_v44 = vadd.f32 %v8830_v42, %v15729_v51  ;;  %v9023_v21 = vpop.f32.mrf.mxu1 }
 0x59f   : > { %v8832_v27 = vpop.f32.mrf.mxu0 }
 0x5a0   : > { %v15773_v14 = vadd.f32 %v9023_v21, %v8831_v44  ;;  %v8833_v20 = vadd.f32 %v8832_v27, %v15723_v33  ;;  %v9025_v39 = vpop.f32.mrf.mxu1  ;;  %v17465_v44 = vld [vmem:[#allocation108_spill] sm:$0xff]  ;;  %v17466_v27 = vld [vmem:[#allocation102_spill] sm:$0xff] }
 0x5a1   : > { %v8834_v12 = vpop.f32.mrf.mxu0 }
 0x5a2   : > { %v15776_v9 = vadd.f32 %v9025_v39, %v8833_v20  ;;  %v8835_v17 = vadd.f32 %v8834_v12, %v15729_v51  ;;  %v9027_v37 = vpop.f32.mrf.mxu1 }
 0x5a3   : > { %v8838_v22 = vpop.f32.mrf.mxu0  ;;  %9303 = vmatmul.mubr.bf16.gmra.mxu0 %v17463_v19 }
 0x5a4   : > { %v15780_v10 = vadd.f32 %v9027_v37, %v8835_v17  ;;  %v8839_v8 = vadd.f32 %v8838_v22, %v15723_v33  ;;  %v9031_v42 = vpop.f32.mrf.mxu1  ;;  %9496 = vmatmul.mubr.bf16.gmra.mxu1 %v17464_v63  ;;  %9312 = vmatprep.mubr.bf16.mxu0 %v17465_v44 }
 0x5a5   : > { %9505 = vmatprep.mubr.bf16.mxu1 %v17466_v27  ;;  %v8840_v21 = vpop.f32.mrf.mxu0  ;;  %v17467_v27 = vld [vmem:[#allocation127_spill] sm:$0xff] }
 0x5a6   : > { %v15786_v20 = vadd.f32 %v9031_v42, %v8839_v8  ;;  %v8841_v39 = vadd.f32 %v8840_v21, %v15729_v51  ;;  %v9033_v12 = vpop.f32.mrf.mxu1 }
 0x5a7   : > { %v8842_v5 = vpop.f32.mrf.mxu0 }
 0x5a8   : > { %v15789_v59 = vadd.f32 %v9033_v12, %v8841_v39  ;;  %v8843_v17 = vadd.f32 %v8842_v5, %v15723_v33  ;;  %v9035_v37 = vpop.f32.mrf.mxu1  ;;  %v17469_v39 = vld [vmem:[#allocation110_spill] sm:$0xff]  ;;  %v17470_v5 = vld [vmem:[#allocation105_spill] sm:$0xff] }
 0x5a9   : > { %v8844_v22 = vpop.f32.mrf.mxu0 }
 0x5aa   : > { %v15792_v19 = vadd.f32 %v9035_v37, %v8843_v17  ;;  %v8845_v63 = vadd.f32 %v8844_v22, %v15729_v51  ;;  %v9037_v44 = vpop.f32.mrf.mxu1 }
 0x5ab   : > { %v8848_v18 = vpop.f32.mrf.mxu0  ;;  %9313 = vmatmul.mubr.bf16.gmra.mxu0 %v17467_v27 }
 0x5ac   : > { %v15796_v8 = vadd.f32 %v9037_v44, %v8845_v63  ;;  %v8849_v42 = vadd.f32 %v8848_v18, %v15723_v33  ;;  %v9041_v21 = vpop.f32.mrf.mxu1  ;;  %9506 = vmatmul.mubr.bf16.gmra.mxu1 %v17468_v29  ;;  %9322 = vmatprep.mubr.bf16.mxu0 %v17469_v39 }
 0x5ad   : > { %9515 = vmatprep.mubr.bf16.mxu1 %v17470_v5  ;;  %v8850_v12 = vpop.f32.mrf.mxu0  ;;  %v17471_v5 = vld [vmem:[#allocation129_spill] sm:$0xff] }
 0x5ae   : > { %v15802_v17 = vadd.f32 %v9041_v21, %v8849_v42  ;;  %v8851_v37 = vadd.f32 %v8850_v12, %v15729_v51  ;;  %v9043_v22 = vpop.f32.mrf.mxu1 }
 0x5af   : > { %v8852_v43 = vpop.f32.mrf.mxu0 }
 0x5b0   : > { %v15805_v56 = vadd.f32 %v9043_v22, %v8851_v37  ;;  %v8853_v63 = vadd.f32 %v8852_v43, %v15723_v33  ;;  %v9045_v44 = vpop.f32.mrf.mxu1  ;;  %v17473_v37 = vld [vmem:[#allocation131_spill] sm:$0xff] }
 0x5b1   : > { %v8854_v18 = vpop.f32.mrf.mxu0  ;;  %v17474_v43 = vld [vmem:[#allocation107_spill] sm:$0xff] }
 0x5b2   : > { %v15808_v27 = vadd.f32 %v9045_v44, %v8853_v63  ;;  %v8855_v29 = vadd.f32 %v8854_v18, %v15729_v51  ;;  %v9047_v39 = vpop.f32.mrf.mxu1 }
 0x5b3   : > { %v8858_v49 = vpop.f32.mrf.mxu0  ;;  %9323 = vmatmul.mubr.bf16.gmra.mxu0 %v17471_v5 }
 0x5b4   : > { %v15812_v42 = vadd.f32 %v9047_v39, %v8855_v29  ;;  %v8859_v21 = vadd.f32 %v8858_v49, %v15723_v33  ;;  %v9051_v12 = vpop.f32.mrf.mxu1  ;;  %9516 = vmatmul.mubr.bf16.gmra.mxu1 %v17472_v53  ;;  %9332 = vmatprep.mubr.bf16.mxu0 %v17473_v37 }
 0x5b5   : > { %9525 = vmatprep.mubr.bf16.mxu1 %v17474_v43  ;;  %v8860_v22 = vpop.f32.mrf.mxu0  ;;  %v17477_v43 = vld [vmem:[#allocation130_spill] sm:$0xff] }
 0x5b6   : > { %v15818_v63 = vadd.f32 %v9051_v12, %v8859_v21  ;;  %v8861_v44 = vadd.f32 %v8860_v22, %v15729_v51  ;;  %v9053_v18 = vpop.f32.mrf.mxu1 }
 0x5b7   : > { %v8862_v13 = vpop.f32.mrf.mxu0 }
 0x5b8   : > { %v15821_v2 = vadd.f32 %v9053_v18, %v8861_v44  ;;  %v8863_v29 = vadd.f32 %v8862_v13, %v15723_v33  ;;  %v9055_v39 = vpop.f32.mrf.mxu1  ;;  %v17480_v44 = vld [vmem:[#allocation135_spill] sm:$0xff]  ;;  %v17481_v13 = vld [vmem:[#allocation109_spill] sm:$0xff] }
 0x5b9   : > { %v8864_v49 = vpop.f32.mrf.mxu0 }
 0x5ba   : > { %17475 = vst [vmem:[#allocation21_spill] sm:$0xff] %v15821_v2  ;;  %v15824_v5 = vadd.f32 %v9055_v39, %v8863_v29  ;;  %v8865_v53 = vadd.f32 %v8864_v49, %v15729_v51  ;;  %v9057_v37 = vpop.f32.mrf.mxu1  ;;  %v12250_v2 = vld [vmem:[#allocation8 + $0x734] ss:$24 sps:$4 sm:$0xff]  }
 0x5bb   : > { %v8868_v28 = vpop.f32.mrf.mxu0  ;;  %9333 = vmatmul.mubr.bf16.gmra.mxu0 %v17477_v43 }
 0x5bc   : > { %17476 = vst [vmem:[#allocation83_spill] sm:$0xff] %v15824_v5  ;;  %v15828_v21 = vadd.f32 %v9057_v37, %v8865_v53  ;;  %v8869_v12 = vadd.f32 %v8868_v28, %v15723_v33  ;;  %v9061_v22 = vpop.f32.mrf.mxu1  ;;  %9526 = vmatmul.mubr.bf16.gmra.mxu1 %v17479_v57  ;;  %9342 = vmatprep.mubr.bf16.mxu0 %v17480_v44 }
 0x5bd   : > { %9535 = vmatprep.mubr.bf16.mxu1 %v17481_v13  ;;  %v8870_v18 = vpop.f32.mrf.mxu0  ;;  %v17485_v13 = vld [vmem:[#allocation133_spill] sm:$0xff] }
 0x5be   : > { %17478 = vst [vmem:[#allocation32_spill] sm:$0xff] %v15828_v21  ;;  %v15834_v29 = vadd.f32 %v9061_v22, %v8869_v12  ;;  %v8871_v39 = vadd.f32 %v8870_v18, %v15729_v51  ;;  %v9063_v49 = vpop.f32.mrf.mxu1 }
 0x5bf   : > { %v8872_v0 = vpop.f32.mrf.mxu0 }
 0x5c0   : > { %17482 = vst [vmem:[#allocation18_spill] sm:$0xff] %v15834_v29  ;;  %v15837_v5 = vadd.f32 %v9063_v49, %v8871_v39  ;;  %v8873_v53 = vadd.f32 %v8872_v0, %v15723_v33  ;;  %v9065_v37 = vpop.f32.mrf.mxu1  ;;  %v17487_v29 = vld [vmem:[#allocation126_spill] sm:$0xff]  ;;  %v17488_v39 = vld [vmem:[#allocation59_spill] sm:$0xff] }
 0x5c1   : > { %v8874_v28 = vpop.f32.mrf.mxu0  ;;  %v17489_v0 = vld [vmem:[#allocation90_spill] sm:$0xff] }
 0x5c2   : > { %17483 = vst [vmem:[#allocation38_spill] sm:$0xff] %v15837_v5  ;;  %v15840_v43 = vadd.f32 %v9065_v37, %v8873_v53  ;;  %v8875_v57 = vadd.f32 %v8874_v28, %v15729_v51  ;;  %v9067_v44 = vpop.f32.mrf.mxu1 }
 0x5c3   : > { %v8878_v21 = vpop.f32.mrf.mxu0  ;;  %9343 = vmatmul.mubr.bf16.gmra.mxu0 %v17485_v13  ;;  %v12242_v13 = vld [vmem:[#allocation8 + $0x760] ss:$24 sps:$4 sm:$0xff]  }
 0x5c4   : > { %17484 = vst [vmem:[#allocation22_spill] sm:$0xff] %v15840_v43  ;;  %v15844_v12 = vadd.f32 %v9067_v44, %v8875_v57  ;;  %v8879_v22 = vadd.f32 %v8878_v21, %v15723_v33  ;;  %v9071_v18 = vpop.f32.mrf.mxu1  ;;  %9536 = vmatmul.mubr.bf16.gmra.mxu1 %v17487_v29  ;;  %9578 = vmatprep.mubr.bf16.mxu0 %v17488_v39 }
 0x5c5   : > { %9771 = vmatprep.mubr.bf16.mxu1 %v17489_v0  ;;  %v8880_v49 = vpop.f32.mrf.mxu0  ;;  %v12245_v0 = vld [vmem:[#allocation8 + $0xa60] ss:$24 sps:$4 sm:$0xff]  }
 0x5c6   : > { %17486 = vst [vmem:[#allocation44_spill] sm:$0xff] %v15844_v12  ;;  %v15850_v53 = vadd.f32 %v9071_v18, %v8879_v22  ;;  %v8881_v37 = vadd.f32 %v8880_v49, %v15729_v51  ;;  %v9073_v28 = vpop.f32.mrf.mxu1  ;;  %v17493_v18 = vld [vmem:[#allocation58_spill] sm:$0xff] }
 0x5c7   : > { %v8882_v43 = vpop.f32.mrf.mxu0  ;;  %v12253_v49 = vld [vmem:[#allocation8 + $0xa34] ss:$24 sps:$4 sm:$0xff]  }
 0x5c8   : > { %17490 = vst [vmem:[#allocation23_spill] sm:$0xff] %v15850_v53  ;;  %v15853_v5 = vadd.f32 %v9073_v28, %v8881_v37  ;;  %v8883_v57 = vadd.f32 %v8882_v43, %v15723_v33  ;;  %v9075_v44 = vpop.f32.mrf.mxu1  ;;  %v17495_v43 = vld [vmem:[#allocation89_spill] sm:$0xff] }
 0x5c9   : > { %v8884_v21 = vpop.f32.mrf.mxu0 }
 0x5ca   : > { %17491 = vst [vmem:[#allocation50_spill] sm:$0xff] %v15853_v5  ;;  %v15856_v12 = vadd.f32 %v9075_v44, %v8883_v57  ;;  %v8885_v39 = vadd.f32 %v8884_v21, %v15729_v51  ;;  %v9077_v29 = vpop.f32.mrf.mxu1  ;;  %v17496_v5 = vld [vmem:[#allocation61_spill] sm:$0xff]  ;;  %v17497_v57 = vld [vmem:[#allocation62_spill] sm:$0xff] }
 0x5cb   : > { %v8888_v22 = vpop.f32.mrf.mxu0  ;;  %9579 = vmatmul.mubr.bf16.vlgmr.msra.gmra.mxu0 %v17493_v18  ;;  %v12248_v21 = vld [vmem:[#allocation8 + $0x730] ss:$24 sps:$4 sm:$0xff]  }
 0x5cc   : > { %17492 = vst [vmem:[#allocation28_spill] sm:$0xff] %v15856_v12  ;;  %v15860_v53 = vadd.f32 %v9077_v29, %v8885_v39  ;;  %v8889_v37 = vadd.f32 %v8888_v22, %v15723_v33  ;;  %v9081_v28 = vpop.f32.mrf.mxu1  ;;  %9772 = vmatmul.mubr.bf16.vlgmr.msra.gmra.mxu1 %v17495_v43  ;;  %9588 = vmatprep.mubr.bf16.mxu0 %v17496_v5  ;;  %v12251_v29 = vld [vmem:[#allocation8 + $0xa30] ss:$24 sps:$4 sm:$0xff]   ;;  %v12256_v39 = vld [vmem:[#allocation8 + $0x704] ss:$24 sps:$4 sm:$0xff]  }
 0x5cd   : > { %9781 = vmatprep.mubr.bf16.mxu1 %v17497_v57  ;;  %9933 = vmatpush1.bf16.msra.mxu0 %v12242_v13  ;;  %v8890_v44 = vpop.f32.mrf.mxu0 }
 0x5ce   : > { %17494 = vst [vmem:[#allocation54_spill] sm:$0xff] %v15860_v53  ;;  %v15866_v12 = vadd.f32 %v9081_v28, %v8889_v37  ;;  %v8891_v54 = vadd.f32 %v8890_v44, %v15729_v51  ;;  %v9083_v18 = vpop.f32.mrf.mxu1  ;;  %10126 = vmatpush1.bf16.msra.mxu1 %v12245_v0  ;;  %9934 = vmatprep.subr.bf16.mxu0 %v12250_v2  ;;  %v12259_v53 = vld [vmem:[#allocation8 + $0xa04] ss:$24 sps:$4 sm:$0xff]   ;;  %v12257_v2 = vld [vmem:[#allocation8 + $0xa00] ss:$24 sps:$4 sm:$0xff]  }
 0x5cf   : > { %v8892_v22 = vpop.f32.mrf.mxu0  ;;  %10127 = vmatprep.subr.bf16.mxu1 %v12253_v49  ;;  %v12262_v0 = vld [vmem:[#allocation8 + $0x6d4] ss:$24 sps:$4 sm:$0xff]  }
 0x5d0   : > { %17498 = vst [vmem:[#allocation27_spill] sm:$0xff] %v15866_v12  ;;  %v15869_v43 = vadd.f32 %v9083_v18, %v8891_v54  ;;  %v8893_v5 = vadd.f32 %v8892_v22, %v15723_v33  ;;  %v9085_v57 = vpop.f32.mrf.mxu1  ;;  %v17501_v49 = vld [vmem:[#allocation60_spill] sm:$0xff] }
 0x5d1   : > { %v8894_v13 = vpop.f32.mrf.mxu0  ;;  %9935 = vmatpush1.bf16.msra.mxu0 %v12248_v21  ;;  %v12265_v54 = vld [vmem:[#allocation8 + $0x9d4] ss:$24 sps:$4 sm:$0xff]  }
 0x5d2   : > { %17499 = vst [vmem:[#allocation25_spill] sm:$0xff] %v15869_v43  ;;  %v15872_v37 = vadd.f32 %v9085_v57, %v8893_v5  ;;  %v8895_v28 = vadd.f32 %v8894_v13, %v15729_v51  ;;  %v9087_v44 = vpop.f32.mrf.mxu1  ;;  %10128 = vmatpush1.bf16.msra.mxu1 %v12251_v29  ;;  %9936 = vmatprep.subr.bf16.mxu0 %v12256_v39  ;;  %v17503_v43 = vld [vmem:[#allocation91_spill] sm:$0xff]  ;;  %v17504_v5 = vld [vmem:[#allocation64_spill] sm:$0xff]  ;;  %v17505_v57 = vld [vmem:[#allocation65_spill] sm:$0xff] }
 0x5d3   : > { %v8898_v12 = vpop.f32.mrf.mxu0  ;;  %9589 = vmatmul.mubr.bf16.gmra.mxu0 %v17501_v49  ;;  %10129 = vmatprep.subr.bf16.mxu1 %v12259_v53  ;;  %v12260_v39 = vld [vmem:[#allocation8 + $0x6d0] ss:$24 sps:$4 sm:$0xff]  }
 0x5d4   : > { %17500 = vst [vmem:[#allocation128_spill] sm:$0xff] %v15872_v37  ;;  %v15876_v18 = vadd.f32 %v9087_v44, %v8895_v28  ;;  %v8899_v22 = vadd.f32 %v8898_v12, %v15723_v33  ;;  %v9091_v21 = vpop.f32.mrf.mxu1  ;;  %9782 = vmatmul.mubr.bf16.gmra.mxu1 %v17503_v43  ;;  %9598 = vmatprep.mubr.bf16.mxu0 %v17504_v5  ;;  %v12263_v28 = vld [vmem:[#allocation8 + $0x9d0] ss:$24 sps:$4 sm:$0xff]   ;;  %v12268_v44 = vld [vmem:[#allocation8 + $0x6a4] ss:$24 sps:$4 sm:$0xff]  }
 0x5d5   : > { %9791 = vmatprep.mubr.bf16.mxu1 %v17505_v57  ;;  %v8900_v29 = vpop.f32.mrf.mxu0  ;;  %9937 = vmatpush1.bf16.msra.mxu0 %v12254_v31  ;;  %v12266_v31 = vld [vmem:[#allocation8 + $0x6a0] ss:$24 sps:$4 sm:$0xff]  }
 0x5d6   : > { %17502 = vst [vmem:[#allocation111_spill] sm:$0xff] %v15876_v18  ;;  %v15882_v13 = vadd.f32 %v9091_v21, %v8899_v22  ;;  %v8901_v49 = vadd.f32 %v8900_v29, %v15729_v51  ;;  %v9093_v53 = vpop.f32.mrf.mxu1  ;;  %10130 = vmatpush1.bf16.msra.mxu1 %v12257_v2  ;;  %9938 = vmatprep.subr.bf16.mxu0 %v12262_v0  ;;  %v12271_v18 = vld [vmem:[#allocation8 + $0x9a4] ss:$24 sps:$4 sm:$0xff]   ;;  %v12269_v2 = vld [vmem:[#allocation8 + $0x9a0] ss:$24 sps:$4 sm:$0xff]  }
 0x5d7   : > { %v8902_v12 = vpop.f32.mrf.mxu0  ;;  %10131 = vmatprep.subr.bf16.mxu1 %v12265_v54  ;;  %v12274_v0 = vld [vmem:[#allocation8 + $0x674] ss:$24 sps:$4 sm:$0xff]   ;;  %v17509_v54 = vld [vmem:[#allocation63_spill] sm:$0xff] }
 0x5d8   : > { %17506 = vst [vmem:[#allocation132_spill] sm:$0xff] %v15882_v13  ;;  %v15885_v43 = vadd.f32 %v9093_v53, %v8901_v49  ;;  %v8903_v5 = vadd.f32 %v8902_v12, %v15723_v33  ;;  %v9095_v57 = vpop.f32.mrf.mxu1  ;;  %v12277_v49 = vld [vmem:[#allocation8 + $0x974] ss:$24 sps:$4 sm:$0xff]  }
 0x5d9   : > { %v8904_v37 = vpop.f32.mrf.mxu0  ;;  %9939 = vmatpush1.bf16.msra.mxu0 %v12260_v39 }
 0x5da   : > { %17507 = vst [vmem:[#allocation134_spill] sm:$0xff] %v15885_v43  ;;  %v15888_v22 = vadd.f32 %v9095_v57, %v8903_v5  ;;  %v8905_v21 = vadd.f32 %v8904_v37, %v15729_v51  ;;  %v9097_v29 = vpop.f32.mrf.mxu1  ;;  %10132 = vmatpush1.bf16.msra.mxu1 %v12263_v28  ;;  %9940 = vmatprep.subr.bf16.mxu0 %v12268_v44  ;;  %v17511_v43 = vld [vmem:[#allocation92_spill] sm:$0xff]  ;;  %v17512_v5 = vld [vmem:[#allocation67_spill] sm:$0xff]  ;;  %v17513_v37 = vld [vmem:[#allocation69_spill] sm:$0xff] }
 0x5db   : > { %v8908_v13 = vpop.f32.mrf.mxu0  ;;  %9599 = vmatmul.mubr.bf16.gmra.mxu0 %v17509_v54  ;;  %10133 = vmatprep.subr.bf16.mxu1 %v12271_v18  ;;  %v12272_v44 = vld [vmem:[#allocation8 + $0x670] ss:$24 sps:$4 sm:$0xff]  }
 0x5dc   : > { %17508 = vst [vmem:[#allocation140_spill] sm:$0xff] %v15888_v22  ;;  %v15892_v53 = vadd.f32 %v9097_v29, %v8905_v21  ;;  %v8909_v12 = vadd.f32 %v8908_v13, %v15723_v33  ;;  %v9101_v39 = vpop.f32.mrf.mxu1  ;;  %9792 = vmatmul.mubr.bf16.gmra.mxu1 %v17511_v43  ;;  %9608 = vmatprep.mubr.bf16.mxu0 %v17512_v5  ;;  %v12275_v21 = vld [vmem:[#allocation8 + $0x970] ss:$24 sps:$4 sm:$0xff]   ;;  %v12280_v29 = vld [vmem:[#allocation8 + $0x644] ss:$24 sps:$4 sm:$0xff]  }
 0x5dd   : > { %9801 = vmatprep.mubr.bf16.mxu1 %v17513_v37  ;;  %v8910_v28 = vpop.f32.mrf.mxu0  ;;  %9941 = vmatpush1.bf16.msra.mxu0 %v12266_v31  ;;  %v12278_v31 = vld [vmem:[#allocation8 + $0x640] ss:$24 sps:$4 sm:$0xff]  }
 0x5de   : > { %17510 = vst [vmem:[#allocation141_spill] sm:$0xff] %v15892_v53  ;;  %v15898_v57 = vadd.f32 %v9101_v39, %v8909_v12  ;;  %v8911_v54 = vadd.f32 %v8910_v28, %v15729_v51  ;;  %v9103_v18 = vpop.f32.mrf.mxu1  ;;  %10134 = vmatpush1.bf16.msra.mxu1 %v12269_v2  ;;  %9942 = vmatprep.subr.bf16.mxu0 %v12274_v0  ;;  %v12283_v53 = vld [vmem:[#allocation8 + $0x944] ss:$24 sps:$4 sm:$0xff]   ;;  %v12281_v2 = vld [vmem:[#allocation8 + $0x940] ss:$24 sps:$4 sm:$0xff]  }
 0x5df   : > { %v8912_v13 = vpop.f32.mrf.mxu0  ;;  %10135 = vmatprep.subr.bf16.mxu1 %v12277_v49  ;;  %v12286_v0 = vld [vmem:[#allocation8 + $0x614] ss:$24 sps:$4 sm:$0xff]  }
 0x5e0   : > { %17514 = vst [vmem:[#allocation142_spill] sm:$0xff] %v15898_v57  ;;  %v15901_v43 = vadd.f32 %v9103_v18, %v8911_v54  ;;  %v8913_v5 = vadd.f32 %v8912_v13, %v15723_v33  ;;  %v9105_v37 = vpop.f32.mrf.mxu1  ;;  %v17517_v49 = vld [vmem:[#allocation66_spill] sm:$0xff] }
 0x5e1   : > { %v8914_v22 = vpop.f32.mrf.mxu0  ;;  %9943 = vmatpush1.bf16.msra.mxu0 %v12272_v44  ;;  %v12289_v54 = vld [vmem:[#allocation8 + $0x914] ss:$24 sps:$4 sm:$0xff]  }
 0x5e2   : > { %17515 = vst [vmem:[#allocation143_spill] sm:$0xff] %v15901_v43  ;;  %v15904_v12 = vadd.f32 %v9105_v37, %v8913_v5  ;;  %v8915_v39 = vadd.f32 %v8914_v22, %v15729_v51  ;;  %v9107_v28 = vpop.f32.mrf.mxu1  ;;  %10136 = vmatpush1.bf16.msra.mxu1 %v12275_v21  ;;  %9944 = vmatprep.subr.bf16.mxu0 %v12280_v29  ;;  %v17519_v43 = vld [vmem:[#allocation68_spill] sm:$0xff]  ;;  %v17521_v22 = vld [vmem:[#allocation73_spill] sm:$0xff] }
 0x5e3   : > { %v8918_v57 = vpop.f32.mrf.mxu0  ;;  %9609 = vmatmul.mubr.bf16.gmra.mxu0 %v17517_v49  ;;  %10137 = vmatprep.subr.bf16.mxu1 %v12283_v53  ;;  %v17520_v5 = vld [vmem:[#allocation72_spill] sm:$0xff] }
 0x5e4   : > { %17516 = vst [vmem:[#allocation144_spill] sm:$0xff] %v15904_v12  ;;  %v15908_v18 = vadd.f32 %v9107_v28, %v8915_v39  ;;  %v8919_v13 = vadd.f32 %v8918_v57, %v15723_v33  ;;  %v9111_v44 = vpop.f32.mrf.mxu1  ;;  %9802 = vmatmul.mubr.bf16.gmra.mxu1 %v17519_v43  ;;  %9618 = vmatprep.mubr.bf16.mxu0 %v17520_v5  ;;  %v12284_v29 = vld [vmem:[#allocation8 + $0x610] ss:$24 sps:$4 sm:$0xff]   ;;  %v12292_v28 = vld [vmem:[#allocation8 + $0x8e4] ss:$24 sps:$4 sm:$0xff]  }
 0x5e5   : > { %9811 = vmatprep.mubr.bf16.mxu1 %v17521_v22  ;;  %v8920_v21 = vpop.f32.mrf.mxu0  ;;  %9945 = vmatpush1.bf16.msra.mxu0 %v12278_v31  ;;  %v12287_v39 = vld [vmem:[#allocation8 + $0x910] ss:$24 sps:$4 sm:$0xff]   ;;  %v12290_v31 = vld [vmem:[#allocation8 + $0x8e0] ss:$24 sps:$4 sm:$0xff]  }
 0x5e6   : > { %17518 = vst [vmem:[#allocation145_spill] sm:$0xff] %v15908_v18  ;;  %v15914_v37 = vadd.f32 %v9111_v44, %v8919_v13  ;;  %v8921_v49 = vadd.f32 %v8920_v21, %v15729_v51  ;;  %v9113_v53 = vpop.f32.mrf.mxu1  ;;  %10138 = vmatpush1.bf16.msra.mxu1 %v12281_v2  ;;  %9946 = vmatprep.subr.bf16.mxu0 %v12286_v0  ;;  %v12295_v18 = vld [vmem:[#allocation8 + $0xbe4] ss:$24 sps:$4 sm:$0xff]   ;;  %v12293_v2 = vld [vmem:[#allocation8 + $0xbe0] ss:$24 sps:$4 sm:$0xff]  }
 0x5e7   : > { %v8922_v57 = vpop.f32.mrf.mxu0  ;;  %10139 = vmatprep.subr.bf16.mxu1 %v12289_v54  ;;  %v12298_v0 = vld [vmem:[#allocation8 + $0x8b4] ss:$24 sps:$4 sm:$0xff]  }
 0x5e8   : > { %17522 = vst [vmem:[#allocation146_spill] sm:$0xff] %v15914_v37  ;;  %v15917_v43 = vadd.f32 %v9113_v53, %v8921_v49  ;;  %v8923_v5 = vadd.f32 %v8922_v57, %v15723_v33  ;;  %v9115_v22 = vpop.f32.mrf.mxu1  ;;  %v17525_v54 = vld [vmem:[#allocation70_spill] sm:$0xff] }
 0x5e9   : > { %v8924_v12 = vpop.f32.mrf.mxu0  ;;  %9947 = vmatpush1.bf16.msra.mxu0 %v12284_v29  ;;  %v12301_v49 = vld [vmem:[#allocation8 + $0xbb4] ss:$24 sps:$4 sm:$0xff]  }
 0x5ea   : > { %17523 = vst [vmem:[#allocation147_spill] sm:$0xff] %v15917_v43  ;;  %v15920_v13 = vadd.f32 %v9115_v22, %v8923_v5  ;;  %v8925_v44 = vadd.f32 %v8924_v12, %v15729_v51  ;;  %v9117_v21 = vpop.f32.mrf.mxu1  ;;  %10140 = vmatpush1.bf16.msra.mxu1 %v12287_v39  ;;  %9948 = vmatprep.subr.bf16.mxu0 %v12292_v28  ;;  %v17527_v43 = vld [vmem:[#allocation71_spill] sm:$0xff]  ;;  %v17528_v5 = vld [vmem:[#allocation78_spill] sm:$0xff]  ;;  %v12296_v28 = vld [vmem:[#allocation8 + $0x8b0] ss:$24 sps:$4 sm:$0xff]  }
 0x5eb   : > { %v8928_v37 = vpop.f32.mrf.mxu0  ;;  %9619 = vmatmul.mubr.bf16.gmra.mxu0 %v17525_v54  ;;  %10141 = vmatprep.subr.bf16.mxu1 %v12295_v18  ;;  %v17529_v12 = vld [vmem:[#allocation75_spill] sm:$0xff] }
 0x5ec   : > { %17524 = vst [vmem:[#allocation148_spill] sm:$0xff] %v15920_v13  ;;  %v15924_v53 = vadd.f32 %v9117_v21, %v8925_v44  ;;  %v8929_v57 = vadd.f32 %v8928_v37, %v15723_v33  ;;  %v9121_v29 = vpop.f32.mrf.mxu1  ;;  %9812 = vmatmul.mubr.bf16.gmra.mxu1 %v17527_v43  ;;  %9628 = vmatprep.mubr.bf16.mxu0 %v17528_v5  ;;  %v12299_v44 = vld [vmem:[#allocation8 + $0xbb0] ss:$24 sps:$4 sm:$0xff]   ;;  %v12304_v21 = vld [vmem:[#allocation8 + $0x884] ss:$24 sps:$4 sm:$0xff]  }
 0x5ed   : > { %9821 = vmatprep.mubr.bf16.mxu1 %v17529_v12  ;;  %v8930_v39 = vpop.f32.mrf.mxu0  ;;  %9949 = vmatpush2.bf16.msra.mxu0 %v12290_v31  ;;  %v12302_v31 = vld [vmem:[#allocation8 + $0x880] ss:$24 sps:$4 sm:$0xff]  }
 0x5ee   : > { %17526 = vst [vmem:[#allocation149_spill] sm:$0xff] %v15924_v53  ;;  %v15930_v22 = vadd.f32 %v9121_v29, %v8929_v57  ;;  %v8931_v54 = vadd.f32 %v8930_v39, %v15729_v51  ;;  %v9123_v18 = vpop.f32.mrf.mxu1  ;;  %10142 = vmatpush2.bf16.msra.mxu1 %v12293_v2  ;;  %9950 = vmatprep.subr.bf16.mxu0 %v12298_v0  ;;  %v12307_v53 = vld [vmem:[#allocation8 + $0xb84] ss:$24 sps:$4 sm:$0xff]   ;;  %v12305_v2 = vld [vmem:[#allocation8 + $0xb80] ss:$24 sps:$4 sm:$0xff]  }
 0x5ef   : > { %v8932_v37 = vpop.f32.mrf.mxu0  ;;  %10143 = vmatprep.subr.bf16.mxu1 %v12301_v49  ;;  %v12310_v0 = vld [vmem:[#allocation8 + $0x854] ss:$24 sps:$4 sm:$0xff]  }
 0x5f0   : > { %17530 = vst [vmem:[#allocation150_spill] sm:$0xff] %v15930_v22  ;;  %v15933_v43 = vadd.f32 %v9123_v18, %v8931_v54  ;;  %v8933_v5 = vadd.f32 %v8932_v37, %v15723_v33  ;;  %v9125_v12 = vpop.f32.mrf.mxu1  ;;  %v17533_v49 = vld [vmem:[#allocation76_spill] sm:$0xff] }
 0x5f1   : > { %v8934_v13 = vpop.f32.mrf.mxu0  ;;  %9951 = vmatpush2.bf16.msra.mxu0 %v12296_v28  ;;  %v12313_v54 = vld [vmem:[#allocation8 + $0xb54] ss:$24 sps:$4 sm:$0xff]  }
 0x5f2   : > { %17531 = vst [vmem:[#allocation151_spill] sm:$0xff] %v15933_v43  ;;  %v15936_v57 = vadd.f32 %v9125_v12, %v8933_v5  ;;  %v8935_v29 = vadd.f32 %v8934_v13, %v15729_v51  ;;  %v9127_v39 = vpop.f32.mrf.mxu1  ;;  %10144 = vmatpush2.bf16.msra.mxu1 %v12299_v44  ;;  %9952 = vmatprep.subr.bf16.mxu0 %v12304_v21  ;;  %v17535_v43 = vld [vmem:[#allocation74_spill] sm:$0xff]  ;;  %v17536_v5 = vld [vmem:[#allocation84_spill] sm:$0xff]  ;;  %v17537_v13 = vld [vmem:[#allocation79_spill] sm:$0xff] }
 0x5f3   : > { %v8938_v22 = vpop.f32.mrf.mxu0  ;;  %9629 = vmatmul.mubr.bf16.gmra.mxu0 %v17533_v49  ;;  %10145 = vmatprep.subr.bf16.mxu1 %v12307_v53  ;;  %v12308_v21 = vld [vmem:[#allocation8 + $0x850] ss:$24 sps:$4 sm:$0xff]  }
 0x5f4   : > { %17532 = vst [vmem:[#allocation152_spill] sm:$0xff] %v15936_v57  ;;  %v15940_v18 = vadd.f32 %v9127_v39, %v8935_v29  ;;  %v8939_v37 = vadd.f32 %v8938_v22, %v15723_v33  ;;  %v9131_v28 = vpop.f32.mrf.mxu1  ;;  %9822 = vmatmul.mubr.bf16.gmra.mxu1 %v17535_v43  ;;  %9638 = vmatprep.mubr.bf16.mxu0 %v17536_v5  ;;  %v12311_v29 = vld [vmem:[#allocation8 + $0xb50] ss:$24 sps:$4 sm:$0xff]   ;;  %v12316_v39 = vld [vmem:[#allocation8 + $0x824] ss:$24 sps:$4 sm:$0xff]  }
 0x5f5   : > { %9831 = vmatprep.mubr.bf16.mxu1 %v17537_v13  ;;  %v8940_v44 = vpop.f32.mrf.mxu0  ;;  %9953 = vmatpush2.bf16.msra.mxu0 %v12302_v31  ;;  %v12314_v31 = vld [vmem:[#allocation8 + $0x820] ss:$24 sps:$4 sm:$0xff]  }
 0x5f6   : > { %17534 = vst [vmem:[#allocation153_spill] sm:$0xff] %v15940_v18  ;;  %v15946_v12 = vadd.f32 %v9131_v28, %v8939_v37  ;;  %v8941_v49 = vadd.f32 %v8940_v44, %v15729_v51  ;;  %v9133_v53 = vpop.f32.mrf.mxu1  ;;  %10146 = vmatpush2.bf16.msra.mxu1 %v12305_v2  ;;  %9954 = vmatprep.subr.bf16.mxu0 %v12310_v0  ;;  %v12319_v18 = vld [vmem:[#allocation8 + $0xb24] ss:$24 sps:$4 sm:$0xff]   ;;  %v12317_v2 = vld [vmem:[#allocation8 + $0xb20] ss:$24 sps:$4 sm:$0xff]  }
 0x5f7   : > { %v8942_v22 = vpop.f32.mrf.mxu0  ;;  %10147 = vmatprep.subr.bf16.mxu1 %v12313_v54  ;;  %v12322_v0 = vld [vmem:[#allocation8 + $0x7f4] ss:$24 sps:$4 sm:$0xff]  }
 0x5f8   : > { %17538 = vst [vmem:[#allocation154_spill] sm:$0xff] %v15946_v12  ;;  %v15949_v43 = vadd.f32 %v9133_v53, %v8941_v49  ;;  %v8943_v5 = vadd.f32 %v8942_v22, %v15723_v33  ;;  %v9135_v13 = vpop.f32.mrf.mxu1  ;;  %v17541_v54 = vld [vmem:[#allocation82_spill] sm:$0xff] }
 0x5f9   : > { %v8944_v57 = vpop.f32.mrf.mxu0  ;;  %9955 = vmatpush2.bf16.msra.mxu0 %v12308_v21  ;;  %v12325_v49 = vld [vmem:[#allocation8 + $0xaf4] ss:$24 sps:$4 sm:$0xff]  }
 0x5fa   : > { %17539 = vst [vmem:[#allocation155_spill] sm:$0xff] %v15949_v43  ;;  %v15952_v37 = vadd.f32 %v9135_v13, %v8943_v5  ;;  %v8945_v28 = vadd.f32 %v8944_v57, %v15729_v51  ;;  %v9137_v44 = vpop.f32.mrf.mxu1  ;;  %10148 = vmatpush2.bf16.msra.mxu1 %v12311_v29  ;;  %9956 = vmatprep.subr.bf16.mxu0 %v12316_v39  ;;  %v17543_v43 = vld [vmem:[#allocation77_spill] sm:$0xff]  ;;  %v17544_v5 = vld [vmem:[#allocation87_spill] sm:$0xff] }
 0x5fb   : > { %v8948_v12 = vpop.f32.mrf.mxu0  ;;  %9639 = vmatmul.mubr.bf16.gmra.mxu0 %v17541_v54  ;;  %10149 = vmatprep.subr.bf16.mxu1 %v12319_v18  ;;  %v17545_v57 = vld [vmem:[#allocation81_spill] sm:$0xff] }
 0x5fc   : > { %17540 = vst [vmem:[#allocation156_spill] sm:$0xff] %v15952_v37  ;;  %v15956_v53 = vadd.f32 %v9137_v44, %v8945_v28  ;;  %v8949_v22 = vadd.f32 %v8948_v12, %v15723_v33  ;;  %v9141_v21 = vpop.f32.mrf.mxu1  ;;  %9832 = vmatmul.mubr.bf16.gmra.mxu1 %v17543_v43  ;;  %9648 = vmatprep.mubr.bf16.mxu0 %v17544_v5  ;;  %v12320_v39 = vld [vmem:[#allocation8 + $0x7f0] ss:$24 sps:$4 sm:$0xff]   ;;  %v12328_v44 = vld [vmem:[#allocation8 + $0x7c4] ss:$24 sps:$4 sm:$0xff]  }
 0x5fd   : > { %9841 = vmatprep.mubr.bf16.mxu1 %v17545_v57  ;;  %v8950_v29 = vpop.f32.mrf.mxu0  ;;  %9957 = vmatpush2.bf16.msra.mxu0 %v12314_v31  ;;  %v12323_v28 = vld [vmem:[#allocation8 + $0xaf0] ss:$24 sps:$4 sm:$0xff]   ;;  %v12326_v31 = vld [vmem:[#allocation8 + $0x7c0] ss:$24 sps:$4 sm:$0xff]  }
 0x5fe   : > { %17542 = vst [vmem:[#allocation157_spill] sm:$0xff] %v15956_v53  ;;  %v15962_v13 = vadd.f32 %v9141_v21, %v8949_v22  ;;  %v8951_v54 = vadd.f32 %v8950_v29, %v15729_v51  ;;  %v9143_v18 = vpop.f32.mrf.mxu1  ;;  %10150 = vmatpush2.bf16.msra.mxu1 %v12317_v2  ;;  %9958 = vmatprep.subr.bf16.mxu0 %v12322_v0  ;;  %v12331_v53 = vld [vmem:[#allocation8 + $0xac4] ss:$24 sps:$4 sm:$0xff]   ;;  %v12329_v2 = vld [vmem:[#allocation8 + $0xac0] ss:$24 sps:$4 sm:$0xff]  }
 0x5ff   : > { %v8952_v12 = vpop.f32.mrf.mxu0  ;;  %10151 = vmatprep.subr.bf16.mxu1 %v12325_v49  ;;  %v12334_v0 = vld [vmem:[#allocation8 + $0x794] ss:$24 sps:$4 sm:$0xff]  }
 0x600   : > { %17546 = vst [vmem:[#allocation158_spill] sm:$0xff] %v15962_v13  ;;  %v15965_v43 = vadd.f32 %v9143_v18, %v8951_v54  ;;  %v8953_v5 = vadd.f32 %v8952_v12, %v15723_v33  ;;  %v9145_v57 = vpop.f32.mrf.mxu1  ;;  %v17548_v49 = vld [vmem:[#allocation86_spill] sm:$0xff] }
 0x601   : > { %v8954_v37 = vpop.f32.mrf.mxu0  ;;  %9959 = vmatpush2.bf16.msra.mxu0 %v12320_v39  ;;  %v12337_v54 = vld [vmem:[#allocation8 + $0xa94] ss:$24 sps:$4 sm:$0xff]  }
 0x602   : > { %17547 = vst [vmem:[#allocation159_spill] sm:$0xff] %v15965_v43  ;;  %v15968_v22 = vadd.f32 %v9145_v57, %v8953_v5  ;;  %v8955_v21 = vadd.f32 %v8954_v37, %v15729_v51  ;;  %v9147_v29 = vpop.f32.mrf.mxu1  ;;  %10152 = vmatpush2.bf16.msra.mxu1 %v12323_v28  ;;  %9960 = vmatprep.subr.bf16.mxu0 %v12328_v44  ;;  %v17550_v43 = vld [vmem:[#allocation80_spill] sm:$0xff]  ;;  %v17551_v5 = vld [vmem:[#allocation26_spill] sm:$0xff]  ;;  %v17552_v37 = vld [vmem:[#allocation85_spill] sm:$0xff] }
 0x603   : > { %v8958_v13 = vpop.f32.mrf.mxu0  ;;  %9649 = vmatmul.mubr.bf16.gmra.mxu0 %v17548_v49  ;;  %10153 = vmatprep.subr.bf16.mxu1 %v12331_v53  ;;  %v12332_v44 = vld [vmem:[#allocation8 + $0x790] ss:$24 sps:$4 sm:$0xff]  }
 0x604   : > { %v15972_v18 = vadd.f32 %v9147_v29, %v8955_v21  ;;  %v8959_v12 = vadd.f32 %v8958_v13, %v15723_v33  ;;  %v9151_v39 = vpop.f32.mrf.mxu1  ;;  %9842 = vmatmul.mubr.bf16.gmra.mxu1 %v17550_v43  ;;  %9658 = vmatprep.mubr.bf16.mxu0 %v17551_v5  ;;  %v12335_v21 = vld [vmem:[#allocation8 + $0xa90] ss:$24 sps:$4 sm:$0xff]  }
 0x605   : > { %9851 = vmatprep.mubr.bf16.mxu1 %v17552_v37  ;;  %v8960_v28 = vpop.f32.mrf.mxu0  ;;  %9961 = vmatpush2.bf16.msra.mxu0 %v12326_v31 }
 0x606   : > { %17549 = vst [vmem:[#allocation160_spill] sm:$0xff] %v15972_v18  ;;  %v15978_v57 = vadd.f32 %v9151_v39, %v8959_v12  ;;  %v8961_v49 = vadd.f32 %v8960_v28, %v15729_v51  ;;  %v9153_v53 = vpop.f32.mrf.mxu1  ;;  %10154 = vmatpush2.bf16.msra.mxu1 %v12329_v2  ;;  %9962 = vmatprep.subr.bf16.mxu0 %v12334_v0 }
 0x607   : > { %v8962_v29 = vpop.f32.mrf.mxu0  ;;  %10155 = vmatprep.subr.bf16.mxu1 %v12337_v54 }
 0x608   : > { %v15981_v13 = vadd.f32 %v9153_v53, %v8961_v49  ;;  %v8963_v43 = vadd.f32 %v8962_v29, %v15723_v33  ;;  %v9155_v5 = vpop.f32.mrf.mxu1 }
 0x609   : > { %v8964_v18 = vpop.f32.mrf.mxu0  ;;  %9963 = vmatpush2.bf16.msra.mxu0 %v12332_v44 }
 0x60a   : > { %v15984_v37 = vadd.f32 %v9155_v5, %v8963_v43  ;;  %v8965_v31 = vadd.f32 %v8964_v18, %v15729_v51  ;;  %v9157_v12 = vpop.f32.mrf.mxu1  ;;  %10156 = vmatpush2.bf16.msra.mxu1 %v12335_v21 }
 0x60b   : > { %v9194_v39 = vpop.f32.mrf.mxu0  ;;  %9659 = vmatmul.mubr.bf16.gmra.mxu0 %v17368_v32 }
 0x60c   : > { %v15988_v2 = vadd.f32 %v9157_v12, %v8965_v31  ;;  %v9195_v0 = vadd.f32 %v9194_v39, %v15738_v11  ;;  %v9387_v54 = vpop.f32.mrf.mxu1  ;;  %9852 = vmatmul.mubr.bf16.gmra.mxu1 %v17369_v52  ;;  %9668 = vmatprep.mubr.bf16.mxu0 %v17370_v16 }
 0x60d   : > { %9861 = vmatprep.mubr.bf16.mxu1 %v17371_v38  ;;  %v9196_v33 = vpop.f32.mrf.mxu0 }
 0x60e   : > { %v9388_v51 = vadd.f32 %v9387_v54, %v9195_v0  ;;  %v9197_v18 = vadd.f32 %v9196_v33, %v15741_v40  ;;  %v9389_v28 = vpop.f32.mrf.mxu1 }
 0x60f   : > { %v9198_v44 = vpop.f32.mrf.mxu0 }
 0x610   : > { %10320 = vst [vmem:[%s15537_s26 + $0x10] sm:$0xff] %v9388_v51  ;;  %v9390_v32 = vadd.f32 %v9389_v28, %v9197_v18  ;;  %v9199_v49 = vadd.f32 %v9198_v44, %v15744_v3  ;;  %v9391_v53 = vpop.f32.mrf.mxu1 }
 0x611   : > { %v9200_v11 = vpop.f32.mrf.mxu0 }
 0x612   : > { %10321 = vst [vmem:[%s15537_s26 + $0x18] sm:$0xff] %v9390_v32  ;;  %v9392_v52 = vadd.f32 %v9391_v53, %v9199_v49  ;;  %v9201_v16 = vadd.f32 %v9200_v11, %v15748_v60  ;;  %v9393_v21 = vpop.f32.mrf.mxu1 }
 0x613   : > { %v9204_v38 = vpop.f32.mrf.mxu0  ;;  %9669 = vmatmul.mubr.bf16.gmra.mxu0 %v17194_v55 }
 0x614   : > { %10326 = vst [vmem:[%s15537_s26 + $0x40] sm:$0xff] %v9392_v52  ;;  %v9394_v40 = vadd.f32 %v9393_v21, %v9201_v16  ;;  %v9205_v29 = vadd.f32 %v9204_v38, %v15754_v45  ;;  %v9397_v43 = vpop.f32.mrf.mxu1  ;;  %9862 = vmatmul.mubr.bf16.gmra.mxu1 %v17196_v6  ;;  %9678 = vmatprep.mubr.bf16.mxu0 %v17372_v48 }
 0x615   : > { %9871 = vmatprep.mubr.bf16.mxu1 %v17373_v62  ;;  %v9206_v3 = vpop.f32.mrf.mxu0 }
 0x616   : > { %10327 = vst [vmem:[%s15537_s26 + $0x48] sm:$0xff] %v9394_v40  ;;  %v9398_v60 = vadd.f32 %v9397_v43, %v9205_v29  ;;  %v9207_v5 = vadd.f32 %v9206_v3, %v15757_v46  ;;  %v9399_v31 = vpop.f32.mrf.mxu1 }
 0x617   : > { %v9208_v55 = vpop.f32.mrf.mxu0 }
 0x618   : > { %10332 = vst [vmem:[%s15537_s26 + $0x70] sm:$0xff] %v9398_v60  ;;  %v9400_v12 = vadd.f32 %v9399_v31, %v9207_v5  ;;  %v9209_v45 = vadd.f32 %v9208_v55, %v15760_v1  ;;  %v9401_v39 = vpop.f32.mrf.mxu1 }
 0x619   : > { %v9210_v0 = vpop.f32.mrf.mxu0 }
 0x61a   : > { %10333 = vst [vmem:[%s15537_s26 + $0x78] sm:$0xff] %v9400_v12  ;;  %v9402_v6 = vadd.f32 %v9401_v39, %v9209_v45  ;;  %v9211_v48 = vadd.f32 %v9210_v0, %v15764_v35  ;;  %v9403_v62 = vpop.f32.mrf.mxu1 }
 0x61b   : > { %v9214_v54 = vpop.f32.mrf.mxu0  ;;  %9679 = vmatmul.mubr.bf16.gmra.mxu0 %v17200_v58 }
 0x61c   : > { %10338 = vst [vmem:[%s15537_s26 + $0xa0] sm:$0xff] %v9402_v6  ;;  %v9404_v46 = vadd.f32 %v9403_v62, %v9211_v48  ;;  %v9215_v33 = vadd.f32 %v9214_v54, %v15770_v30  ;;  %v9407_v51 = vpop.f32.mrf.mxu1  ;;  %9872 = vmatmul.mubr.bf16.gmra.mxu1 %v17202_v36  ;;  %9688 = vmatprep.mubr.bf16.mxu0 %v17374_v50  ;;  %v17554_v48 = vld [vmem:[#allocation34_spill] sm:$0xff]  ;;  %v17555_v54 = vld [vmem:[#allocation21_spill] sm:$0xff] }
 0x61d   : > { %9881 = vmatprep.mubr.bf16.mxu1 %v17375_v7  ;;  %v9216_v1 = vpop.f32.mrf.mxu0 }
 0x61e   : > { %10339 = vst [vmem:[%s15537_s26 + $0xa8] sm:$0xff] %v9404_v46  ;;  %v9408_v35 = vadd.f32 %v9407_v51, %v9215_v33  ;;  %v9217_v18 = vadd.f32 %v9216_v1, %v15773_v14  ;;  %v9409_v28 = vpop.f32.mrf.mxu1  ;;  %v17556_v1 = vld [vmem:[#allocation83_spill] sm:$0xff] }
 0x61f   : > { %v9218_v58 = vpop.f32.mrf.mxu0 }
 0x620   : > { %10344 = vst [vmem:[%s15537_s26 + $0xd0] sm:$0xff] %v9408_v35  ;;  %v9410_v44 = vadd.f32 %v9409_v28, %v9217_v18  ;;  %v9219_v30 = vadd.f32 %v9218_v58, %v15776_v9  ;;  %v9411_v32 = vpop.f32.mrf.mxu1  ;;  %v17557_v28 = vld [vmem:[#allocation32_spill] sm:$0xff] }
 0x621   : > { %v9220_v49 = vpop.f32.mrf.mxu0 }
 0x622   : > { %10345 = vst [vmem:[%s15537_s26 + $0xd8] sm:$0xff] %v9410_v44  ;;  %v9412_v36 = vadd.f32 %v9411_v32, %v9219_v30  ;;  %v9221_v50 = vadd.f32 %v9220_v49, %v15780_v10  ;;  %v9413_v7 = vpop.f32.mrf.mxu1  ;;  %v17558_v32 = vld [vmem:[#allocation56_spill] sm:$0xff] }
 0x623   : > { %v9224_v53 = vpop.f32.mrf.mxu0  ;;  %9689 = vmatmul.mubr.bf16.gmra.mxu0 %v17206_v41 }
 0x624   : > { %10350 = vst [vmem:[%s15537_s26 + $0x100] sm:$0xff] %v9412_v36  ;;  %v9414_v14 = vadd.f32 %v9413_v7, %v9221_v50  ;;  %v9225_v11 = vadd.f32 %v9224_v53, %v15786_v20  ;;  %v9417_v52 = vpop.f32.mrf.mxu1  ;;  %9882 = vmatmul.mubr.bf16.gmra.mxu1 %v17208_v15  ;;  %9698 = vmatprep.mubr.bf16.mxu0 %v17376_v25  ;;  %v17559_v36 = vld [vmem:[#allocation18_spill] sm:$0xff] }
 0x625   : > { %9891 = vmatprep.mubr.bf16.mxu1 %v17377_v24  ;;  %v9226_v9 = vpop.f32.mrf.mxu0  ;;  %v17560_v53 = vld [vmem:[#allocation30_spill] sm:$0xff] }
 0x626   : > { %10351 = vst [vmem:[%s15537_s26 + $0x108] sm:$0xff] %v9414_v14  ;;  %v9418_v10 = vadd.f32 %v9417_v52, %v9225_v11  ;;  %v9227_v16 = vadd.f32 %v9226_v9, %v15789_v59  ;;  %v9419_v21 = vpop.f32.mrf.mxu1  ;;  %v17561_v14 = vld [vmem:[#allocation88_spill] sm:$0xff]  ;;  %v17562_v11 = vld [vmem:[#allocation33_spill] sm:$0xff] }
 0x627   : > { %v9228_v41 = vpop.f32.mrf.mxu0 }
 0x628   : > { %10356 = vst [vmem:[%s15537_s26 + $0x130] sm:$0xff] %v9418_v10  ;;  %v9420_v38 = vadd.f32 %v9419_v21, %v9227_v16  ;;  %v9229_v20 = vadd.f32 %v9228_v41, %v15792_v19  ;;  %v9421_v40 = vpop.f32.mrf.mxu1  ;;  %v17563_v10 = vld [vmem:[#allocation38_spill] sm:$0xff] }
 0x629   : > { %v9230_v29 = vpop.f32.mrf.mxu0 }
 0x62a   : > { %10357 = vst [vmem:[%s15537_s26 + $0x138] sm:$0xff] %v9420_v38  ;;  %v9422_v15 = vadd.f32 %v9421_v40, %v9229_v20  ;;  %v9231_v25 = vadd.f32 %v9230_v29, %v15796_v8  ;;  %v9423_v24 = vpop.f32.mrf.mxu1  ;;  %v17564_v20 = vld [vmem:[#allocation22_spill] sm:$0xff] }
 0x62b   : > { %v9234_v43 = vpop.f32.mrf.mxu0  ;;  %9699 = vmatmul.mubr.bf16.gmra.mxu0 %v17212_v34 }
 0x62c   : > { %10362 = vst [vmem:[%s15537_s26 + $0x160] sm:$0xff] %v9422_v15  ;;  %v9424_v59 = vadd.f32 %v9423_v24, %v9231_v25  ;;  %v9235_v3 = vadd.f32 %v9234_v43, %v15802_v17  ;;  %v9427_v60 = vpop.f32.mrf.mxu1  ;;  %9892 = vmatmul.mubr.bf16.gmra.mxu1 %v17214_v47  ;;  %9708 = vmatprep.mubr.bf16.mxu0 %v17378_v26  ;;  %v17565_v24 = vld [vmem:[#allocation44_spill] sm:$0xff] }
 0x62d   : > { %9901 = vmatprep.mubr.bf16.mxu1 %v17379_v61  ;;  %v9236_v19 = vpop.f32.mrf.mxu0 }
 0x62e   : > { %10363 = vst [vmem:[%s15537_s26 + $0x168] sm:$0xff] %v9424_v59  ;;  %v9428_v8 = vadd.f32 %v9427_v60, %v9235_v3  ;;  %v9237_v5 = vadd.f32 %v9236_v19, %v15805_v56  ;;  %v9429_v31 = vpop.f32.mrf.mxu1  ;;  %v17566_v60 = vld [vmem:[#allocation57_spill] sm:$0xff] }
 0x62f   : > { %v9238_v34 = vpop.f32.mrf.mxu0 }
 0x630   : > { %10368 = vst [vmem:[%s15537_s26 + $0x190] sm:$0xff] %v9428_v8  ;;  %v9430_v55 = vadd.f32 %v9429_v31, %v9237_v5  ;;  %v9239_v17 = vadd.f32 %v9238_v34, %v15808_v27  ;;  %v9431_v12 = vpop.f32.mrf.mxu1  ;;  %v17553_v27 = vld [vmem:[#allocation55_spill] sm:$0xff] }
 0x631   : > { %v9240_v45 = vpop.f32.mrf.mxu0  ;;  %v17567_v8 = vld [vmem:[#allocation23_spill] sm:$0xff] }
 0x632   : > { %10369 = vst [vmem:[%s15537_s26 + $0x198] sm:$0xff] %v9430_v55  ;;  %v9432_v47 = vadd.f32 %v9431_v12, %v9239_v17  ;;  %v9241_v26 = vadd.f32 %v9240_v45, %v15812_v42  ;;  %v9433_v61 = vpop.f32.mrf.mxu1  ;;  %v17568_v34 = vld [vmem:[#allocation31_spill] sm:$0xff]  ;;  %v17569_v55 = vld [vmem:[#allocation113_spill] sm:$0xff] }
 0x633   : > { %v9244_v39 = vpop.f32.mrf.mxu0  ;;  %9709 = vmatmul.mubr.bf16.gmra.mxu0 %v17218_v4  ;;  %v17570_v17 = vld [vmem:[#allocation17_spill] sm:$0xff] }
 0x634   : > { %10374 = vst [vmem:[%s15537_s26 + $0x1c0] sm:$0xff] %v9432_v47  ;;  %v9434_v56 = vadd.f32 %v9433_v61, %v9241_v26  ;;  %v9245_v0 = vadd.f32 %v9244_v39, %v15818_v63  ;;  %v9437_v6 = vpop.f32.mrf.mxu1  ;;  %9902 = vmatmul.mubr.bf16.gmra.mxu1 %v17380_v23  ;;  %9718 = vmatprep.mubr.bf16.mxu0 %v17553_v27  ;;  %v17571_v47 = vld [vmem:[#allocation50_spill] sm:$0xff] }
 0x635   : > { %9911 = vmatprep.mubr.bf16.mxu1 %v17554_v48  ;;  %v9246_v62 = vpop.f32.mrf.mxu0 }
 0x636   : > { %10375 = vst [vmem:[%s15537_s26 + $0x1c8] sm:$0xff] %v9434_v56  ;;  %v9438_v42 = vadd.f32 %v9437_v6, %v9245_v0  ;;  %v9247_v46 = vadd.f32 %v9246_v62, %v17555_v54  ;;  %v9439_v33 = vpop.f32.mrf.mxu1  ;;  %v17572_v0 = vld [vmem:[#allocation28_spill] sm:$0xff] }
 0x637   : > { %v9248_v4 = vpop.f32.mrf.mxu0 }
 0x638   : > { %10380 = vst [vmem:[%s15537_s26 + $0x1f0] sm:$0xff] %v9438_v42  ;;  %v9440_v51 = vadd.f32 %v9439_v33, %v9247_v46  ;;  %v9249_v63 = vadd.f32 %v9248_v4, %v17556_v1  ;;  %v9441_v35 = vpop.f32.mrf.mxu1  ;;  %v17573_v42 = vld [vmem:[#allocation54_spill] sm:$0xff]  ;;  %v17574_v4 = vld [vmem:[#allocation112_spill] sm:$0xff]  ;;  %v17575_v1 = vld [vmem:[#allocation27_spill] sm:$0xff] }
 0x639   : > { %v9250_v18 = vpop.f32.mrf.mxu0 }
 0x63a   : > { %10381 = vst [vmem:[%s15537_s26 + $0x1f8] sm:$0xff] %v9440_v51  ;;  %v9442_v23 = vadd.f32 %v9441_v35, %v9249_v63  ;;  %v9251_v58 = vadd.f32 %v9250_v18, %v17557_v28  ;;  %v9443_v44 = vpop.f32.mrf.mxu1  ;;  %v17576_v18 = vld [vmem:[#allocation29_spill] sm:$0xff]  ;;  %v17578_v28 = vld [vmem:[#allocation20_spill] sm:$0xff] }
 0x63b   : > { %v9254_v30 = vpop.f32.mrf.mxu0  ;;  %9719 = vmatmul.mubr.bf16.gmra.mxu0 %v17558_v32 }
 0x63c   : > { %10386 = vst [vmem:[%s15537_s26 + $0x220] sm:$0xff] %v9442_v23  ;;  %v9444_v49 = vadd.f32 %v9443_v44, %v9251_v58  ;;  %v9255_v50 = vadd.f32 %v9254_v30, %v17559_v36  ;;  %v9447_v7 = vpop.f32.mrf.mxu1  ;;  %9912 = vmatmul.mubr.bf16.gmra.mxu1 %v17560_v53  ;;  %9728 = vmatprep.mubr.bf16.mxu0 %v17561_v14  ;;  %v17577_v23 = vld [vmem:[#allocation115_spill] sm:$0xff]  ;;  %v17579_v30 = vld [vmem:[#allocation25_spill] sm:$0xff] }
 0x63d   : > { %9921 = vmatprep.mubr.bf16.mxu1 %v17562_v11  ;;  %v9256_v52 = vpop.f32.mrf.mxu0 }
 0x63e   : > { %10387 = vst [vmem:[%s15537_s26 + $0x228] sm:$0xff] %v9444_v49  ;;  %v9448_v9 = vadd.f32 %v9447_v7, %v9255_v50  ;;  %v9257_v16 = vadd.f32 %v9256_v52, %v17563_v10  ;;  %v9449_v21 = vpop.f32.mrf.mxu1  ;;  %v17580_v7 = vld [vmem:[#allocation128_spill] sm:$0xff] }
 0x63f   : > { %v9258_v41 = vpop.f32.mrf.mxu0 }
 0x640   : > { %10392 = vst [vmem:[%s15537_s26 + $0x250] sm:$0xff] %v9448_v9  ;;  %v9450_v38 = vadd.f32 %v9449_v21, %v9257_v16  ;;  %v9259_v40 = vadd.f32 %v9258_v41, %v17564_v20  ;;  %v9451_v29 = vpop.f32.mrf.mxu1  ;;  %v17581_v9 = vld [vmem:[#allocation111_spill] sm:$0xff]  ;;  %v17582_v41 = vld [vmem:[#allocation114_spill] sm:$0xff]  ;;  %v17583_v20 = vld [vmem:[#allocation132_spill] sm:$0xff] }
 0x641   : > { %v9260_v15 = vpop.f32.mrf.mxu0 }
 0x642   : > { %10393 = vst [vmem:[%s15537_s26 + $0x258] sm:$0xff] %v9450_v38  ;;  %v9452_v25 = vadd.f32 %v9451_v29, %v9259_v40  ;;  %v9261_v43 = vadd.f32 %v9260_v15, %v17565_v24  ;;  %v9453_v59 = vpop.f32.mrf.mxu1  ;;  %v17584_v15 = vld [vmem:[#allocation35_spill] sm:$0xff] }
 0x643   : > { %v9264_v3 = vpop.f32.mrf.mxu0  ;;  %9729 = vmatmul.mubr.bf16.gmra.mxu0 %v17566_v60  ;;  %v17586_v24 = vld [vmem:[#allocation19_spill] sm:$0xff] }
 0x644   : > { %10398 = vst [vmem:[%s15537_s26 + $0x280] sm:$0xff] %v9452_v25  ;;  %v9454_v19 = vadd.f32 %v9453_v59, %v9261_v43  ;;  %v9265_v5 = vadd.f32 %v9264_v3, %v17567_v8  ;;  %v9457_v31 = vpop.f32.mrf.mxu1  ;;  %9922 = vmatmul.mubr.bf16.gmra.mxu1 %v17568_v34  ;;  %9964 = vmatprep.mubr.bf16.mxu0 %v17569_v55  ;;  %v17585_v25 = vld [vmem:[#allocation117_spill] sm:$0xff]  ;;  %v17587_v3 = vld [vmem:[#allocation134_spill] sm:$0xff] }
 0x645   : > { %10157 = vmatprep.mubr.bf16.mxu1 %v17570_v17  ;;  %v9266_v12 = vpop.f32.mrf.mxu0 }
 0x646   : > { %10399 = vst [vmem:[%s15537_s26 + $0x288] sm:$0xff] %v9454_v19  ;;  %v9458_v45 = vadd.f32 %v9457_v31, %v9265_v5  ;;  %v9267_v26 = vadd.f32 %v9266_v12, %v17571_v47  ;;  %v9459_v61 = vpop.f32.mrf.mxu1  ;;  %v17588_v31 = vld [vmem:[#allocation140_spill] sm:$0xff] }
 0x647   : > { %v9268_v39 = vpop.f32.mrf.mxu0 }
 0x648   : > { %10404 = vst [vmem:[%s15537_s26 + $0x2b0] sm:$0xff] %v9458_v45  ;;  %v9460_v56 = vadd.f32 %v9459_v61, %v9267_v26  ;;  %v9269_v6 = vadd.f32 %v9268_v39, %v17572_v0  ;;  %v9461_v27 = vpop.f32.mrf.mxu1  ;;  %v17589_v45 = vld [vmem:[#allocation141_spill] sm:$0xff]  ;;  %v17590_v39 = vld [vmem:[#allocation116_spill] sm:$0xff]  ;;  %v17591_v0 = vld [vmem:[#allocation142_spill] sm:$0xff] }
 0x649   : > { %v9270_v48 = vpop.f32.mrf.mxu0 }
 0x64a   : > { %10405 = vst [vmem:[%s15537_s26 + $0x2b8] sm:$0xff] %v9460_v56  ;;  %v9462_v62 = vadd.f32 %v9461_v27, %v9269_v6  ;;  %v9271_v54 = vadd.f32 %v9270_v48, %v17573_v42  ;;  %v9463_v46 = vpop.f32.mrf.mxu1  ;;  %v17592_v48 = vld [vmem:[#allocation41_spill] sm:$0xff]  ;;  %v17594_v42 = vld [vmem:[#allocation24_spill] sm:$0xff] }
 0x64b   : > { %v9274_v33 = vpop.f32.mrf.mxu0  ;;  %9965 = vmatmul.mubr.bf16.vlgmr.msra.gmra.mxu0 %v17574_v4 }
 0x64c   : > { %10410 = vst [vmem:[%s15537_s26 + $0x2e0] sm:$0xff] %v9462_v62  ;;  %v9464_v51 = vadd.f32 %v9463_v46, %v9271_v54  ;;  %v9275_v63 = vadd.f32 %v9274_v33, %v17575_v1  ;;  %v9467_v35 = vpop.f32.mrf.mxu1  ;;  %10158 = vmatmul.mubr.bf16.vlgmr.msra.gmra.mxu1 %v17576_v18  ;;  %9974 = vmatprep.mubr.bf16.mxu0 %v17577_v23  ;;  %v17593_v62 = vld [vmem:[#allocation119_spill] sm:$0xff] }
 0x64d   : > { %10167 = vmatprep.mubr.bf16.mxu1 %v17578_v28  ;;  %v9276_v58 = vpop.f32.mrf.mxu0  ;;  %v17595_v33 = vld [vmem:[#allocation143_spill] sm:$0xff] }
 0x64e   : > { %10411 = vst [vmem:[%s15537_s26 + $0x2e8] sm:$0xff] %v9464_v51  ;;  %v9468_v44 = vadd.f32 %v9467_v35, %v9275_v63  ;;  %v9277_v32 = vadd.f32 %v9276_v58, %v17579_v30  ;;  %v9469_v49 = vpop.f32.mrf.mxu1  ;;  %v17596_v35 = vld [vmem:[#allocation144_spill] sm:$0xff] }
 0x64f   : > { %v9278_v36 = vpop.f32.mrf.mxu0 }
 0x650   : > { %10416 = vst [vmem:[%s15537_s26 + $0x310] sm:$0xff] %v9468_v44  ;;  %v9470_v50 = vadd.f32 %v9469_v49, %v9277_v32  ;;  %v9279_v53 = vadd.f32 %v9278_v36, %v17580_v7  ;;  %v9471_v14 = vpop.f32.mrf.mxu1  ;;  %v17597_v44 = vld [vmem:[#allocation145_spill] sm:$0xff]  ;;  %v17598_v36 = vld [vmem:[#allocation118_spill] sm:$0xff] }
 0x651   : > { %v9280_v11 = vpop.f32.mrf.mxu0  ;;  %v17599_v7 = vld [vmem:[#allocation146_spill] sm:$0xff] }
 0x652   : > { %10417 = vst [vmem:[%s15537_s26 + $0x318] sm:$0xff] %v9470_v50  ;;  %v9472_v52 = vadd.f32 %v9471_v14, %v9279_v53  ;;  %v9281_v10 = vadd.f32 %v9280_v11, %v17581_v9  ;;  %v9473_v16 = vpop.f32.mrf.mxu1  ;;  %v17600_v11 = vld [vmem:[#allocation47_spill] sm:$0xff]  ;;  %v17602_v9 = vld [vmem:[#allocation136_spill] sm:$0xff] }
 0x653   : > { %v9284_v21 = vpop.f32.mrf.mxu0  ;;  %9975 = vmatmul.mubr.bf16.gmra.mxu0 %v17582_v41 }
 0x654   : > { %10422 = vst [vmem:[%s15537_s26 + $0x340] sm:$0xff] %v9472_v52  ;;  %v9474_v38 = vadd.f32 %v9473_v16, %v9281_v10  ;;  %v9285_v40 = vadd.f32 %v9284_v21, %v17583_v20  ;;  %v9477_v29 = vpop.f32.mrf.mxu1  ;;  %10168 = vmatmul.mubr.bf16.gmra.mxu1 %v17584_v15  ;;  %9984 = vmatprep.mubr.bf16.mxu0 %v17585_v25  ;;  %v17601_v52 = vld [vmem:[#allocation121_spill] sm:$0xff]  ;;  %v17603_v21 = vld [vmem:[#allocation147_spill] sm:$0xff] }
 0x655   : > { %10177 = vmatprep.mubr.bf16.mxu1 %v17586_v24  ;;  %v9286_v43 = vpop.f32.mrf.mxu0 }
 0x656   : > { %10423 = vst [vmem:[%s15537_s26 + $0x348] sm:$0xff] %v9474_v38  ;;  %v9478_v59 = vadd.f32 %v9477_v29, %v9285_v40  ;;  %v9287_v60 = vadd.f32 %v9286_v43, %v17587_v3  ;;  %v9479_v19 = vpop.f32.mrf.mxu1  ;;  %v17604_v29 = vld [vmem:[#allocation148_spill] sm:$0xff] }
 0x657   : > { %v9288_v8 = vpop.f32.mrf.mxu0 }
 0x658   : > { %10428 = vst [vmem:[%s15537_s26 + $0x370] sm:$0xff] %v9478_v59  ;;  %v9480_v5 = vadd.f32 %v9479_v19, %v9287_v60  ;;  %v9289_v34 = vadd.f32 %v9288_v8, %v17588_v31  ;;  %v9481_v55 = vpop.f32.mrf.mxu1  ;;  %v17605_v59 = vld [vmem:[#allocation149_spill] sm:$0xff]  ;;  %v17606_v8 = vld [vmem:[#allocation120_spill] sm:$0xff]  ;;  %v17607_v31 = vld [vmem:[#allocation150_spill] sm:$0xff] }
 0x659   : > { %v9290_v17 = vpop.f32.mrf.mxu0 }
 0x65a   : > { %10429 = vst [vmem:[%s15537_s26 + $0x378] sm:$0xff] %v9480_v5  ;;  %v9482_v12 = vadd.f32 %v9481_v55, %v9289_v34  ;;  %v9291_v47 = vadd.f32 %v9290_v17, %v17589_v45  ;;  %v9483_v26 = vpop.f32.mrf.mxu1  ;;  %v17608_v17 = vld [vmem:[#allocation53_spill] sm:$0xff]  ;;  %v17610_v45 = vld [vmem:[#allocation138_spill] sm:$0xff] }
 0x65b   : > { %v9294_v61 = vpop.f32.mrf.mxu0  ;;  %9985 = vmatmul.mubr.bf16.gmra.mxu0 %v17590_v39 }
 0x65c   : > { %10434 = vst [vmem:[%s15537_s26 + $0x3a0] sm:$0xff] %v9482_v12  ;;  %v9484_v56 = vadd.f32 %v9483_v26, %v9291_v47  ;;  %v9295_v6 = vadd.f32 %v9294_v61, %v17591_v0  ;;  %v9487_v27 = vpop.f32.mrf.mxu1  ;;  %10178 = vmatmul.mubr.bf16.gmra.mxu1 %v17592_v48  ;;  %9994 = vmatprep.mubr.bf16.mxu0 %v17593_v62  ;;  %v17609_v12 = vld [vmem:[#allocation40_spill] sm:$0xff]  ;;  %v17611_v61 = vld [vmem:[#allocation151_spill] sm:$0xff] }
 0x65d   : > { %10187 = vmatprep.mubr.bf16.mxu1 %v17594_v42  ;;  %v9296_v54 = vpop.f32.mrf.mxu0 }
 0x65e   : > { %10435 = vst [vmem:[%s15537_s26 + $0x3a8] sm:$0xff] %v9484_v56  ;;  %v9488_v46 = vadd.f32 %v9487_v27, %v9295_v6  ;;  %v9297_v4 = vadd.f32 %v9296_v54, %v17595_v33  ;;  %v9489_v51 = vpop.f32.mrf.mxu1  ;;  %v17612_v27 = vld [vmem:[#allocation152_spill] sm:$0xff] }
 0x65f   : > { %v9298_v1 = vpop.f32.mrf.mxu0 }
 0x660   : > { %10440 = vst [vmem:[%s15537_s26 + $0x3d0] sm:$0xff] %v9488_v46  ;;  %v9490_v63 = vadd.f32 %v9489_v51, %v9297_v4  ;;  %v9299_v18 = vadd.f32 %v9298_v1, %v17596_v35  ;;  %v9491_v23 = vpop.f32.mrf.mxu1  ;;  %v17613_v46 = vld [vmem:[#allocation153_spill] sm:$0xff]  ;;  %v17614_v1 = vld [vmem:[#allocation122_spill] sm:$0xff] }
 0x661   : > { %v9300_v28 = vpop.f32.mrf.mxu0  ;;  %v17615_v35 = vld [vmem:[#allocation154_spill] sm:$0xff] }
 0x662   : > { %10441 = vst [vmem:[%s15537_s26 + $0x3d8] sm:$0xff] %v9490_v63  ;;  %v9492_v58 = vadd.f32 %v9491_v23, %v9299_v18  ;;  %v9301_v30 = vadd.f32 %v9300_v28, %v17597_v44  ;;  %v9493_v32 = vpop.f32.mrf.mxu1  ;;  %v17616_v28 = vld [vmem:[#allocation137_spill] sm:$0xff] }
 0x663   : > { %v9304_v49 = vpop.f32.mrf.mxu0  ;;  %9995 = vmatmul.mubr.bf16.gmra.mxu0 %v17598_v36  ;;  %v17618_v44 = vld [vmem:[#allocation37_spill] sm:$0xff] }
 0x664   : > { %10446 = vst [vmem:[%s15537_s26 + $0x400] sm:$0xff] %v9492_v58  ;;  %v9494_v50 = vadd.f32 %v9493_v32, %v9301_v30  ;;  %v9305_v53 = vadd.f32 %v9304_v49, %v17599_v7  ;;  %v9497_v14 = vpop.f32.mrf.mxu1  ;;  %10188 = vmatmul.mubr.bf16.gmra.mxu1 %v17600_v11  ;;  %10004 = vmatprep.mubr.bf16.mxu0 %v17601_v52  ;;  %v17617_v58 = vld [vmem:[#allocation36_spill] sm:$0xff]  ;;  %v17619_v49 = vld [vmem:[#allocation155_spill] sm:$0xff] }
 0x665   : > { %10197 = vmatprep.mubr.bf16.mxu1 %v17602_v9  ;;  %v9306_v10 = vpop.f32.mrf.mxu0 }
 0x666   : > { %10447 = vst [vmem:[%s15537_s26 + $0x408] sm:$0xff] %v9494_v50  ;;  %v9498_v16 = vadd.f32 %v9497_v14, %v9305_v53  ;;  %v9307_v41 = vadd.f32 %v9306_v10, %v17603_v21  ;;  %v9499_v38 = vpop.f32.mrf.mxu1  ;;  %v17620_v14 = vld [vmem:[#allocation156_spill] sm:$0xff] }
 0x667   : > { %v9308_v20 = vpop.f32.mrf.mxu0 }
 0x668   : > { %10452 = vst [vmem:[%s15537_s26 + $0x430] sm:$0xff] %v9498_v16  ;;  %v9500_v40 = vadd.f32 %v9499_v38, %v9307_v41  ;;  %v9309_v15 = vadd.f32 %v9308_v20, %v17604_v29  ;;  %v9501_v25 = vpop.f32.mrf.mxu1  ;;  %v17621_v16 = vld [vmem:[#allocation157_spill] sm:$0xff]  ;;  %v17622_v20 = vld [vmem:[#allocation39_spill] sm:$0xff]  ;;  %v17623_v29 = vld [vmem:[#allocation158_spill] sm:$0xff] }
 0x669   : > { %v9310_v24 = vpop.f32.mrf.mxu0 }
 0x66a   : > { %10453 = vst [vmem:[%s15537_s26 + $0x438] sm:$0xff] %v9500_v40  ;;  %v9502_v43 = vadd.f32 %v9501_v25, %v9309_v15  ;;  %v9311_v3 = vadd.f32 %v9310_v24, %v17605_v59  ;;  %v9503_v60 = vpop.f32.mrf.mxu1  ;;  %v17624_v24 = vld [vmem:[#allocation139_spill] sm:$0xff]  ;;  %v17626_v59 = vld [vmem:[#allocation45_spill] sm:$0xff] }
 0x66b   : > { %v9314_v19 = vpop.f32.mrf.mxu0  ;;  %10005 = vmatmul.mubr.bf16.gmra.mxu0 %v17606_v8 }
 0x66c   : > { %10458 = vst [vmem:[%s15537_s26 + $0x460] sm:$0xff] %v9502_v43  ;;  %v9504_v5 = vadd.f32 %v9503_v60, %v9311_v3  ;;  %v9315_v34 = vadd.f32 %v9314_v19, %v17607_v31  ;;  %v9507_v55 = vpop.f32.mrf.mxu1  ;;  %10198 = vmatmul.mubr.bf16.gmra.mxu1 %v17608_v17  ;;  %10014 = vmatprep.mubr.bf16.mxu0 %v17609_v12  ;;  %v17625_v43 = vld [vmem:[#allocation48_spill] sm:$0xff]  ;;  %v17627_v19 = vld [vmem:[#allocation159_spill] sm:$0xff] }
 0x66d   : > { %10207 = vmatprep.mubr.bf16.mxu1 %v17610_v45  ;;  %v9316_v47 = vpop.f32.mrf.mxu0 }
 0x66e   : > { %10459 = vst [vmem:[%s15537_s26 + $0x468] sm:$0xff] %v9504_v5  ;;  %v9508_v26 = vadd.f32 %v9507_v55, %v9315_v34  ;;  %v9317_v39 = vadd.f32 %v9316_v47, %v17611_v61  ;;  %v9509_v56 = vpop.f32.mrf.mxu1  ;;  %v17628_v47 = vld [vmem:[#allocation160_spill] sm:$0xff] }
 0x66f   : > { %v9318_v0 = vpop.f32.mrf.mxu0 }
 0x670   : > { %10464 = vst [vmem:[%s15537_s26 + $0x490] sm:$0xff] %v9508_v26  ;;  %v9510_v6 = vadd.f32 %v9509_v56, %v9317_v39  ;;  %v9319_v48 = vadd.f32 %v9318_v0, %v17612_v27  ;;  %v9511_v62 = vpop.f32.mrf.mxu1  ;;  %v17629_v56 = vld [vmem:[#allocation46_spill] sm:$0xff] }
 0x671   : > { %v9320_v42 = vpop.f32.mrf.mxu0 }
 0x672   : > { %10465 = vst [vmem:[%s15537_s26 + $0x498] sm:$0xff] %v9510_v6  ;;  %v9512_v54 = vadd.f32 %v9511_v62, %v9319_v48  ;;  %v9321_v33 = vadd.f32 %v9320_v42, %v17613_v46  ;;  %v9513_v4 = vpop.f32.mrf.mxu1  ;;  %v17630_v48 = vld [vmem:[#allocation42_spill] sm:$0xff]  ;;  %v17632_v62 = vld [vmem:[#allocation52_spill] sm:$0xff] }
 0x673   : > { %v9324_v51 = vpop.f32.mrf.mxu0  ;;  %10015 = vmatmul.mubr.bf16.gmra.mxu0 %v17614_v1 }
 0x674   : > { %10470 = vst [vmem:[%s15537_s26 + $0x4c0] sm:$0xff] %v9512_v54  ;;  %v9514_v63 = vadd.f32 %v9513_v4, %v9321_v33  ;;  %v9325_v18 = vadd.f32 %v9324_v51, %v17615_v35  ;;  %v9517_v23 = vpop.f32.mrf.mxu1  ;;  %10208 = vmatmul.mubr.bf16.gmra.mxu1 %v17616_v28  ;;  %10024 = vmatprep.mubr.bf16.mxu0 %v17617_v58  ;;  %v17633_v35 = vld [vmem:[#allocation16_spill] sm:$0xff] }
 0x675   : > { %10217 = vmatprep.mubr.bf16.mxu1 %v17618_v44  ;;  %v9326_v30 = vpop.f32.mrf.mxu0 }
 0x676   : > { %10471 = vst [vmem:[%s15537_s26 + $0x4c8] sm:$0xff] %v9514_v63  ;;  %v9518_v32 = vadd.f32 %v9517_v23, %v9325_v18  ;;  %v9327_v36 = vadd.f32 %v9326_v30, %v17619_v49  ;;  %v9519_v50 = vpop.f32.mrf.mxu1  ;;  %v12582_v63 = vld [vmem:[#allocation10] sm:$0x3f]  ;;  %v17634_v18 = vsub.s32 4, %v17633_v35  ;;  %v17635_v30 = vsub.s32 5, %v17633_v35 }
 0x677   : > { %v9328_v7 = vpop.f32.mrf.mxu0 }
 0x678   : > { %10476 = vst [vmem:[%s15537_s26 + $0x4f0] sm:$0xff] %v9518_v32  ;;  %v9520_v53 = vadd.f32 %v9519_v50, %v9327_v36  ;;  %v9329_v11 = vadd.f32 %v9328_v7, %v17620_v14  ;;  %v9521_v52 = vpop.f32.mrf.mxu1  ;;  %v16179_v23 = vrot.slane %v12582_v63, %v17634_v18  ;;  %v16185_v32 = vrot.slane %v12582_v63, %v17635_v30  ;;  %v17636_v36 = vld [vmem:[#allocation51_spill] sm:$0xff]  ;;  %v17638_v14 = vld [vmem:[#allocation100_spill] sm:$0xff]  ;;  %v17648_v30 = vld [vmem:[#allocation125_spill] sm:$0xff] }
 0x679   : > { %v9330_v9 = vpop.f32.mrf.mxu0 }
 0x67a   : > { %10477 = vst [vmem:[%s15537_s26 + $0x4f8] sm:$0xff] %v9520_v53  ;;  %v9522_v10 = vadd.f32 %v9521_v52, %v9329_v11  ;;  %v9331_v21 = vadd.f32 %v9330_v9, %v17621_v16  ;;  %v9523_v41 = vpop.f32.mrf.mxu1  ;;  %v17637_v53 = vld [vmem:[#allocation43_spill] sm:$0xff]  ;;  %v17639_v11 = vld [vmem:[#allocation93_spill] sm:$0xff] }
 0x67b   : > { %v9334_v38 = vpop.f32.mrf.mxu0  ;;  %10025 = vmatmul.mubr.bf16.gmra.mxu0 %v17622_v20 }
 0x67c   : > { %10482 = vst [vmem:[%s15537_s26 + $0x520] sm:$0xff] %v9522_v10  ;;  %v9524_v40 = vadd.f32 %v9523_v41, %v9331_v21  ;;  %v9335_v15 = vadd.f32 %v9334_v38, %v17623_v29  ;;  %v9527_v25 = vpop.f32.mrf.mxu1  ;;  %10218 = vmatmul.mubr.bf16.gmra.mxu1 %v17624_v24  ;;  %10034 = vmatprep.mubr.bf16.mxu0 %v17625_v43  ;;  %v17640_v24 = vld [vmem:[#allocation98_spill] sm:$0xff] }
 0x67d   : > { %10227 = vmatprep.mubr.bf16.mxu1 %v17626_v59  ;;  %v9336_v3 = vpop.f32.mrf.mxu0 }
 0x67e   : > { %10483 = vst [vmem:[%s15537_s26 + $0x528] sm:$0xff] %v9524_v40  ;;  %v9528_v60 = vadd.f32 %v9527_v25, %v9335_v15  ;;  %v9337_v8 = vadd.f32 %v9336_v3, %v17627_v19  ;;  %v9529_v5 = vpop.f32.mrf.mxu1  ;;  %v17642_v19 = vld [vmem:[#allocation104_spill] sm:$0xff] }
 0x67f   : > { %v9338_v31 = vpop.f32.mrf.mxu0 }
 0x680   : > { %10488 = vst [vmem:[%s15537_s26 + $0x550] sm:$0xff] %v9528_v60  ;;  %v9530_v34 = vadd.f32 %v9529_v5, %v9337_v8  ;;  %v9339_v55 = vadd.f32 %v9338_v31, %v15968_v22  ;;  %v9531_v17 = vpop.f32.mrf.mxu1  ;;  %v17631_v22 = vld [vmem:[#allocation94_spill] sm:$0xff]  ;;  %v17641_v60 = vld [vmem:[#allocation49_spill] sm:$0xff]  ;;  %v17643_v8 = vld [vmem:[#allocation96_spill] sm:$0xff] }
 0x681   : > { %v9340_v12 = vpop.f32.mrf.mxu0 }
 0x682   : > { %10489 = vst [vmem:[%s15537_s26 + $0x558] sm:$0xff] %v9530_v34  ;;  %v9532_v45 = vadd.f32 %v9531_v17, %v9339_v55  ;;  %v9341_v26 = vadd.f32 %v9340_v12, %v17628_v47  ;;  %v9533_v61 = vpop.f32.mrf.mxu1 }
 0x683   : > { %v9344_v39 = vpop.f32.mrf.mxu0  ;;  %10035 = vmatmul.mubr.bf16.gmra.mxu0 %v17629_v56 }
 0x684   : > { %10494 = vst [vmem:[%s15537_s26 + $0x580] sm:$0xff] %v9532_v45  ;;  %v9534_v0 = vadd.f32 %v9533_v61, %v9341_v26  ;;  %v9345_v6 = vadd.f32 %v9344_v39, %v15978_v57  ;;  %v9537_v27 = vpop.f32.mrf.mxu1  ;;  %10228 = vmatmul.mubr.bf16.gmra.mxu1 %v17630_v48  ;;  %10044 = vmatprep.mubr.bf16.mxu0 %v17631_v22 }
 0x685   : > { %10237 = vmatprep.mubr.bf16.mxu1 %v17632_v62  ;;  %v9346_v42 = vpop.f32.mrf.mxu0  ;;  %v17645_v62 = vld [vmem:[#allocation95_spill] sm:$0xff] }
 0x686   : > { %10495 = vst [vmem:[%s15537_s26 + $0x588] sm:$0xff] %v9534_v0  ;;  %v9538_v54 = vadd.f32 %v9537_v27, %v9345_v6  ;;  %v9347_v46 = vadd.f32 %v9346_v42, %v15981_v13  ;;  %v9539_v33 = vpop.f32.mrf.mxu1  ;;  %v17644_v6 = vld [vmem:[#allocation123_spill] sm:$0xff]  ;;  %v17646_v42 = vld [vmem:[#allocation106_spill] sm:$0xff] }
 0x687   : > { %v9348_v4 = vpop.f32.mrf.mxu0 }
 0x688   : > { %10500 = vst [vmem:[%s15537_s26 + $0x5b0] sm:$0xff] %v9538_v54  ;;  %v9540_v51 = vadd.f32 %v9539_v33, %v9347_v46  ;;  %v9349_v57 = vadd.f32 %v9348_v4, %v15984_v37  ;;  %v9541_v1 = vpop.f32.mrf.mxu1  ;;  %v17647_v54 = vld [vmem:[#allocation99_spill] sm:$0xff] }
 0x689   : > { %v9350_v28 = vpop.f32.mrf.mxu0 }
 0x68a   : > { %10501 = vst [vmem:[%s15537_s26 + $0x5b8] sm:$0xff] %v9540_v51  ;;  %v9542_v58 = vadd.f32 %v9541_v1, %v9349_v57  ;;  %v9351_v44 = vadd.f32 %v9350_v28, %v15988_v2  ;;  %v9543_v13 = vpop.f32.mrf.mxu1 }
 0x68b   : > { %v9580_v49 = vpop.f32.mrf.mxu0  ;;  %10045 = vmatmul.mubr.bf16.gmra.mxu0 %v17636_v36 }
 0x68c   : > { %10506 = vst [vmem:[%s15537_s26 + $0x5e0] sm:$0xff] %v9542_v58  ;;  %v9544_v37 = vadd.f32 %v9543_v13, %v9351_v44  ;;  %v9581_v50 = vadd.f32 %v9580_v49, %v16179_v23  ;;  %v9773_v7 = vpop.f32.mrf.mxu1  ;;  %10238 = vmatmul.mubr.bf16.gmra.mxu1 %v17637_v53  ;;  %10054 = vmatprep.mubr.bf16.mxu0 %v17638_v14  ;;  %v17651_v53 = vld [vmem:[#allocation102_spill] sm:$0xff] }
 0x68d   : > { %10247 = vmatprep.mubr.bf16.mxu1 %v17639_v11  ;;  %v9582_v2 = vpop.f32.mrf.mxu0 }
 0x68e   : > { %10507 = vst [vmem:[%s15537_s26 + $0x5e8] sm:$0xff] %v9544_v37  ;;  %v16194_v52 = vadd.f32 %v9773_v7, %v9581_v50  ;;  %v9583_v9 = vadd.f32 %v9582_v2, %v16185_v32  ;;  %v9775_v10 = vpop.f32.mrf.mxu1  ;;  %v17649_v50 = vld [vmem:[#allocation97_spill] sm:$0xff]  ;;  %v17650_v7 = vld [vmem:[#allocation108_spill] sm:$0xff] }
 0x68f   : > { %v9584_v16 = vpop.f32.mrf.mxu0 }
 0x690   : > { %v16197_v21 = vadd.f32 %v9775_v10, %v9583_v9  ;;  %v9585_v41 = vadd.f32 %v9584_v16, %v16179_v23  ;;  %v9777_v38 = vpop.f32.mrf.mxu1 }
 0x691   : > { %v9586_v20 = vpop.f32.mrf.mxu0 }
 0x692   : > { %v16200_v40 = vadd.f32 %v9777_v38, %v9585_v41  ;;  %v9587_v29 = vadd.f32 %v9586_v20, %v16185_v32  ;;  %v9779_v15 = vpop.f32.mrf.mxu1 }
 0x693   : > { %v9590_v25 = vpop.f32.mrf.mxu0  ;;  %10055 = vmatmul.mubr.bf16.gmra.mxu0 %v17640_v24 }
 0x694   : > { %v16204_v43 = vadd.f32 %v9779_v15, %v9587_v29  ;;  %v9591_v59 = vadd.f32 %v9590_v25, %v16179_v23  ;;  %v9783_v3 = vpop.f32.mrf.mxu1  ;;  %10248 = vmatmul.mubr.bf16.gmra.mxu1 %v17641_v60  ;;  %10064 = vmatprep.mubr.bf16.mxu0 %v17642_v19 }
 0x695   : > { %10257 = vmatprep.mubr.bf16.mxu1 %v17643_v8  ;;  %v9592_v5 = vpop.f32.mrf.mxu0  ;;  %v17653_v8 = vld [vmem:[#allocation101_spill] sm:$0xff] }
 0x696   : > { %v16210_v31 = vadd.f32 %v9783_v3, %v9591_v59  ;;  %v9593_v34 = vadd.f32 %v9592_v5, %v16185_v32  ;;  %v9785_v55 = vpop.f32.mrf.mxu1  ;;  %v17652_v59 = vld [vmem:[#allocation127_spill] sm:$0xff]  ;;  %v17654_v5 = vld [vmem:[#allocation110_spill] sm:$0xff] }
 0x697   : > { %v9594_v17 = vpop.f32.mrf.mxu0 }
 0x698   : > { %v16213_v12 = vadd.f32 %v9785_v55, %v9593_v34  ;;  %v9595_v45 = vadd.f32 %v9594_v17, %v16179_v23  ;;  %v9787_v47 = vpop.f32.mrf.mxu1  ;;  %v17655_v34 = vld [vmem:[#allocation105_spill] sm:$0xff] }
 0x699   : > { %v9596_v26 = vpop.f32.mrf.mxu0 }
 0x69a   : > { %v16216_v61 = vadd.f32 %v9787_v47, %v9595_v45  ;;  %v9597_v39 = vadd.f32 %v9596_v26, %v16185_v32  ;;  %v9789_v56 = vpop.f32.mrf.mxu1 }
 0x69b   : > { %v9600_v0 = vpop.f32.mrf.mxu0  ;;  %10065 = vmatmul.mubr.bf16.gmra.mxu0 %v17644_v6 }
 0x69c   : > { %v16220_v27 = vadd.f32 %v9789_v56, %v9597_v39  ;;  %v9601_v48 = vadd.f32 %v9600_v0, %v16179_v23  ;;  %v9793_v22 = vpop.f32.mrf.mxu1  ;;  %10258 = vmatmul.mubr.bf16.gmra.mxu1 %v17645_v62  ;;  %10074 = vmatprep.mubr.bf16.mxu0 %v17646_v42 }
 0x69d   : > { %10267 = vmatprep.mubr.bf16.mxu1 %v17647_v54  ;;  %v9602_v46 = vpop.f32.mrf.mxu0  ;;  %v17656_v54 = vld [vmem:[#allocation129_spill] sm:$0xff] }
 0x69e   : > { %v16226_v33 = vadd.f32 %v9793_v22, %v9601_v48  ;;  %v9603_v4 = vadd.f32 %v9602_v46, %v16185_v32  ;;  %v9795_v51 = vpop.f32.mrf.mxu1 }
 0x69f   : > { %v9604_v57 = vpop.f32.mrf.mxu0 }
 0x6a0   : > { %v16229_v1 = vadd.f32 %v9795_v51, %v9603_v4  ;;  %v9605_v63 = vadd.f32 %v9604_v57, %v16179_v23  ;;  %v9797_v35 = vpop.f32.mrf.mxu1  ;;  %v17657_v57 = vld [vmem:[#allocation103_spill] sm:$0xff] }
 0x6a1   : > { %v9606_v18 = vpop.f32.mrf.mxu0 }
 0x6a2   : > { %v16232_v28 = vadd.f32 %v9797_v35, %v9605_v63  ;;  %v9607_v58 = vadd.f32 %v9606_v18, %v16185_v32  ;;  %v9799_v44 = vpop.f32.mrf.mxu1  ;;  %v17658_v63 = vld [vmem:[#allocation131_spill] sm:$0xff] }
 0x6a3   : > { %v9610_v13 = vpop.f32.mrf.mxu0  ;;  %10075 = vmatmul.mubr.bf16.gmra.mxu0 %v17648_v30  ;;  %v17659_v35 = vld [vmem:[#allocation107_spill] sm:$0xff] }
 0x6a4   : > { %v16236_v49 = vadd.f32 %v9799_v44, %v9607_v58  ;;  %v9611_v36 = vadd.f32 %v9610_v13, %v16179_v23  ;;  %v9803_v37 = vpop.f32.mrf.mxu1  ;;  %10268 = vmatmul.mubr.bf16.gmra.mxu1 %v17649_v50  ;;  %10084 = vmatprep.mubr.bf16.mxu0 %v17650_v7 }
 0x6a5   : > { %10277 = vmatprep.mubr.bf16.mxu1 %v17651_v53  ;;  %v9612_v14 = vpop.f32.mrf.mxu0 }
 0x6a6   : > { %v16242_v11 = vadd.f32 %v9803_v37, %v9611_v36  ;;  %v9613_v2 = vadd.f32 %v9612_v14, %v16185_v32  ;;  %v9805_v9 = vpop.f32.mrf.mxu1 }
 0x6a7   : > { %v9614_v10 = vpop.f32.mrf.mxu0 }
 0x6a8   : > { %v16245_v16 = vadd.f32 %v9805_v9, %v9613_v2  ;;  %v9615_v41 = vadd.f32 %v9614_v10, %v16179_v23  ;;  %v9807_v38 = vpop.f32.mrf.mxu1  ;;  %v17660_v10 = vld [vmem:[#allocation130_spill] sm:$0xff] }
 0x6a9   : > { %v9616_v20 = vpop.f32.mrf.mxu0 }
 0x6aa   : > { %v16248_v29 = vadd.f32 %v9807_v38, %v9615_v41  ;;  %v9617_v15 = vadd.f32 %v9616_v20, %v16185_v32  ;;  %v9809_v25 = vpop.f32.mrf.mxu1 }
 0x6ab   : > { %v9620_v24 = vpop.f32.mrf.mxu0  ;;  %10085 = vmatmul.mubr.bf16.gmra.mxu0 %v17652_v59 }
 0x6ac   : > { %v16252_v3 = vadd.f32 %v9809_v25, %v9617_v15  ;;  %v9621_v60 = vadd.f32 %v9620_v24, %v16179_v23  ;;  %v9813_v19 = vpop.f32.mrf.mxu1  ;;  %10278 = vmatmul.mubr.bf16.gmra.mxu1 %v17653_v8  ;;  %10094 = vmatprep.mubr.bf16.mxu0 %v17654_v5  ;;  %v17661_v15 = vld [vmem:[#allocation124_spill] sm:$0xff]  ;;  %v17662_v25 = vld [vmem:[#allocation135_spill] sm:$0xff]  ;;  %v17663_v24 = vld [vmem:[#allocation109_spill] sm:$0xff] }
 0x6ad   : > { %10287 = vmatprep.mubr.bf16.mxu1 %v17655_v34  ;;  %v9622_v55 = vpop.f32.mrf.mxu0 }
 0x6ae   : > { %v16258_v17 = vadd.f32 %v9813_v19, %v9621_v60  ;;  %v9623_v45 = vadd.f32 %v9622_v55, %v16185_v32  ;;  %v9815_v47 = vpop.f32.mrf.mxu1 }
 0x6af   : > { %v9624_v26 = vpop.f32.mrf.mxu0 }
 0x6b0   : > { %v16261_v39 = vadd.f32 %v9815_v47, %v9623_v45  ;;  %v9625_v56 = vadd.f32 %v9624_v26, %v16179_v23  ;;  %v9817_v0 = vpop.f32.mrf.mxu1 }
 0x6b1   : > { %v9626_v6 = vpop.f32.mrf.mxu0 }
 0x6b2   : > { %v16264_v48 = vadd.f32 %v9817_v0, %v9625_v56  ;;  %v9627_v22 = vadd.f32 %v9626_v6, %v16185_v32  ;;  %v9819_v62 = vpop.f32.mrf.mxu1 }
 0x6b3   : > { %v9630_v42 = vpop.f32.mrf.mxu0  ;;  %10095 = vmatmul.mubr.bf16.gmra.mxu0 %v17656_v54 }
 0x6b4   : > { %v16268_v46 = vadd.f32 %v9819_v62, %v9627_v22  ;;  %v9631_v4 = vadd.f32 %v9630_v42, %v16179_v23  ;;  %v9823_v51 = vpop.f32.mrf.mxu1  ;;  %10288 = vmatmul.mubr.bf16.gmra.mxu1 %v17657_v57  ;;  %10104 = vmatprep.mubr.bf16.mxu0 %v17658_v63  ;;  %v17664_v22 = vld [vmem:[#allocation133_spill] sm:$0xff] }
 0x6b5   : > { %10297 = vmatprep.mubr.bf16.mxu1 %v17659_v35  ;;  %v9632_v18 = vpop.f32.mrf.mxu0 }
 0x6b6   : > { %v16274_v58 = vadd.f32 %v9823_v51, %v9631_v4  ;;  %v9633_v44 = vadd.f32 %v9632_v18, %v16185_v32  ;;  %v9825_v13 = vpop.f32.mrf.mxu1  ;;  %v17665_v4 = vld [vmem:[#allocation126_spill] sm:$0xff] }
 0x6b7   : > { %v9634_v30 = vpop.f32.mrf.mxu0 }
 0x6b8   : > { %v16277_v36 = vadd.f32 %v9825_v13, %v9633_v44  ;;  %v9635_v37 = vadd.f32 %v9634_v30, %v16179_v23  ;;  %v9827_v50 = vpop.f32.mrf.mxu1 }
 0x6b9   : > { %v9636_v7 = vpop.f32.mrf.mxu0 }
 0x6ba   : > { %v16280_v53 = vadd.f32 %v9827_v50, %v9635_v37  ;;  %v9637_v14 = vadd.f32 %v9636_v7, %v16185_v32  ;;  %v9829_v2 = vpop.f32.mrf.mxu1 }
 0x6bb   : > { %v9640_v9 = vpop.f32.mrf.mxu0  ;;  %10105 = vmatmul.mubr.bf16.gmra.mxu0 %v17660_v10 }
 0x6bc   : > { %v16284_v41 = vadd.f32 %v9829_v2, %v9637_v14  ;;  %v9641_v38 = vadd.f32 %v9640_v9, %v16179_v23  ;;  %v9833_v20 = vpop.f32.mrf.mxu1  ;;  %10298 = vmatmul.mubr.bf16.gmra.mxu1 %v17661_v15  ;;  %10114 = vmatprep.mubr.bf16.mxu0 %v17662_v25 }
 0x6bd   : > { %10307 = vmatprep.mubr.bf16.mxu1 %v17663_v24  ;;  %v9642_v59 = vpop.f32.mrf.mxu0 }
 0x6be   : > { %v16290_v60 = vadd.f32 %v9833_v20, %v9641_v38  ;;  %v9643_v19 = vadd.f32 %v9642_v59, %v16185_v32  ;;  %v9835_v8 = vpop.f32.mrf.mxu1 }
 0x6bf   : > { %v9644_v5 = vpop.f32.mrf.mxu0 }
 0x6c0   : > { %v16293_v34 = vadd.f32 %v9835_v8, %v9643_v19  ;;  %v9645_v55 = vadd.f32 %v9644_v5, %v16179_v23  ;;  %v9837_v45 = vpop.f32.mrf.mxu1 }
 0x6c1   : > { %v9646_v47 = vpop.f32.mrf.mxu0 }
 0x6c2   : > { %v16296_v26 = vadd.f32 %v9837_v45, %v9645_v55  ;;  %v9647_v56 = vadd.f32 %v9646_v47, %v16185_v32  ;;  %v9839_v0 = vpop.f32.mrf.mxu1 }
 0x6c3   : > { %v9650_v6 = vpop.f32.mrf.mxu0  ;;  %10115 = vmatmul.mubr.bf16.gmra.mxu0 %v17664_v22 }
 0x6c4   : > { %v16300_v62 = vadd.f32 %v9839_v0, %v9647_v56  ;;  %v9651_v42 = vadd.f32 %v9650_v6, %v16179_v23  ;;  %v9843_v54 = vpop.f32.mrf.mxu1  ;;  %10308 = vmatmul.mubr.bf16.gmra.mxu1 %v17665_v4 }
 0x6c5   : > { %v9652_v51 = vpop.f32.mrf.mxu0 }
 0x6c6   : > { %v16304_v57 = vadd.f32 %v9843_v54, %v9651_v42  ;;  %v9653_v63 = vadd.f32 %v9652_v51, %v16185_v32  ;;  %v9845_v35 = vpop.f32.mrf.mxu1 }
 0x6c7   : > { %v9654_v18 = vpop.f32.mrf.mxu0 }
 0x6c8   : > { %v16307_v44 = vadd.f32 %v9845_v35, %v9653_v63  ;;  %v9655_v13 = vadd.f32 %v9654_v18, %v16179_v23  ;;  %v9847_v30 = vpop.f32.mrf.mxu1 }
 0x6c9   : > { %v9656_v37 = vpop.f32.mrf.mxu0 }
 0x6ca   : > { %v16310_v50 = vadd.f32 %v9847_v30, %v9655_v13  ;;  %v9657_v7 = vadd.f32 %v9656_v37, %v16185_v32  ;;  %v9849_v14 = vpop.f32.mrf.mxu1 }
 0x6cb   : > { %v9660_v2 = vpop.f32.mrf.mxu0 }
 0x6cc   : > { %v16313_v9 = vadd.f32 %v9849_v14, %v9657_v7  ;;  %v9661_v10 = vadd.f32 %v9660_v2, %v16179_v23  ;;  %v9853_v38 = vpop.f32.mrf.mxu1 }
 0x6cd   : > { %v9662_v20 = vpop.f32.mrf.mxu0 }
 0x6ce   : > { %v16316_v15 = vadd.f32 %v9853_v38, %v9661_v10  ;;  %v9663_v25 = vadd.f32 %v9662_v20, %v16185_v32  ;;  %v9855_v24 = vpop.f32.mrf.mxu1 }
 0x6cf   : > { %v9664_v59 = vpop.f32.mrf.mxu0 }
 0x6d0   : > { %v16319_v19 = vadd.f32 %v9855_v24, %v9663_v25  ;;  %v9665_v8 = vadd.f32 %v9664_v59, %v16179_v23  ;;  %v9857_v5 = vpop.f32.mrf.mxu1 }
 0x6d1   : > { %v9666_v55 = vpop.f32.mrf.mxu0 }
 0x6d2   : > { %v16322_v45 = vadd.f32 %v9857_v5, %v9665_v8  ;;  %v9667_v47 = vadd.f32 %v9666_v55, %v16185_v32  ;;  %v9859_v56 = vpop.f32.mrf.mxu1 }
 0x6d3   : > { %v9670_v0 = vpop.f32.mrf.mxu0 }
 0x6d4   : > { %v16325_v6 = vadd.f32 %v9859_v56, %v9667_v47  ;;  %v9671_v22 = vadd.f32 %v9670_v0, %v16179_v23  ;;  %v9863_v42 = vpop.f32.mrf.mxu1 }
 0x6d5   : > { %v9672_v54 = vpop.f32.mrf.mxu0 }
 0x6d6   : > { %v16328_v4 = vadd.f32 %v9863_v42, %v9671_v22  ;;  %v9673_v51 = vadd.f32 %v9672_v54, %v16185_v32  ;;  %v9865_v63 = vpop.f32.mrf.mxu1 }
 0x6d7   : > { %v9674_v35 = vpop.f32.mrf.mxu0 }
 0x6d8   : > { %v16331_v18 = vadd.f32 %v9865_v63, %v9673_v51  ;;  %v9675_v13 = vadd.f32 %v9674_v35, %v16179_v23  ;;  %v9867_v30 = vpop.f32.mrf.mxu1 }
 0x6d9   : > { %v9676_v37 = vpop.f32.mrf.mxu0 }
 0x6da   : > { %v16334_v7 = vadd.f32 %v9867_v30, %v9675_v13  ;;  %v9677_v14 = vadd.f32 %v9676_v37, %v16185_v32  ;;  %v9869_v2 = vpop.f32.mrf.mxu1 }
 0x6db   : > { %v9680_v10 = vpop.f32.mrf.mxu0 }
 0x6dc   : > { %v16337_v38 = vadd.f32 %v9869_v2, %v9677_v14  ;;  %v9681_v20 = vadd.f32 %v9680_v10, %v16179_v23  ;;  %v9873_v25 = vpop.f32.mrf.mxu1 }
 0x6dd   : > { %v9682_v24 = vpop.f32.mrf.mxu0 }
 0x6de   : > { %v16340_v59 = vadd.f32 %v9873_v25, %v9681_v20  ;;  %v9683_v8 = vadd.f32 %v9682_v24, %v16185_v32  ;;  %v9875_v5 = vpop.f32.mrf.mxu1 }
 0x6df   : > { %v9684_v55 = vpop.f32.mrf.mxu0 }
 0x6e0   : > { %v16343_v47 = vadd.f32 %v9875_v5, %v9683_v8  ;;  %v9685_v56 = vadd.f32 %v9684_v55, %v16179_v23  ;;  %v9877_v0 = vpop.f32.mrf.mxu1 }
 0x6e1   : > { %v9686_v22 = vpop.f32.mrf.mxu0 }
 0x6e2   : > { %v16346_v42 = vadd.f32 %v9877_v0, %v9685_v56  ;;  %v9687_v54 = vadd.f32 %v9686_v22, %v16185_v32  ;;  %v9879_v51 = vpop.f32.mrf.mxu1 }
 0x6e3   : > { %v9690_v63 = vpop.f32.mrf.mxu0 }
 0x6e4   : > { %v16349_v35 = vadd.f32 %v9879_v51, %v9687_v54  ;;  %v9691_v13 = vadd.f32 %v9690_v63, %v16179_v23  ;;  %v9883_v30 = vpop.f32.mrf.mxu1 }
 0x6e5   : > { %v9692_v37 = vpop.f32.mrf.mxu0 }
 0x6e6   : > { %v16352_v14 = vadd.f32 %v9883_v30, %v9691_v13  ;;  %v9693_v2 = vadd.f32 %v9692_v37, %v16185_v32  ;;  %v9885_v10 = vpop.f32.mrf.mxu1 }
 0x6e7   : > { %v9694_v20 = vpop.f32.mrf.mxu0 }
 0x6e8   : > { %v16355_v25 = vadd.f32 %v9885_v10, %v9693_v2  ;;  %v9695_v24 = vadd.f32 %v9694_v20, %v16179_v23  ;;  %v9887_v8 = vpop.f32.mrf.mxu1 }
 0x6e9   : > { %v9696_v5 = vpop.f32.mrf.mxu0 }
 0x6ea   : > { %v16358_v55 = vadd.f32 %v9887_v8, %v9695_v24  ;;  %v9697_v56 = vadd.f32 %v9696_v5, %v16185_v32  ;;  %v9889_v0 = vpop.f32.mrf.mxu1 }
 0x6eb   : > { %v9700_v22 = vpop.f32.mrf.mxu0 }
 0x6ec   : > { %17666 = vst [vmem:[#allocation59_spill] sm:$0xff] %v16358_v55  ;;  %v16361_v54 = vadd.f32 %v9889_v0, %v9697_v56  ;;  %v9701_v51 = vadd.f32 %v9700_v22, %v16179_v23  ;;  %v9893_v63 = vpop.f32.mrf.mxu1 }
 0x6ed   : > { %v9702_v13 = vpop.f32.mrf.mxu0 }
 0x6ee   : > { %17667 = vst [vmem:[#allocation90_spill] sm:$0xff] %v16361_v54  ;;  %v16364_v30 = vadd.f32 %v9893_v63, %v9701_v51  ;;  %v9703_v37 = vadd.f32 %v9702_v13, %v16185_v32  ;;  %v9895_v2 = vpop.f32.mrf.mxu1 }
 0x6ef   : > { %v9704_v10 = vpop.f32.mrf.mxu0 }
 0x6f0   : > { %17668 = vst [vmem:[#allocation58_spill] sm:$0xff] %v16364_v30  ;;  %v16367_v20 = vadd.f32 %v9895_v2, %v9703_v37  ;;  %v9705_v24 = vadd.f32 %v9704_v10, %v16179_v23  ;;  %v9897_v8 = vpop.f32.mrf.mxu1 }
 0x6f1   : > { %v9706_v5 = vpop.f32.mrf.mxu0 }
 0x6f2   : > { %17669 = vst [vmem:[#allocation89_spill] sm:$0xff] %v16367_v20  ;;  %v16370_v55 = vadd.f32 %v9897_v8, %v9705_v24  ;;  %v9707_v56 = vadd.f32 %v9706_v5, %v16185_v32  ;;  %v9899_v0 = vpop.f32.mrf.mxu1 }
 0x6f3   : > { %v9710_v22 = vpop.f32.mrf.mxu0 }
 0x6f4   : > { %17670 = vst [vmem:[#allocation61_spill] sm:$0xff] %v16370_v55  ;;  %v16373_v54 = vadd.f32 %v9899_v0, %v9707_v56  ;;  %v9711_v51 = vadd.f32 %v9710_v22, %v16179_v23  ;;  %v9903_v63 = vpop.f32.mrf.mxu1 }
 0x6f5   : > { %v9712_v13 = vpop.f32.mrf.mxu0 }
 0x6f6   : > { %17671 = vst [vmem:[#allocation62_spill] sm:$0xff] %v16373_v54  ;;  %v16376_v30 = vadd.f32 %v9903_v63, %v9711_v51  ;;  %v9713_v37 = vadd.f32 %v9712_v13, %v16185_v32  ;;  %v9905_v2 = vpop.f32.mrf.mxu1 }
 0x6f7   : > { %v9714_v10 = vpop.f32.mrf.mxu0 }
 0x6f8   : > { %17672 = vst [vmem:[#allocation60_spill] sm:$0xff] %v16376_v30  ;;  %v16379_v20 = vadd.f32 %v9905_v2, %v9713_v37  ;;  %v9715_v24 = vadd.f32 %v9714_v10, %v16179_v23  ;;  %v9907_v8 = vpop.f32.mrf.mxu1 }
 0x6f9   : > { %v9716_v5 = vpop.f32.mrf.mxu0 }
 0x6fa   : > { %17673 = vst [vmem:[#allocation91_spill] sm:$0xff] %v16379_v20  ;;  %v16382_v55 = vadd.f32 %v9907_v8, %v9715_v24  ;;  %v9717_v56 = vadd.f32 %v9716_v5, %v16185_v32  ;;  %v9909_v0 = vpop.f32.mrf.mxu1 }
 0x6fb   : > { %v9720_v22 = vpop.f32.mrf.mxu0 }
 0x6fc   : > { %17674 = vst [vmem:[#allocation64_spill] sm:$0xff] %v16382_v55  ;;  %v16385_v54 = vadd.f32 %v9909_v0, %v9717_v56  ;;  %v9721_v51 = vadd.f32 %v9720_v22, %v16179_v23  ;;  %v9913_v63 = vpop.f32.mrf.mxu1 }
 0x6fd   : > { %v9722_v13 = vpop.f32.mrf.mxu0 }
 0x6fe   : > { %17675 = vst [vmem:[#allocation65_spill] sm:$0xff] %v16385_v54  ;;  %v16388_v30 = vadd.f32 %v9913_v63, %v9721_v51  ;;  %v9723_v37 = vadd.f32 %v9722_v13, %v16185_v32  ;;  %v9915_v2 = vpop.f32.mrf.mxu1 }
 0x6ff   : > { %v9724_v10 = vpop.f32.mrf.mxu0 }
 0x700   : > { %17676 = vst [vmem:[#allocation63_spill] sm:$0xff] %v16388_v30  ;;  %v16391_v20 = vadd.f32 %v9915_v2, %v9723_v37  ;;  %v9725_v24 = vadd.f32 %v9724_v10, %v16179_v23  ;;  %v9917_v8 = vpop.f32.mrf.mxu1 }
 0x701   : > { %v9726_v5 = vpop.f32.mrf.mxu0 }
 0x702   : > { %17677 = vst [vmem:[#allocation92_spill] sm:$0xff] %v16391_v20  ;;  %v16394_v55 = vadd.f32 %v9917_v8, %v9725_v24  ;;  %v9727_v56 = vadd.f32 %v9726_v5, %v16185_v32  ;;  %v9919_v0 = vpop.f32.mrf.mxu1 }
 0x703   : > { %v9730_v22 = vpop.f32.mrf.mxu0 }
 0x704   : > { %17678 = vst [vmem:[#allocation67_spill] sm:$0xff] %v16394_v55  ;;  %v16397_v54 = vadd.f32 %v9919_v0, %v9727_v56  ;;  %v9731_v51 = vadd.f32 %v9730_v22, %v16179_v23  ;;  %v9923_v63 = vpop.f32.mrf.mxu1 }
 0x705   : > { %v9732_v13 = vpop.f32.mrf.mxu0 }
 0x706   : > { %v16400_v30 = vadd.f32 %v9923_v63, %v9731_v51  ;;  %v9733_v37 = vadd.f32 %v9732_v13, %v16185_v32  ;;  %v9925_v2 = vpop.f32.mrf.mxu1 }
 0x707   : > { %v9734_v10 = vpop.f32.mrf.mxu0 }
 0x708   : > { %v16403_v20 = vadd.f32 %v9925_v2, %v9733_v37  ;;  %v9735_v24 = vadd.f32 %v9734_v10, %v16179_v23  ;;  %v9927_v8 = vpop.f32.mrf.mxu1 }
 0x709   : > { %v9736_v5 = vpop.f32.mrf.mxu0 }
 0x70a   : > { %17679 = vst [vmem:[#allocation69_spill] sm:$0xff] %v16403_v20  ;;  %v16406_v55 = vadd.f32 %v9927_v8, %v9735_v24  ;;  %v9737_v56 = vadd.f32 %v9736_v5, %v16185_v32  ;;  %v9929_v0 = vpop.f32.mrf.mxu1 }
 0x70b   : > { %v9966_v22 = vpop.f32.mrf.mxu0 }
 0x70c   : > { %v16409_v51 = vadd.f32 %v9929_v0, %v9737_v56  ;;  %v9967_v63 = vadd.f32 %v9966_v22, %v16194_v52  ;;  %v10159_v13 = vpop.f32.mrf.mxu1 }
 0x70d   : > { %v9968_v37 = vpop.f32.mrf.mxu0 }
 0x70e   : > { %v10160_v2 = vadd.f32 %v10159_v13, %v9967_v63  ;;  %v9969_v20 = vadd.f32 %v9968_v37, %v16197_v21  ;;  %v10161_v23 = vpop.f32.mrf.mxu1 }
 0x70f   : > { %v9970_v10 = vpop.f32.mrf.mxu0 }
 0x710   : > { %10322 = vst [vmem:[%s15537_s26 + $0x20] sm:$0xff] %v10160_v2  ;;  %v10162_v24 = vadd.f32 %v10161_v23, %v9969_v20  ;;  %v9971_v32 = vadd.f32 %v9970_v10, %v16200_v40  ;;  %v10163_v8 = vpop.f32.mrf.mxu1 }
 0x711   : > { %v9972_v5 = vpop.f32.mrf.mxu0 }
 0x712   : > { %10323 = vst [vmem:[%s15537_s26 + $0x28] sm:$0xff] %v10162_v24  ;;  %v10164_v56 = vadd.f32 %v10163_v8, %v9971_v32  ;;  %v9973_v52 = vadd.f32 %v9972_v5, %v16204_v43  ;;  %v10165_v0 = vpop.f32.mrf.mxu1 }
 0x713   : > { %v9976_v22 = vpop.f32.mrf.mxu0 }
 0x714   : > { %10328 = vst [vmem:[%s15537_s26 + $0x50] sm:$0xff] %v10164_v56  ;;  %v10166_v63 = vadd.f32 %v10165_v0, %v9973_v52  ;;  %v9977_v21 = vadd.f32 %v9976_v22, %v16210_v31  ;;  %v10169_v13 = vpop.f32.mrf.mxu1 }
 0x715   : > { %v9978_v37 = vpop.f32.mrf.mxu0 }
 0x716   : > { %10329 = vst [vmem:[%s15537_s26 + $0x58] sm:$0xff] %v10166_v63  ;;  %v10170_v20 = vadd.f32 %v10169_v13, %v9977_v21  ;;  %v9979_v40 = vadd.f32 %v9978_v37, %v16213_v12  ;;  %v10171_v2 = vpop.f32.mrf.mxu1 }
 0x717   : > { %v9980_v23 = vpop.f32.mrf.mxu0 }
 0x718   : > { %10334 = vst [vmem:[%s15537_s26 + $0x80] sm:$0xff] %v10170_v20  ;;  %v10172_v10 = vadd.f32 %v10171_v2, %v9979_v40  ;;  %v9981_v43 = vadd.f32 %v9980_v23, %v16216_v61  ;;  %v10173_v24 = vpop.f32.mrf.mxu1 }
 0x719   : > { %v9982_v32 = vpop.f32.mrf.mxu0 }
 0x71a   : > { %10335 = vst [vmem:[%s15537_s26 + $0x88] sm:$0xff] %v10172_v10  ;;  %v10174_v8 = vadd.f32 %v10173_v24, %v9981_v43  ;;  %v9983_v31 = vadd.f32 %v9982_v32, %v16220_v27  ;;  %v10175_v5 = vpop.f32.mrf.mxu1 }
 0x71b   : > { %v9986_v56 = vpop.f32.mrf.mxu0 }
 0x71c   : > { %10340 = vst [vmem:[%s15537_s26 + $0xb0] sm:$0xff] %v10174_v8  ;;  %v10176_v52 = vadd.f32 %v10175_v5, %v9983_v31  ;;  %v9987_v12 = vadd.f32 %v9986_v56, %v16226_v33  ;;  %v10179_v0 = vpop.f32.mrf.mxu1 }
 0x71d   : > { %v9988_v22 = vpop.f32.mrf.mxu0 }
 0x71e   : > { %10341 = vst [vmem:[%s15537_s26 + $0xb8] sm:$0xff] %v10176_v52  ;;  %v10180_v63 = vadd.f32 %v10179_v0, %v9987_v12  ;;  %v9989_v61 = vadd.f32 %v9988_v22, %v16229_v1  ;;  %v10181_v21 = vpop.f32.mrf.mxu1 }
 0x71f   : > { %v9990_v13 = vpop.f32.mrf.mxu0 }
 0x720   : > { %10346 = vst [vmem:[%s15537_s26 + $0xe0] sm:$0xff] %v10180_v63  ;;  %v10182_v37 = vadd.f32 %v10181_v21, %v9989_v61  ;;  %v9991_v27 = vadd.f32 %v9990_v13, %v16232_v28  ;;  %v10183_v20 = vpop.f32.mrf.mxu1 }
 0x721   : > { %v9992_v40 = vpop.f32.mrf.mxu0 }
 0x722   : > { %10347 = vst [vmem:[%s15537_s26 + $0xe8] sm:$0xff] %v10182_v37  ;;  %v10184_v2 = vadd.f32 %v10183_v20, %v9991_v27  ;;  %v9993_v33 = vadd.f32 %v9992_v40, %v16236_v49  ;;  %v10185_v23 = vpop.f32.mrf.mxu1 }
 0x723   : > { %v9996_v10 = vpop.f32.mrf.mxu0 }
 0x724   : > { %10352 = vst [vmem:[%s15537_s26 + $0x110] sm:$0xff] %v10184_v2  ;;  %v10186_v43 = vadd.f32 %v10185_v23, %v9993_v33  ;;  %v9997_v1 = vadd.f32 %v9996_v10, %v16242_v11  ;;  %v10189_v24 = vpop.f32.mrf.mxu1 }
 0x725   : > { %v9998_v32 = vpop.f32.mrf.mxu0 }
 0x726   : > { %10353 = vst [vmem:[%s15537_s26 + $0x118] sm:$0xff] %v10186_v43  ;;  %v10190_v8 = vadd.f32 %v10189_v24, %v9997_v1  ;;  %v9999_v28 = vadd.f32 %v9998_v32, %v16245_v16  ;;  %v10191_v31 = vpop.f32.mrf.mxu1 }
 0x727   : > { %v10000_v5 = vpop.f32.mrf.mxu0 }
 0x728   : > { %10358 = vst [vmem:[%s15537_s26 + $0x140] sm:$0xff] %v10190_v8  ;;  %v10192_v56 = vadd.f32 %v10191_v31, %v9999_v28  ;;  %v10001_v49 = vadd.f32 %v10000_v5, %v16248_v29  ;;  %v10193_v52 = vpop.f32.mrf.mxu1 }
 0x729   : > { %v10002_v12 = vpop.f32.mrf.mxu0 }
 0x72a   : > { %10359 = vst [vmem:[%s15537_s26 + $0x148] sm:$0xff] %v10192_v56  ;;  %v10194_v0 = vadd.f32 %v10193_v52, %v10001_v49  ;;  %v10003_v11 = vadd.f32 %v10002_v12, %v16252_v3  ;;  %v10195_v22 = vpop.f32.mrf.mxu1 }
 0x72b   : > { %v10006_v63 = vpop.f32.mrf.mxu0 }
 0x72c   : > { %10364 = vst [vmem:[%s15537_s26 + $0x170] sm:$0xff] %v10194_v0  ;;  %v10196_v61 = vadd.f32 %v10195_v22, %v10003_v11  ;;  %v10007_v16 = vadd.f32 %v10006_v63, %v16258_v17  ;;  %v10199_v21 = vpop.f32.mrf.mxu1 }
 0x72d   : > { %v10008_v13 = vpop.f32.mrf.mxu0 }
 0x72e   : > { %10365 = vst [vmem:[%s15537_s26 + $0x178] sm:$0xff] %v10196_v61  ;;  %v10200_v37 = vadd.f32 %v10199_v21, %v10007_v16  ;;  %v10009_v29 = vadd.f32 %v10008_v13, %v16261_v39  ;;  %v10201_v27 = vpop.f32.mrf.mxu1 }
 0x72f   : > { %v10010_v20 = vpop.f32.mrf.mxu0 }
 0x730   : > { %10370 = vst [vmem:[%s15537_s26 + $0x1a0] sm:$0xff] %v10200_v37  ;;  %v10202_v40 = vadd.f32 %v10201_v27, %v10009_v29  ;;  %v10011_v3 = vadd.f32 %v10010_v20, %v16264_v48  ;;  %v10203_v2 = vpop.f32.mrf.mxu1 }
 0x731   : > { %v10012_v33 = vpop.f32.mrf.mxu0 }
 0x732   : > { %10371 = vst [vmem:[%s15537_s26 + $0x1a8] sm:$0xff] %v10202_v40  ;;  %v10204_v23 = vadd.f32 %v10203_v2, %v10011_v3  ;;  %v10013_v17 = vadd.f32 %v10012_v33, %v16268_v46  ;;  %v10205_v10 = vpop.f32.mrf.mxu1 }
 0x733   : > { %v10016_v43 = vpop.f32.mrf.mxu0 }
 0x734   : > { %10376 = vst [vmem:[%s15537_s26 + $0x1d0] sm:$0xff] %v10204_v23  ;;  %v10206_v1 = vadd.f32 %v10205_v10, %v10013_v17  ;;  %v10017_v39 = vadd.f32 %v10016_v43, %v16274_v58  ;;  %v10209_v24 = vpop.f32.mrf.mxu1 }
 0x735   : > { %v10018_v32 = vpop.f32.mrf.mxu0 }
 0x736   : > { %10377 = vst [vmem:[%s15537_s26 + $0x1d8] sm:$0xff] %v10206_v1  ;;  %v10210_v8 = vadd.f32 %v10209_v24, %v10017_v39  ;;  %v10019_v48 = vadd.f32 %v10018_v32, %v16277_v36  ;;  %v10211_v28 = vpop.f32.mrf.mxu1 }
 0x737   : > { %v10020_v31 = vpop.f32.mrf.mxu0 }
 0x738   : > { %10382 = vst [vmem:[%s15537_s26 + $0x200] sm:$0xff] %v10210_v8  ;;  %v10212_v5 = vadd.f32 %v10211_v28, %v10019_v48  ;;  %v10021_v46 = vadd.f32 %v10020_v31, %v16280_v53  ;;  %v10213_v56 = vpop.f32.mrf.mxu1 }
 0x739   : > { %v10022_v49 = vpop.f32.mrf.mxu0 }
 0x73a   : > { %10383 = vst [vmem:[%s15537_s26 + $0x208] sm:$0xff] %v10212_v5  ;;  %v10214_v52 = vadd.f32 %v10213_v56, %v10021_v46  ;;  %v10023_v58 = vadd.f32 %v10022_v49, %v16284_v41  ;;  %v10215_v12 = vpop.f32.mrf.mxu1 }
 0x73b   : > { %v10026_v0 = vpop.f32.mrf.mxu0 }
 0x73c   : > { %10388 = vst [vmem:[%s15537_s26 + $0x230] sm:$0xff] %v10214_v52  ;;  %v10216_v11 = vadd.f32 %v10215_v12, %v10023_v58  ;;  %v10027_v36 = vadd.f32 %v10026_v0, %v16290_v60  ;;  %v10219_v22 = vpop.f32.mrf.mxu1 }
 0x73d   : > { %v10028_v63 = vpop.f32.mrf.mxu0 }
 0x73e   : > { %10389 = vst [vmem:[%s15537_s26 + $0x238] sm:$0xff] %v10216_v11  ;;  %v10220_v61 = vadd.f32 %v10219_v22, %v10027_v36  ;;  %v10029_v53 = vadd.f32 %v10028_v63, %v16293_v34  ;;  %v10221_v16 = vpop.f32.mrf.mxu1 }
 0x73f   : > { %v10030_v21 = vpop.f32.mrf.mxu0 }
 0x740   : > { %10394 = vst [vmem:[%s15537_s26 + $0x260] sm:$0xff] %v10220_v61  ;;  %v10222_v13 = vadd.f32 %v10221_v16, %v10029_v53  ;;  %v10031_v41 = vadd.f32 %v10030_v21, %v16296_v26  ;;  %v10223_v37 = vpop.f32.mrf.mxu1 }
 0x741   : > { %v10032_v29 = vpop.f32.mrf.mxu0 }
 0x742   : > { %10395 = vst [vmem:[%s15537_s26 + $0x268] sm:$0xff] %v10222_v13  ;;  %v10224_v27 = vadd.f32 %v10223_v37, %v10031_v41  ;;  %v10033_v60 = vadd.f32 %v10032_v29, %v16300_v62  ;;  %v10225_v20 = vpop.f32.mrf.mxu1 }
 0x743   : > { %v10036_v40 = vpop.f32.mrf.mxu0 }
 0x744   : > { %10400 = vst [vmem:[%s15537_s26 + $0x290] sm:$0xff] %v10224_v27  ;;  %v10226_v3 = vadd.f32 %v10225_v20, %v10033_v60  ;;  %v10037_v34 = vadd.f32 %v10036_v40, %v16304_v57  ;;  %v10229_v2 = vpop.f32.mrf.mxu1 }
 0x745   : > { %v10038_v33 = vpop.f32.mrf.mxu0 }
 0x746   : > { %10401 = vst [vmem:[%s15537_s26 + $0x298] sm:$0xff] %v10226_v3  ;;  %v10230_v23 = vadd.f32 %v10229_v2, %v10037_v34  ;;  %v10039_v26 = vadd.f32 %v10038_v33, %v16307_v44  ;;  %v10231_v17 = vpop.f32.mrf.mxu1 }
 0x747   : > { %v10040_v10 = vpop.f32.mrf.mxu0 }
 0x748   : > { %10406 = vst [vmem:[%s15537_s26 + $0x2c0] sm:$0xff] %v10230_v23  ;;  %v10232_v43 = vadd.f32 %v10231_v17, %v10039_v26  ;;  %v10041_v62 = vadd.f32 %v10040_v10, %v16310_v50  ;;  %v10233_v1 = vpop.f32.mrf.mxu1 }
 0x749   : > { %v10042_v39 = vpop.f32.mrf.mxu0 }
 0x74a   : > { %10407 = vst [vmem:[%s15537_s26 + $0x2c8] sm:$0xff] %v10232_v43  ;;  %v10234_v24 = vadd.f32 %v10233_v1, %v10041_v62  ;;  %v10043_v57 = vadd.f32 %v10042_v39, %v16313_v9  ;;  %v10235_v32 = vpop.f32.mrf.mxu1 }
 0x74b   : > { %v10046_v8 = vpop.f32.mrf.mxu0 }
 0x74c   : > { %10412 = vst [vmem:[%s15537_s26 + $0x2f0] sm:$0xff] %v10234_v24  ;;  %v10236_v48 = vadd.f32 %v10235_v32, %v10043_v57  ;;  %v10047_v44 = vadd.f32 %v10046_v8, %v16316_v15  ;;  %v10239_v28 = vpop.f32.mrf.mxu1 }
 0x74d   : > { %v10048_v31 = vpop.f32.mrf.mxu0 }
 0x74e   : > { %10413 = vst [vmem:[%s15537_s26 + $0x2f8] sm:$0xff] %v10236_v48  ;;  %v10240_v5 = vadd.f32 %v10239_v28, %v10047_v44  ;;  %v10049_v50 = vadd.f32 %v10048_v31, %v16319_v19  ;;  %v10241_v46 = vpop.f32.mrf.mxu1 }
 0x74f   : > { %v10050_v56 = vpop.f32.mrf.mxu0 }
 0x750   : > { %10418 = vst [vmem:[%s15537_s26 + $0x320] sm:$0xff] %v10240_v5  ;;  %v10242_v49 = vadd.f32 %v10241_v46, %v10049_v50  ;;  %v10051_v9 = vadd.f32 %v10050_v56, %v16322_v45  ;;  %v10243_v52 = vpop.f32.mrf.mxu1 }
 0x751   : > { %v10052_v58 = vpop.f32.mrf.mxu0 }
 0x752   : > { %10419 = vst [vmem:[%s15537_s26 + $0x328] sm:$0xff] %v10242_v49  ;;  %v10244_v12 = vadd.f32 %v10243_v52, %v10051_v9  ;;  %v10053_v15 = vadd.f32 %v10052_v58, %v16325_v6  ;;  %v10245_v0 = vpop.f32.mrf.mxu1 }
 0x753   : > { %v10056_v11 = vpop.f32.mrf.mxu0 }
 0x754   : > { %10424 = vst [vmem:[%s15537_s26 + $0x350] sm:$0xff] %v10244_v12  ;;  %v10246_v36 = vadd.f32 %v10245_v0, %v10053_v15  ;;  %v10057_v19 = vadd.f32 %v10056_v11, %v16328_v4  ;;  %v10249_v22 = vpop.f32.mrf.mxu1  ;;  %v17683_v12 = vld [vmem:[#allocation89_spill] sm:$0xff] }
 0x755   : > { %v10058_v63 = vpop.f32.mrf.mxu0 }
 0x756   : > { %10425 = vst [vmem:[%s15537_s26 + $0x358] sm:$0xff] %v10246_v36  ;;  %v10250_v61 = vadd.f32 %v10249_v22, %v10057_v19  ;;  %v10059_v45 = vadd.f32 %v10058_v63, %v16331_v18  ;;  %v10251_v53 = vpop.f32.mrf.mxu1  ;;  %v17684_v19 = vld [vmem:[#allocation61_spill] sm:$0xff] }
 0x757   : > { %v10060_v16 = vpop.f32.mrf.mxu0 }
 0x758   : > { %10430 = vst [vmem:[%s15537_s26 + $0x380] sm:$0xff] %v10250_v61  ;;  %v10252_v21 = vadd.f32 %v10251_v53, %v10059_v45  ;;  %v10061_v6 = vadd.f32 %v10060_v16, %v16334_v7  ;;  %v10253_v13 = vpop.f32.mrf.mxu1  ;;  %v17685_v53 = vld [vmem:[#allocation62_spill] sm:$0xff] }
 0x759   : > { %v10062_v41 = vpop.f32.mrf.mxu0 }
 0x75a   : > { %10431 = vst [vmem:[%s15537_s26 + $0x388] sm:$0xff] %v10252_v21  ;;  %v10254_v37 = vadd.f32 %v10253_v13, %v10061_v6  ;;  %v10063_v4 = vadd.f32 %v10062_v41, %v16337_v38  ;;  %v10255_v29 = vpop.f32.mrf.mxu1  ;;  %v17686_v41 = vld [vmem:[#allocation60_spill] sm:$0xff] }
 0x75b   : > { %v10066_v27 = vpop.f32.mrf.mxu0 }
 0x75c   : > { %10436 = vst [vmem:[%s15537_s26 + $0x3b0] sm:$0xff] %v10254_v37  ;;  %v10256_v60 = vadd.f32 %v10255_v29, %v10063_v4  ;;  %v10067_v18 = vadd.f32 %v10066_v27, %v16340_v59  ;;  %v10259_v20 = vpop.f32.mrf.mxu1 }
 0x75d   : > { %v10068_v40 = vpop.f32.mrf.mxu0 }
 0x75e   : > { %10437 = vst [vmem:[%s15537_s26 + $0x3b8] sm:$0xff] %v10256_v60  ;;  %v10260_v3 = vadd.f32 %v10259_v20, %v10067_v18  ;;  %v10069_v7 = vadd.f32 %v10068_v40, %v16343_v47  ;;  %v10261_v34 = vpop.f32.mrf.mxu1  ;;  %v17687_v60 = vld [vmem:[#allocation91_spill] sm:$0xff] }
 0x75f   : > { %v10070_v2 = vpop.f32.mrf.mxu0 }
 0x760   : > { %10442 = vst [vmem:[%s15537_s26 + $0x3e0] sm:$0xff] %v10260_v3  ;;  %v10262_v33 = vadd.f32 %v10261_v34, %v10069_v7  ;;  %v10071_v38 = vadd.f32 %v10070_v2, %v16346_v42  ;;  %v10263_v23 = vpop.f32.mrf.mxu1  ;;  %v17688_v7 = vld [vmem:[#allocation64_spill] sm:$0xff] }
 0x761   : > { %v10072_v26 = vpop.f32.mrf.mxu0 }
 0x762   : > { %10443 = vst [vmem:[%s15537_s26 + $0x3e8] sm:$0xff] %v10262_v33  ;;  %v10264_v17 = vadd.f32 %v10263_v23, %v10071_v38  ;;  %v10073_v59 = vadd.f32 %v10072_v26, %v16349_v35  ;;  %v10265_v10 = vpop.f32.mrf.mxu1  ;;  %v17680_v35 = vld [vmem:[#allocation59_spill] sm:$0xff]  ;;  %v17689_v23 = vld [vmem:[#allocation65_spill] sm:$0xff] }
 0x763   : > { %v10076_v43 = vpop.f32.mrf.mxu0 }
 0x764   : > { %10448 = vst [vmem:[%s15537_s26 + $0x410] sm:$0xff] %v10264_v17  ;;  %v10266_v62 = vadd.f32 %v10265_v10, %v10073_v59  ;;  %v10077_v47 = vadd.f32 %v10076_v43, %v16352_v14  ;;  %v10269_v1 = vpop.f32.mrf.mxu1  ;;  %v17681_v14 = vld [vmem:[#allocation90_spill] sm:$0xff]  ;;  %v17690_v43 = vld [vmem:[#allocation63_spill] sm:$0xff] }
 0x765   : > { %v10078_v39 = vpop.f32.mrf.mxu0 }
 0x766   : > { %10449 = vst [vmem:[%s15537_s26 + $0x418] sm:$0xff] %v10266_v62  ;;  %v10270_v24 = vadd.f32 %v10269_v1, %v10077_v47  ;;  %v10079_v42 = vadd.f32 %v10078_v39, %v16355_v25  ;;  %v10271_v57 = vpop.f32.mrf.mxu1  ;;  %v17682_v25 = vld [vmem:[#allocation58_spill] sm:$0xff] }
 0x767   : > { %v10080_v32 = vpop.f32.mrf.mxu0 }
 0x768   : > { %10454 = vst [vmem:[%s15537_s26 + $0x440] sm:$0xff] %v10270_v24  ;;  %v10272_v8 = vadd.f32 %v10271_v57, %v10079_v42  ;;  %v10081_v48 = vadd.f32 %v10080_v32, %v17680_v35  ;;  %v10273_v44 = vpop.f32.mrf.mxu1  ;;  %v17691_v24 = vld [vmem:[#allocation92_spill] sm:$0xff]  ;;  %v17692_v35 = vld [vmem:[#allocation67_spill] sm:$0xff] }
 0x769   : > { %v10082_v28 = vpop.f32.mrf.mxu0 }
 0x76a   : > { %10455 = vst [vmem:[%s15537_s26 + $0x448] sm:$0xff] %v10272_v8  ;;  %v10274_v31 = vadd.f32 %v10273_v44, %v10081_v48  ;;  %v10083_v5 = vadd.f32 %v10082_v28, %v17681_v14  ;;  %v10275_v50 = vpop.f32.mrf.mxu1 }
 0x76b   : > { %v10086_v46 = vpop.f32.mrf.mxu0 }
 0x76c   : > { %10460 = vst [vmem:[%s15537_s26 + $0x470] sm:$0xff] %v10274_v31  ;;  %v10276_v56 = vadd.f32 %v10275_v50, %v10083_v5  ;;  %v10087_v49 = vadd.f32 %v10086_v46, %v17682_v25  ;;  %v10279_v9 = vpop.f32.mrf.mxu1 }
 0x76d   : > { %v10088_v52 = vpop.f32.mrf.mxu0 }
 0x76e   : > { %10461 = vst [vmem:[%s15537_s26 + $0x478] sm:$0xff] %v10276_v56  ;;  %v10280_v58 = vadd.f32 %v10279_v9, %v10087_v49  ;;  %v10089_v15 = vadd.f32 %v10088_v52, %v17683_v12  ;;  %v10281_v0 = vpop.f32.mrf.mxu1  ;;  %v17693_v52 = vld [vmem:[#allocation69_spill] sm:$0xff] }
 0x76f   : > { %v10090_v11 = vpop.f32.mrf.mxu0 }
 0x770   : > { %10466 = vst [vmem:[%s15537_s26 + $0x4a0] sm:$0xff] %v10280_v58  ;;  %v10282_v36 = vadd.f32 %v10281_v0, %v10089_v15  ;;  %v10091_v22 = vadd.f32 %v10090_v11, %v17684_v19  ;;  %v10283_v63 = vpop.f32.mrf.mxu1 }
 0x771   : > { %v10092_v61 = vpop.f32.mrf.mxu0 }
 0x772   : > { %10467 = vst [vmem:[%s15537_s26 + $0x4a8] sm:$0xff] %v10282_v36  ;;  %v10284_v45 = vadd.f32 %v10283_v63, %v10091_v22  ;;  %v10093_v16 = vadd.f32 %v10092_v61, %v17685_v53  ;;  %v10285_v21 = vpop.f32.mrf.mxu1 }
 0x773   : > { %v10096_v6 = vpop.f32.mrf.mxu0 }
 0x774   : > { %10472 = vst [vmem:[%s15537_s26 + $0x4d0] sm:$0xff] %v10284_v45  ;;  %v10286_v13 = vadd.f32 %v10285_v21, %v10093_v16  ;;  %v10097_v37 = vadd.f32 %v10096_v6, %v17686_v41  ;;  %v10289_v4 = vpop.f32.mrf.mxu1 }
 0x775   : > { %v10098_v29 = vpop.f32.mrf.mxu0 }
 0x776   : > { %10473 = vst [vmem:[%s15537_s26 + $0x4d8] sm:$0xff] %v10286_v13  ;;  %v10290_v27 = vadd.f32 %v10289_v4, %v10097_v37  ;;  %v10099_v18 = vadd.f32 %v10098_v29, %v17687_v60  ;;  %v10291_v20 = vpop.f32.mrf.mxu1 }
 0x777   : > { %v10100_v40 = vpop.f32.mrf.mxu0 }
 0x778   : > { %10478 = vst [vmem:[%s15537_s26 + $0x500] sm:$0xff] %v10290_v27  ;;  %v10292_v3 = vadd.f32 %v10291_v20, %v10099_v18  ;;  %v10101_v34 = vadd.f32 %v10100_v40, %v17688_v7  ;;  %v10293_v2 = vpop.f32.mrf.mxu1 }
 0x779   : > { %v10102_v33 = vpop.f32.mrf.mxu0 }
 0x77a   : > { %10479 = vst [vmem:[%s15537_s26 + $0x508] sm:$0xff] %v10292_v3  ;;  %v10294_v38 = vadd.f32 %v10293_v2, %v10101_v34  ;;  %v10103_v26 = vadd.f32 %v10102_v33, %v17689_v23  ;;  %v10295_v17 = vpop.f32.mrf.mxu1 }
 0x77b   : > { %v10106_v59 = vpop.f32.mrf.mxu0 }
 0x77c   : > { %10484 = vst [vmem:[%s15537_s26 + $0x530] sm:$0xff] %v10294_v38  ;;  %v10296_v10 = vadd.f32 %v10295_v17, %v10103_v26  ;;  %v10107_v62 = vadd.f32 %v10106_v59, %v17690_v43  ;;  %v10299_v47 = vpop.f32.mrf.mxu1 }
 0x77d   : > { %v10108_v1 = vpop.f32.mrf.mxu0 }
 0x77e   : > { %10485 = vst [vmem:[%s15537_s26 + $0x538] sm:$0xff] %v10296_v10  ;;  %v10300_v39 = vadd.f32 %v10299_v47, %v10107_v62  ;;  %v10109_v42 = vadd.f32 %v10108_v1, %v17691_v24  ;;  %v10301_v57 = vpop.f32.mrf.mxu1 }
 0x77f   : > { %v10110_v32 = vpop.f32.mrf.mxu0 }
 0x780   : > { %10490 = vst [vmem:[%s15537_s26 + $0x560] sm:$0xff] %v10300_v39  ;;  %v10302_v8 = vadd.f32 %v10301_v57, %v10109_v42  ;;  %v10111_v48 = vadd.f32 %v10110_v32, %v17692_v35  ;;  %v10303_v44 = vpop.f32.mrf.mxu1 }
 0x781   : > { %v10112_v28 = vpop.f32.mrf.mxu0 }
 0x782   : > { %10491 = vst [vmem:[%s15537_s26 + $0x568] sm:$0xff] %v10302_v8  ;;  %v10304_v31 = vadd.f32 %v10303_v44, %v10111_v48  ;;  %v10113_v14 = vadd.f32 %v10112_v28, %v16397_v54  ;;  %v10305_v5 = vpop.f32.mrf.mxu1 }
 0x783   : > { %v10116_v50 = vpop.f32.mrf.mxu0 }
 0x784   : > { %10496 = vst [vmem:[%s15537_s26 + $0x590] sm:$0xff] %v10304_v31  ;;  %v10306_v46 = vadd.f32 %v10305_v5, %v10113_v14  ;;  %v10117_v56 = vadd.f32 %v10116_v50, %v16400_v30  ;;  %v10309_v25 = vpop.f32.mrf.mxu1 }
 0x785   : > { %v10118_v49 = vpop.f32.mrf.mxu0 }
 0x786   : > { %10497 = vst [vmem:[%s15537_s26 + $0x598] sm:$0xff] %v10306_v46  ;;  %v10310_v9 = vadd.f32 %v10309_v25, %v10117_v56  ;;  %v10119_v58 = vadd.f32 %v10118_v49, %v17693_v52  ;;  %v10311_v12 = vpop.f32.mrf.mxu1 }
 0x787   : > { %v10120_v15 = vpop.f32.mrf.mxu0 }
 0x788   : > { %10502 = vst [vmem:[%s15537_s26 + $0x5c0] sm:$0xff] %v10310_v9  ;;  %v10312_v54 = vadd.f32 %v10311_v12, %v10119_v58  ;;  %v10121_v0 = vadd.f32 %v10120_v15, %v16406_v55  ;;  %v10313_v11 = vpop.f32.mrf.mxu1 }
 0x789   : > { %v10122_v30 = vpop.f32.mrf.mxu0 }
 0x78a   : > { %10503 = vst [vmem:[%s15537_s26 + $0x5c8] sm:$0xff] %v10312_v54  ;;  %v10314_v36 = vadd.f32 %v10313_v11, %v10121_v0  ;;  %v10123_v19 = vadd.f32 %v10122_v30, %v16409_v51  ;;  %v10315_v22 = vpop.f32.mrf.mxu1 }
 0x78c   : > { %10508 = vst [vmem:[%s15537_s26 + $0x5f0] sm:$0xff] %v10314_v36  ;;  %v10316_v55 = vadd.f32 %v10315_v22, %v10123_v19 }
 0x78e   : > { %10509 = vst [vmem:[%s15537_s26 + $0x5f8] sm:$0xff] %v10316_v55 }
 0x78f   : > { %12728 = shalt.err (!%p12725_p5)
}
 0x790   : > { %s12729_s13 = scalar_lea.hbm %s16542_s10, 24576  ;;  %s12733_s6 = scalar_lea.hbm %s16594_s5, 49152 }
 0x791   : > { %p12730_p0 = scmp.ne.s32.totalorder %s16542_s10, %s12729_s13  ;;  %p12734_p10 = scmp.lt.s32.totalorder %s16542_s10, %s16594_s5 }
 0x792   : > { %p12735_p1 = scmp.lt.s32.totalorder %s12733_s6, %s12729_s13 }
 0x793   : > { %p12731_p7 = pnand %p12730_p0, %p17694_p8 }
 0x794   : > { %p12736_p2 = por %p12735_p1, %p12734_p10 }
 0x795   : > { %p12732_p11 = pneg %p12731_p7 }
 0x797   : > { %p12737_p4 = pnand %p12736_p2, %p12732_p11 }
 0x799   : > { %12740 = shalt.err (!%p12737_p4)
}
 0x79a   : > { %s12799_s14 = smov 768   ;;  %s12800_s7 = smov 48  }
 0x79b   : > { %11543 = dma.vmem_to_hbm [thread:$0]  (%p17694_p8), %s16544_s28, 24576, %s16542_s10, %s10511_s22, %s12799_s14, %s12799_s14, %s12800_s7  }
 0x79c PF: > { %s10540_s9 = sand.u32 1, %s12775_s18   ;;  %p17695_p12 = scmp.ne.s32.totalorder %s16792_s25, 0 }
 0x79d   : > { %p17696_p6 = scmp.ge.s32.totalorder %s12787_s21, 2  ;;  %s10541_s17 = scalar_lea.sflag [#allocation4], %s10540_s9 }
 0x79f   : > { %p11563_p3 = pnand %p17696_p6, %p17695_p12 }
 0x7a1   : > { %p11564_p9 = pneg %p11563_p3 }
 0x7a3   : > { %12770 = dma.done.wait (%p11564_p9), %s10541_s17, 24576  }
 0x7a4   : > { %12772 = vsyncadd (%p11564_p9), %s10541_s17, 4294942720  ;;  %p20_p13 = scmp.ge.s32.totalorder %s12922_s11, 4   ;;  %s17697_s18 = smov %s12779_s19 }
 0x7a5   : > { %s17698_s19 = smov %s12783_s20  ;;  %s17699_s20 = smov %s12931_s15 }
 0x7a6   : > { %s17700_s21 = smov %s12922_s11  ;;  %22 = sbr.rel (!%p20_p13) target bundleno = 7 (0x7), region = 101 }
 0x7ab   :  { %10546 = vsyncpa [#allocation3], 1 }
 0x7ac   :  { %10548 = vsyncpa [#allocation3 + $0x1], 1 }
 0x7ad   :  { %10549 = vsyncpa [#allocation6], 1 }
 0x7ae   :  { %10550 = vsyncpa [#allocation9], 1 }
 0x7af   :  { %10551 = vsyncpa [#allocation4], 1 }
 0x7b0   :  { %10553 = vsyncpa [#allocation4 + $0x1], 1 }

</bundles_post_ra>
